<compile_context>
chip_gen: v5e
topology: v5e:2x2
jax: 0.10.0
libtpu: 0.0.40
codegen_flags: <defaults>
</compile_context>

<pallas_src>
import functools
import math

import jax
import jax.numpy as jnp
from jax.experimental import pallas as pl
from jax.experimental.pallas import tpu as pltpu


_INV_SQRT2 = 1.0 / math.sqrt(2.0)


def _residual_kernel(x_ref, w_ref, bias_ref, scale_ref, shift_ref, o_ref, xpad_s,
                     *, approximate_gelu=False):
    # x_ref / o_ref : (1, H, W, TC)  NHWC tile, channels on the 128-lane axis
    # w_ref         : (K, K, TC)
    # bias/scale/shift : (1, TC)
    # xpad_s        : (H + 2p, lp + W + p, TC) VMEM scratch, interior starts at
    #                 sublane-aligned column lp = round_up(p, 8).
    _, H, W, C = x_ref.shape
    K = w_ref.shape[0]
    p = K // 2
    Wp = xpad_s.shape[1]
    lp = Wp - W - p            # aligned left pad
    base = lp - p              # column in scratch corresponding to padded col 0

    # Zero only the halo (not the whole scratch), then copy the interior.
    if p > 0:
        xpad_s[0:p, :, :] = jnp.zeros((p, Wp, C), xpad_s.dtype)
        xpad_s[p + H:p + H + p, :, :] = jnp.zeros((p, Wp, C), xpad_s.dtype)
        xpad_s[p:p + H, base:lp, :] = jnp.zeros((H, p, C), xpad_s.dtype)
        xpad_s[p:p + H, lp + W:lp + W + p, :] = jnp.zeros((H, p, C), xpad_s.dtype)
    xpad_s[p:p + H, lp:lp + W, :] = x_ref[0]

    w = w_ref[...].astype(jnp.float32)            # (K, K, C)

    # Depthwise "same" conv: one W-direction (sublane) shift per dx, read
    # directly from the scratch ref; cheap H-direction (major axis) slices
    # inside; f32 accumulator.
    acc = jnp.zeros((H, W, C), jnp.float32)
    for dx in range(K):
        strip = xpad_s[:, base + dx:base + dx + W, :].astype(jnp.float32)
        for dy in range(K):
            acc = acc + strip[dy:dy + H] * w[dy, dx]

    acc = acc + bias_ref[0].astype(jnp.float32)

    if approximate_gelu:
        # tanh approximation (EUP slot) -- intentionally different numerics.
        c = math.sqrt(2.0 / math.pi)
        y = 0.5 * acc * (1.0 + jnp.tanh(c * (acc + 0.044715 * acc * acc * acc)))
    else:
        # Exact erf GELU, matching torch.nn.GELU() default.
        y = 0.5 * acc * (1.0 + jax.lax.erf(acc * _INV_SQRT2))

    # Folded BatchNorm (inference): y * gamma/sqrt(var+eps) + (beta - mean*scale)
    y = y * scale_ref[0].astype(jnp.float32) + shift_ref[0].astype(jnp.float32)

    # Residual add: fn(x) + x.  Load the residual late (short live range).
    o_ref[0] = (y + x_ref[0].astype(jnp.float32)).astype(o_ref.dtype)


def _round_up(v, m):
    return (v + m - 1) // m * m


def _tile_bytes(shape, itemsize):
    s = list(shape)
    s[-1] = _round_up(s[-1], 128)
    if len(s) >= 2:
        s[-2] = _round_up(max(s[-2], 1), 8)
    n = 1
    for d in s:
        n *= d
    return n * itemsize


def _vmem_estimate(H, W, TC, K, itemsize):
    p = K // 2
    lp = _round_up(p, 8)
    return (2 * _tile_bytes((1, H, W, TC), itemsize)            # input (double-buffered)
            + 2 * _tile_bytes((1, H, W, TC), itemsize)          # output (double-buffered)
            + 2 * _tile_bytes((K, K, TC), 4)                    # weights
            + 6 * _tile_bytes((1, TC), 4)                       # bias/scale/shift
            + _tile_bytes((H + 2 * p, lp + W + p, TC), itemsize)  # padded scratch
            + _tile_bytes((H, W, TC), 4)                        # f32 accumulator
            + _tile_bytes((H + 2 * p, W, TC), 4))               # per-dx f32 strip


def _vmem_cap_bytes():
    cap = None
    try:
        cap = getattr(pltpu.get_tpu_info(), "vmem_capacity_bytes", None)
    except Exception:
        cap = None
    if not cap:
        cap = 64 * 2 ** 20     # conservative default (v7x per-core VMEM)
    # Leave headroom for double buffers and compiler-internal scratch:
    # ~48 MiB on v7x (64 MiB physical), ~96 MiB on v5e/v6e (128 MiB physical).
    return int(cap * 3 // 4)


def _pick_channel_tile(Cpad, N, H, W, K, itemsize, vmem_cap):
    # Candidates: multiples of 128 dividing Cpad, capped at 512.
    cands = [tc for tc in range(128, min(Cpad, 512) + 1, 128) if Cpad % tc == 0]
    if not cands:
        cands = [128]
    cands.sort(reverse=True)
    tc = cands[-1]
    for c in cands:
        if 2 * _vmem_estimate(H, W, c, K, itemsize) <= vmem_cap:
            tc = c
            break
    # v7x megacore: prefer >= 2 parallel grid steps when possible.
    if N * (Cpad // tc) < 2:
        for c in cands:
            if Cpad // c >= 2:
                tc = c
                break
    return tc


def residual_convmixer_block_nhwc(x, w_kkc, bias, gamma, beta, run_mean, run_var,
                                  eps=1e-5, approximate_gelu=False):
    """x: (N, H, W, C) NHWC (production layout). Returns fn(x) + x in NHWC."""
    N, H, W, C = x.shape
    K = w_kkc.shape[0]
    assert K % 2 == 1, "padding='same' fold here assumes odd kernel_size"
    p = K // 2

    # Fold BatchNorm params (eval mode).
    # TODO(synk): training-mode BatchNorm (batch statistics) is not fused here.
    scale = (gamma / jnp.sqrt(run_var + eps)).astype(jnp.float32)
    shift = (beta - run_mean * scale).astype(jnp.float32)

    # Lane-dense channels: pad C to a multiple of 128 (real ConvMixer widths
    # 256..1536 already are; only tiny demo C hits this path).
    Cpad = max(128, _round_up(C, 128))
    if Cpad != C:
        cp = Cpad - C
        x_p = jnp.pad(x, ((0, 0), (0, 0), (0, 0), (0, cp)))
        w_p = jnp.pad(w_kkc, ((0, 0), (0, 0), (0, cp)))
        bias_p = jnp.pad(bias, (0, cp))
        scale_p = jnp.pad(scale, (0, cp))
        shift_p = jnp.pad(shift, (0, cp))
    else:
        x_p, w_p, bias_p, scale_p, shift_p = x, w_kkc, bias, scale, shift

    itemsize = jnp.dtype(x.dtype).itemsize
    vmem_cap = _vmem_cap_bytes()
    TC = _pick_channel_tile(Cpad, N, H, W, K, itemsize, vmem_cap)
    est = _vmem_estimate(H, W, TC, K, itemsize)
    vmem_limit = int(min(vmem_cap, max(32 * 2 ** 20, 2 * est)))

    kernel = functools.partial(_residual_kernel, approximate_gelu=approximate_gelu)

    out = pl.pallas_call(
        kernel,
        out_shape=jax.ShapeDtypeStruct((N, H, W, Cpad), x.dtype),
        grid_spec=pltpu.PrefetchScalarGridSpec(
            num_scalar_prefetch=0,
            # Channel tile outer, batch inner: weight/bias/scale/shift block
            # indices are constant along the inner axis -> stay resident.
            grid=(Cpad // TC, N),
            in_specs=[
                pl.BlockSpec((1, H, W, TC), lambda c, n: (n, 0, 0, c)),
                pl.BlockSpec((K, K, TC), lambda c, n: (0, 0, c)),
                pl.BlockSpec((1, TC), lambda c, n: (0, c)),
                pl.BlockSpec((1, TC), lambda c, n: (0, c)),
                pl.BlockSpec((1, TC), lambda c, n: (0, c)),
            ],
            out_specs=pl.BlockSpec((1, H, W, TC), lambda c, n: (n, 0, 0, c)),
            scratch_shapes=[
                # interior starts at sublane-aligned column round_up(p, 8)
                pltpu.VMEM((H + 2 * p, _round_up(p, 8) + W + p, TC), x.dtype),
            ],
        ),
        compiler_params=pltpu.CompilerParams(
            dimension_semantics=("parallel", "parallel"),
            vmem_limit_bytes=vmem_limit),
    )(x_p,
      w_p.astype(jnp.float32),
      bias_p.reshape(1, Cpad).astype(jnp.float32),
      scale_p.reshape(1, Cpad),
      shift_p.reshape(1, Cpad))

    if Cpad != C:
        out = out[..., :C]
    return out


def residual_convmixer_block_nchw(x_nchw, w_kkc, bias, gamma, beta, run_mean,
                                  run_var, eps=1e-5, approximate_gelu=False):
    # Convenience wrapper for the PyTorch NCHW calling convention only.
    # In a real ConvMixer keep activations NHWC end-to-end (no transposes).
    x = jnp.transpose(x_nchw, (0, 2, 3, 1))
    out = residual_convmixer_block_nhwc(x, w_kkc, bias, gamma, beta,
                                        run_mean, run_var, eps, approximate_gelu)
    return jnp.transpose(out, (0, 3, 1, 2))


def _reference_nhwc(x, w_kkc, bias, gamma, beta, run_mean, run_var, eps=1e-5):
    # Pure-JAX reference matching PyTorch semantics (eval-mode BN, erf GELU).
    C = x.shape[-1]
    w_hwio = w_kkc[:, :, None, :]                 # (K, K, 1, C) depthwise
    y = jax.lax.conv_general_dilated(
        x, w_hwio, window_strides=(1, 1), padding="SAME",
        feature_group_count=C,
        dimension_numbers=("NHWC", "HWIO", "NHWC"))
    y = y + bias
    y = 0.5 * y * (1.0 + jax.lax.erf(y * _INV_SQRT2))
    scale = gamma / jnp.sqrt(run_var + eps)
    shift = beta - run_mean * scale
    return y * scale + shift + x


if __name__ == "__main__":
    key = jax.random.PRNGKey(0)
    kx, kw, kb, kg, kbt, km, kv = jax.random.split(key, 7)

    N, H, W, C = 2, 16, 16, 4
    K = 5                                          # ConvMixer-style kernel_size

    x = jax.random.normal(kx, (N, H, W, C), jnp.float32)           # NHWC
    w = jax.random.normal(kw, (K, K, C), jnp.float32) * 0.1        # depthwise weight
    bias = jax.random.normal(kb, (C,), jnp.float32) * 0.1
    gamma = 1.0 + 0.1 * jax.random.normal(kg, (C,), jnp.float32)
    beta = 0.1 * jax.random.normal(kbt, (C,), jnp.float32)
    run_mean = 0.1 * jax.random.normal(km, (C,), jnp.float32)
    run_var = jnp.abs(1.0 + 0.1 * jax.random.normal(kv, (C,), jnp.float32))

    # Production (NHWC) path.
    out = residual_convmixer_block_nhwc(x, w, bias, gamma, beta, run_mean, run_var)
    out = jax.block_until_ready(out)

    ref = _reference_nhwc(x, w, bias, gamma, beta, run_mean, run_var)
    assert out.shape == x.shape and out.dtype == x.dtype
    assert jnp.allclose(out, ref, atol=1e-4, rtol=1e-4), \
        float(jnp.max(jnp.abs(out - ref)))

    # PyTorch NCHW calling-convention compatibility check (same kernel inside).
    x_nchw = jnp.transpose(x, (0, 3, 1, 2))
    out_nchw = jax.block_until_ready(
        residual_convmixer_block_nchw(x_nchw, w, bias, gamma, beta,
                                      run_mean, run_var))
    assert jnp.allclose(out_nchw, jnp.transpose(ref, (0, 3, 1, 2)),
                        atol=1e-4, rtol=1e-4)

    print("KERNEL_OK")
</pallas_src>

<mosaic_0001>
module attributes {stable_mosaic.version = 11 : i64} {
  func.func @_residual_kernel(%arg0: i32, %arg1: i32, %arg2: memref<1x16x16x128xf32, #tpu.memory_space<vmem>>, %arg3: memref<5x5x128xf32, #tpu.memory_space<vmem>>, %arg4: memref<1x128xf32, #tpu.memory_space<vmem>>, %arg5: memref<1x128xf32, #tpu.memory_space<vmem>>, %arg6: memref<1x128xf32, #tpu.memory_space<vmem>>, %arg7: memref<1x16x16x128xf32, #tpu.memory_space<vmem>>, %arg8: memref<20x26x128xf32, #tpu.memory_space<vmem>>) attributes {dimension_semantics = [#tpu.dimension_semantics<parallel>, #tpu.dimension_semantics<parallel>], iteration_bounds = array<i64: 1, 2>, scalar_prefetch = 0 : i64, scratch_operands = 1 : i64, tpu.core_type = #tpu.core_type<tc>, window_params = [{transform_indices = @transform_0, window_bounds = array<i64: 1, 16, 16, 128>}, {transform_indices = @transform_1, window_bounds = array<i64: 5, 5, 128>}, {transform_indices = @transform_2, window_bounds = array<i64: 1, 128>}, {transform_indices = @transform_3, window_bounds = array<i64: 1, 128>}, {transform_indices = @transform_4, window_bounds = array<i64: 1, 128>}, {transform_indices = @transform_5, window_bounds = array<i64: 1, 16, 16, 128>}]} {
    %cst = arith.constant 0.000000e+00 : f32
    %0 = vector.broadcast %cst : f32 to vector<2x26x128xf32>
    %c0 = arith.constant 0 : index
    %c0_0 = arith.constant 0 : index
    %c0_1 = arith.constant 0 : index
    %1 = vector.load %arg8[%c0, %c0_0, %c0_1] : memref<20x26x128xf32, #tpu.memory_space<vmem>>, vector<2x26x128xf32>
    tpu.vector_store %arg8[%c0, %c0_0, %c0_1], %0 {strides = array<i32>} : memref<20x26x128xf32, #tpu.memory_space<vmem>>, vector<2x26x128xf32>,
    %cst_2 = arith.constant 0.000000e+00 : f32
    %2 = vector.broadcast %cst_2 : f32 to vector<2x26x128xf32>
    %c18 = arith.constant 18 : index
    %c0_3 = arith.constant 0 : index
    %c0_4 = arith.constant 0 : index
    %3 = vector.load %arg8[%c18, %c0_3, %c0_4] : memref<20x26x128xf32, #tpu.memory_space<vmem>>, vector<2x26x128xf32>
    tpu.vector_store %arg8[%c18, %c0_3, %c0_4], %2 {strides = array<i32>} : memref<20x26x128xf32, #tpu.memory_space<vmem>>, vector<2x26x128xf32>,
    %cst_5 = arith.constant 0.000000e+00 : f32
    %4 = vector.broadcast %cst_5 : f32 to vector<16x2x128xf32>
    %c2 = arith.constant 2 : index
    %c6 = arith.constant 6 : index
    %c0_6 = arith.constant 0 : index
    %5 = vector.load %arg8[%c2, %c6, %c0_6] : memref<20x26x128xf32, #tpu.memory_space<vmem>>, vector<16x2x128xf32>
    tpu.vector_store %arg8[%c2, %c6, %c0_6], %4 {strides = array<i32>} : memref<20x26x128xf32, #tpu.memory_space<vmem>>, vector<16x2x128xf32>,
    %cst_7 = arith.constant 0.000000e+00 : f32
    %6 = vector.broadcast %cst_7 : f32 to vector<16x2x128xf32>
    %c2_8 = arith.constant 2 : index
    %c24 = arith.constant 24 : index
    %c0_9 = arith.constant 0 : index
    %7 = vector.load %arg8[%c2_8, %c24, %c0_9] : memref<20x26x128xf32, #tpu.memory_space<vmem>>, vector<16x2x128xf32>
    tpu.vector_store %arg8[%c2_8, %c24, %c0_9], %6 {strides = array<i32>} : memref<20x26x128xf32, #tpu.memory_space<vmem>>, vector<16x2x128xf32>,
    %c0_10 = arith.constant 0 : index
    %c0_11 = arith.constant 0 : index
    %c0_12 = arith.constant 0 : index
    %c0_13 = arith.constant 0 : index
    %8 = vector.load %arg2[%c0_10, %c0_11, %c0_12, %c0_13] : memref<1x16x16x128xf32, #tpu.memory_space<vmem>>, vector<1x16x16x128xf32>
    %9 = vector.shape_cast %8 : vector<1x16x16x128xf32> to vector<16x16x128xf32>
    %c2_14 = arith.constant 2 : index
    %c8 = arith.constant 8 : index
    %c0_15 = arith.constant 0 : index
    %10 = vector.load %arg8[%c2_14, %c8, %c0_15] : memref<20x26x128xf32, #tpu.memory_space<vmem>>, vector<16x16x128xf32>
    tpu.vector_store %arg8[%c2_14, %c8, %c0_15], %9 {strides = array<i32>} : memref<20x26x128xf32, #tpu.memory_space<vmem>>, vector<16x16x128xf32>,
    %c0_16 = arith.constant 0 : index
    %c0_17 = arith.constant 0 : index
    %c0_18 = arith.constant 0 : index
    %11 = vector.load %arg3[%c0_16, %c0_17, %c0_18] : memref<5x5x128xf32, #tpu.memory_space<vmem>>, vector<5x5x128xf32>
    %cst_19 = arith.constant 0.000000e+00 : f32
    %12 = vector.broadcast %cst_19 : f32 to vector<16x16x128xf32>
    %c0_20 = arith.constant 0 : index
    %c6_21 = arith.constant 6 : index
    %c0_22 = arith.constant 0 : index
    %13 = vector.load %arg8[%c0_20, %c6_21, %c0_22] : memref<20x26x128xf32, #tpu.memory_space<vmem>>, vector<20x16x128xf32>
    %14 = vector.extract_strided_slice %13 {offsets = [0, 0, 0], sizes = [16, 16, 128], strides = [1, 1, 1]} : vector<20x16x128xf32> to vector<16x16x128xf32>
    %15 = vector.extract_strided_slice %11 {offsets = [0, 0, 0], sizes = [1, 1, 128], strides = [1, 1, 1]} : vector<5x5x128xf32> to vector<1x1x128xf32>
    %16 = vector.shape_cast %15 : vector<1x1x128xf32> to vector<128xf32>
    %17 = vector.shape_cast %16 : vector<128xf32> to vector<1x1x128xf32>
    %18 = vector.broadcast %17 : vector<1x1x128xf32> to vector<16x16x128xf32>
    %19 = arith.mulf %14, %18 : vector<16x16x128xf32>
    %20 = arith.addf %12, %19 : vector<16x16x128xf32>
    %21 = vector.extract_strided_slice %13 {offsets = [1, 0, 0], sizes = [16, 16, 128], strides = [1, 1, 1]} : vector<20x16x128xf32> to vector<16x16x128xf32>
    %22 = vector.extract_strided_slice %11 {offsets = [1, 0, 0], sizes = [1, 1, 128], strides = [1, 1, 1]} : vector<5x5x128xf32> to vector<1x1x128xf32>
    %23 = vector.shape_cast %22 : vector<1x1x128xf32> to vector<128xf32>
    %24 = vector.shape_cast %23 : vector<128xf32> to vector<1x1x128xf32>
    %25 = vector.broadcast %24 : vector<1x1x128xf32> to vector<16x16x128xf32>
    %26 = arith.mulf %21, %25 : vector<16x16x128xf32>
    %27 = arith.addf %20, %26 : vector<16x16x128xf32>
    %28 = vector.extract_strided_slice %13 {offsets = [2, 0, 0], sizes = [16, 16, 128], strides = [1, 1, 1]} : vector<20x16x128xf32> to vector<16x16x128xf32>
    %29 = vector.extract_strided_slice %11 {offsets = [2, 0, 0], sizes = [1, 1, 128], strides = [1, 1, 1]} : vector<5x5x128xf32> to vector<1x1x128xf32>
    %30 = vector.shape_cast %29 : vector<1x1x128xf32> to vector<128xf32>
    %31 = vector.shape_cast %30 : vector<128xf32> to vector<1x1x128xf32>
    %32 = vector.broadcast %31 : vector<1x1x128xf32> to vector<16x16x128xf32>
    %33 = arith.mulf %28, %32 : vector<16x16x128xf32>
    %34 = arith.addf %27, %33 : vector<16x16x128xf32>
    %35 = vector.extract_strided_slice %13 {offsets = [3, 0, 0], sizes = [16, 16, 128], strides = [1, 1, 1]} : vector<20x16x128xf32> to vector<16x16x128xf32>
    %36 = vector.extract_strided_slice %11 {offsets = [3, 0, 0], sizes = [1, 1, 128], strides = [1, 1, 1]} : vector<5x5x128xf32> to vector<1x1x128xf32>
    %37 = vector.shape_cast %36 : vector<1x1x128xf32> to vector<128xf32>
    %38 = vector.shape_cast %37 : vector<128xf32> to vector<1x1x128xf32>
    %39 = vector.broadcast %38 : vector<1x1x128xf32> to vector<16x16x128xf32>
    %40 = arith.mulf %35, %39 : vector<16x16x128xf32>
    %41 = arith.addf %34, %40 : vector<16x16x128xf32>
    %42 = vector.extract_strided_slice %13 {offsets = [4, 0, 0], sizes = [16, 16, 128], strides = [1, 1, 1]} : vector<20x16x128xf32> to vector<16x16x128xf32>
    %43 = vector.extract_strided_slice %11 {offsets = [4, 0, 0], sizes = [1, 1, 128], strides = [1, 1, 1]} : vector<5x5x128xf32> to vector<1x1x128xf32>
    %44 = vector.shape_cast %43 : vector<1x1x128xf32> to vector<128xf32>
    %45 = vector.shape_cast %44 : vector<128xf32> to vector<1x1x128xf32>
    %46 = vector.broadcast %45 : vector<1x1x128xf32> to vector<16x16x128xf32>
    %47 = arith.mulf %42, %46 : vector<16x16x128xf32>
    %48 = arith.addf %41, %47 : vector<16x16x128xf32>
    %c0_23 = arith.constant 0 : index
    %c7 = arith.constant 7 : index
    %c0_24 = arith.constant 0 : index
    %49 = vector.load %arg8[%c0_23, %c7, %c0_24] : memref<20x26x128xf32, #tpu.memory_space<vmem>>, vector<20x16x128xf32>
    %50 = vector.extract_strided_slice %49 {offsets = [0, 0, 0], sizes = [16, 16, 128], strides = [1, 1, 1]} : vector<20x16x128xf32> to vector<16x16x128xf32>
    %51 = vector.extract_strided_slice %11 {offsets = [0, 1, 0], sizes = [1, 1, 128], strides = [1, 1, 1]} : vector<5x5x128xf32> to vector<1x1x128xf32>
    %52 = vector.shape_cast %51 : vector<1x1x128xf32> to vector<128xf32>
    %53 = vector.shape_cast %52 : vector<128xf32> to vector<1x1x128xf32>
    %54 = vector.broadcast %53 : vector<1x1x128xf32> to vector<16x16x128xf32>
    %55 = arith.mulf %50, %54 : vector<16x16x128xf32>
    %56 = arith.addf %48, %55 : vector<16x16x128xf32>
    %57 = vector.extract_strided_slice %49 {offsets = [1, 0, 0], sizes = [16, 16, 128], strides = [1, 1, 1]} : vector<20x16x128xf32> to vector<16x16x128xf32>
    %58 = vector.extract_strided_slice %11 {offsets = [1, 1, 0], sizes = [1, 1, 128], strides = [1, 1, 1]} : vector<5x5x128xf32> to vector<1x1x128xf32>
    %59 = vector.shape_cast %58 : vector<1x1x128xf32> to vector<128xf32>
    %60 = vector.shape_cast %59 : vector<128xf32> to vector<1x1x128xf32>
    %61 = vector.broadcast %60 : vector<1x1x128xf32> to vector<16x16x128xf32>
    %62 = arith.mulf %57, %61 : vector<16x16x128xf32>
    %63 = arith.addf %56, %62 : vector<16x16x128xf32>
    %64 = vector.extract_strided_slice %49 {offsets = [2, 0, 0], sizes = [16, 16, 128], strides = [1, 1, 1]} : vector<20x16x128xf32> to vector<16x16x128xf32>
    %65 = vector.extract_strided_slice %11 {offsets = [2, 1, 0], sizes = [1, 1, 128], strides = [1, 1, 1]} : vector<5x5x128xf32> to vector<1x1x128xf32>
    %66 = vector.shape_cast %65 : vector<1x1x128xf32> to vector<128xf32>
    %67 = vector.shape_cast %66 : vector<128xf32> to vector<1x1x128xf32>
    %68 = vector.broadcast %67 : vector<1x1x128xf32> to vector<16x16x128xf32>
    %69 = arith.mulf %64, %68 : vector<16x16x128xf32>
    %70 = arith.addf %63, %69 : vector<16x16x128xf32>
    %71 = vector.extract_strided_slice %49 {offsets = [3, 0, 0], sizes = [16, 16, 128], strides = [1, 1, 1]} : vector<20x16x128xf32> to vector<16x16x128xf32>
    %72 = vector.extract_strided_slice %11 {offsets = [3, 1, 0], sizes = [1, 1, 128], strides = [1, 1, 1]} : vector<5x5x128xf32> to vector<1x1x128xf32>
    %73 = vector.shape_cast %72 : vector<1x1x128xf32> to vector<128xf32>
    %74 = vector.shape_cast %73 : vector<128xf32> to vector<1x1x128xf32>
    %75 = vector.broadcast %74 : vector<1x1x128xf32> to vector<16x16x128xf32>
    %76 = arith.mulf %71, %75 : vector<16x16x128xf32>
    %77 = arith.addf %70, %76 : vector<16x16x128xf32>
    %78 = vector.extract_strided_slice %49 {offsets = [4, 0, 0], sizes = [16, 16, 128], strides = [1, 1, 1]} : vector<20x16x128xf32> to vector<16x16x128xf32>
    %79 = vector.extract_strided_slice %11 {offsets = [4, 1, 0], sizes = [1, 1, 128], strides = [1, 1, 1]} : vector<5x5x128xf32> to vector<1x1x128xf32>
    %80 = vector.shape_cast %79 : vector<1x1x128xf32> to vector<128xf32>
    %81 = vector.shape_cast %80 : vector<128xf32> to vector<1x1x128xf32>
    %82 = vector.broadcast %81 : vector<1x1x128xf32> to vector<16x16x128xf32>
    %83 = arith.mulf %78, %82 : vector<16x16x128xf32>
    %84 = arith.addf %77, %83 : vector<16x16x128xf32>
    %c0_25 = arith.constant 0 : index
    %c8_26 = arith.constant 8 : index
    %c0_27 = arith.constant 0 : index
    %85 = vector.load %arg8[%c0_25, %c8_26, %c0_27] : memref<20x26x128xf32, #tpu.memory_space<vmem>>, vector<20x16x128xf32>
    %86 = vector.extract_strided_slice %85 {offsets = [0, 0, 0], sizes = [16, 16, 128], strides = [1, 1, 1]} : vector<20x16x128xf32> to vector<16x16x128xf32>
    %87 = vector.extract_strided_slice %11 {offsets = [0, 2, 0], sizes = [1, 1, 128], strides = [1, 1, 1]} : vector<5x5x128xf32> to vector<1x1x128xf32>
    %88 = vector.shape_cast %87 : vector<1x1x128xf32> to vector<128xf32>
    %89 = vector.shape_cast %88 : vector<128xf32> to vector<1x1x128xf32>
    %90 = vector.broadcast %89 : vector<1x1x128xf32> to vector<16x16x128xf32>
    %91 = arith.mulf %86, %90 : vector<16x16x128xf32>
    %92 = arith.addf %84, %91 : vector<16x16x128xf32>
    %93 = vector.extract_strided_slice %85 {offsets = [1, 0, 0], sizes = [16, 16, 128], strides = [1, 1, 1]} : vector<20x16x128xf32> to vector<16x16x128xf32>
    %94 = vector.extract_strided_slice %11 {offsets = [1, 2, 0], sizes = [1, 1, 128], strides = [1, 1, 1]} : vector<5x5x128xf32> to vector<1x1x128xf32>
    %95 = vector.shape_cast %94 : vector<1x1x128xf32> to vector<128xf32>
    %96 = vector.shape_cast %95 : vector<128xf32> to vector<1x1x128xf32>
    %97 = vector.broadcast %96 : vector<1x1x128xf32> to vector<16x16x128xf32>
    %98 = arith.mulf %93, %97 : vector<16x16x128xf32>
    %99 = arith.addf %92, %98 : vector<16x16x128xf32>
    %100 = vector.extract_strided_slice %85 {offsets = [2, 0, 0], sizes = [16, 16, 128], strides = [1, 1, 1]} : vector<20x16x128xf32> to vector<16x16x128xf32>
    %101 = vector.extract_strided_slice %11 {offsets = [2, 2, 0], sizes = [1, 1, 128], strides = [1, 1, 1]} : vector<5x5x128xf32> to vector<1x1x128xf32>
    %102 = vector.shape_cast %101 : vector<1x1x128xf32> to vector<128xf32>
    %103 = vector.shape_cast %102 : vector<128xf32> to vector<1x1x128xf32>
    %104 = vector.broadcast %103 : vector<1x1x128xf32> to vector<16x16x128xf32>
    %105 = arith.mulf %100, %104 : vector<16x16x128xf32>
    %106 = arith.addf %99, %105 : vector<16x16x128xf32>
    %107 = vector.extract_strided_slice %85 {offsets = [3, 0, 0], sizes = [16, 16, 128], strides = [1, 1, 1]} : vector<20x16x128xf32> to vector<16x16x128xf32>
    %108 = vector.extract_strided_slice %11 {offsets = [3, 2, 0], sizes = [1, 1, 128], strides = [1, 1, 1]} : vector<5x5x128xf32> to vector<1x1x128xf32>
    %109 = vector.shape_cast %108 : vector<1x1x128xf32> to vector<128xf32>
    %110 = vector.shape_cast %109 : vector<128xf32> to vector<1x1x128xf32>
    %111 = vector.broadcast %110 : vector<1x1x128xf32> to vector<16x16x128xf32>
    %112 = arith.mulf %107, %111 : vector<16x16x128xf32>
    %113 = arith.addf %106, %112 : vector<16x16x128xf32>
    %114 = vector.extract_strided_slice %85 {offsets = [4, 0, 0], sizes = [16, 16, 128], strides = [1, 1, 1]} : vector<20x16x128xf32> to vector<16x16x128xf32>
    %115 = vector.extract_strided_slice %11 {offsets = [4, 2, 0], sizes = [1, 1, 128], strides = [1, 1, 1]} : vector<5x5x128xf32> to vector<1x1x128xf32>
    %116 = vector.shape_cast %115 : vector<1x1x128xf32> to vector<128xf32>
    %117 = vector.shape_cast %116 : vector<128xf32> to vector<1x1x128xf32>
    %118 = vector.broadcast %117 : vector<1x1x128xf32> to vector<16x16x128xf32>
    %119 = arith.mulf %114, %118 : vector<16x16x128xf32>
    %120 = arith.addf %113, %119 : vector<16x16x128xf32>
    %c0_28 = arith.constant 0 : index
    %c9 = arith.constant 9 : index
    %c0_29 = arith.constant 0 : index
    %121 = vector.load %arg8[%c0_28, %c9, %c0_29] : memref<20x26x128xf32, #tpu.memory_space<vmem>>, vector<20x16x128xf32>
    %122 = vector.extract_strided_slice %121 {offsets = [0, 0, 0], sizes = [16, 16, 128], strides = [1, 1, 1]} : vector<20x16x128xf32> to vector<16x16x128xf32>
    %123 = vector.extract_strided_slice %11 {offsets = [0, 3, 0], sizes = [1, 1, 128], strides = [1, 1, 1]} : vector<5x5x128xf32> to vector<1x1x128xf32>
    %124 = vector.shape_cast %123 : vector<1x1x128xf32> to vector<128xf32>
    %125 = vector.shape_cast %124 : vector<128xf32> to vector<1x1x128xf32>
    %126 = vector.broadcast %125 : vector<1x1x128xf32> to vector<16x16x128xf32>
    %127 = arith.mulf %122, %126 : vector<16x16x128xf32>
    %128 = arith.addf %120, %127 : vector<16x16x128xf32>
    %129 = vector.extract_strided_slice %121 {offsets = [1, 0, 0], sizes = [16, 16, 128], strides = [1, 1, 1]} : vector<20x16x128xf32> to vector<16x16x128xf32>
    %130 = vector.extract_strided_slice %11 {offsets = [1, 3, 0], sizes = [1, 1, 128], strides = [1, 1, 1]} : vector<5x5x128xf32> to vector<1x1x128xf32>
    %131 = vector.shape_cast %130 : vector<1x1x128xf32> to vector<128xf32>
    %132 = vector.shape_cast %131 : vector<128xf32> to vector<1x1x128xf32>
    %133 = vector.broadcast %132 : vector<1x1x128xf32> to vector<16x16x128xf32>
    %134 = arith.mulf %129, %133 : vector<16x16x128xf32>
    %135 = arith.addf %128, %134 : vector<16x16x128xf32>
    %136 = vector.extract_strided_slice %121 {offsets = [2, 0, 0], sizes = [16, 16, 128], strides = [1, 1, 1]} : vector<20x16x128xf32> to vector<16x16x128xf32>
    %137 = vector.extract_strided_slice %11 {offsets = [2, 3, 0], sizes = [1, 1, 128], strides = [1, 1, 1]} : vector<5x5x128xf32> to vector<1x1x128xf32>
    %138 = vector.shape_cast %137 : vector<1x1x128xf32> to vector<128xf32>
    %139 = vector.shape_cast %138 : vector<128xf32> to vector<1x1x128xf32>
    %140 = vector.broadcast %139 : vector<1x1x128xf32> to vector<16x16x128xf32>
    %141 = arith.mulf %136, %140 : vector<16x16x128xf32>
    %142 = arith.addf %135, %141 : vector<16x16x128xf32>
    %143 = vector.extract_strided_slice %121 {offsets = [3, 0, 0], sizes = [16, 16, 128], strides = [1, 1, 1]} : vector<20x16x128xf32> to vector<16x16x128xf32>
    %144 = vector.extract_strided_slice %11 {offsets = [3, 3, 0], sizes = [1, 1, 128], strides = [1, 1, 1]} : vector<5x5x128xf32> to vector<1x1x128xf32>
    %145 = vector.shape_cast %144 : vector<1x1x128xf32> to vector<128xf32>
    %146 = vector.shape_cast %145 : vector<128xf32> to vector<1x1x128xf32>
    %147 = vector.broadcast %146 : vector<1x1x128xf32> to vector<16x16x128xf32>
    %148 = arith.mulf %143, %147 : vector<16x16x128xf32>
    %149 = arith.addf %142, %148 : vector<16x16x128xf32>
    %150 = vector.extract_strided_slice %121 {offsets = [4, 0, 0], sizes = [16, 16, 128], strides = [1, 1, 1]} : vector<20x16x128xf32> to vector<16x16x128xf32>
    %151 = vector.extract_strided_slice %11 {offsets = [4, 3, 0], sizes = [1, 1, 128], strides = [1, 1, 1]} : vector<5x5x128xf32> to vector<1x1x128xf32>
    %152 = vector.shape_cast %151 : vector<1x1x128xf32> to vector<128xf32>
    %153 = vector.shape_cast %152 : vector<128xf32> to vector<1x1x128xf32>
    %154 = vector.broadcast %153 : vector<1x1x128xf32> to vector<16x16x128xf32>
    %155 = arith.mulf %150, %154 : vector<16x16x128xf32>
    %156 = arith.addf %149, %155 : vector<16x16x128xf32>
    %c0_30 = arith.constant 0 : index
    %c10 = arith.constant 10 : index
    %c0_31 = arith.constant 0 : index
    %157 = vector.load %arg8[%c0_30, %c10, %c0_31] : memref<20x26x128xf32, #tpu.memory_space<vmem>>, vector<20x16x128xf32>
    %158 = vector.extract_strided_slice %157 {offsets = [0, 0, 0], sizes = [16, 16, 128], strides = [1, 1, 1]} : vector<20x16x128xf32> to vector<16x16x128xf32>
    %159 = vector.extract_strided_slice %11 {offsets = [0, 4, 0], sizes = [1, 1, 128], strides = [1, 1, 1]} : vector<5x5x128xf32> to vector<1x1x128xf32>
    %160 = vector.shape_cast %159 : vector<1x1x128xf32> to vector<128xf32>
    %161 = vector.shape_cast %160 : vector<128xf32> to vector<1x1x128xf32>
    %162 = vector.broadcast %161 : vector<1x1x128xf32> to vector<16x16x128xf32>
    %163 = arith.mulf %158, %162 : vector<16x16x128xf32>
    %164 = arith.addf %156, %163 : vector<16x16x128xf32>
    %165 = vector.extract_strided_slice %157 {offsets = [1, 0, 0], sizes = [16, 16, 128], strides = [1, 1, 1]} : vector<20x16x128xf32> to vector<16x16x128xf32>
    %166 = vector.extract_strided_slice %11 {offsets = [1, 4, 0], sizes = [1, 1, 128], strides = [1, 1, 1]} : vector<5x5x128xf32> to vector<1x1x128xf32>
    %167 = vector.shape_cast %166 : vector<1x1x128xf32> to vector<128xf32>
    %168 = vector.shape_cast %167 : vector<128xf32> to vector<1x1x128xf32>
    %169 = vector.broadcast %168 : vector<1x1x128xf32> to vector<16x16x128xf32>
    %170 = arith.mulf %165, %169 : vector<16x16x128xf32>
    %171 = arith.addf %164, %170 : vector<16x16x128xf32>
    %172 = vector.extract_strided_slice %157 {offsets = [2, 0, 0], sizes = [16, 16, 128], strides = [1, 1, 1]} : vector<20x16x128xf32> to vector<16x16x128xf32>
    %173 = vector.extract_strided_slice %11 {offsets = [2, 4, 0], sizes = [1, 1, 128], strides = [1, 1, 1]} : vector<5x5x128xf32> to vector<1x1x128xf32>
    %174 = vector.shape_cast %173 : vector<1x1x128xf32> to vector<128xf32>
    %175 = vector.shape_cast %174 : vector<128xf32> to vector<1x1x128xf32>
    %176 = vector.broadcast %175 : vector<1x1x128xf32> to vector<16x16x128xf32>
    %177 = arith.mulf %172, %176 : vector<16x16x128xf32>
    %178 = arith.addf %171, %177 : vector<16x16x128xf32>
    %179 = vector.extract_strided_slice %157 {offsets = [3, 0, 0], sizes = [16, 16, 128], strides = [1, 1, 1]} : vector<20x16x128xf32> to vector<16x16x128xf32>
    %180 = vector.extract_strided_slice %11 {offsets = [3, 4, 0], sizes = [1, 1, 128], strides = [1, 1, 1]} : vector<5x5x128xf32> to vector<1x1x128xf32>
    %181 = vector.shape_cast %180 : vector<1x1x128xf32> to vector<128xf32>
    %182 = vector.shape_cast %181 : vector<128xf32> to vector<1x1x128xf32>
    %183 = vector.broadcast %182 : vector<1x1x128xf32> to vector<16x16x128xf32>
    %184 = arith.mulf %179, %183 : vector<16x16x128xf32>
    %185 = arith.addf %178, %184 : vector<16x16x128xf32>
    %186 = vector.extract_strided_slice %157 {offsets = [4, 0, 0], sizes = [16, 16, 128], strides = [1, 1, 1]} : vector<20x16x128xf32> to vector<16x16x128xf32>
    %187 = vector.extract_strided_slice %11 {offsets = [4, 4, 0], sizes = [1, 1, 128], strides = [1, 1, 1]} : vector<5x5x128xf32> to vector<1x1x128xf32>
    %188 = vector.shape_cast %187 : vector<1x1x128xf32> to vector<128xf32>
    %189 = vector.shape_cast %188 : vector<128xf32> to vector<1x1x128xf32>
    %190 = vector.broadcast %189 : vector<1x1x128xf32> to vector<16x16x128xf32>
    %191 = arith.mulf %186, %190 : vector<16x16x128xf32>
    %192 = arith.addf %185, %191 : vector<16x16x128xf32>
    %c0_32 = arith.constant 0 : index
    %c0_33 = arith.constant 0 : index
    %193 = vector.load %arg4[%c0_32, %c0_33] : memref<1x128xf32, #tpu.memory_space<vmem>>, vector<1x128xf32>
    %194 = vector.shape_cast %193 : vector<1x128xf32> to vector<128xf32>
    %195 = vector.shape_cast %194 : vector<128xf32> to vector<1x1x128xf32>
    %196 = vector.broadcast %195 : vector<1x1x128xf32> to vector<16x16x128xf32>
    %197 = arith.addf %192, %196 : vector<16x16x128xf32>
    %cst_34 = arith.constant 5.000000e-01 : f32
    %198 = vector.broadcast %cst_34 : f32 to vector<16x16x128xf32>
    %199 = arith.mulf %198, %197 : vector<16x16x128xf32>
    %cst_35 = arith.constant 0.707106769 : f32
    %200 = vector.broadcast %cst_35 : f32 to vector<16x16x128xf32>
    %201 = arith.mulf %197, %200 : vector<16x16x128xf32>
    %202 = math.erf %201 : vector<16x16x128xf32>
    %cst_36 = arith.constant 1.000000e+00 : f32
    %203 = vector.broadcast %cst_36 : f32 to vector<16x16x128xf32>
    %204 = arith.addf %203, %202 : vector<16x16x128xf32>
    %205 = arith.mulf %199, %204 : vector<16x16x128xf32>
    %c0_37 = arith.constant 0 : index
    %c0_38 = arith.constant 0 : index
    %206 = vector.load %arg5[%c0_37, %c0_38] : memref<1x128xf32, #tpu.memory_space<vmem>>, vector<1x128xf32>
    %207 = vector.shape_cast %206 : vector<1x128xf32> to vector<128xf32>
    %208 = vector.shape_cast %207 : vector<128xf32> to vector<1x1x128xf32>
    %209 = vector.broadcast %208 : vector<1x1x128xf32> to vector<16x16x128xf32>
    %210 = arith.mulf %205, %209 : vector<16x16x128xf32>
    %c0_39 = arith.constant 0 : index
    %c0_40 = arith.constant 0 : index
    %211 = vector.load %arg6[%c0_39, %c0_40] : memref<1x128xf32, #tpu.memory_space<vmem>>, vector<1x128xf32>
    %212 = vector.shape_cast %211 : vector<1x128xf32> to vector<128xf32>
    %213 = vector.shape_cast %212 : vector<128xf32> to vector<1x1x128xf32>
    %214 = vector.broadcast %213 : vector<1x1x128xf32> to vector<16x16x128xf32>
    %215 = arith.addf %210, %214 : vector<16x16x128xf32>
    %c0_41 = arith.constant 0 : index
    %c0_42 = arith.constant 0 : index
    %c0_43 = arith.constant 0 : index
    %c0_44 = arith.constant 0 : index
    %216 = vector.load %arg2[%c0_41, %c0_42, %c0_43, %c0_44] : memref<1x16x16x128xf32, #tpu.memory_space<vmem>>, vector<1x16x16x128xf32>
    %217 = vector.shape_cast %216 : vector<1x16x16x128xf32> to vector<16x16x128xf32>
    %218 = arith.addf %215, %217 : vector<16x16x128xf32>
    %c0_45 = arith.constant 0 : index
    %c0_46 = arith.constant 0 : index
    %c0_47 = arith.constant 0 : index
    %c0_48 = arith.constant 0 : index
    %219 = vector.load %arg7[%c0_45, %c0_46, %c0_47, %c0_48] : memref<1x16x16x128xf32, #tpu.memory_space<vmem>>, vector<1x16x16x128xf32>
    %220 = vector.shape_cast %219 : vector<1x16x16x128xf32> to vector<16x16x128xf32>
    %221 = vector.shape_cast %218 : vector<16x16x128xf32> to vector<1x16x16x128xf32>
    tpu.vector_store %arg7[%c0_45, %c0_46, %c0_47, %c0_48], %221 {strides = array<i32>} : memref<1x16x16x128xf32, #tpu.memory_space<vmem>>, vector<1x16x16x128xf32>,
    return
  }
  func.func @transform_0(%arg0: i32, %arg1: i32) -> (i32, i32, i32, i32) {
    %c0_i32 = arith.constant 0 : i32
    %c0_i32_0 = arith.constant 0 : i32
    %c0_i32_1 = arith.constant 0 : i32
    return %arg1, %c0_i32, %c0_i32_0, %arg0 : i32, i32, i32, i32
  }
  func.func @transform_1(%arg0: i32, %arg1: i32) -> (i32, i32, i32) {
    %c0_i32 = arith.constant 0 : i32
    %c0_i32_0 = arith.constant 0 : i32
    %c0_i32_1 = arith.constant 0 : i32
    return %c0_i32, %c0_i32_0, %arg0 : i32, i32, i32
  }
  func.func @transform_2(%arg0: i32, %arg1: i32) -> (i32, i32) {
    %c0_i32 = arith.constant 0 : i32
    %c0_i32_0 = arith.constant 0 : i32
    return %c0_i32, %arg0 : i32, i32
  }
  func.func @transform_3(%arg0: i32, %arg1: i32) -> (i32, i32) {
    %c0_i32 = arith.constant 0 : i32
    %c0_i32_0 = arith.constant 0 : i32
    return %c0_i32, %arg0 : i32, i32
  }
  func.func @transform_4(%arg0: i32, %arg1: i32) -> (i32, i32) {
    %c0_i32 = arith.constant 0 : i32
    %c0_i32_0 = arith.constant 0 : i32
    return %c0_i32, %arg0 : i32, i32
  }
  func.func @transform_5(%arg0: i32, %arg1: i32) -> (i32, i32, i32, i32) {
    %c0_i32 = arith.constant 0 : i32
    %c0_i32_0 = arith.constant 0 : i32
    %c0_i32_1 = arith.constant 0 : i32
    return %arg1, %c0_i32, %c0_i32_0, %arg0 : i32, i32, i32, i32
  }
}

</mosaic_0001>

<bundles_post_ra>
// kernel: tpu_custom_call.1
= control target key start
LH: loop header
LB: loop body
LE: loop exit
PB: predicated region body
PF: predicated region fallthrough
CT: control target
= control target key end

     0   :  { %s8617_s0 = inlined_call_operand.hbm [shape: f32[2,16,16,128], index: 0, kind: input, shape index: {}]   ;;  %s8618_s1 = inlined_call_operand.hbm [shape: f32[5,5,128], index: 1, kind: input, shape index: {}]   ;;  %s8619_s2 = inlined_call_operand.vmem [shape: f32[1,128], index: 2, kind: input, shape index: {}]   ;;  %s8620_s3 = inlined_call_operand.vmem [shape: f32[1,128], index: 3, kind: input, shape index: {}]   ;;  %s8621_s4 = inlined_call_operand.vmem [shape: f32[1,128], index: 4, kind: input, shape index: {}]   ;;  %s8622_s5 = inlined_call_operand.hbm [shape: f32[2,16,16,128], index: 5, kind: output, shape index: {}]  }
   0x1   :  { %8684 = sst [smem:[#allocation169_spill]] %s8618_s1 }
   0x2   :  { %10 = vsyncpa [#allocation4], 0 }
   0x3   :  { %12 = vsyncpa [#allocation4 + $0x1], 0 }
   0x4   :  { %13 = vsyncpa [#allocation7], 0 }
   0x5   :  { %14 = vsyncpa [#allocation5], 0 }
   0x6   :  { %16 = vsyncpa [#allocation5 + $0x1], 0  ;;  %s4492_s18 = smov 0   ;;  %s4494_s19 = smov 0  }
   0x7   :  { %s4496_s20 = smov 0   ;;  %s4498_s21 = smov 0  }
   0x8   :  { %s4500_s22 = smov 0   ;;  %s4502_s23 = smov 0  }
   0x9 LB: > { %8685 = sst [smem:[#allocation12_spill]] %s4454_s23  ;;  %s4034_s24 = sadd.s32 4294967295, %s4454_s23   ;;  %s4454_s23 = sphi %s4502_s23, %s22_s23   ;;  %s4450_s22 = sphi %s4500_s22, %s9182_s22   ;;  %s4446_s21 = sphi %s4498_s21, %s9181_s21   ;;  %s4442_s20 = sphi %s4496_s20, %s9180_s20   ;;  %s4438_s19 = sphi %s4494_s19, %s9179_s19   ;;  %s4434_s18 = sphi %s4492_s18, %s9178_s18  }
   0xa   : > { %s4035_s25 = sadd.s32 4294967294, %s4454_s23   ;;  %p56_p0 = scmp.ne.s32.totalorder %s4438_s19, %s4434_s18 }
   0xb   : > { %p4526_p1 = scmp.eq.s32.totalorder %s4034_s24, 0  ;;  %p4530_p2 = scmp.eq.s32.totalorder %s4034_s24, 1 }
   0xc   : > { %p192_p3 = scmp.eq.s32.totalorder %s4035_s25, 1  ;;  %p4036_p5 = scmp.ge.s32.totalorder %s4454_s23, 1 }
   0xd   : > { %p4536_p4 = por %p4526_p1, %p56_p0  ;;  %p199_p7 = scmp.lt.s32.totalorder %s4454_s23, 3 }
   0xe   : > { %p4541_p6 = por %p192_p3, %p56_p0  ;;  %s8690_s1 = sld [smem:[#allocation169_spill]] }
   0xf   : > { %p4549_p8 = pnand %p4036_p5, %p199_p7  ;;  %s4456_s9 = smov [#allocation6]  }
  0x10   : > { %s214_s10 = sshll.u32 %s4456_s9, 4  ;;  %p4041_p11 = scmp.ge.s32.totalorder %s4454_s23, 2  ;;  %s215_s10 = int_to_ptr.vmem [resolvable:$true] %s214_s10 }
  0x11   : > { %p4096_p9 = pneg %p4549_p8  ;;  %s8623_s11 = smov 128  }
  0x12   : > { %s8624_s12 = smov 8   ;;  %s31_s13 = sadd.s32 1, %s4450_s22 }
  0x13   : > { %p4097_p10 = pnand %p4096_p9, %p4526_p1  ;;  %p32_p12 = scmp.ge.s32.totalorder %s31_s13, 2 }
  0x14   : > { %s212_s7 = sshll.u32 %s8690_s1, 4  ;;  %s43_s14 = sadd.s32 1, %s4442_s20  ;;  %s213_s7 = int_to_ptr.hbm [resolvable:$true] %s212_s7 }
  0x15   : > { %4099 = dma.hbm_to_vmem [thread:$0]  (!%p4097_p10), %s213_s7, 640, %s215_s10, [#allocation7], %s8623_s11, %s8623_s11, %s8624_s12  }
  0x16   : > { %p50_p13 = scmp.ne.s32.totalorder %s4442_s20, %s4438_s19  ;;  %p51_p0 = scmp.eq.s32.totalorder %s4454_s23, 0 }
  0x17   : > { %s9184_s13 = smov (%p32_p12, %s31_s13), 0  ;;  %p4109_p7 = scmp.lt.s32.totalorder %s4454_s23, 2 }
  0x18   : > { %8692 = sst [smem:[#allocation13_spill]] %s9184_s13  ;;  %p4568_p3 = por %p51_p0, %p50_p13 }
  0x19   : > { %p4574_p5 = por %p4530_p2, %p50_p13  ;;  %s38_s17 = ssub.s32 %s4450_s22, %s9184_s13 }
  0x1a   : > { %p41_p9 = scmp.eq.s32.totalorder %s38_s17, 0  ;;  %s246_s24 = sand.u32 1, %s4442_s20  }
  0x1b   : > { %s4042_s25 = sshll.u32 %s246_s24, 8  ;;  %s4086_s6 = sshll.u32 %s4450_s22, 8 }
  0x1c   : > { %s4583_s30 = scalar_select %p41_p9, %s4442_s20, %s43_s14  }
  0x1d   : > { %s256_s10 = scalar_lea.hbm %s8617_s0, %s4086_s6  ;;  %s250_s11 = scalar_lea.vmem [#allocation3], %s4042_s25 }
  0x1e   : > { %s259_s12 = sshll.u32 %s250_s11, 4  ;;  %s257_s27 = sshll.u32 %s256_s10, 4  ;;  %s260_s12 = int_to_ptr.vmem [resolvable:$true] %s259_s12  ;;  %s258_s27 = int_to_ptr.hbm [resolvable:$true] %s257_s27 }
  0x1f   : > { %p4101_p2 = pnand %p4109_p7, %p4568_p3  ;;  %s247_s1 = scalar_lea.sflag [#allocation4], %s246_s24 }
  0x20   : > { %s8695_s13 = smov 8   ;;  %s8696_s23 = smov 128  }
  0x21   : > { %4103 = dma.hbm_to_vmem [thread:$0]  (!%p4101_p2), %s258_s27, 4096, %s260_s12, %s247_s1, %s8696_s23, %s8696_s23, %s8695_s13  }
  0x22   : > { %271 = sbr.rel (%p4549_p8) target bundleno = 944 (0x3b0), region = 40 }
  0x27   : > { %s4597_s14 = sand.u32 1, %s4438_s19  }
  0x28   : > { %s4046_s11 = sshll.u32 %s4597_s14, 8  ;;  %s274_s17 = scalar_lea.sflag [#allocation4], %s4597_s14 }
  0x29   : > { %s4603_s15 = scalar_lea.vmem [#allocation3], %s4046_s11 }
  0x2a   : > { %4421 = dma.done.wait (%p4536_p4), %s274_s17, 4096  }
  0x2b   : > { %4423 = vsyncadd (%p4536_p4), %s274_s17, 4294963200 }
  0x2c   : > { %4425 = dma.done.wait (%p4526_p1), [#allocation7], 640  }
  0x2d   : > { %4427 = vsyncadd (%p4526_p1), [#allocation7], 4294966656  ;;  %v4459_v0 = vmov 0.0   ;;  %v442_v1 = vld [vmem:[#allocation6] sm:$0x1f]  ;;  %v379_v36 = vld [vmem:[%s4603_s15 + $0x8] sm:$0xff] }
  0x2e   : > { %328 = vst [vmem:[#allocation2] sm:$0xff] %v4459_v0  ;;  %v4653_v2 = vperm.slane %v442_v1, 0  ;;  %v443_v3 = vld [vmem:[#allocation6 + $0x8] sm:$0x1f]  ;;  %v4656_v6 = vperm.slane %v442_v1, 1  ;;  %v4660_v11 = vperm.slane %v442_v1, 2 }
  0x2f   : > { %329 = vst [vmem:[#allocation2 + $0x8] sm:$0xff] %v4459_v0  ;;  %v4662_v12 = vperm.slane %v443_v3, 0  ;;  %v4667_v18 = vperm.slane %v442_v1, 3  ;;  %v378_v19 = vld [vmem:[%s4603_s15] sm:$0xff]  ;;  %v4680_v26 = vperm.slane %v443_v3, 1  ;;  %v4689_v29 = vperm.slane %v443_v3, 2 }
  0x30   : > { %330 = vst [vmem:[#allocation2 + $0x10] sm:$0xff] %v4459_v0  ;;  %v4691_v30 = vperm.slane %v443_v3, 3  ;;  %v444_v31 = vld [vmem:[#allocation6 + $0x10] sm:$0x1f]  ;;  %v4698_v33 = vmul.f32 0.0, %v4660_v11  ;;  %v381_v42 = vld [vmem:[%s4603_s15 + $0x18] sm:$0xff]  ;;  %v4747_v58 = vmul.f32 %v4660_v11, %v378_v19  ;;  %v4758_v63 = vmul.f32 %v4660_v11, %v379_v36 }
  0x31   : > { %331 = vst [vmem:[#allocation2 + $0x18] sm:$0x3] %v4459_v0  ;;  %v380_v41 = vld [vmem:[%s4603_s15 + $0x10] sm:$0xff]  ;;  %v4721_v44 = vperm.slane %v444_v31, 0  ;;  %v4723_v45 = vperm.slane %v444_v31, 1  ;;  %v4725_v46 = vperm.slane %v444_v31, 2  ;;  %v4755_v62 = vmul.f32 %v4689_v29, %v378_v19 }
  0x32   : > { %332 = vst [vmem:[#allocation2 + $0x20] sm:$0xff] %v4459_v0  ;;  %v445_v47 = vld [vmem:[#allocation6 + $0x18] sm:$0x1f]  ;;  %v4731_v50 = vmul.f32 0.0, %v4689_v29  ;;  %v4740_v53 = vld [vmem:[%s4603_s15 + $0x20] sm:$0xff]  ;;  %v4752_v60 = vld [vmem:[%s4603_s15 + $0x28] sm:$0xff] }
  0x33   : > { %333 = vst [vmem:[#allocation2 + $0x28] sm:$0xff] %v4459_v0  ;;  %v4749_v59 = vperm.slane %v445_v47, 2  ;;  %v4763_v1 = vperm.slane %v445_v47, 0  ;;  %v446_v3 = vld [vmem:[#allocation6 + $0x20] sm:$0x1f]  ;;  %s6654_s13 = scalar_lea.vmem [#allocation8], %s4046_s11 }
  0x34   : > { %334 = vst [vmem:[#allocation2 + $0x30] sm:$0xff] %v4459_v0  ;;  %s4087_s10 = sshll.u32 %s4446_s21, 8  ;;  %s3898_s1 = sshll.u32 %s6654_s13, 4  ;;  %s3899_s1 = int_to_ptr.vmem [resolvable:$true] %s3898_s1 }
  0x35   : > { %335 = vst [vmem:[#allocation2 + $0x38] sm:$0x3] %v4459_v0  ;;  %s3897_s17 = scalar_lea.hbm %s8622_s5, %s4087_s10  ;;  %s3885_s21 = scalar_lea.sflag [#allocation5], %s4597_s14 }
  0x36   : > { %337 = vst [vmem:[#allocation2 + $0x240] sm:$0xff] %v4459_v0  ;;  %v447_v4 = vld [vmem:[#allocation2 + $0x6] sm:$0xff]  ;;  %s3900_s23 = sshll.u32 %s3897_s17, 4  ;;  %s4388_s24 = scalar_lea.hbm %s8622_s5, 512  ;;  %s3901_s23 = int_to_ptr.hbm [resolvable:$true] %s3900_s23 }
  0x37   : > { %338 = vst [vmem:[#allocation2 + $0x248] sm:$0xff] %v4459_v0  ;;  %v448_v5 = vld [vmem:[#allocation2 + $0xe] sm:$0xff]  ;;  %v488_v14 = vmul.f32 %v4653_v2, %v447_v4  ;;  %s4382_s26 = sshra.s32 %s3901_s23, 4  ;;  %s4383_s26 = int_to_ptr.hbm [resolvable:$true] %s4382_s26 }
  0x38   : > { %339 = vst [vmem:[#allocation2 + $0x250] sm:$0xff] %v4459_v0  ;;  %v812_v8 = vld [vmem:[#allocation2 + $0x7] sm:$0xff]  ;;  %v813_v9 = vld [vmem:[#allocation2 + $0xf] sm:$0xff]  ;;  %v489_v15 = vmul.f32 %v4653_v2, %v448_v5  ;;  %v4769_v5 = vmul.f32 %v4725_v46, %v378_v19  ;;  %s4384_s28 = scalar_lea.hbm %s4383_s26, 256  ;;  %p4389_p10 = scmp.lt.s32.totalorder %s4383_s26, %s8622_s5 }
  0x39   : > { %340 = vst [vmem:[#allocation2 + $0x258] sm:$0x3] %v4459_v0  ;;  %v1542_v17 = vld [vmem:[#allocation2 + $0x9] sm:$0xff]  ;;  %v4678_v22 = vmul.f32 %v4656_v6, %v812_v8  ;;  %v1543_v23 = vld [vmem:[#allocation2 + $0x11] sm:$0xff]  ;;  %v4684_v27 = vmul.f32 %v4656_v6, %v813_v9  ;;  %v4774_v8 = vperm.slane %v445_v47, 1  ;;  %v4777_v9 = vmul.f32 %v4660_v11, %v380_v41  ;;  %p4385_p1 = scmp.ne.s32.totalorder %s4383_s26, %s4384_s28  ;;  %p4390_p12 = scmp.lt.s32.totalorder %s4388_s24, %s4384_s28 }
  0x3a   : > { %341 = vst [vmem:[#allocation2 + $0x260] sm:$0xff] %v4459_v0  ;;  %v449_v7 = vld [vmem:[#allocation2 + $0x26] sm:$0xff]  ;;  %v4705_v37 = vmul.f32 %v4667_v18, %v1542_v17  ;;  %v4708_v38 = vmul.f32 %v4667_v18, %v1543_v23  ;;  %v4766_v4 = vld [vmem:[%s4603_s15 + $0x30] sm:$0xff] }
  0x3b   : > { %342 = vst [vmem:[#allocation2 + $0x268] sm:$0xff] %v4459_v0  ;;  %v814_v10 = vld [vmem:[#allocation2 + $0x27] sm:$0xff]  ;;  %v815_v16 = vld [vmem:[#allocation2 + $0x2f] sm:$0xff]  ;;  %v4672_v20 = vmul.f32 %v4653_v2, %v449_v7  ;;  %v553_v34 = vmul.f32 %v4662_v12, %v449_v7  ;;  %v4772_v7 = vmul.f32 %v4725_v46, %v379_v36  ;;  %p4386_p4 = pnand %p4385_p1, %p4574_p5  ;;  %p4391_p13 = por %p4390_p12, %p4389_p10 }
  0x3c   : > { %343 = vst [vmem:[#allocation2 + $0x270] sm:$0xff] %v4459_v0  ;;  %v450_v13 = vld [vmem:[#allocation2 + $0x2e] sm:$0xff]  ;;  %v4687_v28 = vmul.f32 %v4656_v6, %v814_v10  ;;  %v4695_v32 = vmul.f32 %v4656_v6, %v815_v16  ;;  %v4719_v43 = vmul.f32 %v4680_v26, %v814_v10  ;;  %v4728_v49 = vmul.f32 %v4680_v26, %v815_v16  ;;  %v4781_v10 = vld [vmem:[%s4603_s15 + $0x38] sm:$0xff]  ;;  %v4797_v17 = vld [vmem:[%s4603_s15 + $0x40] sm:$0xff] }
  0x3d   : > { %344 = vst [vmem:[#allocation2 + $0x278] sm:$0x3] %v4459_v0  ;;  %v4675_v21 = vmul.f32 %v4653_v2, %v450_v13  ;;  %v1544_v24 = vld [vmem:[#allocation2 + $0x29] sm:$0xff]  ;;  %v1545_v25 = vld [vmem:[#allocation2 + $0x31] sm:$0xff]  ;;  %v554_v35 = vmul.f32 %v4662_v12, %v450_v13  ;;  %v4742_v56 = vadd.f32 %v553_v34, %v488_v14  ;;  %v4784_v13 = vmul.f32 %v4689_v29, %v380_v41  ;;  %p4387_p8 = pneg %p4386_p4 }
  0x3e   : > { %346 = vst [vmem:[#allocation2 + $0x46] sm:$0x3] %v4459_v0  ;;  %v4711_v39 = vmul.f32 %v4667_v18, %v1544_v24  ;;  %v4714_v40 = vmul.f32 %v4667_v18, %v1545_v25  ;;  %v483_v48 = vld [vmem:[#allocation2 + $0x246] sm:$0xff]  ;;  %v4734_v51 = vmul.f32 %v4691_v30, %v1544_v24  ;;  %v4737_v52 = vmul.f32 %v4691_v30, %v1545_v25 }
  0x3f   : > { %347 = vst [vmem:[#allocation2 + $0x66] sm:$0x3] %v4459_v0  ;;  %v484_v54 = vld [vmem:[#allocation2 + $0x24e] sm:$0xff]  ;;  %v4744_v57 = vadd.f32 %v554_v35, %v489_v15  ;;  %v4787_v14 = vmul.f32 %v4725_v46, %v380_v41  ;;  %v4790_v15 = vmul.f32 %v4763_v1, %v483_v48  ;;  %v4800_v24 = vmul.f32 %v4749_v59, %v380_v41  ;;  %p4392_p0 = pnand %p4391_p13, %p4387_p8 }
  0x40   : > { %348 = vst [vmem:[#allocation2 + $0x86] sm:$0x3] %v4459_v0  ;;  %v848_v55 = vld [vmem:[#allocation2 + $0x247] sm:$0xff]  ;;  %v849_v61 = vld [vmem:[#allocation2 + $0x24f] sm:$0xff]  ;;  %v4793_v16 = vmul.f32 %v4763_v1, %v484_v54  ;;  %v4808_v34 = vperm.slane %v446_v3, 0 }
  0x41   : > { %349 = vst [vmem:[#allocation2 + $0xa6] sm:$0x3] %v4459_v0  ;;  %v4803_v25 = vmul.f32 %v4774_v8, %v848_v55  ;;  %v4806_v31 = vmul.f32 %v4774_v8, %v849_v61  ;;  %v4812_v35 = vld [vmem:[%s4603_s15 + $0x48] sm:$0xff] }
  0x42   : > { %350 = vst [vmem:[#allocation2 + $0xc6] sm:$0x3] %v4459_v0  ;;  %v850_v23 = vld [vmem:[#allocation2 + $0x267] sm:$0xff] }
  0x43   : > { %351 = vst [vmem:[#allocation2 + $0xe6] sm:$0x3] %v4459_v0  ;;  %v851_v47 = vld [vmem:[#allocation2 + $0x26f] sm:$0xff] }
  0x44   : > { %352 = vst [vmem:[#allocation2 + $0x106] sm:$0x3] %v4459_v0 }
  0x45   : > { %353 = vst [vmem:[#allocation2 + $0x126] sm:$0x3] %v4459_v0 }
  0x46   : > { %354 = vst [vmem:[#allocation2 + $0x146] sm:$0x3] %v4459_v0 }
  0x47   : > { %355 = vst [vmem:[#allocation2 + $0x166] sm:$0x3] %v4459_v0 }
  0x48   : > { %356 = vst [vmem:[#allocation2 + $0x186] sm:$0x3] %v4459_v0 }
  0x49   : > { %357 = vst [vmem:[#allocation2 + $0x1a6] sm:$0x3] %v4459_v0 }
  0x4a   : > { %358 = vst [vmem:[#allocation2 + $0x1c6] sm:$0x3] %v4459_v0 }
  0x4b   : > { %359 = vst [vmem:[#allocation2 + $0x1e6] sm:$0x3] %v4459_v0 }
  0x4c   : > { %360 = vst [vmem:[#allocation2 + $0x206] sm:$0x3] %v4459_v0 }
  0x4d   : > { %361 = vst [vmem:[#allocation2 + $0x226] sm:$0x3] %v4459_v0 }
  0x4e   : > { %362 = vst [vmem:[#allocation2 + $0x58] sm:$0x3] %v4459_v0 }
  0x4f   : > { %363 = vst [vmem:[#allocation2 + $0x78] sm:$0x3] %v4459_v0 }
  0x50   : > { %364 = vst [vmem:[#allocation2 + $0x98] sm:$0x3] %v4459_v0 }
  0x51   : > { %365 = vst [vmem:[#allocation2 + $0xb8] sm:$0x3] %v4459_v0 }
  0x52   : > { %366 = vst [vmem:[#allocation2 + $0xd8] sm:$0x3] %v4459_v0 }
  0x53   : > { %367 = vst [vmem:[#allocation2 + $0xf8] sm:$0x3] %v4459_v0 }
  0x54   : > { %368 = vst [vmem:[#allocation2 + $0x118] sm:$0x3] %v4459_v0 }
  0x55   : > { %369 = vst [vmem:[#allocation2 + $0x138] sm:$0x3] %v4459_v0 }
  0x56   : > { %370 = vst [vmem:[#allocation2 + $0x158] sm:$0x3] %v4459_v0 }
  0x57   : > { %371 = vst [vmem:[#allocation2 + $0x178] sm:$0x3] %v4459_v0 }
  0x58   : > { %372 = vst [vmem:[#allocation2 + $0x198] sm:$0x3] %v4459_v0 }
  0x59   : > { %373 = vst [vmem:[#allocation2 + $0x1b8] sm:$0x3] %v4459_v0 }
  0x5a   : > { %8697 = vst [vmem:[#allocation14_spill] sm:$0xff] %v4667_v18 }
  0x5b   : > { %374 = vst [vmem:[#allocation2 + $0x1d8] sm:$0x3] %v4459_v0 }
  0x5c   : > { %375 = vst [vmem:[#allocation2 + $0x1f8] sm:$0x3] %v4459_v0 }
  0x5d   : > { %8698 = vst [vmem:[#allocation15_spill] sm:$0xff] %v4691_v30 }
  0x5e   : > { %376 = vst [vmem:[#allocation2 + $0x218] sm:$0x3] %v4459_v0 }
  0x5f   : > { %377 = vst [vmem:[#allocation2 + $0x238] sm:$0x3] %v4459_v0  ;;  %v4761_v0 = vmul.f32 %v4689_v29, %v379_v36 }
  0x60   : > { %8699 = vst [vmem:[#allocation16_spill] sm:$0xff] %v4705_v37  ;;  %v4893_v37 = vmul.f32 %v4689_v29, %v4752_v60 }
  0x61   : > { %8700 = vst [vmem:[#allocation17_spill] sm:$0xff] %v4708_v38  ;;  %v4830_v38 = vmul.f32 %v4749_v59, %v381_v42 }
  0x62   : > { %8701 = vst [vmem:[#allocation18_spill] sm:$0xff] %v4711_v39  ;;  %v4821_v39 = vmul.f32 %v4689_v29, %v381_v42 }
  0x63   : > { %8702 = vst [vmem:[#allocation19_spill] sm:$0xff] %v4714_v40 }
  0x64   : > { %410 = vst [vmem:[#allocation2 + $0x48] sm:$0xff] %v378_v19  ;;  %v485_v19 = vld [vmem:[#allocation2 + $0x266] sm:$0xff] }
  0x65   : > { %8703 = vst [vmem:[#allocation20_spill] sm:$0xff] %v4725_v46 }
  0x66   : > { %8704 = vst [vmem:[#allocation21_spill] sm:$0xff] %v4731_v50 }
  0x67   : > { %8705 = vst [vmem:[#allocation22_spill] sm:$0xff] %v4734_v51 }
  0x68   : > { %8706 = vst [vmem:[#allocation23_spill] sm:$0xff] %v4737_v52  ;;  %v4823_v52 = vperm.slane %v446_v3, 1 }
  0x69   : > { %411 = vst [vmem:[#allocation2 + $0x50] sm:$0xff] %v379_v36  ;;  %v486_v36 = vld [vmem:[#allocation2 + $0x26e] sm:$0xff] }
  0x6a   : > { %8707 = vst [vmem:[#allocation24_spill] sm:$0xff] %v4747_v58 }
  0x6b   : > { %412 = vst [vmem:[#allocation2 + $0x68] sm:$0xff] %v380_v41  ;;  %v451_v40 = vld [vmem:[#allocation2 + $0x46] sm:$0xff]  ;;  %v4818_v41 = vmul.f32 %v4660_v11, %v381_v42 }
  0x6c   : > { %8708 = vst [vmem:[#allocation25_spill] sm:$0xff] %v4749_v59 }
  0x6d   : > { %8709 = vst [vmem:[#allocation26_spill] sm:$0xff] %v4755_v62  ;;  %v4835_v62 = vmul.f32 %v4808_v34, %v483_v48 }
  0x6e   : > { %8710 = vst [vmem:[#allocation27_spill] sm:$0xff] %v4758_v63 }
  0x6f   : > { %8711 = vst [vmem:[#allocation28_spill] sm:$0xff] %v4761_v0  ;;  %v4827_v0 = vmul.f32 %v4725_v46, %v381_v42 }
  0x70   : > { %413 = vst [vmem:[#allocation2 + $0x70] sm:$0xff] %v381_v42  ;;  %v618_v42 = vmul.f32 %v4721_v44, %v451_v40  ;;  %v452_v48 = vld [vmem:[#allocation2 + $0x4e] sm:$0xff] }
  0x71   : > { %8712 = vst [vmem:[#allocation29_spill] sm:$0xff] %v4769_v5 }
  0x72   : > { %8713 = vst [vmem:[#allocation30_spill] sm:$0xff] %v4772_v7  ;;  %v4839_v7 = vmul.f32 %v4808_v34, %v484_v54  ;;  %v4856_v54 = vmul.f32 %v4823_v52, %v850_v23  ;;  %v555_v23 = vmul.f32 %v4662_v12, %v451_v40 }
  0x73   : > { %8714 = vst [vmem:[#allocation31_spill] sm:$0xff] %v4777_v9 }
  0x74   : > { %414 = vst [vmem:[#allocation2 + $0x88] sm:$0xff] %v4740_v53 }
  0x75   : > { %8715 = vst [vmem:[#allocation32_spill] sm:$0xff] %v4784_v13  ;;  %v4815_v13 = vmul.f32 0.0, %v4749_v59 }
  0x76   : > { %8716 = vst [vmem:[#allocation33_spill] sm:$0xff] %v4787_v14  ;;  %v4832_v14 = vperm.slane %v446_v3, 2  ;;  %v4853_v3 = vmul.f32 %v4808_v34, %v486_v36  ;;  %v4875_v36 = vmul.f32 %v4749_v59, %v4740_v53 }
  0x77   : > { %8717 = vst [vmem:[#allocation34_spill] sm:$0xff] %v4790_v15  ;;  %v454_v5 = vld [vmem:[#allocation2 + $0x6e] sm:$0xff] }
  0x78   : > { %8718 = vst [vmem:[#allocation35_spill] sm:$0xff] %v4793_v16  ;;  %v4880_v51 = vmul.f32 %v4832_v14, %v4740_v53  ;;  %v684_v15 = vmul.f32 %v4763_v1, %v454_v5 }
  0x79   : > { %415 = vst [vmem:[#allocation2 + $0x90] sm:$0xff] %v4752_v60 }
  0x7a   : > { %8719 = vst [vmem:[#allocation36_spill] sm:$0xff] %v4800_v24 }
  0x7b   : > { %8720 = vst [vmem:[#allocation37_spill] sm:$0xff] %v4803_v25  ;;  %v4910_v25 = vmul.f32 %v4660_v11, %v4766_v4  ;;  %v455_v50 = vld [vmem:[#allocation2 + $0x86] sm:$0xff] }
  0x7c   : > { %8721 = vst [vmem:[#allocation38_spill] sm:$0xff] %v4806_v31  ;;  %v4902_v31 = vmul.f32 %v4749_v59, %v4752_v60  ;;  %v496_v9 = vmul.f32 %v4653_v2, %v455_v50 }
  0x7d   : > { %416 = vst [vmem:[#allocation2 + $0xa8] sm:$0xff] %v4766_v4 }
  0x7e   : > { %8722 = vst [vmem:[#allocation39_spill] sm:$0xff] %v4812_v35 }
  0x7f   : > { %8723 = vst [vmem:[#allocation40_spill] sm:$0xff] %v4815_v13  ;;  %v4845_v13 = vmul.f32 %v4823_v52, %v848_v55  ;;  %v4863_v55 = vmul.f32 %v4660_v11, %v4740_v53 }
  0x80   : > { %8724 = vst [vmem:[#allocation41_spill] sm:$0xff] %v4818_v41 }
  0x81   : > { %8725 = vst [vmem:[#allocation42_spill] sm:$0xff] %v4821_v39  ;;  %v4842_v39 = vmul.f32 %v4808_v34, %v485_v19  ;;  %v4859_v19 = vmul.f32 %v4823_v52, %v851_v47  ;;  %v816_v47 = vld [vmem:[#allocation2 + $0x47] sm:$0xff] }
  0x82   : > { %417 = vst [vmem:[#allocation2 + $0xb0] sm:$0xff] %v4781_v10 }
  0x83   : > { %8726 = vst [vmem:[#allocation43_spill] sm:$0xff] %v4827_v0  ;;  %v4848_v0 = vmul.f32 %v4823_v52, %v849_v61  ;;  %v4867_v61 = vmul.f32 %v4689_v29, %v4740_v53 }
  0x84   : > { %8727 = vst [vmem:[#allocation44_spill] sm:$0xff] %v4830_v38  ;;  %v4871_v38 = vmul.f32 %v4725_v46, %v4740_v53  ;;  %v4897_v53 = vmul.f32 %v4725_v46, %v4752_v60 }
  0x85   : > { %8728 = vst [vmem:[#allocation45_spill] sm:$0xff] %v4832_v14 }
  0x86   : > { %8729 = vst [vmem:[#allocation46_spill] sm:$0xff] %v4835_v62 }
  0x87   : > { %418 = vst [vmem:[#allocation2 + $0xc8] sm:$0xff] %v4797_v17 }
  0x88   : > { %8730 = vst [vmem:[#allocation47_spill] sm:$0xff] %v4839_v7 }
  0x89   : > { %8731 = vst [vmem:[#allocation48_spill] sm:$0xff] %v4842_v39 }
  0x8a   : > { %8732 = vst [vmem:[#allocation49_spill] sm:$0xff] %v4845_v13  ;;  %v4906_v13 = vmul.f32 %v4832_v14, %v4752_v60 }
  0x8b   : > { %8733 = vst [vmem:[#allocation50_spill] sm:$0xff] %v4848_v0  ;;  %v817_v0 = vld [vmem:[#allocation2 + $0x4f] sm:$0xff] }
  0x8c   : > { %419 = vst [vmem:[#allocation2 + $0xd0] sm:$0xff] %v4812_v35  ;;  %v4927_v24 = vmul.f32 %v4656_v6, %v817_v0  ;;  %v4936_v7 = vmul.f32 %v4680_v26, %v817_v0 }
  0x8d   : > { %8734 = vst [vmem:[#allocation51_spill] sm:$0xff] %v4853_v3  ;;  %v4931_v3 = vld [vmem:[%s4603_s15 + $0x50] sm:$0xff] }
  0x8e   : > { %8735 = vst [vmem:[#allocation52_spill] sm:$0xff] %v4856_v54  ;;  %v619_v54 = vmul.f32 %v4721_v44, %v452_v48 }
  0x8f   : > { %8736 = vst [vmem:[#allocation53_spill] sm:$0xff] %v4859_v19  ;;  %v4883_v19 = vmul.f32 0.0, %v4832_v14 }
  0x90   : > { %8737 = vst [vmem:[#allocation54_spill] sm:$0xff] %v4863_v55 }
  0x91   : > { %8738 = vst [vmem:[#allocation55_spill] sm:$0xff] %v4867_v61  ;;  %v4887_v61 = vmul.f32 %v4660_v11, %v4752_v60  ;;  %v587_v60 = vadd.f32 %v555_v23, %v4672_v20  ;;  %v4944_v23 = vmul.f32 %v4723_v45, %v817_v0  ;;  %v559_v0 = vmul.f32 %v4662_v12, %v455_v50 }
  0x92   : > { %8739 = vst [vmem:[#allocation56_spill] sm:$0xff] %v4871_v38  ;;  %v556_v38 = vmul.f32 %v4662_v12, %v452_v48 }
  0x93   : > { %8740 = vst [vmem:[#allocation57_spill] sm:$0xff] %v4875_v36  ;;  %v453_v36 = vld [vmem:[#allocation2 + $0x66] sm:$0xff] }
  0x94   : > { %8741 = vst [vmem:[#allocation58_spill] sm:$0xff] %v4880_v51  ;;  %v4914_v51 = vmul.f32 %v4656_v6, %v816_v47  ;;  %v588_v39 = vadd.f32 %v556_v38, %v4675_v21  ;;  %v494_v20 = vmul.f32 %v4653_v2, %v453_v36  ;;  %v818_v38 = vld [vmem:[#allocation2 + $0x67] sm:$0xff] }
  0x95   : > { %8742 = vst [vmem:[#allocation59_spill] sm:$0xff] %v4883_v19  ;;  %v650_v19 = vadd.f32 %v618_v42, %v4742_v56  ;;  %v4917_v56 = vmul.f32 %v4680_v26, %v816_v47  ;;  %v4920_v42 = vmul.f32 %v4723_v45, %v816_v47  ;;  %v651_v47 = vadd.f32 %v619_v54, %v4744_v57 }
  0x96   : > { %8743 = vst [vmem:[#allocation60_spill] sm:$0xff] %v4887_v61  ;;  %v557_v57 = vmul.f32 %v4662_v12, %v453_v36  ;;  %v620_v54 = vmul.f32 %v4721_v44, %v453_v36  ;;  %v4966_v55 = vmul.f32 %v4656_v6, %v818_v38  ;;  %v4968_v41 = vadd.f32 %v559_v0, %v494_v20  ;;  %v4984_v20 = vld [vmem:[#allocation2 + $0xa6] sm:$0xff] }
  0x97   : > { %8744 = vst [vmem:[#allocation61_spill] sm:$0xff] %v4893_v37  ;;  %v492_v37 = vmul.f32 %v4653_v2, %v451_v40  ;;  %v683_v40 = vmul.f32 %v4763_v1, %v453_v36  ;;  %v716_v36 = vadd.f32 %v684_v15, %v651_v47  ;;  %v4974_v63 = vmul.f32 %v4680_v26, %v818_v38 }
  0x98   : > { %8745 = vst [vmem:[#allocation62_spill] sm:$0xff] %v4897_v53  ;;  %v1546_v53 = vld [vmem:[#allocation2 + $0x49] sm:$0xff]  ;;  %v685_v15 = vmul.f32 %v4763_v1, %v455_v50  ;;  %v558_v0 = vmul.f32 %v4662_v12, %v454_v5 }
  0x99   : > { %8746 = vst [vmem:[#allocation63_spill] sm:$0xff] %v4902_v31  ;;  %v1547_v31 = vld [vmem:[#allocation2 + $0x51] sm:$0xff]  ;;  %v4947_v16 = vmul.f32 %v4667_v18, %v1546_v53  ;;  %v715_v21 = vadd.f32 %v683_v40, %v650_v19  ;;  %v4958_v61 = vmul.f32 %v4691_v30, %v1546_v53  ;;  %v495_v19 = vmul.f32 %v4653_v2, %v454_v5 }
  0x9a   : > { %8747 = vst [vmem:[#allocation64_spill] sm:$0xff] %v4906_v13  ;;  %v4924_v13 = vmul.f32 %v4653_v2, %v452_v48  ;;  %v4941_v48 = vld [vmem:[%s4603_s15 + $0x58] sm:$0xff]  ;;  %v4950_v62 = vmul.f32 %v4667_v18, %v1547_v31  ;;  %v748_v40 = vmul.f32 %v4808_v34, %v455_v50  ;;  %v4977_v53 = vmul.f32 %v4723_v45, %v818_v38 }
  0x9b   : > { %8748 = vst [vmem:[#allocation65_spill] sm:$0xff] %v4910_v25  ;;  %v456_v25 = vld [vmem:[#allocation2 + $0x8e] sm:$0xff] }
  0x9c   : > { %8749 = vst [vmem:[#allocation66_spill] sm:$0xff] %v4927_v24  ;;  %v749_v47 = vmul.f32 %v4808_v34, %v456_v25  ;;  %v820_v24 = vld [vmem:[#allocation2 + $0x87] sm:$0xff] }
  0x9d   : > { %8750 = vst [vmem:[#allocation67_spill] sm:$0xff] %v4931_v3 }
  0x9e   : > { %420 = vst [vmem:[#allocation2 + $0xe8] sm:$0xff] %v4931_v3 }
  0x9f   : > { %8751 = vst [vmem:[#allocation68_spill] sm:$0xff] %v4941_v48 }
  0xa0   : > { %8752 = vst [vmem:[#allocation69_spill] sm:$0xff] %v4947_v16  ;;  %v4961_v16 = vmul.f32 %v4691_v30, %v1547_v31  ;;  %v819_v31 = vld [vmem:[#allocation2 + $0x6f] sm:$0xff]  ;;  %v780_v30 = vadd.f32 %v748_v40, %v715_v21 }
  0xa1   : > { %8753 = vst [vmem:[#allocation70_spill] sm:$0xff] %v4950_v62  ;;  %v652_v62 = vadd.f32 %v620_v54, %v587_v60  ;;  %v589_v60 = vadd.f32 %v557_v57, %v492_v37  ;;  %v1048_v54 = vmul.f32 %v4774_v8, %v818_v38  ;;  %v4991_v37 = vmul.f32 %v4656_v6, %v819_v31 }
  0xa2   : > { %421 = vst [vmem:[#allocation2 + $0xf0] sm:$0xff] %v4941_v48  ;;  %v4971_v48 = vld [vmem:[%s4603_s15 + $0x60] sm:$0xff]  ;;  %v885_v21 = vadd.f32 %v4678_v22, %v780_v30  ;;  %v781_v57 = vadd.f32 %v749_v47, %v716_v36  ;;  %v4994_v3 = vmul.f32 %v4680_v26, %v819_v31  ;;  %v4997_v58 = vmul.f32 %v4723_v45, %v819_v31 }
  0xa3   : > { %8754 = vst [vmem:[#allocation71_spill] sm:$0xff] %v4958_v61  ;;  %v1548_v61 = vld [vmem:[#allocation2 + $0x69] sm:$0xff]  ;;  %v717_v38 = vadd.f32 %v685_v15, %v652_v62  ;;  %v1049_v35 = vmul.f32 %v4774_v8, %v819_v31  ;;  %v561_v22 = vmul.f32 %v4662_v12, %v4984_v20  ;;  %v590_v36 = vadd.f32 %v558_v0, %v4924_v13 }
  0xa4   : > { %8755 = vst [vmem:[#allocation72_spill] sm:$0xff] %v4961_v16  ;;  %v560_v16 = vmul.f32 %v4662_v12, %v456_v25  ;;  %v5003_v30 = vmul.f32 %v4667_v18, %v1548_v61  ;;  %v886_v62 = vadd.f32 %v4684_v27, %v781_v57  ;;  %v622_v15 = vmul.f32 %v4721_v44, %v455_v50  ;;  %v821_v27 = vld [vmem:[#allocation2 + $0x8f] sm:$0xff] }
  0xa5   : > { %8756 = vst [vmem:[#allocation73_spill] sm:$0xff] %v4966_v55  ;;  %v1549_v55 = vld [vmem:[#allocation2 + $0x71] sm:$0xff]  ;;  %v5014_v47 = vadd.f32 %v561_v22, %v496_v9  ;;  %v5025_v13 = vmul.f32 %v4680_v26, %v820_v24  ;;  %v686_v50 = vmul.f32 %v4763_v1, %v456_v25  ;;  %v497_v0 = vmul.f32 %v4653_v2, %v456_v25 }
  0xa6   : > { %8757 = vst [vmem:[#allocation74_spill] sm:$0xff] %v4971_v48  ;;  %v592_v40 = vadd.f32 %v560_v16, %v495_v19  ;;  %v750_v16 = vmul.f32 %v4808_v34, %v4984_v20  ;;  %v5010_v19 = vld [vmem:[%s4603_s15 + $0x68] sm:$0xff]  ;;  %v5018_v61 = vmul.f32 %v4667_v18, %v1549_v55 }
  0xa7   : > { %422 = vst [vmem:[#allocation2 + $0x108] sm:$0xff] %v4971_v48  ;;  %v621_v48 = vmul.f32 %v4721_v44, %v454_v5  ;;  %v950_v5 = vadd.f32 %v4719_v43, %v885_v21  ;;  %v5021_v43 = vmul.f32 %v4656_v6, %v820_v24  ;;  %v951_v21 = vadd.f32 %v4728_v49, %v886_v62  ;;  %v458_v9 = vld [vmem:[#allocation2 + $0xae] sm:$0xff] }
  0xa8   : > { %8758 = vst [vmem:[#allocation75_spill] sm:$0xff] %v5003_v30  ;;  %v782_v57 = vadd.f32 %v750_v16, %v717_v38  ;;  %v654_v30 = vadd.f32 %v622_v15, %v589_v60  ;;  %v1113_v60 = vmul.f32 %v4823_v52, %v820_v24  ;;  %v623_v38 = vmul.f32 %v4721_v44, %v456_v25 }
  0xa9   : > { %8759 = vst [vmem:[#allocation76_spill] sm:$0xff] %v5010_v19  ;;  %v653_v31 = vadd.f32 %v621_v48, %v588_v39  ;;  %v5028_v39 = vmul.f32 %v4723_v45, %v820_v24  ;;  %v1015_v55 = vadd.f32 %v4920_v42, %v950_v5  ;;  %v1050_v48 = vmul.f32 %v4774_v8, %v820_v24  ;;  %v822_v24 = vld [vmem:[#allocation2 + $0xa7] sm:$0xff] }
  0xaa   : > { %423 = vst [vmem:[#allocation2 + $0x110] sm:$0xff] %v5010_v19  ;;  %v887_v49 = vadd.f32 %v4687_v28, %v782_v57  ;;  %v5038_v62 = vmul.f32 %v4656_v6, %v821_v27  ;;  %v1016_v16 = vadd.f32 %v4944_v23, %v951_v21  ;;  %v562_v42 = vmul.f32 %v4662_v12, %v458_v9 }
  0xab   : > { %8760 = vst [vmem:[#allocation77_spill] sm:$0xff] %v5018_v61  ;;  %v718_v22 = vadd.f32 %v686_v50, %v653_v31  ;;  %v625_v5 = vmul.f32 %v4721_v44, %v458_v9  ;;  %v655_v18 = vadd.f32 %v623_v38, %v590_v36  ;;  %v5045_v61 = vmul.f32 %v4680_v26, %v821_v27  ;;  %v5052_v31 = vld [vmem:[%s4603_s15 + $0x70] sm:$0xff] }
  0xac   : > { %v952_v15 = vadd.f32 %v4917_v56, %v887_v49  ;;  %v5048_v28 = vmul.f32 %v4723_v45, %v821_v27  ;;  %v751_v25 = vmul.f32 %v4808_v34, %v458_v9  ;;  %8761 = vst [vmem:[#allocation78_spill] sm:$0xff] %v5052_v31  ;;  %v1080_v57 = vadd.f32 %v1048_v54, %v1015_v55 }
  0xad   : > { %v1051_v23 = vmul.f32 %v4774_v8, %v821_v27  ;;  %v5055_v56 = vadd.f32 %v562_v42, %v497_v0  ;;  %v5057_v21 = vadd.f32 %v625_v5, %v592_v40  ;;  %424 = vst [vmem:[#allocation2 + $0x128] sm:$0xff] %v5052_v31  ;;  %v1114_v36 = vmul.f32 %v4823_v52, %v821_v27  ;;  %v459_v0 = vld [vmem:[#allocation2 + $0xc6] sm:$0xff] }
  0xae   : > { %v624_v50 = vmul.f32 %v4721_v44, %v4984_v20  ;;  %v687_v49 = vmul.f32 %v4763_v1, %v4984_v20  ;;  %v783_v38 = vadd.f32 %v751_v25, %v718_v22  ;;  %v1081_v19 = vadd.f32 %v1049_v35, %v1016_v16 }
  0xaf   : > { %v498_v54 = vmul.f32 %v4653_v2, %v4984_v20  ;;  %v5068_v55 = vmul.f32 %v4656_v6, %v822_v24  ;;  %v1017_v40 = vadd.f32 %v4977_v53, %v952_v15  ;;  %v5073_v5 = vmul.f32 %v4680_v26, %v822_v24 }
  0xb0   : > { %v656_v27 = vadd.f32 %v624_v50, %v4968_v41  ;;  %v719_v42 = vadd.f32 %v687_v49, %v654_v30  ;;  %v888_v31 = vadd.f32 %v4695_v32, %v783_v38  ;;  %v1145_v22 = vadd.f32 %v1113_v60, %v1080_v57  ;;  %v5091_v32 = vld [vmem:[%s4603_s15 + $0x78] sm:$0xff]  ;;  %v823_v50 = vld [vmem:[#allocation2 + $0xaf] sm:$0xff] }
  0xb1   : > { %v5077_v35 = vmul.f32 %v4723_v45, %v822_v24  ;;  %v5080_v20 = vmul.f32 %v4774_v8, %v822_v24  ;;  %v1115_v16 = vmul.f32 %v4823_v52, %v822_v24  ;;  %v5085_v53 = vmul.f32 %v4689_v29, %v4766_v4  ;;  %8763 = vst [vmem:[#allocation80_spill] sm:$0xff] %v5091_v32 }
  0xb2   : > { %v953_v41 = vadd.f32 %v4936_v7, %v888_v31  ;;  %v563_v30 = vmul.f32 %v4662_v12, %v459_v0  ;;  %v626_v15 = vmul.f32 %v4721_v44, %v459_v0  ;;  %v1146_v60 = vadd.f32 %v1114_v36, %v1081_v19  ;;  %425 = vst [vmem:[#allocation2 + $0x130] sm:$0xff] %v5091_v32 }
  0xb3   : > { %8762 = vst [vmem:[#allocation79_spill] sm:$0xff] %v5085_v53  ;;  %v1082_v25 = vadd.f32 %v1050_v48, %v1017_v40  ;;  %v5095_v57 = vmul.f32 %v4725_v46, %v4766_v4  ;;  %v752_v24 = vmul.f32 %v4808_v34, %v459_v0  ;;  %v5101_v7 = vmul.f32 %v4749_v59, %v4766_v4  ;;  %v460_v53 = vld [vmem:[#allocation2 + $0xce] sm:$0xff] }
  0xb4   : > { %v688_v31 = vmul.f32 %v4763_v1, %v458_v9  ;;  %v595_v49 = vadd.f32 %v563_v30, %v498_v54  ;;  %v5105_v38 = vadd.f32 %v626_v15, %v5014_v47  ;;  %v5108_v19 = vadd.f32 %v4698_v33, %v1145_v22 }
  0xb5   : > { %8764 = vst [vmem:[#allocation81_spill] sm:$0xff] %v5095_v57  ;;  %v5112_v48 = vmul.f32 %v4832_v14, %v4766_v4  ;;  %v499_v36 = vmul.f32 %v4653_v2, %v458_v9  ;;  %v784_v40 = vadd.f32 %v752_v24, %v719_v42  ;;  %v5119_v54 = vmul.f32 %v4680_v26, %v823_v50 }
  0xb6   : > { %8765 = vst [vmem:[#allocation82_spill] sm:$0xff] %v5101_v7  ;;  %v720_v57 = vadd.f32 %v688_v31, %v655_v18  ;;  %v5116_v7 = vmul.f32 %v4656_v6, %v823_v50  ;;  %v1018_v47 = vadd.f32 %v4997_v58, %v953_v41  ;;  %v5123_v22 = vadd.f32 %v4698_v33, %v1146_v60  ;;  %v5139_v41 = vld [vmem:[%s4603_s15 + $0x80] sm:$0xff] }
  0xb7   : > { %8766 = vst [vmem:[#allocation83_spill] sm:$0xff] %v5108_v19  ;;  %v1147_v30 = vadd.f32 %v1115_v16, %v1082_v25  ;;  %v5126_v4 = vmul.f32 %v4723_v45, %v823_v50  ;;  %v889_v9 = vadd.f32 %v4914_v51, %v784_v40  ;;  %v5130_v42 = vmul.f32 %v4774_v8, %v823_v50  ;;  %v824_v25 = vld [vmem:[#allocation2 + $0xc7] sm:$0xff] }
  0xb8   : > { %8767 = vst [vmem:[#allocation84_spill] sm:$0xff] %v5112_v48  ;;  %v1116_v18 = vmul.f32 %v4823_v52, %v823_v50  ;;  %v5135_v15 = vmul.f32 %v4660_v11, %v4781_v10  ;;  %v564_v58 = vmul.f32 %v4662_v12, %v460_v53  ;;  %v5143_v16 = vmul.f32 %v4689_v29, %v4781_v10  ;;  %v461_v19 = vld [vmem:[#allocation2 + $0xe6] sm:$0xff] }
  0xb9   : > { %8768 = vst [vmem:[#allocation85_spill] sm:$0xff] %v5123_v22  ;;  %v5147_v51 = vmul.f32 %v4725_v46, %v4781_v10  ;;  %v5151_v60 = vmul.f32 %v4749_v59, %v4781_v10  ;;  %v753_v50 = vmul.f32 %v4808_v34, %v460_v53  ;;  %v1083_v24 = vadd.f32 %v1051_v23, %v1018_v47 }
  0xba   : > { %8769 = vst [vmem:[#allocation86_spill] sm:$0xff] %v5135_v15  ;;  %v689_v31 = vmul.f32 %v4763_v1, %v459_v0  ;;  %v954_v40 = vadd.f32 %v4974_v63, %v889_v9  ;;  %v596_v48 = vadd.f32 %v564_v58, %v499_v36  ;;  %v5166_v23 = vmul.f32 %v4656_v6, %v824_v25 }
  0xbb   : > { %8770 = vst [vmem:[#allocation87_spill] sm:$0xff] %v5139_v41  ;;  %v785_v22 = vadd.f32 %v753_v50, %v720_v57  ;;  %v5169_v47 = vmul.f32 %v4680_v26, %v824_v25  ;;  %v5172_v63 = vmul.f32 %v4723_v45, %v824_v25  ;;  %v1054_v36 = vmul.f32 %v4774_v8, %v824_v25 }
  0xbc   : > { %8771 = vst [vmem:[#allocation88_spill] sm:$0xff] %v5143_v16  ;;  %v5158_v16 = vadd.f32 %v4698_v33, %v1147_v30  ;;  %v721_v32 = vadd.f32 %v689_v31, %v656_v27  ;;  %v5178_v30 = vmul.f32 %v4660_v11, %v4797_v17  ;;  %v1148_v27 = vadd.f32 %v1116_v18, %v1083_v24  ;;  %v5185_v31 = vld [vmem:[%s4603_s15 + $0x88] sm:$0xff] }
  0xbd   : > { %8772 = vst [vmem:[#allocation89_spill] sm:$0xff] %v5147_v51  ;;  %v5162_v51 = vmul.f32 %v4832_v14, %v4781_v10  ;;  %v1117_v10 = vmul.f32 %v4823_v52, %v824_v25  ;;  %v1019_v9 = vadd.f32 %v5028_v39, %v954_v40  ;;  %v565_v58 = vmul.f32 %v4662_v12, %v461_v19  ;;  %v825_v18 = vld [vmem:[#allocation2 + $0xcf] sm:$0xff] }
  0xbe   : > { %8773 = vst [vmem:[#allocation90_spill] sm:$0xff] %v5151_v60  ;;  %v500_v60 = vmul.f32 %v4653_v2, %v459_v0  ;;  %v8777_v0 = vld [vmem:[#allocation66_spill] sm:$0xff]  ;;  %v628_v50 = vmul.f32 %v4721_v44, %v461_v19  ;;  %v5193_v25 = vmul.f32 %v4725_v46, %v4797_v17  ;;  %v754_v39 = vmul.f32 %v4808_v34, %v461_v19 }
  0xbf   : > { %426 = vst [vmem:[#allocation2 + $0x148] sm:$0xff] %v5139_v41  ;;  %v890_v57 = vadd.f32 %v8777_v0, %v785_v22  ;;  %v5197_v22 = vmul.f32 %v4749_v59, %v4797_v17  ;;  %v5203_v24 = vmul.f32 %v4832_v14, %v4797_v17  ;;  %v501_v40 = vmul.f32 %v4653_v2, %v460_v53 }
  0xc0   : > { %8774 = vst [vmem:[#allocation91_spill] sm:$0xff] %v5158_v16  ;;  %v597_v0 = vadd.f32 %v565_v58, %v500_v60  ;;  %v690_v16 = vmul.f32 %v4763_v1, %v460_v53  ;;  %v786_v41 = vadd.f32 %v754_v39, %v721_v32  ;;  %v5212_v15 = vadd.f32 %v4698_v33, %v1148_v27  ;;  %v8784_v32 = vld [vmem:[#allocation73_spill] sm:$0xff] }
  0xc1   : > { %8775 = vst [vmem:[#allocation92_spill] sm:$0xff] %v5162_v51  ;;  %v5189_v51 = vmul.f32 %v4689_v29, %v4797_v17  ;;  %v5216_v17 = vmul.f32 %v4656_v6, %v825_v18  ;;  %v1055_v33 = vmul.f32 %v4774_v8, %v825_v18 }
  0xc2   : > { %8776 = vst [vmem:[#allocation93_spill] sm:$0xff] %v5178_v30  ;;  %v462_v30 = vld [vmem:[#allocation2 + $0xee] sm:$0xff] }
  0xc3   : > { %8778 = vst [vmem:[#allocation66_spill] sm:$0xff] %v5185_v31  ;;  %v566_v27 = vmul.f32 %v4662_v12, %v462_v30 }
  0xc4   : > { %8779 = vst [vmem:[#allocation94_spill] sm:$0xff] %v5189_v51  ;;  %v5206_v51 = vadd.f32 %v628_v50, %v595_v49  ;;  %v5219_v49 = vmul.f32 %v4680_v26, %v825_v18  ;;  %v8785_v50 = vld [vmem:[#allocation39_spill] sm:$0xff] }
  0xc5   : > { %8780 = vst [vmem:[#allocation95_spill] sm:$0xff] %v5193_v25  ;;  %v627_v25 = vmul.f32 %v4721_v44, %v460_v53  ;;  %v722_v53 = vadd.f32 %v690_v16, %v5057_v21  ;;  %v826_v21 = vld [vmem:[#allocation2 + $0xe7] sm:$0xff] }
  0xc6   : > { %8781 = vst [vmem:[#allocation96_spill] sm:$0xff] %v5197_v22  ;;  %v955_v22 = vadd.f32 %v4994_v3, %v890_v57  ;;  %v5224_v3 = vmul.f32 %v4723_v45, %v825_v18  ;;  %v891_v57 = vadd.f32 %v8784_v32, %v786_v41  ;;  %v5239_v41 = vld [vmem:[%s4603_s15 + $0x90] sm:$0xff]  ;;  %v5245_v32 = vadd.f32 %v566_v27, %v501_v40 }
  0xc7   : > { %427 = vst [vmem:[#allocation2 + $0x150] sm:$0xff] %v5185_v31  ;;  %v1084_v31 = vadd.f32 %v5080_v20, %v1019_v9  ;;  %v659_v60 = vadd.f32 %v627_v25, %v5055_v56  ;;  %v1118_v20 = vmul.f32 %v4823_v52, %v825_v18  ;;  %v629_v9 = vmul.f32 %v4721_v44, %v462_v30 }
  0xc8   : > { %8782 = vst [vmem:[#allocation97_spill] sm:$0xff] %v5203_v24  ;;  %v1020_v58 = vadd.f32 %v5048_v28, %v955_v22  ;;  %v5234_v56 = vmul.f32 %v4660_v11, %v8785_v50  ;;  %v956_v16 = vadd.f32 %v5025_v13, %v891_v57  ;;  %v755_v25 = vmul.f32 %v4808_v34, %v462_v30  ;;  %v5259_v22 = vld [vmem:[#allocation2 + $0x106] sm:$0xff] }
  0xc9   : > { %8783 = vst [vmem:[#allocation98_spill] sm:$0xff] %v5212_v15  ;;  %v1149_v39 = vadd.f32 %v1117_v10, %v1084_v31  ;;  %v5243_v18 = vmul.f32 %v4689_v29, %v8785_v50  ;;  %v5247_v24 = vadd.f32 %v629_v9, %v596_v48  ;;  %v5252_v28 = vmul.f32 %v4725_v46, %v8785_v50 }
  0xca   : > { %428 = vst [vmem:[#allocation2 + $0x168] sm:$0xff] %v5239_v41  ;;  %v5256_v13 = vmul.f32 %v4749_v59, %v8785_v50  ;;  %v1021_v10 = vadd.f32 %v5077_v35, %v956_v16  ;;  %v787_v31 = vadd.f32 %v755_v25, %v722_v53  ;;  %v5263_v40 = vmul.f32 %v4832_v14, %v8785_v50  ;;  %v8790_v16 = vld [vmem:[#allocation24_spill] sm:$0xff] }
  0xcb   : > { %8786 = vst [vmem:[#allocation73_spill] sm:$0xff] %v5243_v18  ;;  %v502_v48 = vmul.f32 %v4653_v2, %v461_v19  ;;  %v691_v57 = vmul.f32 %v4763_v1, %v461_v19  ;;  %v5268_v27 = vmul.f32 %v4656_v6, %v826_v21  ;;  %v1085_v9 = vadd.f32 %v5130_v42, %v1020_v58  ;;  %v5289_v58 = vld [vmem:[%s4603_s15 + $0x98] sm:$0xff] }
  0xcc   : > { %8787 = vst [vmem:[#allocation39_spill] sm:$0xff] %v5252_v28  ;;  %v1086_v18 = vadd.f32 %v1054_v36, %v1021_v10  ;;  %v1119_v35 = vmul.f32 %v4823_v52, %v826_v21  ;;  %v892_v53 = vadd.f32 %v4991_v37, %v787_v31  ;;  %v5274_v25 = vadd.f32 %v8790_v16, %v1149_v39  ;;  %v827_v31 = vld [vmem:[#allocation2 + $0xef] sm:$0xff] }
  0xcd   : > { %8788 = vst [vmem:[#allocation99_spill] sm:$0xff] %v5256_v13  ;;  %v723_v50 = vadd.f32 %v691_v57, %v5105_v38  ;;  %v5278_v28 = vmul.f32 %v4680_v26, %v826_v21  ;;  %v567_v19 = vmul.f32 %v4662_v12, %v5259_v22  ;;  %v5283_v13 = vmul.f32 %v4723_v45, %v826_v21  ;;  %v8792_v38 = vld [vmem:[#allocation67_spill] sm:$0xff] }
  0xce   : > { %8789 = vst [vmem:[#allocation100_spill] sm:$0xff] %v5263_v40  ;;  %v1151_v42 = vadd.f32 %v1119_v35, %v1086_v18  ;;  %v957_v36 = vadd.f32 %v5045_v61, %v892_v53  ;;  %v630_v37 = vmul.f32 %v4721_v44, %v5259_v22  ;;  %v1056_v39 = vmul.f32 %v4774_v8, %v826_v21  ;;  %v8793_v61 = vld [vmem:[#allocation31_spill] sm:$0xff] }
  0xcf   : > { %8791 = vst [vmem:[#allocation24_spill] sm:$0xff] %v5274_v25  ;;  %v5294_v10 = vmul.f32 %v4660_v11, %v8792_v38  ;;  %v599_v57 = vadd.f32 %v567_v19, %v502_v48  ;;  %v756_v16 = vmul.f32 %v4808_v34, %v5259_v22  ;;  %v1150_v18 = vadd.f32 %v1118_v20, %v1085_v9  ;;  %v5314_v20 = vld [vmem:[#allocation2 + $0x10e] sm:$0xff] }
  0xd0   : > { %429 = vst [vmem:[#allocation2 + $0x170] sm:$0xff] %v5289_v58  ;;  %v5300_v35 = vadd.f32 %v8793_v61, %v1151_v42  ;;  %v1022_v53 = vadd.f32 %v5126_v4, %v957_v36  ;;  %v5303_v40 = vadd.f32 %v630_v37, %v597_v0  ;;  %v5307_v21 = vmul.f32 %v4689_v29, %v8792_v38 }
  0xd1   : > { %v5311_v48 = vmul.f32 %v4725_v46, %v8792_v38  ;;  %v692_v19 = vmul.f32 %v4763_v1, %v462_v30  ;;  %v788_v25 = vadd.f32 %v756_v16, %v723_v50  ;;  %v5318_v9 = vmul.f32 %v4749_v59, %v8792_v38  ;;  %v8799_v16 = vld [vmem:[#allocation27_spill] sm:$0xff] }
  0xd2   : > { %8794 = vst [vmem:[#allocation67_spill] sm:$0xff] %v5300_v35  ;;  %v503_v4 = vmul.f32 %v4653_v2, %v462_v30  ;;  %v1087_v0 = vadd.f32 %v1055_v33, %v1022_v53  ;;  %v1120_v42 = vmul.f32 %v4823_v52, %v827_v31  ;;  %v5324_v36 = vmul.f32 %v4832_v14, %v8792_v38  ;;  %v5339_v53 = vld [vmem:[%s4603_s15 + $0xa0] sm:$0xff] }
  0xd3   : > { %8795 = vst [vmem:[#allocation31_spill] sm:$0xff] %v5307_v21  ;;  %v724_v37 = vadd.f32 %v692_v19, %v659_v60  ;;  %v5327_v61 = vmul.f32 %v4656_v6, %v827_v31  ;;  %v893_v50 = vadd.f32 %v5021_v43, %v788_v25  ;;  %v5331_v21 = vadd.f32 %v8799_v16, %v1150_v18  ;;  %v828_v19 = vld [vmem:[#allocation2 + $0x107] sm:$0xff]  ;;  %v8802_v18 = vld [vmem:[#allocation68_spill] sm:$0xff] }
  0xd4   : > { %8796 = vst [vmem:[#allocation101_spill] sm:$0xff] %v5311_v48  ;;  %v5334_v48 = vmul.f32 %v4680_v26, %v827_v31  ;;  %v1152_v30 = vadd.f32 %v1120_v42, %v1087_v0  ;;  %v568_v33 = vmul.f32 %v4662_v12, %v5314_v20  ;;  %v5342_v38 = vmul.f32 %v4723_v45, %v827_v31  ;;  %v8803_v42 = vld [vmem:[#allocation41_spill] sm:$0xff] }
  0xd5   : > { %8797 = vst [vmem:[#allocation102_spill] sm:$0xff] %v5318_v9  ;;  %v1057_v60 = vmul.f32 %v4774_v8, %v827_v31  ;;  %v958_v43 = vadd.f32 %v5073_v5, %v893_v50  ;;  %v757_v25 = vmul.f32 %v4808_v34, %v5314_v20  ;;  %v5351_v0 = vmul.f32 %v4660_v11, %v8802_v18 }
  0xd6   : > { %8798 = vst [vmem:[#allocation103_spill] sm:$0xff] %v5324_v36  ;;  %v5354_v16 = vadd.f32 %v8803_v42, %v1152_v30  ;;  %v5358_v9 = vmul.f32 %v4689_v29, %v8802_v18  ;;  %v600_v31 = vadd.f32 %v568_v33, %v503_v4  ;;  %v5362_v5 = vmul.f32 %v4725_v46, %v8802_v18 }
  0xd7   : > { %8800 = vst [vmem:[#allocation27_spill] sm:$0xff] %v5331_v21  ;;  %v693_v50 = vmul.f32 %v4763_v1, %v5259_v22  ;;  %v1023_v36 = vadd.f32 %v5172_v63, %v958_v43  ;;  %v789_v35 = vadd.f32 %v757_v25, %v724_v37  ;;  %v465_v21 = vld [vmem:[#allocation2 + $0x126] sm:$0xff]  ;;  %v5369_v30 = vmul.f32 %v4749_v59, %v8802_v18 }
  0xd8   : > { %8801 = vst [vmem:[#allocation104_spill] sm:$0xff] %v5339_v53  ;;  %v5373_v42 = vmul.f32 %v4832_v14, %v8802_v18  ;;  %v504_v4 = vmul.f32 %v4653_v2, %v5259_v22  ;;  %v5378_v33 = vmul.f32 %v4656_v6, %v828_v19  ;;  %v1121_v63 = vmul.f32 %v4823_v52, %v828_v19 }
  0xd9   : > { %430 = vst [vmem:[#allocation2 + $0x188] sm:$0xff] %v5339_v53  ;;  %v894_v37 = vadd.f32 %v5038_v62, %v789_v35  ;;  %v5384_v43 = vmul.f32 %v4680_v26, %v828_v19  ;;  %v5387_v25 = vmul.f32 %v4723_v45, %v828_v19  ;;  %v569_v18 = vmul.f32 %v4662_v12, %v465_v21  ;;  %v8810_v62 = vld [vmem:[#allocation74_spill] sm:$0xff] }
  0xda   : > { %8804 = vst [vmem:[#allocation68_spill] sm:$0xff] %v5354_v16  ;;  %v632_v22 = vmul.f32 %v4721_v44, %v465_v21  ;;  %v5400_v35 = vmul.f32 %v4660_v11, %v8810_v62  ;;  %v829_v16 = vld [vmem:[#allocation2 + $0x10f] sm:$0xff] }
  0xdb   : > { %8805 = vst [vmem:[#allocation41_spill] sm:$0xff] %v5358_v9  ;;  %v725_v9 = vadd.f32 %v693_v50, %v5206_v51  ;;  %v5404_v50 = vmul.f32 %v4689_v29, %v8810_v62  ;;  %v601_v15 = vadd.f32 %v569_v18, %v504_v4  ;;  %v5420_v4 = vmul.f32 %v4749_v59, %v8810_v62 }
  0xdc   : > { %8806 = vst [vmem:[#allocation105_spill] sm:$0xff] %v5362_v5  ;;  %v1088_v5 = vadd.f32 %v1056_v39, %v1023_v36  ;;  %v959_v39 = vadd.f32 %v5119_v54, %v894_v37  ;;  %v758_v36 = vmul.f32 %v4808_v34, %v465_v21  ;;  %v5406_v53 = vadd.f32 %v632_v22, %v599_v57 }
  0xdd   : > { %8807 = vst [vmem:[#allocation106_spill] sm:$0xff] %v5369_v30  ;;  %v5392_v30 = vld [vmem:[%s4603_s15 + $0xa8] sm:$0xff]  ;;  %v694_v54 = vmul.f32 %v4763_v1, %v5314_v20  ;;  %v5424_v57 = vmul.f32 %v4832_v14, %v8810_v62  ;;  %v505_v18 = vmul.f32 %v4653_v2, %v5314_v20  ;;  %v1122_v22 = vmul.f32 %v4823_v52, %v829_v16 }
  0xde   : > { %8808 = vst [vmem:[#allocation107_spill] sm:$0xff] %v5373_v42  ;;  %v1058_v42 = vmul.f32 %v4774_v8, %v828_v19  ;;  %v1153_v51 = vadd.f32 %v1121_v63, %v1088_v5  ;;  %v8813_v19 = vld [vmem:[#allocation54_spill] sm:$0xff]  ;;  %v1024_v63 = vadd.f32 %v5224_v3, %v959_v39  ;;  %v790_v37 = vadd.f32 %v758_v36, %v725_v9 }
  0xdf   : > { %8809 = vst [vmem:[#allocation108_spill] sm:$0xff] %v5392_v30  ;;  %v726_v3 = vadd.f32 %v694_v54, %v5247_v24  ;;  %v631_v39 = vmul.f32 %v4721_v44, %v5314_v20  ;;  %v5434_v36 = vmul.f32 %v4656_v6, %v829_v16  ;;  %v5444_v54 = vld [vmem:[%s4603_s15 + $0xb0] sm:$0xff]  ;;  %v5448_v20 = vmul.f32 %v4723_v45, %v829_v16 }
  0xe0   : > { %431 = vst [vmem:[#allocation2 + $0x190] sm:$0xff] %v5392_v30  ;;  %v5409_v5 = vadd.f32 %v8813_v19, %v1153_v51  ;;  %v466_v30 = vld [vmem:[#allocation2 + $0x12e] sm:$0xff]  ;;  %v1089_v9 = vadd.f32 %v1057_v60, %v1024_v63  ;;  %v895_v51 = vadd.f32 %v5068_v55, %v790_v37 }
  0xe1   : > { %8811 = vst [vmem:[#allocation74_spill] sm:$0xff] %v5400_v35  ;;  %v5416_v35 = vmul.f32 %v4725_v46, %v8810_v62  ;;  %v570_v19 = vmul.f32 %v4662_v12, %v466_v30  ;;  %v633_v62 = vmul.f32 %v4721_v44, %v466_v30  ;;  %v759_v60 = vmul.f32 %v4808_v34, %v466_v30  ;;  %v830_v63 = vld [vmem:[#allocation2 + $0x127] sm:$0xff] }
  0xe2   : > { %8812 = vst [vmem:[#allocation109_spill] sm:$0xff] %v5404_v50  ;;  %v5439_v50 = vmul.f32 %v4680_v26, %v829_v16  ;;  %v960_v24 = vadd.f32 %v5169_v47, %v895_v51  ;;  %v663_v55 = vadd.f32 %v631_v39, %v5245_v32  ;;  %v8821_v32 = vld [vmem:[#allocation76_spill] sm:$0xff] }
  0xe3   : > { %8814 = vst [vmem:[#allocation54_spill] sm:$0xff] %v5409_v5  ;;  %v602_v37 = vadd.f32 %v570_v19, %v505_v18  ;;  %v791_v51 = vadd.f32 %v759_v60, %v726_v3  ;;  %v5458_v5 = vld [vmem:[#allocation2 + $0x146] sm:$0xff]  ;;  %v5462_v39 = vmul.f32 %v4660_v11, %v8821_v32  ;;  %v506_v18 = vmul.f32 %v4653_v2, %v465_v21 }
  0xe4   : > { %8815 = vst [vmem:[#allocation110_spill] sm:$0xff] %v5416_v35  ;;  %v1154_v35 = vadd.f32 %v1122_v22, %v1089_v9  ;;  %v8819_v9 = vld [vmem:[#allocation60_spill] sm:$0xff]  ;;  %v1025_v47 = vadd.f32 %v5283_v13, %v960_v24  ;;  %v1123_v3 = vmul.f32 %v4823_v52, %v830_v63  ;;  %v5482_v24 = vmul.f32 %v4832_v14, %v8821_v32 }
  0xe5   : > { %8816 = vst [vmem:[#allocation111_spill] sm:$0xff] %v5420_v4  ;;  %v5450_v4 = vadd.f32 %v633_v62, %v600_v31  ;;  %v5466_v31 = vmul.f32 %v4689_v29, %v8821_v32  ;;  %v896_v19 = vadd.f32 %v5116_v7, %v791_v51  ;;  %v5478_v62 = vmul.f32 %v4749_v59, %v8821_v32  ;;  %v5494_v51 = vld [vmem:[%s4603_s15 + $0xb8] sm:$0xff] }
  0xe6   : > { %8817 = vst [vmem:[#allocation112_spill] sm:$0xff] %v5424_v57  ;;  %v1059_v57 = vmul.f32 %v4774_v8, %v829_v16  ;;  %v5455_v22 = vadd.f32 %v8819_v9, %v1154_v35  ;;  %v695_v16 = vmul.f32 %v4763_v1, %v465_v21  ;;  %v5472_v35 = vmul.f32 %v4725_v46, %v8821_v32 }
  0xe7   : > { %8818 = vst [vmem:[#allocation113_spill] sm:$0xff] %v5444_v54  ;;  %v1090_v13 = vadd.f32 %v1058_v42, %v1025_v47  ;;  %v571_v21 = vmul.f32 %v4662_v12, %v5458_v5  ;;  %v5488_v9 = vmul.f32 %v4656_v6, %v830_v63  ;;  %v961_v47 = vadd.f32 %v5219_v49, %v896_v19 }
  0xe8   : > { %432 = vst [vmem:[#allocation2 + $0x1a8] sm:$0xff] %v5444_v54  ;;  %v727_v60 = vadd.f32 %v695_v16, %v5303_v40  ;;  %v634_v7 = vmul.f32 %v4721_v44, %v5458_v5  ;;  %v5500_v32 = vmul.f32 %v4723_v45, %v830_v63  ;;  %v831_v40 = vld [vmem:[#allocation2 + $0x12f] sm:$0xff]  ;;  %v1060_v49 = vmul.f32 %v4774_v8, %v830_v63 }
  0xe9   : > { %8820 = vst [vmem:[#allocation60_spill] sm:$0xff] %v5455_v22  ;;  %v1155_v42 = vadd.f32 %v1123_v3, %v1090_v13  ;;  %v603_v16 = vadd.f32 %v571_v21, %v506_v18  ;;  %v8827_v13 = vld [vmem:[#allocation65_spill] sm:$0xff]  ;;  %v1026_v19 = vadd.f32 %v5342_v38, %v961_v47  ;;  %v696_v21 = vmul.f32 %v4763_v1, %v466_v30 }
  0xea   : > { %8822 = vst [vmem:[#allocation76_spill] sm:$0xff] %v5466_v31  ;;  %v5497_v31 = vmul.f32 %v4680_v26, %v830_v63  ;;  %v468_v63 = vld [vmem:[#allocation2 + $0x14e] sm:$0xff]  ;;  %v1124_v47 = vmul.f32 %v4823_v52, %v831_v40 }
  0xeb   : > { %8823 = vst [vmem:[#allocation114_spill] sm:$0xff] %v5472_v35  ;;  %v760_v35 = vmul.f32 %v4808_v34, %v5458_v5  ;;  %v5507_v3 = vadd.f32 %v8827_v13, %v1155_v42  ;;  %v1091_v38 = vadd.f32 %v1059_v57, %v1026_v19  ;;  %v635_v57 = vmul.f32 %v4721_v44, %v468_v63  ;;  %v5542_v19 = vld [vmem:[%s4603_s15 + $0xc0] sm:$0xff] }
  0xec   : > { %8824 = vst [vmem:[#allocation115_spill] sm:$0xff] %v5478_v62  ;;  %v5510_v62 = vadd.f32 %v634_v7, %v601_v15  ;;  %v507_v15 = vmul.f32 %v4653_v2, %v466_v30  ;;  %v572_v30 = vmul.f32 %v4662_v12, %v468_v63 }
  0xed   : > { %8825 = vst [vmem:[#allocation116_spill] sm:$0xff] %v5482_v24  ;;  %v8829_v24 = vld [vmem:[#allocation78_spill] sm:$0xff] }
  0xee   : > { %8826 = vst [vmem:[#allocation117_spill] sm:$0xff] %v5494_v51  ;;  %v5514_v22 = vmul.f32 %v4660_v11, %v8829_v24  ;;  %v5518_v18 = vmul.f32 %v4689_v29, %v8829_v24  ;;  %v5523_v42 = vmul.f32 %v4725_v46, %v8829_v24  ;;  %v5529_v7 = vmul.f32 %v4749_v59, %v8829_v24 }
  0xef   : > { %433 = vst [vmem:[#allocation2 + $0x1b0] sm:$0xff] %v5494_v51  ;;  %v792_v51 = vadd.f32 %v760_v35, %v727_v60  ;;  %v5533_v13 = vmul.f32 %v4832_v14, %v8829_v24  ;;  %v5537_v60 = vmul.f32 %v4656_v6, %v831_v40  ;;  %v1061_v24 = vmul.f32 %v4774_v8, %v831_v40 }
  0xf0   : > { %8828 = vst [vmem:[#allocation65_spill] sm:$0xff] %v5507_v3  ;;  %v5545_v3 = vmul.f32 %v4680_v26, %v831_v40 }
  0xf1   : > { %8830 = vst [vmem:[#allocation78_spill] sm:$0xff] %v5514_v22  ;;  %v897_v35 = vadd.f32 %v5166_v23, %v792_v51  ;;  %v761_v23 = vmul.f32 %v4808_v34, %v468_v63  ;;  %v8837_v51 = vld [vmem:[#allocation86_spill] sm:$0xff]  ;;  %v8839_v22 = vld [vmem:[#allocation80_spill] sm:$0xff] }
  0xf2   : > { %8831 = vst [vmem:[#allocation118_spill] sm:$0xff] %v5518_v18  ;;  %v728_v18 = vadd.f32 %v696_v21, %v663_v55  ;;  %v5561_v54 = vmul.f32 %v4660_v11, %v8839_v22 }
  0xf3   : > { %8832 = vst [vmem:[#allocation119_spill] sm:$0xff] %v5523_v42  ;;  %v1156_v42 = vadd.f32 %v1124_v47, %v1091_v38  ;;  %v962_v55 = vadd.f32 %v5278_v28, %v897_v35  ;;  %v832_v38 = vld [vmem:[#allocation2 + $0x147] sm:$0xff]  ;;  %v604_v47 = vadd.f32 %v572_v30, %v507_v15  ;;  %v697_v28 = vmul.f32 %v4763_v1, %v5458_v5 }
  0xf4   : > { %8833 = vst [vmem:[#allocation120_spill] sm:$0xff] %v5529_v7  ;;  %v5548_v7 = vmul.f32 %v4723_v45, %v831_v40  ;;  %v5568_v40 = vmul.f32 %v4689_v29, %v8839_v22  ;;  %v508_v15 = vmul.f32 %v4653_v2, %v5458_v5 }
  0xf5   : > { %8834 = vst [vmem:[#allocation121_spill] sm:$0xff] %v5533_v13  ;;  %v5555_v21 = vadd.f32 %v8837_v51, %v1156_v42  ;;  %v5557_v13 = vadd.f32 %v635_v57, %v602_v37  ;;  %v1027_v35 = vadd.f32 %v5387_v25, %v962_v55  ;;  %v5572_v37 = vmul.f32 %v4725_v46, %v8839_v22 }
  0xf6   : > { %8835 = vst [vmem:[#allocation122_spill] sm:$0xff] %v5537_v60  ;;  %v469_v60 = vld [vmem:[#allocation2 + $0x166] sm:$0xff]  ;;  %v5576_v42 = vmul.f32 %v4749_v59, %v8839_v22  ;;  %v729_v30 = vadd.f32 %v697_v28, %v5406_v53  ;;  %v5585_v55 = vmul.f32 %v4832_v14, %v8839_v22  ;;  %v5596_v53 = vmul.f32 %v4680_v26, %v832_v38  ;;  %v833_v28 = vld [vmem:[#allocation2 + $0x14f] sm:$0xff] }
  0xf7   : > { %8836 = vst [vmem:[#allocation123_spill] sm:$0xff] %v5542_v19  ;;  %v1092_v25 = vadd.f32 %v1060_v49, %v1027_v35  ;;  %v573_v51 = vmul.f32 %v4662_v12, %v469_v60  ;;  %v5602_v22 = vmul.f32 %v4723_v45, %v832_v38 }
  0xf8   : > { %434 = vst [vmem:[#allocation2 + $0x1c8] sm:$0xff] %v5542_v19  ;;  %v793_v19 = vadd.f32 %v761_v23, %v728_v18  ;;  %v1125_v18 = vmul.f32 %v4823_v52, %v832_v38  ;;  %v5588_v23 = vmul.f32 %v4656_v6, %v832_v38 }
  0xf9   : > { %8838 = vst [vmem:[#allocation86_spill] sm:$0xff] %v5555_v21  ;;  %v605_v35 = vadd.f32 %v573_v51, %v508_v15 }
  0xfa   : > { %8840 = vst [vmem:[#allocation80_spill] sm:$0xff] %v5561_v54  ;;  %v898_v57 = vadd.f32 %v5216_v17, %v793_v19  ;;  %v1157_v5 = vadd.f32 %v1125_v18, %v1092_v25  ;;  %v762_v17 = vmul.f32 %v4808_v34, %v469_v60  ;;  %v1062_v19 = vmul.f32 %v4774_v8, %v832_v38  ;;  %v8848_v54 = vld [vmem:[#allocation87_spill] sm:$0xff] }
  0xfb   : > { %8841 = vst [vmem:[#allocation124_spill] sm:$0xff] %v5568_v40  ;;  %v636_v40 = vmul.f32 %v4721_v44, %v469_v60  ;;  %v698_v25 = vmul.f32 %v4763_v1, %v468_v63  ;;  %v5618_v38 = vmul.f32 %v4689_v29, %v8848_v54  ;;  %v5630_v51 = vmul.f32 %v4749_v59, %v8848_v54 }
  0xfc   : > { %8842 = vst [vmem:[#allocation125_spill] sm:$0xff] %v5572_v37  ;;  %v5593_v37 = vld [vmem:[%s4603_s15 + $0xc8] sm:$0xff]  ;;  %v963_v49 = vadd.f32 %v5334_v48, %v898_v57  ;;  %v794_v18 = vadd.f32 %v762_v17, %v729_v30  ;;  %v1126_v30 = vmul.f32 %v4823_v52, %v833_v28 }
  0xfd   : > { %8843 = vst [vmem:[#allocation126_spill] sm:$0xff] %v5576_v42  ;;  %v5605_v42 = vadd.f32 %v636_v40, %v603_v16  ;;  %v470_v57 = vld [vmem:[#allocation2 + $0x16e] sm:$0xff]  ;;  %v5622_v16 = vmul.f32 %v4725_v46, %v8848_v54  ;;  %v509_v40 = vmul.f32 %v4653_v2, %v468_v63  ;;  %v730_v15 = vadd.f32 %v698_v25, %v5450_v4 }
  0xfe   : > { %8844 = vst [vmem:[#allocation127_spill] sm:$0xff] %v5585_v55  ;;  %v8846_v55 = vld [vmem:[#allocation93_spill] sm:$0xff]  ;;  %v1028_v48 = vadd.f32 %v5448_v20, %v963_v49  ;;  %v574_v49 = vmul.f32 %v4662_v12, %v470_v57  ;;  %v637_v17 = vmul.f32 %v4721_v44, %v470_v57  ;;  %v5639_v63 = vmul.f32 %v4656_v6, %v833_v28  ;;  %v5644_v25 = vld [vmem:[%s4603_s15 + $0xd0] sm:$0xff] }
  0xff   : > { %8845 = vst [vmem:[#allocation128_spill] sm:$0xff] %v5593_v37  ;;  %v5608_v21 = vadd.f32 %v8846_v55, %v1157_v5  ;;  %v899_v55 = vadd.f32 %v5268_v27, %v794_v18  ;;  %v5634_v5 = vmul.f32 %v4832_v14, %v8848_v54  ;;  %v763_v27 = vmul.f32 %v4808_v34, %v470_v57  ;;  %v834_v18 = vld [vmem:[#allocation2 + $0x167] sm:$0xff] }
 0x100   : > { %435 = vst [vmem:[#allocation2 + $0x1d0] sm:$0xff] %v5593_v37  ;;  %v5614_v37 = vmul.f32 %v4660_v11, %v8848_v54  ;;  %v1093_v20 = vadd.f32 %v1061_v24, %v1028_v48  ;;  %v5647_v48 = vmul.f32 %v4680_v26, %v833_v28  ;;  %v5650_v54 = vmul.f32 %v4723_v45, %v833_v28 }
 0x101   : > { %8847 = vst [vmem:[#allocation93_spill] sm:$0xff] %v5608_v21  ;;  %v964_v24 = vadd.f32 %v5384_v43, %v899_v55  ;;  %v795_v55 = vadd.f32 %v763_v27, %v730_v15  ;;  %v1127_v15 = vmul.f32 %v4823_v52, %v834_v18 }
 0x102   : > { %8849 = vst [vmem:[#allocation87_spill] sm:$0xff] %v5618_v38  ;;  %v1158_v4 = vadd.f32 %v1126_v30, %v1093_v20  ;;  %v606_v38 = vadd.f32 %v574_v49, %v509_v40  ;;  %v1063_v20 = vmul.f32 %v4774_v8, %v833_v28  ;;  %v510_v40 = vmul.f32 %v4653_v2, %v469_v60 }
 0x103   : > { %8850 = vst [vmem:[#allocation129_spill] sm:$0xff] %v5622_v16  ;;  %v5652_v16 = vadd.f32 %v637_v17, %v604_v47  ;;  %v1029_v30 = vadd.f32 %v5500_v32, %v964_v24  ;;  %v699_v28 = vmul.f32 %v4763_v1, %v469_v60  ;;  %v900_v49 = vadd.f32 %v5327_v61, %v795_v55  ;;  %v5679_v17 = vld [vmem:[%s4603_s15 + $0xd8] sm:$0xff] }
 0x104   : > { %8851 = vst [vmem:[#allocation130_spill] sm:$0xff] %v5630_v51  ;;  %v5657_v43 = vadd.f32 %v5234_v56, %v1158_v4  ;;  %v5660_v51 = vld [vmem:[#allocation2 + $0x186] sm:$0xff] }
 0x105   : > { %8852 = vst [vmem:[#allocation131_spill] sm:$0xff] %v5634_v5  ;;  %v8854_v5 = vld [vmem:[#allocation66_spill] sm:$0xff]  ;;  %v1094_v32 = vadd.f32 %v1062_v19, %v1029_v30  ;;  %v731_v60 = vadd.f32 %v699_v28, %v5510_v62  ;;  %v575_v27 = vmul.f32 %v4662_v12, %v5660_v51  ;;  %v5694_v19 = vmul.f32 %v4656_v6, %v834_v18 }
 0x106   : > { %436 = vst [vmem:[#allocation2 + $0x1e8] sm:$0xff] %v5644_v25  ;;  %v5664_v21 = vmul.f32 %v4660_v11, %v8854_v5  ;;  %v5668_v47 = vmul.f32 %v4689_v29, %v8854_v5  ;;  %v5674_v56 = vmul.f32 %v4725_v46, %v8854_v5  ;;  %v5683_v4 = vmul.f32 %v4749_v59, %v8854_v5  ;;  %v835_v62 = vld [vmem:[#allocation2 + $0x16f] sm:$0xff] }
 0x107   : > { %8853 = vst [vmem:[#allocation132_spill] sm:$0xff] %v5657_v43  ;;  %v5687_v24 = vmul.f32 %v4832_v14, %v8854_v5  ;;  %v1159_v61 = vadd.f32 %v1127_v15, %v1094_v32  ;;  %v965_v30 = vadd.f32 %v5439_v50, %v900_v49  ;;  %v638_v55 = vmul.f32 %v4721_v44, %v5660_v51  ;;  %v472_v43 = vld [vmem:[#allocation2 + $0x18e] sm:$0xff] }
 0x108   : > { %8855 = vst [vmem:[#allocation66_spill] sm:$0xff] %v5668_v47  ;;  %v5700_v47 = vmul.f32 %v4680_v26, %v834_v18  ;;  %v5703_v5 = vmul.f32 %v4723_v45, %v834_v18  ;;  %v607_v28 = vadd.f32 %v575_v27, %v510_v40  ;;  %v5716_v49 = vmul.f32 %v4660_v11, %v5239_v41 }
 0x109   : > { %8856 = vst [vmem:[#allocation133_spill] sm:$0xff] %v5674_v56  ;;  %v764_v56 = vmul.f32 %v4808_v34, %v5660_v51  ;;  %v5709_v32 = vadd.f32 %v5294_v10, %v1159_v61  ;;  %v1030_v50 = vadd.f32 %v5548_v7, %v965_v30  ;;  %v5712_v15 = vadd.f32 %v638_v55, %v605_v35  ;;  %v5730_v61 = vld [vmem:[%s4603_s15 + $0xe0] sm:$0xff] }
 0x10a   : > { %8857 = vst [vmem:[#allocation134_spill] sm:$0xff] %v5683_v4  ;;  %v1064_v4 = vmul.f32 %v4774_v8, %v834_v18  ;;  %v700_v40 = vmul.f32 %v4763_v1, %v470_v57  ;;  %v5725_v10 = vmul.f32 %v4725_v46, %v5239_v41  ;;  %v511_v7 = vmul.f32 %v4653_v2, %v470_v57 }
 0x10b   : > { %8858 = vst [vmem:[#allocation135_spill] sm:$0xff] %v5687_v24  ;;  %v5720_v24 = vmul.f32 %v4689_v29, %v5239_v41  ;;  %v796_v27 = vadd.f32 %v764_v56, %v731_v60  ;;  %v1095_v35 = vadd.f32 %v1063_v20, %v1030_v50  ;;  %v1128_v18 = vmul.f32 %v4823_v52, %v835_v62 }
 0x10c   : > { %437 = vst [vmem:[#allocation2 + $0x1f0] sm:$0xff] %v5679_v17  ;;  %v5734_v30 = vmul.f32 %v4749_v59, %v5239_v41  ;;  %v5738_v55 = vmul.f32 %v4832_v14, %v5239_v41  ;;  %v732_v56 = vadd.f32 %v700_v40, %v5557_v13  ;;  %v5744_v57 = vmul.f32 %v4656_v6, %v835_v62 }
 0x10d   : > { %8859 = vst [vmem:[#allocation136_spill] sm:$0xff] %v5709_v32  ;;  %v901_v60 = vadd.f32 %v5378_v33, %v796_v27  ;;  %v1160_v20 = vadd.f32 %v1128_v18, %v1095_v35  ;;  %v576_v50 = vmul.f32 %v4662_v12, %v472_v43  ;;  %v5752_v41 = vmul.f32 %v4723_v45, %v835_v62  ;;  %v836_v35 = vld [vmem:[#allocation2 + $0x187] sm:$0xff] }
 0x10e   : > { %8860 = vst [vmem:[#allocation137_spill] sm:$0xff] %v5720_v24  ;;  %v639_v24 = vmul.f32 %v4721_v44, %v472_v43  ;;  %v765_v33 = vmul.f32 %v4808_v34, %v472_v43  ;;  %v1065_v40 = vmul.f32 %v4774_v8, %v835_v62  ;;  %v701_v32 = vmul.f32 %v4763_v1, %v5660_v51 }
 0x10f   : > { %8861 = vst [vmem:[#allocation138_spill] sm:$0xff] %v5725_v10  ;;  %v5749_v10 = vmul.f32 %v4680_v26, %v835_v62  ;;  %v966_v13 = vadd.f32 %v5497_v31, %v901_v60  ;;  %v5758_v27 = vadd.f32 %v5351_v0, %v1160_v20  ;;  %v608_v18 = vadd.f32 %v576_v50, %v511_v7  ;;  %v5787_v50 = vld [vmem:[%s4603_s15 + $0xe8] sm:$0xff] }
 0x110   : > { %8862 = vst [vmem:[#allocation139_spill] sm:$0xff] %v5730_v61  ;;  %v797_v60 = vadd.f32 %v765_v33, %v732_v56  ;;  %v5771_v0 = vmul.f32 %v4689_v29, %v5289_v58  ;;  %v5775_v62 = vmul.f32 %v4725_v46, %v5289_v58  ;;  %v733_v7 = vadd.f32 %v701_v32, %v5605_v42 }
 0x111   : > { %8863 = vst [vmem:[#allocation140_spill] sm:$0xff] %v5734_v30  ;;  %v5760_v30 = vadd.f32 %v639_v24, %v606_v38  ;;  %v1031_v31 = vadd.f32 %v5602_v22, %v966_v13  ;;  %v5779_v38 = vmul.f32 %v4749_v59, %v5289_v58  ;;  %v512_v24 = vmul.f32 %v4653_v2, %v5660_v51 }
 0x112   : > { %8864 = vst [vmem:[#allocation141_spill] sm:$0xff] %v5738_v55  ;;  %v5764_v55 = vmul.f32 %v4660_v11, %v5289_v58  ;;  %v1129_v56 = vmul.f32 %v4823_v52, %v836_v35  ;;  %v902_v20 = vadd.f32 %v5434_v36, %v797_v60  ;;  %v5791_v13 = vmul.f32 %v4832_v14, %v5289_v58  ;;  %v837_v60 = vld [vmem:[#allocation2 + $0x18f] sm:$0xff] }
 0x113   : > { %438 = vst [vmem:[#allocation2 + $0x208] sm:$0xff] %v5730_v61  ;;  %v473_v61 = vld [vmem:[#allocation2 + $0x1a6] sm:$0xff]  ;;  %v1096_v22 = vadd.f32 %v1064_v4, %v1031_v31  ;;  %v5794_v33 = vmul.f32 %v4656_v6, %v836_v35  ;;  %v5800_v42 = vmul.f32 %v4680_v26, %v836_v35  ;;  %v5805_v58 = vmul.f32 %v4723_v45, %v836_v35 }
 0x114   : > { %8865 = vst [vmem:[#allocation142_spill] sm:$0xff] %v5758_v27  ;;  %v640_v51 = vmul.f32 %v4721_v44, %v473_v61  ;;  %v967_v36 = vadd.f32 %v5545_v3, %v902_v20  ;;  %v766_v32 = vmul.f32 %v4808_v34, %v473_v61  ;;  %v1066_v31 = vmul.f32 %v4774_v8, %v836_v35  ;;  %v474_v3 = vld [vmem:[#allocation2 + $0x1ae] sm:$0xff]  ;;  %v8873_v20 = vld [vmem:[#allocation104_spill] sm:$0xff] }
 0x115   : > { %8866 = vst [vmem:[#allocation143_spill] sm:$0xff] %v5771_v0  ;;  %v577_v0 = vmul.f32 %v4662_v12, %v473_v61  ;;  %v1161_v4 = vadd.f32 %v1129_v56, %v1096_v22  ;;  %v702_v14 = vmul.f32 %v4763_v1, %v472_v43  ;;  %v5821_v35 = vmul.f32 %v4689_v29, %v8873_v20 }
 0x116   : > { %8867 = vst [vmem:[#allocation144_spill] sm:$0xff] %v5775_v62  ;;  %v1032_v22 = vadd.f32 %v5650_v54, %v967_v36  ;;  %v798_v56 = vadd.f32 %v766_v32, %v733_v7  ;;  %v1130_v7 = vmul.f32 %v4823_v52, %v837_v60  ;;  %v578_v36 = vmul.f32 %v4662_v12, %v474_v3 }
 0x117   : > { %8868 = vst [vmem:[#allocation145_spill] sm:$0xff] %v5779_v38  ;;  %v609_v62 = vadd.f32 %v577_v0, %v512_v24  ;;  %v5808_v38 = vadd.f32 %v640_v51, %v607_v28  ;;  %v5825_v28 = vmul.f32 %v4725_v46, %v8873_v20  ;;  %v513_v0 = vmul.f32 %v4653_v2, %v472_v43 }
 0x118   : > { %8869 = vst [vmem:[#allocation146_spill] sm:$0xff] %v5787_v50  ;;  %v734_v24 = vadd.f32 %v702_v14, %v5652_v16  ;;  %v1097_v54 = vadd.f32 %v1065_v40, %v1032_v22  ;;  %v5833_v51 = vmul.f32 %v4749_v59, %v8873_v20  ;;  %v641_v32 = vmul.f32 %v4721_v44, %v474_v3  ;;  %v838_v16 = vld [vmem:[#allocation2 + $0x1a7] sm:$0xff]  ;;  %v5846_v22 = vld [vmem:[%s4603_s15 + $0xf0] sm:$0xff] }
 0x119   : > { %8870 = vst [vmem:[#allocation147_spill] sm:$0xff] %v5791_v13  ;;  %v8871_v13 = vld [vmem:[#allocation74_spill] sm:$0xff]  ;;  %v5841_v43 = vmul.f32 %v4680_v26, %v837_v60 }
 0x11a   : > { %439 = vst [vmem:[#allocation2 + $0x210] sm:$0xff] %v5787_v50  ;;  %v5811_v27 = vadd.f32 %v8871_v13, %v1161_v4  ;;  %v5817_v50 = vmul.f32 %v4660_v11, %v8873_v20  ;;  %v903_v13 = vadd.f32 %v5488_v9, %v798_v56  ;;  %v5836_v4 = vmul.f32 %v4656_v6, %v837_v60 }
 0x11b   : > { %8875 = vst [vmem:[#allocation148_spill] sm:$0xff] %v5821_v35  ;;  %v1162_v14 = vadd.f32 %v1130_v7, %v1097_v54  ;;  %v767_v9 = vmul.f32 %v4808_v34, %v474_v3  ;;  %v5849_v56 = vmul.f32 %v4723_v45, %v837_v60  ;;  %v703_v20 = vmul.f32 %v4763_v1, %v473_v61 }
 0x11c   : > { %8872 = vst [vmem:[#allocation74_spill] sm:$0xff] %v5811_v27  ;;  %v968_v40 = vadd.f32 %v5596_v53, %v903_v13  ;;  %v610_v35 = vadd.f32 %v578_v36, %v513_v0  ;;  %v1067_v54 = vmul.f32 %v4774_v8, %v837_v60  ;;  %v475_v27 = vld [vmem:[#allocation2 + $0x1c6] sm:$0xff] }
 0x11d   : > { %8874 = vst [vmem:[#allocation104_spill] sm:$0xff] %v5817_v50  ;;  %v5860_v53 = vadd.f32 %v5462_v39, %v1162_v14  ;;  %v799_v13 = vadd.f32 %v767_v9, %v734_v24  ;;  %v8880_v50 = vld [vmem:[#allocation108_spill] sm:$0xff]  ;;  %v735_v36 = vadd.f32 %v703_v20, %v5712_v15  ;;  %v5874_v39 = vmul.f32 %v4680_v26, %v838_v16  ;;  %v8883_v24 = vld [vmem:[#allocation122_spill] sm:$0xff]  ;;  %v8884_v9 = vld [vmem:[#allocation113_spill] sm:$0xff] }
 0x11e   : > { %8876 = vst [vmem:[#allocation149_spill] sm:$0xff] %v5825_v28  ;;  %v5852_v28 = vadd.f32 %v641_v32, %v608_v18  ;;  %v1033_v7 = vadd.f32 %v5703_v5, %v968_v40  ;;  %v5866_v0 = vmul.f32 %v4660_v11, %v8880_v50  ;;  %v514_v18 = vmul.f32 %v4653_v2, %v473_v61  ;;  %v839_v15 = vld [vmem:[#allocation2 + $0x1af] sm:$0xff] }
 0x11f   : > { %8877 = vst [vmem:[#allocation150_spill] sm:$0xff] %v5833_v51  ;;  %v5856_v51 = vld [vmem:[%s4603_s15 + $0xf8] sm:$0xff]  ;;  %v5871_v32 = vmul.f32 %v4656_v6, %v838_v16  ;;  %v1131_v5 = vmul.f32 %v4823_v52, %v838_v16  ;;  %v904_v14 = vadd.f32 %v8883_v24, %v799_v13  ;;  %v5879_v40 = vmul.f32 %v4723_v45, %v838_v16 }
 0x120   : > { %440 = vst [vmem:[#allocation2 + $0x228] sm:$0xff] %v5846_v22  ;;  %v1098_v60 = vadd.f32 %v1066_v31, %v1033_v7  ;;  %v1068_v50 = vmul.f32 %v4774_v8, %v838_v16  ;;  %v5884_v61 = vmul.f32 %v4660_v11, %v8884_v9  ;;  %v579_v20 = vmul.f32 %v4662_v12, %v475_v27 }
 0x121   : > { %8878 = vst [vmem:[#allocation151_spill] sm:$0xff] %v5856_v51  ;;  %v5889_v31 = vmul.f32 %v4689_v29, %v8884_v9  ;;  %v969_v7 = vadd.f32 %v5647_v48, %v904_v14  ;;  %v642_v13 = vmul.f32 %v4721_v44, %v475_v27  ;;  %v515_v24 = vmul.f32 %v4653_v2, %v474_v3 }
 0x122   : > { %8879 = vst [vmem:[#allocation152_spill] sm:$0xff] %v5860_v53  ;;  %v1163_v53 = vadd.f32 %v1131_v5, %v1098_v60  ;;  %v704_v16 = vmul.f32 %v4763_v1, %v474_v3  ;;  %v5902_v60 = vmul.f32 %v4656_v6, %v839_v15  ;;  %v5909_v14 = vmul.f32 %v4680_v26, %v839_v15 }
 0x123   : > { %441 = vst [vmem:[#allocation2 + $0x230] sm:$0xff] %v5856_v51  ;;  %v8887_v51 = vld [vmem:[#allocation78_spill] sm:$0xff]  ;;  %v1034_v5 = vadd.f32 %v5752_v41, %v969_v7  ;;  %v5905_v9 = vadd.f32 %v642_v13, %v609_v62  ;;  %v5912_v3 = vmul.f32 %v4723_v45, %v839_v15  ;;  %v5925_v62 = vmul.f32 %v4653_v2, %v475_v27 }
 0x124   : > { %8881 = vst [vmem:[#allocation108_spill] sm:$0xff] %v5866_v0  ;;  %v5895_v0 = vadd.f32 %v579_v20, %v514_v18  ;;  %v736_v48 = vadd.f32 %v704_v16, %v5760_v30  ;;  %v840_v20 = vld [vmem:[#allocation2 + $0x1c7] sm:$0xff] }
 0x125   : > { %8882 = vst [vmem:[#allocation153_spill] sm:$0xff] %v5871_v32  ;;  %v5899_v32 = vadd.f32 %v8887_v51, %v1163_v53  ;;  %v1069_v51 = vmul.f32 %v4774_v8, %v839_v15  ;;  %v1099_v53 = vadd.f32 %v1067_v54, %v1034_v5  ;;  %v5930_v54 = vmul.f32 %v4656_v6, %v840_v20 }
 0x126   : > { %8885 = vst [vmem:[#allocation122_spill] sm:$0xff] %v5884_v61  ;;  %v768_v61 = vmul.f32 %v4808_v34, %v475_v27 }
 0x127   : > { %8886 = vst [vmem:[#allocation113_spill] sm:$0xff] %v5889_v31  ;;  %v476_v31 = vld [vmem:[#allocation2 + $0x1ce] sm:$0xff] }
 0x128   : > { %8888 = vst [vmem:[#allocation78_spill] sm:$0xff] %v5899_v32  ;;  %v800_v18 = vadd.f32 %v768_v61, %v735_v36  ;;  %v1132_v32 = vmul.f32 %v4823_v52, %v839_v15  ;;  %v705_v36 = vmul.f32 %v4763_v1, %v475_v27  ;;  %v580_v15 = vmul.f32 %v4662_v12, %v476_v31  ;;  %v8895_v27 = vld [vmem:[#allocation80_spill] sm:$0xff] }
 0x129   : > { %8889 = vst [vmem:[#allocation154_spill] sm:$0xff] %v5902_v60  ;;  %v8890_v60 = vld [vmem:[#allocation117_spill] sm:$0xff]  ;;  %v643_v13 = vmul.f32 %v4721_v44, %v476_v31 }
 0x12a   : > { %v5918_v41 = vmul.f32 %v4660_v11, %v8890_v60  ;;  %v5922_v30 = vmul.f32 %v4689_v29, %v8890_v60  ;;  %v905_v61 = vadd.f32 %v5588_v23, %v800_v18  ;;  %v1164_v7 = vadd.f32 %v1132_v32, %v1099_v53  ;;  %8893 = vst [vmem:[#allocation156_spill] sm:$0xff] %v5930_v54  ;;  %v841_v53 = vld [vmem:[#allocation2 + $0x1cf] sm:$0xff] }
 0x12b   : > { %v737_v16 = vadd.f32 %v705_v36, %v5808_v38  ;;  %v5936_v60 = vmul.f32 %v4680_v26, %v840_v20  ;;  %v5944_v23 = vmul.f32 %v4723_v45, %v840_v20  ;;  %v5946_v32 = vadd.f32 %v580_v15, %v515_v24  ;;  %v477_v15 = vld [vmem:[#allocation2 + $0x1e6] sm:$0xff] }
 0x12c   : > { %8891 = vst [vmem:[#allocation117_spill] sm:$0xff] %v5918_v41  ;;  %v970_v5 = vadd.f32 %v5700_v47, %v905_v61  ;;  %v769_v41 = vmul.f32 %v4808_v34, %v476_v31  ;;  %v5948_v18 = vadd.f32 %v643_v13, %v610_v35  ;;  %v1070_v36 = vmul.f32 %v4774_v8, %v840_v20  ;;  %v8897_v61 = vld [vmem:[#allocation123_spill] sm:$0xff] }
 0x12d   : > { %8892 = vst [vmem:[#allocation155_spill] sm:$0xff] %v5922_v30  ;;  %v5941_v30 = vadd.f32 %v8895_v27, %v1164_v7  ;;  %v1133_v54 = vmul.f32 %v4823_v52, %v840_v20  ;;  %v5959_v7 = vmul.f32 %v4689_v29, %v8897_v61  ;;  %v5962_v24 = vmul.f32 %v4653_v2, %v476_v31 }
 0x12e   : > { %8894 = vst [vmem:[#allocation157_spill] sm:$0xff] %v5936_v60  ;;  %v1035_v38 = vadd.f32 %v5805_v58, %v970_v5  ;;  %v801_v47 = vadd.f32 %v769_v41, %v736_v48  ;;  %v5955_v60 = vmul.f32 %v4660_v11, %v8897_v61  ;;  %v706_v35 = vmul.f32 %v4763_v1, %v476_v31 }
 0x12f   : > { %8896 = vst [vmem:[#allocation80_spill] sm:$0xff] %v5941_v30  ;;  %v5966_v13 = vmul.f32 %v4656_v6, %v841_v53  ;;  %v5970_v20 = vmul.f32 %v4680_v26, %v841_v53  ;;  %v5974_v5 = vmul.f32 %v4723_v45, %v841_v53  ;;  %v5977_v27 = vmul.f32 %v4774_v8, %v841_v53 }
 0x130   : > { %8898 = vst [vmem:[#allocation123_spill] sm:$0xff] %v5955_v60  ;;  %v1100_v58 = vadd.f32 %v1068_v50, %v1035_v38  ;;  %v906_v48 = vadd.f32 %v5639_v63, %v801_v47  ;;  %v738_v41 = vadd.f32 %v706_v35, %v5852_v28  ;;  %v1134_v31 = vmul.f32 %v4823_v52, %v841_v53  ;;  %v8901_v38 = vld [vmem:[#allocation128_spill] sm:$0xff]  ;;  %v842_v47 = vld [vmem:[#allocation2 + $0x1e7] sm:$0xff] }
 0x131   : > { %8899 = vst [vmem:[#allocation158_spill] sm:$0xff] %v5959_v7  ;;  %v5983_v30 = vmul.f32 %v4660_v11, %v8901_v38  ;;  %v770_v63 = vmul.f32 %v4808_v34, %v477_v15  ;;  %v5988_v28 = vmul.f32 %v4689_v29, %v8901_v38  ;;  %v518_v35 = vmul.f32 %v4653_v2, %v477_v15 }
 0x132   : > { %8900 = vst [vmem:[#allocation159_spill] sm:$0xff] %v5966_v13  ;;  %v1165_v61 = vadd.f32 %v1133_v54, %v1100_v58  ;;  %v971_v50 = vadd.f32 %v5749_v10, %v906_v48  ;;  %v581_v60 = vmul.f32 %v4662_v12, %v477_v15  ;;  %v644_v53 = vmul.f32 %v4721_v44, %v477_v15 }
 0x133   : > { %8902 = vst [vmem:[#allocation128_spill] sm:$0xff] %v5983_v30  ;;  %v707_v58 = vmul.f32 %v4763_v1, %v477_v15  ;;  %v802_v48 = vadd.f32 %v770_v63, %v737_v16  ;;  %v478_v30 = vld [vmem:[#allocation2 + $0x1ee] sm:$0xff]  ;;  %v5999_v7 = vmul.f32 %v4656_v6, %v842_v47  ;;  %v6002_v38 = vmul.f32 %v4680_v26, %v842_v47 }
 0x134   : > { %8903 = vst [vmem:[#allocation160_spill] sm:$0xff] %v5988_v28  ;;  %v5994_v54 = vadd.f32 %v5614_v37, %v1165_v61  ;;  %v1036_v10 = vadd.f32 %v5849_v56, %v971_v50  ;;  %v6005_v28 = vmul.f32 %v4723_v45, %v842_v47  ;;  %v6008_v13 = vmul.f32 %v4774_v8, %v842_v47  ;;  %v843_v15 = vld [vmem:[#allocation2 + $0x1ef] sm:$0xff] }
 0x135   : > { %8905 = vst [vmem:[#allocation162_spill] sm:$0xff] %v5999_v7  ;;  %v907_v61 = vadd.f32 %v5694_v19, %v802_v48  ;;  %v1135_v56 = vmul.f32 %v4823_v52, %v842_v47  ;;  %v6014_v16 = vmul.f32 %v4660_v11, %v5644_v25  ;;  %v6018_v50 = vmul.f32 %v4689_v29, %v5644_v25 }
 0x136   : > { %8904 = vst [vmem:[#allocation161_spill] sm:$0xff] %v5994_v54  ;;  %v1101_v37 = vadd.f32 %v1069_v51, %v1036_v10  ;;  %v6022_v63 = vmul.f32 %v4725_v46, %v5644_v25  ;;  %v519_v54 = vmul.f32 %v4653_v2, %v478_v30  ;;  %v771_v51 = vmul.f32 %v4808_v34, %v478_v30 }
 0x137   : > { %8906 = vst [vmem:[#allocation163_spill] sm:$0xff] %v6002_v38  ;;  %v972_v47 = vadd.f32 %v5800_v42, %v907_v61  ;;  %v582_v10 = vmul.f32 %v4662_v12, %v478_v30  ;;  %v645_v48 = vmul.f32 %v4721_v44, %v478_v30  ;;  %v708_v38 = vmul.f32 %v4763_v1, %v478_v30 }
 0x138   : > { %8907 = vst [vmem:[#allocation164_spill] sm:$0xff] %v6014_v16  ;;  %v1166_v19 = vadd.f32 %v1134_v31, %v1101_v37  ;;  %v479_v16 = vld [vmem:[#allocation2 + $0x206] sm:$0xff]  ;;  %v803_v7 = vadd.f32 %v771_v51, %v738_v41  ;;  %v6034_v25 = vmul.f32 %v4680_v26, %v843_v15  ;;  %v6041_v42 = vmul.f32 %v4723_v45, %v843_v15 }
 0x139   : > { %8908 = vst [vmem:[#allocation165_spill] sm:$0xff] %v6018_v50  ;;  %v6031_v50 = vmul.f32 %v4656_v6, %v843_v15  ;;  %v1037_v31 = vadd.f32 %v5879_v40, %v972_v47  ;;  %v6044_v37 = vmul.f32 %v4774_v8, %v843_v15  ;;  %v1136_v41 = vmul.f32 %v4823_v52, %v843_v15  ;;  %v844_v47 = vld [vmem:[#allocation2 + $0x207] sm:$0xff] }
 0x13a   : > { %8909 = vst [vmem:[#allocation166_spill] sm:$0xff] %v6022_v63  ;;  %v6037_v2 = vadd.f32 %v5664_v21, %v1166_v19  ;;  %v908_v30 = vadd.f32 %v5744_v57, %v803_v7  ;;  %v6050_v6 = vmul.f32 %v4660_v11, %v5679_v17  ;;  %v583_v61 = vmul.f32 %v4662_v12, %v479_v16 }
 0x13b   : > { %v1102_v21 = vadd.f32 %v1070_v36, %v1037_v31  ;;  %v613_v51 = vadd.f32 %v581_v60, %v5925_v62  ;;  %v646_v40 = vmul.f32 %v4721_v44, %v479_v16  ;;  %v676_v19 = vadd.f32 %v644_v53, %v5895_v0  ;;  %v480_v53 = vld [vmem:[#allocation2 + $0x20e] sm:$0xff] }
 0x13c   : > { %8910 = vst [vmem:[#allocation167_spill] sm:$0xff] %v6037_v2  ;;  %v973_v2 = vadd.f32 %v5841_v43, %v908_v30  ;;  %v615_v63 = vadd.f32 %v583_v61, %v518_v35  ;;  %v709_v57 = vmul.f32 %v4763_v1, %v479_v16  ;;  %v739_v7 = vadd.f32 %v707_v58, %v5905_v9 }
 0x13d   : > { %v1167_v15 = vadd.f32 %v1135_v56, %v1102_v21  ;;  %v6061_v11 = vmul.f32 %v4689_v29, %v5679_v17  ;;  %v6065_v62 = vmul.f32 %v4725_v46, %v5679_v17  ;;  %v772_v60 = vmul.f32 %v4808_v34, %v479_v16 }
 0x13e   : > { %v1038_v0 = vadd.f32 %v5912_v3, %v973_v2  ;;  %v678_v36 = vadd.f32 %v646_v40, %v613_v51  ;;  %v741_v43 = vadd.f32 %v709_v57, %v676_v19  ;;  %v6070_v35 = vmul.f32 %v4680_v26, %v844_v47  ;;  %v8912_v2 = vld [vmem:[#allocation139_spill] sm:$0xff] }
 0x13f   : > { %v6073_v9 = vadd.f32 %v5716_v49, %v1167_v15  ;;  %v804_v58 = vadd.f32 %v772_v60, %v739_v7  ;;  %v6076_v56 = vmul.f32 %v4723_v45, %v844_v47  ;;  %v6079_v17 = vmul.f32 %v4774_v8, %v844_v47  ;;  %v845_v40 = vld [vmem:[#allocation2 + $0x20f] sm:$0xff] }
 0x140   : > { %v1103_v16 = vadd.f32 %v5977_v27, %v1038_v0  ;;  %v1137_v3 = vmul.f32 %v4823_v52, %v844_v47  ;;  %v6085_v31 = vmul.f32 %v4689_v29, %v8912_v2  ;;  %v6089_v30 = vmul.f32 %v4725_v46, %v8912_v2  ;;  %v8914_v0 = vld [vmem:[#allocation146_spill] sm:$0xff] }
 0x141   : > { %8911 = vst [vmem:[#allocation168_spill] sm:$0xff] %v6073_v9  ;;  %v909_v49 = vadd.f32 %v5794_v33, %v804_v58  ;;  %v584_v61 = vmul.f32 %v4662_v12, %v480_v53  ;;  %v614_v21 = vadd.f32 %v582_v10, %v5962_v24  ;;  %v647_v51 = vmul.f32 %v4721_v44, %v480_v53 }
 0x142   : > { %v1168_v27 = vadd.f32 %v1136_v41, %v1103_v16  ;;  %v677_v19 = vadd.f32 %v645_v48, %v5946_v32  ;;  %v710_v47 = vmul.f32 %v4763_v1, %v480_v53  ;;  %v740_v57 = vadd.f32 %v708_v38, %v5948_v18  ;;  %v481_v48 = vld [vmem:[#allocation2 + $0x226] sm:$0xff] }
 0x143   : > { %v974_v7 = vadd.f32 %v5874_v39, %v909_v49  ;;  %v616_v15 = vadd.f32 %v584_v61, %v519_v54  ;;  %v679_v60 = vadd.f32 %v647_v51, %v614_v21  ;;  %v773_v33 = vmul.f32 %v4808_v34, %v480_v53 }
 0x144   : > { %v6101_v12 = vadd.f32 %v5764_v55, %v1168_v27  ;;  %v6105_v24 = vmul.f32 %v4749_v59, %v8912_v2  ;;  %v742_v10 = vadd.f32 %v710_v47, %v677_v19  ;;  %v6108_v32 = vmul.f32 %v4680_v26, %v845_v40  ;;  %v846_v55 = vld [vmem:[#allocation2 + $0x227] sm:$0xff] }
 0x145   : > { %v1039_v18 = vadd.f32 %v5944_v23, %v974_v7  ;;  %v805_v38 = vadd.f32 %v773_v33, %v740_v57  ;;  %v6112_v39 = vmul.f32 %v4723_v45, %v845_v40  ;;  %v6115_v54 = vmul.f32 %v4774_v8, %v845_v40 }
 0x146   : > { %8913 = vst [vmem:[#allocation139_spill] sm:$0xff] %v6101_v12  ;;  %v1138_v41 = vmul.f32 %v4823_v52, %v845_v40  ;;  %v6120_v53 = vmul.f32 %v4689_v29, %v8914_v0  ;;  %v6124_v26 = vmul.f32 %v4725_v46, %v8914_v0  ;;  %v6128_v23 = vmul.f32 %v4749_v59, %v8914_v0  ;;  %v8920_v12 = vld [vmem:[#allocation113_spill] sm:$0xff] }
 0x147   : > { %v1104_v58 = vadd.f32 %v6008_v13, %v1039_v18  ;;  %v910_v16 = vadd.f32 %v5836_v4, %v805_v38  ;;  %v648_v2 = vmul.f32 %v4721_v44, %v481_v48  ;;  %v711_v49 = vmul.f32 %v4763_v1, %v481_v48  ;;  %v482_v4 = vld [vmem:[#allocation2 + $0x22e] sm:$0xff] }
 0x148   : > { %v774_v61 = vmul.f32 %v4808_v34, %v481_v48  ;;  %v6136_v21 = vmul.f32 %v4723_v45, %v846_v55  ;;  %v6139_v51 = vmul.f32 %v4774_v8, %v846_v55  ;;  %v1139_v40 = vmul.f32 %v4823_v52, %v846_v55  ;;  %v8915_v48 = vld [vmem:[#allocation45_spill] sm:$0xff]  ;;  %v847_v38 = vld [vmem:[#allocation2 + $0x22f] sm:$0xff] }
 0x149   : > { %v1169_v27 = vadd.f32 %v1137_v3, %v1104_v58  ;;  %v975_v19 = vadd.f32 %v5909_v14, %v910_v16  ;;  %v680_v13 = vadd.f32 %v648_v2, %v615_v63  ;;  %v743_v47 = vadd.f32 %v711_v49, %v678_v36  ;;  %v8916_v3 = vld [vmem:[#allocation104_spill] sm:$0xff]  ;;  %v8917_v63 = vld [vmem:[#allocation34_spill] sm:$0xff]  ;;  %v8919_v58 = vld [vmem:[#allocation153_spill] sm:$0xff] }
 0x14a   : > { %v806_v57 = vadd.f32 %v774_v61, %v741_v43  ;;  %v6145_v7 = vmul.f32 %v4725_v46, %v5846_v22  ;;  %v6149_v33 = vmul.f32 %v4749_v59, %v5846_v22  ;;  %v6153_v18 = vmul.f32 %v8915_v48, %v5846_v22  ;;  %v8918_v43 = vld [vmem:[#allocation46_spill] sm:$0xff] }
 0x14b   : > { %v1274_v55 = vadd.f32 %v8916_v3, %v1169_v27  ;;  %v1040_v14 = vadd.f32 %v5974_v5, %v975_v19  ;;  %v745_v36 = vadd.f32 %v8917_v63, %v680_v13  ;;  %v808_v0 = vadd.f32 %v8918_v43, %v743_v47  ;;  %v8922_v19 = vld [vmem:[#allocation157_spill] sm:$0xff] }
 0x14c   : > { %v911_v16 = vadd.f32 %v8919_v58, %v806_v57  ;;  %v649_v2 = vmul.f32 %v4721_v44, %v482_v4  ;;  %v712_v49 = vmul.f32 %v4763_v1, %v482_v4  ;;  %v775_v61 = vmul.f32 %v4808_v34, %v482_v4  ;;  %v8923_v1 = vld [vmem:[#allocation151_spill] sm:$0xff] }
 0x14d   : > { %v6164_v22 = vadd.f32 %v8920_v12, %v1274_v55  ;;  %v1105_v9 = vadd.f32 %v6044_v37, %v1040_v14  ;;  %v1014_v27 = vmul.f32 %v4723_v45, %v847_v38  ;;  %v1077_v5 = vmul.f32 %v4774_v8, %v847_v38  ;;  %v8924_v37 = vld [vmem:[#allocation154_spill] sm:$0xff]  ;;  %v8929_v14 = vld [vmem:[#allocation156_spill] sm:$0xff] }
 0x14e   : > { %v976_v13 = vadd.f32 %v8922_v19, %v911_v16  ;;  %v681_v47 = vadd.f32 %v649_v2, %v616_v15  ;;  %v744_v3 = vadd.f32 %v712_v49, %v679_v60  ;;  %v807_v57 = vadd.f32 %v775_v61, %v742_v10  ;;  %v8925_v60 = vld [vmem:[#allocation35_spill] sm:$0xff]  ;;  %v8926_v10 = vld [vmem:[#allocation108_spill] sm:$0xff]  ;;  %v8932_v61 = vld [vmem:[#allocation21_spill] sm:$0xff] }
 0x14f   : > { %8921 = vst [vmem:[#allocation146_spill] sm:$0xff] %v6164_v22  ;;  %v1170_v63 = vadd.f32 %v1138_v41, %v1105_v9  ;;  %v1140_v44 = vmul.f32 %v4823_v52, %v847_v38  ;;  %v6173_v34 = vmul.f32 %v4725_v46, %v8923_v1  ;;  %v6177_v12 = vmul.f32 %v4749_v59, %v8923_v1  ;;  %v8927_v41 = vld [vmem:[#allocation47_spill] sm:$0xff]  ;;  %v8928_v38 = vld [vmem:[#allocation48_spill] sm:$0xff] }
 0x150   : > { %v1041_v45 = vadd.f32 %v6005_v28, %v976_v13  ;;  %v912_v8 = vadd.f32 %v8924_v37, %v807_v57  ;;  %v6183_v15 = vmul.f32 %v8915_v48, %v8923_v1  ;;  %v746_v9 = vadd.f32 %v8925_v60, %v681_v47  ;;  %v8930_v16 = vld [vmem:[#allocation51_spill] sm:$0xff]  ;;  %v8936_v1 = vld [vmem:[#allocation162_spill] sm:$0xff] }
 0x151   : > { %v1275_v52 = vadd.f32 %v8926_v10, %v1170_v63  ;;  %v809_v4 = vadd.f32 %v8927_v41, %v744_v3  ;;  %v810_v55 = vadd.f32 %v8928_v38, %v745_v36  ;;  %v913_v43 = vadd.f32 %v8929_v14, %v808_v0  ;;  %v8931_v49 = vld [vmem:[#allocation83_spill] sm:$0xff] }
 0x152   : > { %v1106_v58 = vadd.f32 %v6079_v17, %v1041_v45  ;;  %v977_v28 = vadd.f32 %v5970_v20, %v912_v8  ;;  %v811_v2 = vadd.f32 %v8930_v16, %v746_v9  ;;  %v1315_v19 = vadd.f32 %v8932_v61, %v8931_v49  ;;  %v8933_v13 = vld [vmem:[#allocation155_spill] sm:$0xff]  ;;  %v8938_v20 = vld [vmem:[#allocation29_spill] sm:$0xff]  ;;  %v8942_v49 = vld [vmem:[#allocation58_spill] sm:$0xff] }
 0x153   : > { %v6196_v57 = vadd.f32 %v8933_v13, %v1275_v52  ;;  %v8935_v47 = vld [vmem:[#allocation159_spill] sm:$0xff]  ;;  %v915_v3 = vadd.f32 %v8936_v1, %v810_v55  ;;  %v8943_v13 = vld [vmem:[#allocation37_spill] sm:$0xff]  ;;  %v4235_v1 = vld [vmem:[#allocation6 + $0x18] sm:$0x1f] }
 0x154   : > { %v914_v63 = vadd.f32 %v8935_v47, %v809_v4  ;;  %v8937_v37 = vld [vmem:[#allocation163_spill] sm:$0xff]  ;;  %v1171_v60 = vadd.f32 %v1139_v40, %v1106_v58  ;;  %v1042_v0 = vadd.f32 %v6041_v42, %v977_v28  ;;  %v916_v17 = vadd.f32 %v6031_v50, %v811_v2  ;;  %v8939_v4 = vld [vmem:[#allocation122_spill] sm:$0xff]  ;;  %v8940_v50 = vld [vmem:[#allocation36_spill] sm:$0xff] }
 0x155   : > { %8934 = vst [vmem:[#allocation104_spill] sm:$0xff] %v6196_v57  ;;  %v978_v36 = vadd.f32 %v8937_v37, %v913_v43  ;;  %v1380_v45 = vadd.f32 %v8938_v20, %v1315_v19  ;;  %v980_v9 = vadd.f32 %v6070_v35, %v915_v3  ;;  %v6207_v52 = vld [vmem:[#allocation6 + $0x10] sm:$0x1f]  ;;  %v8941_v58 = vld [vmem:[#allocation158_spill] sm:$0xff]  ;;  %v8944_v47 = vld [vmem:[#allocation49_spill] sm:$0xff] }
 0x156   : > { %v979_v8 = vadd.f32 %v6034_v25, %v914_v63  ;;  %v6210_v41 = vperm.slane %v6207_v52, 3  ;;  %v1276_v38 = vadd.f32 %v8939_v4, %v1171_v60  ;;  %v1107_v40 = vadd.f32 %v6115_v54, %v1042_v0  ;;  %v8948_v0 = vld [vmem:[#allocation16_spill] sm:$0xff]  ;;  %v6237_v4 = vld [vmem:[#allocation2 + $0x89] sm:$0xff] }
 0x157   : > { %v1043_v10 = vadd.f32 %v6076_v56, %v978_v36  ;;  %v981_v42 = vadd.f32 %v6108_v32, %v916_v17  ;;  %v1445_v55 = vadd.f32 %v8940_v50, %v1380_v45  ;;  %v1045_v25 = vadd.f32 %v6136_v21, %v980_v9  ;;  %v4234_v56 = vld [vmem:[#allocation2 + $0x49] sm:$0xff]  ;;  %v8950_v20 = vld [vmem:[#allocation52_spill] sm:$0xff]  ;;  %v8953_v50 = vld [vmem:[#allocation53_spill] sm:$0xff] }
 0x158   : > { %v1044_v14 = vadd.f32 %v6112_v39, %v979_v8  ;;  %v1713_v43 = vmul.f32 %v4234_v56, %v6210_v41  ;;  %v1341_v28 = vadd.f32 %v8941_v58, %v1276_v38  ;;  %v1172_v16 = vadd.f32 %v1140_v44, %v1107_v40  ;;  %v8945_v21 = vld [vmem:[#allocation166_spill] sm:$0xff]  ;;  %v8952_v40 = vld [vmem:[#allocation160_spill] sm:$0xff] }
 0x159   : > { %v1108_v35 = vadd.f32 %v6139_v51, %v1043_v10  ;;  %v1046_v2 = vadd.f32 %v1014_v27, %v981_v42  ;;  %v1510_v19 = vadd.f32 %v8942_v49, %v1445_v55  ;;  %v1110_v32 = vadd.f32 %v8943_v13, %v1045_v25  ;;  %v8946_v51 = vld [vmem:[#allocation117_spill] sm:$0xff]  ;;  %v8947_v36 = vld [vmem:[#allocation38_spill] sm:$0xff]  ;;  %v8956_v58 = vld [vmem:[#allocation164_spill] sm:$0xff] }
 0x15a   : > { %v1109_v54 = vadd.f32 %v1077_v5, %v1044_v14  ;;  %v6224_v39 = vperm.slane %v4235_v1, 3  ;;  %v1406_v3 = vadd.f32 %v8945_v21, %v1341_v28  ;;  %v1277_v37 = vadd.f32 %v8946_v51, %v1172_v16  ;;  %v8949_v44 = vld [vmem:[#allocation50_spill] sm:$0xff]  ;;  %v8951_v5 = vld [vmem:[#allocation123_spill] sm:$0xff]  ;;  %v8957_v16 = vld [vmem:[#allocation165_spill] sm:$0xff] }
 0x15b   : > { %v1173_v63 = vadd.f32 %v8944_v47, %v1108_v35  ;;  %v1111_v60 = vadd.f32 %v8947_v36, %v1046_v2  ;;  %v1615_v17 = vadd.f32 %v8948_v0, %v1510_v19  ;;  %v1175_v45 = vadd.f32 %v8950_v20, %v1110_v32  ;;  %v6233_v9 = vld [vmem:[#allocation2 + $0x69] sm:$0xff]  ;;  %v8955_v35 = vld [vmem:[#allocation128_spill] sm:$0xff]  ;;  %v4237_v49 = vld [vmem:[#allocation6 + $0x20] sm:$0x1f] }
 0x15c   : > { %v1174_v27 = vadd.f32 %v8949_v44, %v1109_v54  ;;  %v1778_v10 = vmul.f32 %v6233_v9, %v6224_v39  ;;  %v1471_v38 = vadd.f32 %v6105_v24, %v1406_v3  ;;  %v1342_v42 = vadd.f32 %v8952_v40, %v1277_v37  ;;  %v8954_v14 = vld [vmem:[#allocation22_spill] sm:$0xff]  ;;  %v8960_v20 = vld [vmem:[#allocation40_spill] sm:$0xff] }
 0x15d   : > { %v1278_v8 = vadd.f32 %v8951_v5, %v1173_v63  ;;  %v1176_v55 = vadd.f32 %v8953_v50, %v1111_v60  ;;  %v1680_v25 = vadd.f32 %v8954_v14, %v1615_v17  ;;  %v1280_v28 = vadd.f32 %v8956_v58, %v1175_v45  ;;  %v1907_v51 = vld [vmem:[#allocation2 + $0xa] sm:$0xff] }
 0x15e   : > { %v1279_v56 = vadd.f32 %v8955_v35, %v1174_v27  ;;  %v6246_v19 = vperm.slane %v4237_v49, 3  ;;  %v6249_v54 = vadd.f32 %v6153_v18, %v1471_v38  ;;  %v1407_v24 = vadd.f32 %v6065_v62, %v1342_v42  ;;  %v6260_v60 = vld [vmem:[#allocation2 + $0x2a] sm:$0xff]  ;;  %v4238_v62 = vld [vmem:[#allocation6] sm:$0x1f] }
 0x15f   : > { %v1343_v2 = vadd.f32 %v8957_v16, %v1278_v8  ;;  %v1281_v13 = vadd.f32 %v6050_v6, %v1176_v55  ;;  %v1745_v32 = vadd.f32 %v1713_v43, %v1680_v25  ;;  %v1345_v63 = vadd.f32 %v6085_v31, %v1280_v28  ;;  %v4239_v43 = vld [vmem:[#allocation6 + $0x8] sm:$0x1f]  ;;  %v8966_v55 = vld [vmem:[#allocation85_spill] sm:$0xff] }
 0x160   : > { %8958 = vst [vmem:[#allocation34_spill] sm:$0xff] %v6249_v54  ;;  %v1344_v47 = vadd.f32 %v6061_v11, %v1279_v56  ;;  %v1843_v3 = vmul.f32 %v6246_v19, %v6237_v4  ;;  %v1472_v37 = vadd.f32 %v6128_v23, %v1407_v24  ;;  %v6262_v6 = vperm.slane %v4238_v62, 4  ;;  %v4240_v38 = vld [vmem:[#allocation2 + $0x188] sm:$0xff]  ;;  %v4241_v56 = vld [vmem:[#allocation2 + $0x190] sm:$0xff] }
 0x161   : > { %v1408_v21 = vadd.f32 %v6089_v30, %v1343_v2  ;;  %v1346_v18 = vadd.f32 %v6120_v53, %v1281_v13  ;;  %v1810_v36 = vadd.f32 %v1778_v10, %v1745_v32  ;;  %v1410_v31 = vadd.f32 %v6145_v7, %v1345_v63  ;;  %v6279_v7 = vld [vmem:[#allocation2 + $0x4a] sm:$0xff] }
 0x162   : > { %v1409_v11 = vadd.f32 %v6124_v26, %v1344_v47  ;;  %v6267_v0 = vperm.slane %v4239_v43, 4  ;;  %v6270_v17 = vadd.f32 %v6183_v15, %v1472_v37  ;;  %v1948_v44 = vmul.f32 %v6262_v6, %v1907_v51  ;;  %v8961_v26 = vld [vmem:[#allocation59_spill] sm:$0xff]  ;;  %v8971_v2 = vld [vmem:[#allocation30_spill] sm:$0xff] }
 0x163   : > { %v1473_v30 = vadd.f32 %v6149_v33, %v1408_v21  ;;  %v1411_v53 = vadd.f32 %v6173_v34, %v1346_v18  ;;  %v1875_v23 = vadd.f32 %v1843_v3, %v1810_v36  ;;  %v1475_v45 = vadd.f32 %v8960_v20, %v1410_v31  ;;  %v6298_v50 = vld [vmem:[#allocation2 + $0x6a] sm:$0xff]  ;;  %v1908_v21 = vld [vmem:[#allocation2 + $0x12] sm:$0xff] }
 0x164   : > { %8959 = vst [vmem:[#allocation46_spill] sm:$0xff] %v6270_v17  ;;  %v1474_v27 = vadd.f32 %v6177_v12, %v1409_v11  ;;  %v2013_v33 = vmul.f32 %v6267_v0, %v6260_v60  ;;  %v6285_v34 = vperm.slane %v6207_v52, 4  ;;  %v6287_v10 = vperm.slane %v4235_v1, 4  ;;  %v6321_v13 = vld [vmem:[#allocation2 + $0x91] sm:$0xff] }
 0x165   : > { %v6277_v5 = vadd.f32 %v8961_v26, %v1473_v30  ;;  %v1476_v15 = vadd.f32 %v8960_v20, %v1411_v53  ;;  %v1980_v8 = vadd.f32 %v1948_v44, %v1875_v23  ;;  %v6290_v12 = vmul.f32 %v4240_v38, %v8915_v48  ;;  %v6337_v37 = vld [vmem:[#allocation2 + $0x1b0] sm:$0xff]  ;;  %v8978_v36 = vld [vmem:[#allocation44_spill] sm:$0xff]  ;;  %v6351_v53 = vld [vmem:[%s8619_s2] ss:$0 sm:$0xff] }
 0x166   : > { %v6293_v40 = vadd.f32 %v8961_v26, %v1474_v27  ;;  %v6296_v42 = vadd.f32 %v8961_v26, %v1475_v45  ;;  %v1316_v14 = vadd.f32 %v8932_v61, %v8966_v55  ;;  %v2078_v25 = vmul.f32 %v6285_v34, %v6279_v7  ;;  %v6318_v61 = vld [vmem:[#allocation2 + $0x8a] sm:$0xff]  ;;  %8976 = vst [vmem:[#allocation21_spill] sm:$0xff] %v6337_v37  ;;  %v1910_v11 = vld [vmem:[#allocation2 + $0x32] sm:$0xff] }
 0x167   : > { %8962 = vst [vmem:[#allocation153_spill] sm:$0xff] %v6277_v5  ;;  %v6303_v52 = vadd.f32 %v8961_v26, %v1476_v15  ;;  %v2045_v1 = vadd.f32 %v2013_v33, %v1980_v8  ;;  %v6307_v35 = vperm.slane %v4237_v49, 4  ;;  %v6310_v58 = vmul.f32 %v4241_v56, %v4689_v29  ;;  %v4242_v49 = vld [vmem:[#allocation2 + $0x1a8] sm:$0xff]  ;;  %v6344_v31 = vld [vmem:[#allocation2 + $0x52] sm:$0xff] }
 0x168   : > { %8963 = vst [vmem:[#allocation113_spill] sm:$0xff] %v6290_v12  ;;  %v6313_v28 = vmul.f32 %v4241_v56, %v4725_v46  ;;  %v6316_v16 = vmul.f32 %v4241_v56, %v4749_v59  ;;  %v1381_v24 = vadd.f32 %v8971_v2, %v1316_v14  ;;  %v6324_v32 = vmul.f32 %v4241_v56, %v8915_v48  ;;  %v4244_v23 = vld [vmem:[#allocation2 + $0x51] sm:$0xff]  ;;  %v8981_v26 = vld [vmem:[#allocation26_spill] sm:$0xff] }
 0x169   : > { %8964 = vst [vmem:[#allocation157_spill] sm:$0xff] %v6293_v40  ;;  %v6327_v47 = vmul.f32 %v4242_v49, %v4725_v46  ;;  %v2110_v29 = vadd.f32 %v2078_v25, %v2045_v1  ;;  %v2143_v63 = vmul.f32 %v6287_v10, %v6298_v50  ;;  %v6332_v3 = vmul.f32 %v4242_v49, %v4749_v59  ;;  %v6354_v27 = vld [vmem:[#allocation2 + $0x72] sm:$0xff]  ;;  %v6368_v25 = vld [vmem:[#allocation2 + $0xa9] sm:$0xff] }
 0x16a   : > { %8965 = vst [vmem:[#allocation151_spill] sm:$0xff] %v6296_v42  ;;  %v6335_v51 = vmul.f32 %v4242_v49, %v8915_v48  ;;  %v6341_v18 = vmul.f32 %v6337_v37, %v4725_v46  ;;  %v1446_v62 = vadd.f32 %v8978_v36, %v1381_v24  ;;  %v2208_v43 = vmul.f32 %v6307_v35, %v6318_v61  ;;  %v6356_v20 = vld [vmem:[#allocation2 + $0x92] sm:$0xff]  ;;  %v8983_v49 = vld [vmem:[#allocation33_spill] sm:$0xff]  ;;  %v9000_v46 = vld [vmem:[#allocation82_spill] sm:$0xff] }
 0x16b   : > { %8967 = vst [vmem:[#allocation154_spill] sm:$0xff] %v6303_v52  ;;  %v2175_v30 = vadd.f32 %v2143_v63, %v2110_v29  ;;  %v1714_v44 = vmul.f32 %v4244_v23, %v6210_v41  ;;  %v8980_v45 = vld [vmem:[#allocation91_spill] sm:$0xff]  ;;  %v8982_v15 = vld [vmem:[#allocation64_spill] sm:$0xff]  ;;  %v1844_v14 = vmul.f32 %v6246_v19, %v6321_v13  ;;  %v1949_v1 = vmul.f32 %v6262_v6, %v1908_v21  ;;  %v8984_v63 = vld [vmem:[#allocation17_spill] sm:$0xff] }
 0x16c   : > { %8968 = vst [vmem:[#allocation35_spill] sm:$0xff] %v6310_v58  ;;  %v1317_v33 = vadd.f32 %v8981_v26, %v8980_v45  ;;  %v1511_v8 = vadd.f32 %v8982_v15, %v1446_v62  ;;  %v6361_v38 = vld [vmem:[#allocation2 + $0x71] sm:$0xff]  ;;  %v2014_v2 = vmul.f32 %v6267_v0, %v1910_v11  ;;  %v2079_v24 = vmul.f32 %v6285_v34, %v6344_v31  ;;  %v8985_v21 = vld [vmem:[#allocation98_spill] sm:$0xff]  ;;  %v8987_v26 = vld [vmem:[#allocation57_spill] sm:$0xff] }
 0x16d   : > { %8969 = vst [vmem:[#allocation108_spill] sm:$0xff] %v6313_v28  ;;  %v1779_v55 = vmul.f32 %v6361_v38, %v6224_v39  ;;  %v2240_v56 = vadd.f32 %v2208_v43, %v2175_v30  ;;  %v6377_v62 = vmul.f32 %v6287_v10, %v6354_v27  ;;  %v6381_v23 = vmul.f32 %v6307_v35, %v6356_v20  ;;  %v8986_v45 = vld [vmem:[#allocation28_spill] sm:$0xff] }
 0x16e   : > { %8970 = vst [vmem:[#allocation47_spill] sm:$0xff] %v6316_v16  ;;  %v1382_v29 = vadd.f32 %v8983_v49, %v1317_v33  ;;  %v1616_v36 = vadd.f32 %v8984_v63, %v1511_v8  ;;  %v1318_v30 = vadd.f32 %v8986_v45, %v8985_v21  ;;  %v1715_v33 = vmul.f32 %v6233_v9, %v6210_v41  ;;  %v6391_v49 = vld [vmem:[#allocation2 + $0xaa] sm:$0xff] }
 0x16f   : > { %8972 = vst [vmem:[#allocation48_spill] sm:$0xff] %v6324_v32  ;;  %v2276_v43 = vadd.f32 %v6351_v53, %v2240_v56  ;;  %v1780_v8 = vmul.f32 %v6224_v39, %v6237_v4  ;;  %v8988_v63 = vld [vmem:[#allocation23_spill] sm:$0xff]  ;;  %v1845_v42 = vmul.f32 %v6246_v19, %v6368_v25  ;;  %v1950_v21 = vmul.f32 %v6262_v6, %v6260_v60 }
 0x170   : > { %8973 = vst [vmem:[#allocation156_spill] sm:$0xff] %v6327_v47  ;;  %v1447_v15 = vadd.f32 %v8987_v26, %v1382_v29  ;;  %v1681_v52 = vadd.f32 %v8988_v63, %v1616_v36  ;;  %v8989_v45 = vld [vmem:[#allocation43_spill] sm:$0xff]  ;;  %v8990_v26 = vld [vmem:[#allocation84_spill] sm:$0xff]  ;;  %v2015_v17 = vmul.f32 %v6267_v0, %v6279_v7  ;;  %v6408_v36 = vmul.f32 %v6285_v34, %v6298_v50 }
 0x171   : > { %8974 = vst [vmem:[#allocation51_spill] sm:$0xff] %v6332_v3  ;;  %v1383_v56 = vadd.f32 %v8989_v45, %v1318_v30  ;;  %v6399_v40 = vld [vmem:[#allocation2 + $0xb1] sm:$0xff]  ;;  %v6401_v29 = vmul.f32 0.70710677, %v2276_v43  ;;  %v6412_v54 = vmul.f32 %v6287_v10, %v6318_v61  ;;  %v6416_v60 = vmul.f32 %v6307_v35, %v6391_v49 }
 0x172   : > { %8975 = vst [vmem:[#allocation83_spill] sm:$0xff] %v6335_v51  ;;  %v1512_v5 = vadd.f32 %v8990_v26, %v1447_v15  ;;  %v1746_v63 = vadd.f32 %v1714_v44, %v1681_v52  ;;  %v8991_v30 = vld [vmem:[#allocation63_spill] sm:$0xff]  ;;  %v8992_v26 = vld [vmem:[#allocation18_spill] sm:$0xff]  ;;  %v1716_v22 = vmul.f32 %v6361_v38, %v6210_v41  ;;  %v8994_v52 = vld [vmem:[#allocation32_spill] sm:$0xff]  ;;  %v1781_v3 = vmul.f32 %v6224_v39, %v6321_v13 }
 0x173   : > { %8977 = vst [vmem:[#allocation155_spill] sm:$0xff] %v6341_v18  ;;  %v1448_v45 = vadd.f32 %v8991_v30, %v1383_v56  ;;  %v2372_v15 = vmul.f32 %v6401_v29, %v6401_v29  ;;  %v8993_v18 = vld [vmem:[#allocation24_spill] sm:$0xff]  ;;  %v1846_v56 = vmul.f32 %v6246_v19, %v6399_v40  ;;  %v8996_v16 = vld [vmem:[#allocation71_spill] sm:$0xff]  ;;  %v6436_v12 = vmul.f32 0.5, %v2276_v43 }
 0x174   : > { %8979 = vst [vmem:[#allocation159_spill] sm:$0xff] %v6356_v20  ;;  %v1617_v57 = vadd.f32 %v8992_v26, %v1512_v5  ;;  %v1319_v44 = vadd.f32 %v8994_v52, %v8993_v18  ;;  %v1811_v58 = vadd.f32 %v1779_v55, %v1746_v63  ;;  %v8995_v47 = vld [vmem:[#allocation92_spill] sm:$0xff]  ;;  %v1951_v5 = vmul.f32 %v6262_v6, %v1910_v11  ;;  %v8999_v55 = vld [vmem:[#allocation19_spill] sm:$0xff] }
 0x175   : > { %v1513_v28 = vadd.f32 %v8995_v47, %v1448_v45  ;;  %v6431_v30 = vmin.f32 %v2372_v15, 16.0  ;;  %v8997_v26 = vld [vmem:[#allocation56_spill] sm:$0xff]  ;;  %8998 = vst [vmem:[#allocation162_spill] sm:$0xff] %v6436_v12  ;;  %v2016_v47 = vmul.f32 %v6267_v0, %v6344_v31  ;;  %v2081_v43 = vmul.f32 %v6285_v34, %v6354_v27  ;;  %v9003_v12 = vld [vmem:[#allocation15_spill] sm:$0xff] }
 0x176   : > { %v1682_v51 = vadd.f32 %v8996_v16, %v1617_v57  ;;  %v1384_v32 = vadd.f32 %v8997_v26, %v1319_v44  ;;  %v1876_v18 = vadd.f32 %v1844_v14, %v1811_v58  ;;  %v9001_v16 = vld [vmem:[#allocation72_spill] sm:$0xff]  ;;  %v2146_v58 = vmul.f32 %v6287_v10, %v6356_v20  ;;  %v9002_v26 = vld [vmem:[#allocation97_spill] sm:$0xff] }
 0x177   : > { %v1618_v63 = vadd.f32 %v8999_v55, %v1513_v28  ;;  %v2374_v45 = vmul.f32 2.1237322e-06, %v6431_v30  ;;  %v2385_v52 = vmul.f32 3.8918573e-05, %v6431_v30 }
 0x178   : > { %v1747_v15 = vadd.f32 %v1715_v33, %v1682_v51  ;;  %v1449_v48 = vadd.f32 %v9000_v46, %v1384_v32  ;;  %v1981_v57 = vadd.f32 %v1949_v1, %v1876_v18  ;;  %v1652_v51 = vmul.f32 %v6233_v9, %v9003_v12  ;;  %v9004_v46 = vld [vmem:[#allocation27_spill] sm:$0xff]  ;;  %v9005_v32 = vld [vmem:[#allocation42_spill] sm:$0xff] }
 0x179   : > { %v1683_v11 = vadd.f32 %v9001_v16, %v1618_v63  ;;  %v2375_v28 = vadd.f32 0.00028619796, %v2374_v45  ;;  %v2386_v14 = vadd.f32 0.001143296, %v2385_v52  ;;  %v1320_v1 = vadd.f32 %v9005_v32, %v9004_v46  ;;  %v9006_v16 = vld [vmem:[#allocation69_spill] sm:$0xff] }
 0x17a   : > { %v1812_v44 = vadd.f32 %v1780_v8, %v1747_v15  ;;  %v1514_v55 = vadd.f32 %v9002_v26, %v1449_v48  ;;  %v2046_v37 = vadd.f32 %v2014_v2, %v1981_v57  ;;  %v1717_v48 = vmul.f32 %v6210_v41, %v6237_v4  ;;  %v9007_v2 = vld [vmem:[#allocation62_spill] sm:$0xff] }
 0x17b   : > { %v1748_v59 = vadd.f32 %v1716_v22, %v1683_v11  ;;  %v2376_v33 = vmul.f32 %v2375_v28, %v6431_v30  ;;  %v2387_v18 = vmul.f32 %v2386_v14, %v6431_v30  ;;  %v1385_v22 = vadd.f32 %v9007_v2, %v1320_v1  ;;  %v6460_v8 = vld [vmem:[#allocation2 + $0xc9] sm:$0xff] }
 0x17c   : > { %v1877_v63 = vadd.f32 %v1845_v42, %v1812_v44  ;;  %v1619_v20 = vadd.f32 %v9006_v16, %v1514_v55  ;;  %v2111_v45 = vadd.f32 %v2079_v24, %v2046_v37  ;;  %v1782_v42 = vmul.f32 %v6224_v39, %v6368_v25  ;;  %v9008_v14 = vld [vmem:[#allocation90_spill] sm:$0xff] }
 0x17d   : > { %v1813_v52 = vadd.f32 %v1781_v3, %v1748_v59  ;;  %v2377_v9 = vadd.f32 0.0036580483, %v2376_v33  ;;  %v2388_v15 = vadd.f32 0.014752088, %v2387_v18  ;;  %v1450_v37 = vadd.f32 %v9008_v14, %v1385_v22 }
 0x17e   : > { %v1982_v57 = vadd.f32 %v1950_v21, %v1877_v63  ;;  %v1684_v11 = vadd.f32 %v1652_v51, %v1619_v20  ;;  %v2176_v28 = vadd.f32 %v6377_v62, %v2111_v45  ;;  %v1847_v20 = vmul.f32 %v6246_v19, %v6460_v8  ;;  %v9009_v21 = vld [vmem:[#allocation100_spill] sm:$0xff]  ;;  %v9010_v63 = vld [vmem:[#allocation70_spill] sm:$0xff] }
 0x17f   : > { %v1878_v26 = vadd.f32 %v1846_v56, %v1813_v52  ;;  %v2378_v59 = vmul.f32 %v2377_v9, %v6431_v30  ;;  %v2389_v3 = vmul.f32 %v2388_v15, %v6431_v30  ;;  %v1515_v62 = vadd.f32 %v9009_v21, %v1450_v37  ;;  %v6480_v52 = vld [vmem:[#allocation2 + $0xb2] sm:$0xff] }
 0x180   : > { %v2047_v24 = vadd.f32 %v2015_v17, %v1982_v57  ;;  %v1749_v44 = vadd.f32 %v1717_v48, %v1684_v11  ;;  %v2241_v55 = vadd.f32 %v6381_v23, %v2176_v28  ;;  %v1952_v17 = vmul.f32 %v6262_v6, %v6279_v7  ;;  %v6489_v57 = vld [vmem:[#allocation2 + $0xca] sm:$0xff] }
 0x181   : > { %v1983_v46 = vadd.f32 %v1951_v5, %v1878_v26  ;;  %v2379_v56 = vadd.f32 0.05243302, %v2378_v59  ;;  %v2390_v51 = vadd.f32 0.112945676, %v2389_v3  ;;  %v1620_v16 = vadd.f32 %v9010_v63, %v1515_v62  ;;  %v6501_v37 = vld [vmem:[#allocation2 + $0xd1] sm:$0xff] }
 0x182   : > { %v2112_v32 = vadd.f32 %v6408_v36, %v2047_v24  ;;  %v1814_v1 = vadd.f32 %v1782_v42, %v1749_v44  ;;  %v2277_v33 = vadd.f32 %v6351_v53, %v2241_v55  ;;  %v1653_v7 = vmul.f32 %v6361_v38, %v9003_v12 }
 0x183   : > { %v2048_v18 = vadd.f32 %v2016_v47, %v1983_v46  ;;  %v2380_v23 = vmul.f32 %v2379_v56, %v6431_v30  ;;  %v2391_v5 = vmul.f32 %v2390_v51, %v6431_v30  ;;  %v2017_v47 = vmul.f32 %v6267_v0, %v6298_v50 }
 0x184   : > { %v2177_v45 = vadd.f32 %v6412_v54, %v2112_v32  ;;  %v1879_v48 = vadd.f32 %v1847_v20, %v1814_v1  ;;  %v6482_v2 = vmul.f32 0.70710677, %v2277_v33  ;;  %v2082_v26 = vmul.f32 %v6285_v34, %v6318_v61 }
 0x185   : > { %v2113_v36 = vadd.f32 %v2081_v43, %v2048_v18  ;;  %v2381_v22 = vadd.f32 0.18741608, %v2380_v23  ;;  %v2392_v9 = vadd.f32 0.4994258, %v2391_v5  ;;  %v2211_v43 = vmul.f32 %v6307_v35, %v6480_v52 }
 0x186   : > { %v2242_v15 = vadd.f32 %v6416_v60, %v2177_v45  ;;  %v1984_v11 = vadd.f32 %v1952_v17, %v1879_v48  ;;  %v2412_v54 = vmul.f32 %v6482_v2, %v6482_v2  ;;  %v1685_v60 = vadd.f32 %v1653_v7, %v1620_v16 }
 0x187   : > { %v2178_v28 = vadd.f32 %v2146_v58, %v2113_v36  ;;  %v2393_v42 = vmul.f32 %v2392_v9, %v6431_v30  ;;  %v2147_v58 = vmul.f32 %v6287_v10, %v6391_v49  ;;  %v2212_v24 = vmul.f32 %v6307_v35, %v6489_v57 }
 0x188   : > { %v6499_v38 = vadd.f32 %v6351_v53, %v2242_v15  ;;  %v2049_v14 = vadd.f32 %v2017_v47, %v1984_v11  ;;  %v6503_v59 = vmin.f32 %v2412_v54, 16.0  ;;  %v2382_v44 = vmul.f32 %v2381_v22, %v6431_v30 }
 0x189   : > { %v2243_v3 = vadd.f32 %v2211_v43, %v2178_v28  ;;  %v6510_v55 = vadd.f32 1.0, %v2393_v42  ;;  %v1718_v20 = vmul.f32 %v6210_v41, %v6321_v13  ;;  %v1783_v30 = vmul.f32 %v6224_v39, %v6399_v40 }
 0x18a   : > { %v6513_v46 = vmul.f32 0.70710677, %v6499_v38  ;;  %v2414_v21 = vmul.f32 2.1237322e-06, %v6503_v59  ;;  %v2425_v62 = vmul.f32 3.8918573e-05, %v6503_v59  ;;  %v2114_v51 = vadd.f32 %v2082_v26, %v2049_v14 }
 0x18b   : > { %v6520_v56 = vadd.f32 %v6351_v53, %v2243_v3  ;;  %4169 = vrcp.f32 %v6510_v55  ;;  %v1750_v32 = vadd.f32 %v1718_v20, %v1685_v60  ;;  %v6527_v1 = vmul.f32 %v6246_v19, %v6501_v37 }
 0x18c   : > { %v6529_v18 = vmul.f32 0.5, %v2277_v33  ;;  %v2415_v17 = vadd.f32 0.00028619796, %v2414_v21  ;;  %v2426_v63 = vadd.f32 0.001143296, %v2425_v62  ;;  %v2452_v16 = vmul.f32 %v6513_v46, %v6513_v46 }
 0x18d   : > { %v2383_v23 = vadd.f32 1.1283791, %v2382_v44  ;;  %v2406_v5 = vand.u32 2147483648, %v6510_v55  ;;  %v6535_v45 = vmul.f32 0.70710677, %v6520_v56  ;;  %v2179_v48 = vadd.f32 %v2147_v58, %v2114_v51 }
 0x18e   : > { %v2404_v36 = vand.u32 2147483647, %v6510_v55  ;;  %v2416_v47 = vmul.f32 %v2415_v17, %v6503_v59  ;;  %v2427_v7 = vmul.f32 %v2426_v63, %v6503_v59  ;;  %v6540_v33 = vmin.f32 %v2452_v16, 16.0 }
 0x18f   : > { %v2492_v22 = vmul.f32 %v6535_v45, %v6535_v45  ;;  %v2244_v9 = vadd.f32 %v2212_v24, %v2179_v48  ;;  %v1815_v15 = vadd.f32 %v1783_v30, %v1750_v32  ;;  %v6546_v11 = vmul.f32 %v6262_v6, %v6344_v31 }
 0x190   : > { %v2417_v54 = vadd.f32 0.0036580483, %v2416_v47  ;;  %v2428_v28 = vadd.f32 0.014752088, %v2427_v7  ;;  %v2454_v43 = vmul.f32 2.1237322e-06, %v6540_v33  ;;  %v6551_v26 = vmul.f32 %v6267_v0, %v6354_v27 }
 0x191   : > { %v4170_v42 = vpop.eup %4169  ;;  %v2384_v14 = vmul.f32 %v2383_v23, %v6401_v29  ;;  %v2407_v60 = vor.u32 1.1754944e-38, %v2406_v5  ;;  %v2465_v3 = vmul.f32 3.8918573e-05, %v6540_v33  ;;  %v6555_v58 = vmin.f32 %v2492_v22, 16.0 }
 0x192   : > { %v2396_v24 = vmul.f32 %v4170_v42, %v6510_v55  ;;  %vm6558_vm0 = vcmp.eq.f32.partialorder %v2404_v36, 8.507059e+37  ;;  %v2418_v44 = vmul.f32 %v2417_v54, %v6503_v59  ;;  %v2429_v20 = vmul.f32 %v2428_v28, %v6503_v59 }
 0x193   : > { %v6565_v21 = vadd.f32 %v6351_v53, %v2244_v9  ;;  %vm2400_vm1 = vweird.f32 %v6510_v55  ;;  %v2455_v29 = vadd.f32 0.00028619796, %v2454_v43  ;;  %v2466_v62 = vadd.f32 0.001143296, %v2465_v3 }
 0x194   : > { %v2494_v51 = vmul.f32 2.1237322e-06, %v6555_v58  ;;  %v2397_v32 = vsub.f32 1.0, %v2396_v24  ;;  %vm2401_vm2 = vweird.f32 %v4170_v42  ;;  %v2419_v30 = vadd.f32 0.05243302, %v2418_v44 }
 0x195   : > { %v2430_v17 = vadd.f32 0.112945676, %v2429_v20  ;;  %v2456_v63 = vmul.f32 %v2455_v29, %v6540_v33  ;;  %v2467_v16 = vmul.f32 %v2466_v62, %v6540_v33  ;;  %v2505_v5 = vmul.f32 3.8918573e-05, %v6555_v58  ;;  %vm2402_vm3 = vmor %vm2400_vm1, %vm2401_vm2 }
 0x196   : > { %v2495_v23 = vadd.f32 0.00028619796, %v2494_v51  ;;  %v2398_v48 = vmul.f32 %v4170_v42, %v2397_v32  ;;  %v2420_v36 = vmul.f32 %v2419_v30, %v6503_v59  ;;  %v6575_v7 = vmul.f32 0.70710677, %v6565_v21 }
 0x197   : > { %v2431_v47 = vmul.f32 %v2430_v17, %v6503_v59  ;;  %v2457_v22 = vadd.f32 0.0036580483, %v2456_v63  ;;  %v2468_v9 = vadd.f32 0.014752088, %v2467_v16  ;;  %v2506_v28 = vadd.f32 0.001143296, %v2505_v5 }
 0x198   : > { %v2496_v54 = vmul.f32 %v2495_v23, %v6555_v58  ;;  %v2399_v43 = vadd.f32 %v4170_v42, %v2398_v48  ;;  %v2421_v3 = vadd.f32 0.18741608, %v2420_v36  ;;  %v2532_v44 = vmul.f32 %v6575_v7, %v6575_v7 }
 0x199   : > { %v2432_v24 = vadd.f32 0.4994258, %v2431_v47  ;;  %v2458_v20 = vmul.f32 %v2457_v22, %v6540_v33  ;;  %v2469_v29 = vmul.f32 %v2468_v9, %v6540_v33  ;;  %v2507_v51 = vmul.f32 %v2506_v28, %v6555_v58 }
 0x19a   : > { %v2497_v62 = vadd.f32 0.0036580483, %v2496_v54  ;;  %v2403_v32 = vsel %vm2402_vm3, %v4170_v42, %v2399_v43  ;;  %v6587_v17 = vmin.f32 %v2532_v44, 16.0  ;;  %v1880_v63 = vadd.f32 %v6527_v1, %v1815_v15 }
 0x19b   : > { %v2433_v30 = vmul.f32 %v2432_v24, %v6503_v59  ;;  %v2408_v16 = vsel %vm6558_vm0, %v2407_v60, %v2403_v32  ;;  %v2459_v23 = vadd.f32 0.05243302, %v2458_v20  ;;  %v2470_v55 = vadd.f32 0.112945676, %v2469_v29 }
 0x19c   : > { %v2498_v5 = vmul.f32 %v2497_v62, %v6555_v58  ;;  %v2409_v48 = vmul.f32 %v2408_v16, %v2384_v14  ;;  %v2422_v36 = vmul.f32 %v2421_v3, %v6503_v59  ;;  %v2508_v22 = vadd.f32 0.014752088, %v2507_v51  ;;  %v6609_v59 = vld [vmem:[%s8620_s3] ss:$0 sm:$0xff]  ;;  %v9013_v3 = vld [vmem:[#allocation159_spill] sm:$0xff] }
 0x19d   : > { %v6594_v47 = vadd.f32 1.0, %v2433_v30  ;;  %v2460_v42 = vmul.f32 %v2459_v23, %v6540_v33  ;;  %v2471_v9 = vmul.f32 %v2470_v55, %v6540_v33  ;;  %v2534_v1 = vmul.f32 2.1237322e-06, %v6587_v17  ;;  %v9014_v30 = vld [vmem:[#allocation162_spill] sm:$0xff] }
 0x19e   : > { %v2499_v54 = vadd.f32 0.05243302, %v2498_v5  ;;  %v4049_v15 = vclamps-f32 %v2409_v48, 1.0  ;;  %v6601_v60 = vmul.f32 0.5, %v6499_v38  ;;  %v6604_v14 = vmul.f32 0.5, %v6520_v56 }
 0x19f   : > { %4171 = vrcp.f32 %v6594_v47  ;;  %v2461_v31 = vadd.f32 0.18741608, %v2460_v42  ;;  %v1985_v43 = vadd.f32 %v6546_v11, %v1880_v63  ;;  %v2083_v24 = vmul.f32 %v6285_v34, %v9013_v3  ;;  %v6623_v11 = vld [vmem:[%s8621_s4] ss:$0 sm:$0xff] }
 0x1a0   : > { %v2500_v28 = vmul.f32 %v2499_v54, %v6555_v58  ;;  %v3652_v44 = vadd.f32 1.0, %v4049_v15  ;;  %v2472_v20 = vadd.f32 0.4994258, %v2471_v9  ;;  %v2509_v38 = vmul.f32 %v2508_v22, %v6555_v58 }
 0x1a1   : > { %v2535_v29 = vadd.f32 0.00028619796, %v2534_v1  ;;  %v2423_v56 = vadd.f32 1.1283791, %v2422_v36  ;;  %v2444_v62 = vand.u32 2147483647, %v6594_v47  ;;  %v2148_v32 = vmul.f32 %v6287_v10, %v6480_v52 }
 0x1a2   : > { %v2501_v51 = vadd.f32 0.18741608, %v2500_v28  ;;  %v3684_v16 = vmul.f32 %v3652_v44, %v9014_v30  ;;  %v2473_v63 = vmul.f32 %v2472_v20, %v6540_v33  ;;  %v2510_v23 = vadd.f32 0.112945676, %v2509_v38  ;;  %v3788_v28 = vld [vmem:[%s4603_s15] sm:$0xff] }
 0x1a3   : > { %v2536_v55 = vmul.f32 %v2535_v29, %v6587_v17  ;;  %v2462_v5 = vmul.f32 %v2461_v31, %v6540_v33  ;;  %v6629_v48 = vmul.f32 0.5, %v6565_v21  ;;  %v2545_v36 = vmul.f32 3.8918573e-05, %v6587_v17 }
 0x1a4   : > { %v2050_v22 = vadd.f32 %v6551_v26, %v1985_v43  ;;  %v3720_v9 = vmul.f32 %v6609_v59, %v3684_v16  ;;  %v6634_v54 = vadd.f32 1.0, %v2473_v63  ;;  %v2511_v1 = vmul.f32 %v2510_v23, %v6555_v58  ;;  %v9023_v26 = vld [vmem:[#allocation96_spill] sm:$0xff] }
 0x1a5   : > { %9015 = vst [vmem:[#allocation163_spill] sm:$0xff] %v6629_v48  ;;  %v4172_v42 = vpop.eup %4171  ;;  %v2537_v15 = vadd.f32 0.0036580483, %v2536_v55  ;;  %v2424_v44 = vmul.f32 %v2423_v56, %v6482_v2  ;;  %vm2440_vm4 = vweird.f32 %v6594_v47  ;;  %v2502_v21 = vmul.f32 %v2501_v51, %v6555_v58 }
 0x1a6   : > { %v2436_v33 = vmul.f32 %v4172_v42, %v6594_v47  ;;  %v3756_v31 = vadd.f32 %v6623_v11, %v3720_v9  ;;  %vm6643_vm5 = vcmp.eq.f32.partialorder %v2444_v62, 8.507059e+37  ;;  %v2446_v43 = vand.u32 2147483648, %v6594_v47  ;;  %v9019_v9 = vld [vmem:[#allocation55_spill] sm:$0xff] }
 0x1a7   : > { %4173 = vrcp.f32 %v6634_v54  ;;  %v2463_v38 = vadd.f32 1.1283791, %v2462_v5  ;;  %v2512_v2 = vadd.f32 0.4994258, %v2511_v1  ;;  %v2115_v29 = vadd.f32 %v2083_v24, %v2050_v22  ;;  %v9018_v22 = vld [vmem:[#allocation67_spill] sm:$0xff] }
 0x1a8   : > { %v2437_v20 = vsub.f32 1.0, %v2436_v33  ;;  %v3820_v56 = vadd.f32 %v3788_v28, %v3756_v31  ;;  %vm2441_vm6 = vweird.f32 %v4172_v42  ;;  %v2538_v30 = vmul.f32 %v2537_v15, %v6587_v17 }
 0x1a9   : > { %v2546_v51 = vadd.f32 0.001143296, %v2545_v36  ;;  %v2484_v63 = vand.u32 2147483647, %v6634_v54  ;;  %v2503_v62 = vadd.f32 1.1283791, %v2502_v21  ;;  %v2513_v23 = vmul.f32 %v2512_v2, %v6555_v58  ;;  %vm2442_vm7 = vmor %vm2440_vm4, %vm2441_vm6 }
 0x1aa   : > { %v2438_v16 = vmul.f32 %v4172_v42, %v2437_v20  ;;  %3852 = vst [vmem:[%s6654_s13] sm:$0xff] %v3820_v56  ;;  %v2486_v55 = vand.u32 2147483648, %v6634_v54  ;;  %v2539_v5 = vadd.f32 0.05243302, %v2538_v30  ;;  %v1321_v1 = vadd.f32 %v9019_v9, %v9018_v22  ;;  %v6669_v20 = vld [vmem:[#allocation2 + $0xd2] sm:$0xff]  ;;  %v9020_v2 = vld [vmem:[#allocation81_spill] sm:$0xff] }
 0x1ab   : > { %v2547_v24 = vmul.f32 %v2546_v51, %v6587_v17  ;;  %v2447_v15 = vor.u32 1.1754944e-38, %v2446_v43  ;;  %v2464_v28 = vmul.f32 %v2463_v38, %v6513_v46  ;;  %v6662_v33 = vadd.f32 1.0, %v2513_v23 }
 0x1ac   : > { %v2439_v36 = vadd.f32 %v4172_v42, %v2438_v16  ;;  %vm2480_vm8 = vweird.f32 %v6634_v54  ;;  %v2540_v21 = vmul.f32 %v2539_v5, %v6587_v17  ;;  %v1386_v56 = vadd.f32 %v9020_v2, %v1321_v1 }
 0x1ad   : > { %v4174_v58 = vpop.eup %4173  ;;  %v2548_v31 = vadd.f32 0.014752088, %v2547_v24  ;;  %v6674_v46 = vmul.f32 %v2503_v62, %v6535_v45  ;;  %4175 = vrcp.f32 %v6662_v33  ;;  %vm6679_vm9 = vcmp.eq.f32.partialorder %v2484_v63, 8.507059e+37 }
 0x1ae   : > { %v2443_v30 = vsel %vm2442_vm7, %v4172_v42, %v2439_v36  ;;  %v2476_v43 = vmul.f32 %v4174_v58, %v6634_v54  ;;  %v2487_v51 = vor.u32 1.1754944e-38, %v2486_v55  ;;  %v2180_v16 = vadd.f32 %v2148_v32, %v2115_v29  ;;  %v6689_v55 = vld [vmem:[#allocation2 + $0xe9] sm:$0xff] }
 0x1af   : > { %v2448_v47 = vsel %vm6643_vm5, %v2447_v15, %v2443_v30  ;;  %v2549_v42 = vmul.f32 %v2548_v31, %v6587_v17  ;;  %v2213_v24 = vmul.f32 %v6307_v35, %v6669_v20  ;;  %v2524_v45 = vand.u32 2147483647, %v6662_v33  ;;  %9024 = vst [vmem:[#allocation29_spill] sm:$0xff] %v6689_v55  ;;  %v9025_v32 = vld [vmem:[#allocation103_spill] sm:$0xff] }
 0x1b0   : > { %v2449_v23 = vmul.f32 %v2448_v47, %v2424_v44  ;;  %v2477_v5 = vsub.f32 1.0, %v2476_v43  ;;  %v2526_v62 = vand.u32 2147483648, %v6662_v33  ;;  %v2541_v22 = vadd.f32 0.18741608, %v2540_v21 }
 0x1b1   : > { %v1451_v9 = vadd.f32 %v9023_v26, %v1386_v56  ;;  %vm2481_vm10 = vweird.f32 %v4174_v58  ;;  %v2550_v36 = vadd.f32 0.112945676, %v2549_v42  ;;  %v1654_v29 = vmul.f32 %v9003_v12, %v6237_v4  ;;  %v9028_v42 = vld [vmem:[#allocation75_spill] sm:$0xff] }
 0x1b2   : > { %v4050_v63 = vclamps-f32 %v2449_v23, 1.0  ;;  %v2478_v1 = vmul.f32 %v4174_v58, %v2477_v5  ;;  %v1719_v15 = vmul.f32 %v6210_v41, %v6368_v25  ;;  %v1784_v31 = vmul.f32 %v6224_v39, %v6460_v8  ;;  %vm2482_vm12 = vmor %vm2480_vm8, %vm2481_vm10 }
 0x1b3   : > { %v1516_v44 = vadd.f32 %v9025_v32, %v1451_v9  ;;  %v4176_v21 = vpop.eup %4175  ;;  %vm2520_vm11 = vweird.f32 %v6662_v33  ;;  %v2551_v30 = vmul.f32 %v2550_v36, %v6587_v17  ;;  %vm6703_vm13 = vcmp.eq.f32.partialorder %v2524_v45, 8.507059e+37 }
 0x1b4   : > { %v3653_v2 = vadd.f32 1.0, %v4050_v63  ;;  %v2479_v56 = vadd.f32 %v4174_v58, %v2478_v1  ;;  %v2516_v43 = vmul.f32 %v4176_v21, %v6662_v33  ;;  %v2527_v23 = vor.u32 1.1754944e-38, %v2526_v62 }
 0x1b5   : > { %v2542_v5 = vmul.f32 %v2541_v22, %v6587_v17  ;;  %v1621_v26 = vadd.f32 %v9028_v42, %v1516_v44  ;;  %v2552_v1 = vadd.f32 0.4994258, %v2551_v30  ;;  %v1849_v54 = vmul.f32 %v6246_v19, %v6689_v55  ;;  %v9029_v42 = vld [vmem:[#allocation68_spill] sm:$0xff] }
 0x1b6   : > { %v3685_v9 = vmul.f32 %v3653_v2, %v6529_v18  ;;  %v2483_v63 = vsel %vm2482_vm12, %v4174_v58, %v2479_v56  ;;  %v2517_v45 = vsub.f32 1.0, %v2516_v43  ;;  %v1954_v48 = vmul.f32 %v6262_v6, %v6298_v50  ;;  %v9030_v18 = vld [vmem:[#allocation61_spill] sm:$0xff]  ;;  %v3789_v2 = vld [vmem:[%s4603_s15 + $0x8] sm:$0xff] }
 0x1b7   : > { %v2488_v36 = vsel %vm6679_vm9, %v2487_v51, %v2483_v63  ;;  %v1686_v32 = vadd.f32 %v1654_v29, %v1621_v26  ;;  %v2553_v44 = vmul.f32 %v2552_v1, %v6587_v17  ;;  %v1322_v58 = vadd.f32 %v9030_v18, %v9029_v42  ;;  %v9031_v43 = vld [vmem:[#allocation89_spill] sm:$0xff]  ;;  %v3790_v18 = vld [vmem:[%s4603_s15 + $0x10] sm:$0xff] }
 0x1b8   : > { %v3721_v62 = vmul.f32 %v6609_v59, %v3685_v9  ;;  %v2489_v22 = vmul.f32 %v2488_v36, %v2464_v28  ;;  %v2518_v56 = vmul.f32 %v4176_v21, %v2517_v45  ;;  %vm2521_vm14 = vweird.f32 %v4176_v21 }
 0x1b9   : > { %v2543_v30 = vadd.f32 1.1283791, %v2542_v5  ;;  %v1751_v55 = vadd.f32 %v1719_v15, %v1686_v32  ;;  %v6722_v29 = vadd.f32 1.0, %v2553_v44  ;;  %v1387_v50 = vadd.f32 %v9031_v43, %v1322_v58  ;;  %vm2522_vm15 = vmor %vm2520_vm11, %vm2521_vm14  ;;  %v6730_v15 = vld [vmem:[#allocation2 + $0xea] sm:$0xff]  ;;  %v9034_v43 = vld [vmem:[#allocation77_spill] sm:$0xff] }
 0x1ba   : > { %v3757_v38 = vadd.f32 %v6623_v11, %v3721_v62  ;;  %v4051_v51 = vclamps-f32 %v2489_v22, 1.0  ;;  %v2519_v26 = vadd.f32 %v4176_v21, %v2518_v56  ;;  %v2245_v28 = vadd.f32 %v2213_v24, %v2180_v16  ;;  %v9032_v32 = vld [vmem:[#allocation99_spill] sm:$0xff] }
 0x1bb   : > { %v1816_v9 = vadd.f32 %v1784_v31, %v1751_v55  ;;  %v2019_v17 = vmul.f32 %v6267_v0, %v6318_v61  ;;  %4177 = vrcp.f32 %v6722_v29  ;;  %v2084_v5 = vmul.f32 %v6285_v34, %v6391_v49 }
 0x1bc   : > { %v3821_v63 = vadd.f32 %v3789_v2, %v3757_v38  ;;  %v3654_v1 = vadd.f32 1.0, %v4051_v51  ;;  %v2523_v36 = vsel %vm2522_vm15, %v4176_v21, %v2519_v26  ;;  %v6735_v45 = vmul.f32 %v2543_v30, %v6575_v7 }
 0x1bd   : > { %v6738_v16 = vadd.f32 %v6351_v53, %v2245_v28  ;;  %v2149_v24 = vmul.f32 %v6287_v10, %v6489_v57  ;;  %v2528_v55 = vsel %vm6703_vm13, %v2527_v23, %v2523_v36  ;;  %v1881_v31 = vadd.f32 %v1849_v54, %v1816_v9  ;;  %v9033_v23 = vld [vmem:[#allocation107_spill] sm:$0xff] }
 0x1be   : > { %3853 = vst [vmem:[%s6654_s13 + $0x8] sm:$0xff] %v3821_v63  ;;  %v3686_v33 = vmul.f32 %v3654_v1, %v6601_v60  ;;  %v1452_v62 = vadd.f32 %v9032_v32, %v1387_v50  ;;  %v2529_v21 = vmul.f32 %v2528_v55, %v6674_v46  ;;  %v2564_v7 = vand.u32 2147483647, %v6722_v29 }
 0x1bf   : > { %v2214_v22 = vmul.f32 %v6307_v35, %v6730_v15  ;;  %v1655_v44 = vmul.f32 %v9003_v12, %v6321_v13  ;;  %v6755_v60 = vmul.f32 0.70710677, %v6738_v16  ;;  %v1986_v47 = vadd.f32 %v1954_v48, %v1881_v31  ;;  %v6764_v13 = vld [vmem:[#allocation2 + $0xf1] sm:$0xff] }
 0x1c0   : > { %v3722_v42 = vmul.f32 %v6609_v59, %v3686_v33  ;;  %v1517_v54 = vadd.f32 %v9033_v23, %v1452_v62  ;;  %v4052_v58 = vclamps-f32 %v2529_v21, 1.0  ;;  %v2566_v46 = vand.u32 2147483648, %v6722_v29 }
 0x1c1   : > { %v1720_v2 = vmul.f32 %v6210_v41, %v6399_v40  ;;  %v1785_v56 = vmul.f32 %v6224_v39, %v6501_v37  ;;  %v4178_v30 = vpop.eup %4177  ;;  %v2572_v48 = vmul.f32 %v6755_v60, %v6755_v60  ;;  %v2051_v51 = vadd.f32 %v2019_v17, %v1986_v47 }
 0x1c2   : > { %v3758_v38 = vadd.f32 %v6623_v11, %v3722_v42  ;;  %v1622_v50 = vadd.f32 %v9034_v43, %v1517_v54  ;;  %v3655_v26 = vadd.f32 1.0, %v4052_v58  ;;  %v2556_v28 = vmul.f32 %v4178_v30, %v6722_v29 }
 0x1c3   : > { %vm2560_vm0 = vweird.f32 %v6722_v29  ;;  %vm6772_vm1 = vcmp.eq.f32.partialorder %v2564_v7, 8.507059e+37  ;;  %v6776_v1 = vmin.f32 %v2572_v48, 16.0  ;;  %v2116_v36 = vadd.f32 %v2084_v5, %v2051_v51  ;;  %v9037_v5 = vld [vmem:[#allocation54_spill] sm:$0xff] }
 0x1c4   : > { %v3822_v63 = vadd.f32 %v3790_v18, %v3758_v38  ;;  %v1687_v33 = vadd.f32 %v1655_v44, %v1622_v50  ;;  %v3687_v55 = vmul.f32 %v3655_v26, %v6604_v14  ;;  %v2557_v17 = vsub.f32 1.0, %v2556_v28  ;;  %v9038_v44 = vld [vmem:[#allocation79_spill] sm:$0xff]  ;;  %v3791_v14 = vld [vmem:[%s4603_s15 + $0x18] sm:$0xff] }
 0x1c5   : > { %v2567_v31 = vor.u32 1.1754944e-38, %v2566_v46  ;;  %v1850_v32 = vmul.f32 %v6246_v19, %v6764_v13  ;;  %v2574_v62 = vmul.f32 2.1237322e-06, %v6776_v1  ;;  %v2585_v21 = vmul.f32 3.8918573e-05, %v6776_v1 }
 0x1c6   : > { %3854 = vst [vmem:[%s6654_s13 + $0x10] sm:$0xff] %v3822_v63  ;;  %v2181_v7 = vadd.f32 %v2149_v24, %v2116_v36  ;;  %v1752_v42 = vadd.f32 %v1720_v2, %v1687_v33  ;;  %v3723_v47 = vmul.f32 %v6609_v59, %v3687_v55  ;;  %v2558_v23 = vmul.f32 %v4178_v30, %v2557_v17  ;;  %v9039_v2 = vld [vmem:[#allocation95_spill] sm:$0xff]  ;;  %v9040_v33 = vld [vmem:[#allocation102_spill] sm:$0xff] }
 0x1c7   : > { %vm2561_vm2 = vweird.f32 %v4178_v30  ;;  %v1323_v54 = vadd.f32 %v9038_v44, %v9037_v5  ;;  %v2575_v18 = vadd.f32 0.00028619796, %v2574_v62  ;;  %v2586_v58 = vadd.f32 0.001143296, %v2585_v21  ;;  %v9041_v62 = vld [vmem:[#allocation14_spill] sm:$0xff] }
 0x1c8   : > { %v2246_v46 = vadd.f32 %v2214_v22, %v2181_v7  ;;  %v1817_v38 = vadd.f32 %v1785_v56, %v1752_v42  ;;  %v3759_v48 = vadd.f32 %v6623_v11, %v3723_v47  ;;  %v2559_v51 = vadd.f32 %v4178_v30, %v2558_v23  ;;  %vm2562_vm3 = vmor %vm2560_vm0, %vm2561_vm2 }
 0x1c9   : > { %v1955_v24 = vmul.f32 %v6262_v6, %v6354_v27  ;;  %v1388_v43 = vadd.f32 %v9039_v2, %v1323_v54  ;;  %v2576_v50 = vmul.f32 %v2575_v18, %v6776_v1  ;;  %v2587_v26 = vmul.f32 %v2586_v58, %v6776_v1 }
 0x1ca   : > { %v6797_v28 = vadd.f32 %v6351_v53, %v2246_v46  ;;  %v1882_v22 = vadd.f32 %v1850_v32, %v1817_v38  ;;  %v3823_v56 = vadd.f32 %v3791_v14, %v3759_v48  ;;  %v2563_v63 = vsel %vm2562_vm3, %v4178_v30, %v2559_v51  ;;  %v6811_v30 = vld [vmem:[#allocation2 + $0xf2] sm:$0xff]  ;;  %v6826_v38 = vld [vmem:[#allocation2 + $0x109] sm:$0xff] }
 0x1cb   : > { %v2020_v36 = vmul.f32 %v6267_v0, %v9013_v3  ;;  %v1453_v27 = vadd.f32 %v9040_v33, %v1388_v43  ;;  %v2568_v55 = vsel %vm6772_vm1, %v2567_v31, %v2563_v63  ;;  %v2577_v29 = vadd.f32 0.0036580483, %v2576_v50  ;;  %9042 = vst [vmem:[#allocation122_spill] sm:$0xff] %v6811_v30  ;;  %v9043_v3 = vld [vmem:[#allocation112_spill] sm:$0xff] }
 0x1cc   : > { %v2588_v17 = vadd.f32 0.014752088, %v2587_v26  ;;  %v1591_v21 = vmul.f32 %v9041_v62, %v6237_v4  ;;  %3855 = vst [vmem:[%s6654_s13 + $0x18] sm:$0xff] %v3823_v56  ;;  %v2569_v7 = vmul.f32 %v2568_v55, %v6735_v45  ;;  %v6809_v32 = vmul.f32 0.70710677, %v6797_v28  ;;  %v9044_v26 = vld [vmem:[#allocation29_spill] sm:$0xff] }
 0x1cd   : > { %v1987_v42 = vadd.f32 %v1955_v24, %v1882_v22  ;;  %v1518_v47 = vadd.f32 %v9043_v3, %v1453_v27  ;;  %v2578_v23 = vmul.f32 %v2577_v29, %v6776_v1  ;;  %v2085_v31 = vmul.f32 %v6285_v34, %v6480_v52  ;;  %v9045_v56 = vld [vmem:[#allocation163_spill] sm:$0xff] }
 0x1ce   : > { %v2589_v9 = vmul.f32 %v2588_v17, %v6776_v1  ;;  %v1656_v4 = vmul.f32 %v9003_v12, %v6368_v25  ;;  %v4053_v5 = vclamps-f32 %v2569_v7, 1.0  ;;  %v2612_v45 = vmul.f32 %v6809_v32, %v6809_v32 }
 0x1cf   : > { %v2052_v44 = vadd.f32 %v2020_v36, %v1987_v42  ;;  %v1623_v54 = vadd.f32 %v1591_v21, %v1518_v47  ;;  %v2579_v14 = vadd.f32 0.05243302, %v2578_v23  ;;  %v2150_v58 = vmul.f32 %v6287_v10, %v6669_v20  ;;  %v3792_v47 = vld [vmem:[%s4603_s15 + $0x20] sm:$0xff] }
 0x1d0   : > { %v2590_v18 = vadd.f32 0.112945676, %v2589_v9  ;;  %v2215_v46 = vmul.f32 %v6307_v35, %v6811_v30  ;;  %v3656_v48 = vadd.f32 1.0, %v4053_v5  ;;  %v6828_v51 = vmin.f32 %v2612_v45, 16.0  ;;  %v9047_v5 = vld [vmem:[#allocation88_spill] sm:$0xff] }
 0x1d1   : > { %v2117_v25 = vadd.f32 %v2085_v31, %v2052_v44  ;;  %v1688_v24 = vadd.f32 %v1656_v4, %v1623_v54  ;;  %v2580_v2 = vmul.f32 %v2579_v14, %v6776_v1  ;;  %v1721_v50 = vmul.f32 %v6210_v41, %v6460_v8  ;;  %v9046_v4 = vld [vmem:[#allocation60_spill] sm:$0xff] }
 0x1d2   : > { %v2591_v43 = vmul.f32 %v2590_v18, %v6776_v1  ;;  %v1786_v22 = vmul.f32 %v6224_v39, %v9044_v26  ;;  %v3688_v63 = vmul.f32 %v3656_v48, %v9045_v56  ;;  %v2614_v36 = vmul.f32 2.1237322e-06, %v6828_v51 }
 0x1d3   : > { %v2625_v33 = vmul.f32 3.8918573e-05, %v6828_v51  ;;  %v2182_v27 = vadd.f32 %v2150_v58, %v2117_v25  ;;  %v2581_v55 = vadd.f32 0.18741608, %v2580_v2  ;;  %v1753_v17 = vadd.f32 %v1721_v50, %v1688_v24  ;;  %v9048_v58 = vld [vmem:[#allocation25_spill] sm:$0xff]  ;;  %v9051_v24 = vld [vmem:[#allocation39_spill] sm:$0xff] }
 0x1d4   : > { %v2592_v29 = vadd.f32 0.4994258, %v2591_v43  ;;  %v1851_v21 = vmul.f32 %v6246_v19, %v6826_v38  ;;  %v3724_v7 = vmul.f32 %v6609_v59, %v3688_v63  ;;  %v2615_v42 = vadd.f32 0.00028619796, %v2614_v36  ;;  %v9052_v43 = vld [vmem:[#allocation45_spill] sm:$0xff] }
 0x1d5   : > { %v2626_v8 = vadd.f32 0.001143296, %v2625_v33  ;;  %v2247_v3 = vadd.f32 %v2215_v46, %v2182_v27  ;;  %v2582_v23 = vmul.f32 %v2581_v55, %v6776_v1  ;;  %v1818_v31 = vadd.f32 %v1786_v22, %v1753_v17  ;;  %v9049_v46 = vld [vmem:[#allocation21_spill] sm:$0xff]  ;;  %v6868_v33 = vld [vmem:[#allocation2 + $0x10a] sm:$0xff] }
 0x1d6   : > { %v2593_v9 = vmul.f32 %v2592_v29, %v6776_v1  ;;  %v1324_v45 = vadd.f32 %v9047_v5, %v9046_v4  ;;  %v3760_v44 = vadd.f32 %v6623_v11, %v3724_v7  ;;  %v2616_v54 = vmul.f32 %v2615_v42, %v6828_v51  ;;  %v9055_v4 = vld [vmem:[#allocation116_spill] sm:$0xff] }
 0x1d7   : > { %v2627_v14 = vmul.f32 %v2626_v8, %v6828_v51  ;;  %v6851_v18 = vadd.f32 %v6351_v53, %v2247_v3  ;;  %v6855_v48 = vmul.f32 %v9049_v46, %v9048_v58  ;;  %v1883_v1 = vadd.f32 %v1851_v21, %v1818_v31  ;;  %v9054_v8 = vld [vmem:[#allocation106_spill] sm:$0xff] }
 0x1d8   : > { %v6857_v25 = vadd.f32 1.0, %v2593_v9  ;;  %v1389_v2 = vadd.f32 %v9051_v24, %v1324_v45  ;;  %v6862_v50 = vmul.f32 %v9049_v46, %v9052_v43  ;;  %v3824_v22 = vadd.f32 %v3792_v47, %v3760_v44  ;;  %v4246_v45 = vld [vmem:[#allocation2 + $0x91] sm:$0xff] }
 0x1d9   : > { %9050 = vst [vmem:[#allocation36_spill] sm:$0xff] %v6855_v48  ;;  %v2617_v56 = vadd.f32 0.0036580483, %v2616_v54  ;;  %v2628_v63 = vadd.f32 0.014752088, %v2627_v14  ;;  %v6865_v36 = vmul.f32 0.5, %v6738_v16  ;;  %v1956_v27 = vmul.f32 %v6262_v6, %v6318_v61 }
 0x1da   : > { %9053 = vst [vmem:[#allocation158_spill] sm:$0xff] %v6862_v50  ;;  %v2583_v53 = vadd.f32 1.1283791, %v2582_v23  ;;  %4179 = vrcp.f32 %v6857_v25  ;;  %v6876_v17 = vmul.f32 0.70710677, %v6851_v18  ;;  %v2021_v16 = vmul.f32 %v6267_v0, %v6391_v49  ;;  %v7091_v48 = vld [vmem:[#allocation2 + $0x132] sm:$0xff] }
 0x1db   : > { %3856 = vst [vmem:[%s6654_s13 + $0x20] sm:$0xff] %v3824_v22  ;;  %v2618_v55 = vmul.f32 %v2617_v56, %v6828_v51  ;;  %v2629_v29 = vmul.f32 %v2628_v63, %v6828_v51  ;;  %v1988_v21 = vadd.f32 %v1956_v27, %v1883_v1  ;;  %v2086_v7 = vmul.f32 %v6285_v34, %v6489_v57 }
 0x1dc   : > { %v2151_v42 = vmul.f32 %v6287_v10, %v6730_v15  ;;  %v1454_v61 = vadd.f32 %v9054_v8, %v1389_v2  ;;  %v2652_v23 = vmul.f32 %v6876_v17, %v6876_v17  ;;  %v2216_v9 = vmul.f32 %v6307_v35, %v6868_v33 }
 0x1dd   : > { %v2619_v3 = vadd.f32 0.05243302, %v2618_v55  ;;  %v2630_v47 = vadd.f32 0.112945676, %v2629_v29  ;;  %v2584_v31 = vmul.f32 %v2583_v53, %v6755_v60  ;;  %v2053_v49 = vadd.f32 %v2021_v16, %v1988_v21 }
 0x1de   : > { %v1519_v5 = vadd.f32 %v9055_v4, %v1454_v61  ;;  %v1592_v57 = vmul.f32 %v4246_v45, %v9041_v62  ;;  %vm2600_vm4 = vweird.f32 %v6857_v25  ;;  %v2604_v44 = vand.u32 2147483647, %v6857_v25 }
 0x1df   : > { %v2620_v54 = vmul.f32 %v2619_v3, %v6828_v51  ;;  %v2631_v14 = vmul.f32 %v2630_v47, %v6828_v51  ;;  %v6896_v46 = vmin.f32 %v2652_v23, 16.0  ;;  %v2606_v24 = vand.u32 2147483648, %v6857_v25  ;;  %v6910_v3 = vld [vmem:[#allocation2 + $0x111] sm:$0xff] }
 0x1e0   : > { %v4180_v1 = vpop.eup %4179  ;;  %v2118_v60 = vadd.f32 %v2086_v7, %v2053_v49  ;;  %v1624_v2 = vadd.f32 %v1592_v57, %v1519_v5  ;;  %v1657_v22 = vmul.f32 %v9003_v12, %v6399_v40  ;;  %v1722_v27 = vmul.f32 %v6210_v41, %v6501_v37  ;;  %v6923_v57 = vld [vmem:[%s8619_s2] ss:$0 sm:$0xff] }
 0x1e1   : > { %v2596_v56 = vmul.f32 %v4180_v1, %v6857_v25  ;;  %v2621_v63 = vadd.f32 0.18741608, %v2620_v54  ;;  %v2632_v53 = vadd.f32 0.4994258, %v2631_v14  ;;  %v2654_v55 = vmul.f32 2.1237322e-06, %v6896_v46 }
 0x1e2   : > { %v2665_v29 = vmul.f32 3.8918573e-05, %v6896_v46  ;;  %v2183_v16 = vadd.f32 %v2151_v42, %v2118_v60  ;;  %v1689_v21 = vadd.f32 %v1657_v22, %v1624_v2  ;;  %v1787_v40 = vmul.f32 %v6224_v39, %v6764_v13 }
 0x1e3   : > { %v2597_v8 = vsub.f32 1.0, %v2596_v56  ;;  %v2622_v7 = vmul.f32 %v2621_v63, %v6828_v51  ;;  %v2633_v61 = vmul.f32 %v2632_v53, %v6828_v51  ;;  %v2655_v47 = vadd.f32 0.00028619796, %v2654_v55  ;;  %v4248_v56 = vld [vmem:[#allocation2 + $0x92] sm:$0xff] }
 0x1e4   : > { %v2666_v23 = vadd.f32 0.001143296, %v2665_v29  ;;  %v2248_v49 = vadd.f32 %v2216_v9, %v2183_v16  ;;  %v1754_v37 = vadd.f32 %v1722_v27, %v1689_v21  ;;  %vm2601_vm5 = vweird.f32 %v4180_v1 }
 0x1e5   : > { %v2598_v4 = vmul.f32 %v4180_v1, %v2597_v8  ;;  %vm6912_vm6 = vcmp.eq.f32.partialorder %v2604_v44, 8.507059e+37  ;;  %v6916_v42 = vadd.f32 1.0, %v2633_v61  ;;  %v2656_v45 = vmul.f32 %v2655_v47, %v6896_v46  ;;  %vm2602_vm7 = vmor %vm2600_vm4, %vm2601_vm5 }
 0x1e6   : > { %v2667_v51 = vmul.f32 %v2666_v23, %v6896_v46  ;;  %v6926_v9 = vadd.f32 %v6923_v57, %v2248_v49  ;;  %v1819_v54 = vadd.f32 %v1787_v40, %v1754_v37  ;;  %v2623_v44 = vadd.f32 1.1283791, %v2622_v7  ;;  %v9058_v23 = vld [vmem:[#allocation65_spill] sm:$0xff]  ;;  %v9059_v49 = vld [vmem:[#allocation94_spill] sm:$0xff] }
 0x1e7   : > { %v2599_v14 = vadd.f32 %v4180_v1, %v2598_v4  ;;  %4181 = vrcp.f32 %v6916_v42  ;;  %v1852_v60 = vmul.f32 %v6246_v19, %v6910_v3  ;;  %v2607_v2 = vor.u32 1.1754944e-38, %v2606_v24 }
 0x1e8   : > { %v2657_v22 = vadd.f32 0.0036580483, %v2656_v45  ;;  %v1957_v63 = vmul.f32 %v4248_v56, %v6262_v6  ;;  %v2022_v53 = vmul.f32 %v6267_v0, %v6480_v52  ;;  %v2668_v55 = vadd.f32 0.014752088, %v2667_v51 }
 0x1e9   : > { %v2603_v27 = vsel %vm2602_vm7, %v4180_v1, %v2599_v14  ;;  %v6937_v29 = vmul.f32 0.70710677, %v6926_v9  ;;  %v1884_v16 = vadd.f32 %v1852_v60, %v1819_v54  ;;  %v2646_v25 = vand.u32 2147483648, %v6916_v42 }
 0x1ea   : > { %v2608_v21 = vsel %vm6912_vm6, %v2607_v2, %v2603_v27  ;;  %v2658_v24 = vmul.f32 %v2657_v22, %v6896_v46  ;;  %v2087_v8 = vmul.f32 %v6285_v34, %v6669_v20  ;;  %v2624_v61 = vmul.f32 %v2623_v44, %v6809_v32  ;;  %v9060_v44 = vld [vmem:[#allocation101_spill] sm:$0xff] }
 0x1eb   : > { %v2609_v7 = vmul.f32 %v2608_v21, %v2584_v31  ;;  %v2669_v52 = vmul.f32 %v2668_v55, %v6896_v46  ;;  %v2692_v1 = vmul.f32 %v6937_v29, %v6937_v29  ;;  %vm2640_vm8 = vweird.f32 %v6916_v42  ;;  %v9061_v21 = vld [vmem:[#allocation111_spill] sm:$0xff] }
 0x1ec   : > { %v2659_v40 = vadd.f32 0.05243302, %v2658_v24  ;;  %v1989_v47 = vadd.f32 %v1957_v63, %v1884_v16  ;;  %v1325_v37 = vadd.f32 %v9059_v49, %v9058_v23  ;;  %v2644_v45 = vand.u32 2147483647, %v6916_v42  ;;  %v9062_v23 = vld [vmem:[#allocation121_spill] sm:$0xff] }
 0x1ed   : > { %v4182_v4 = vpop.eup %4181  ;;  %v4054_v5 = vclamps-f32 %v2609_v7, 1.0  ;;  %v2670_v51 = vadd.f32 0.112945676, %v2669_v52  ;;  %v6953_v31 = vmin.f32 %v2692_v1, 16.0  ;;  %v2647_v54 = vor.u32 1.1754944e-38, %v2646_v25 }
 0x1ee   : > { %v2636_v32 = vmul.f32 %v4182_v4, %v6916_v42  ;;  %v2660_v14 = vmul.f32 %v2659_v40, %v6896_v46  ;;  %v1390_v60 = vadd.f32 %v9060_v44, %v1325_v37  ;;  %v2054_v16 = vadd.f32 %v2022_v53, %v1989_v47  ;;  %v4249_v37 = vld [vmem:[#allocation2 + $0xa9] sm:$0xff] }
 0x1ef   : > { %v3657_v2 = vadd.f32 1.0, %v4054_v5  ;;  %v2671_v22 = vmul.f32 %v2670_v51, %v6896_v46  ;;  %v2694_v56 = vmul.f32 2.1237322e-06, %v6953_v31  ;;  %v2705_v63 = vmul.f32 3.8918573e-05, %v6953_v31 }
 0x1f0   : > { %v2637_v27 = vsub.f32 1.0, %v2636_v32  ;;  %v2661_v55 = vadd.f32 0.18741608, %v2660_v14  ;;  %v1455_v24 = vadd.f32 %v9061_v21, %v1390_v60  ;;  %vm2641_vm9 = vweird.f32 %v4182_v4  ;;  %v3793_v14 = vld [vmem:[%s4603_s15 + $0x28] sm:$0xff] }
 0x1f1   : > { %v3689_v7 = vmul.f32 %v3657_v2, %v6865_v36  ;;  %v2672_v25 = vadd.f32 0.4994258, %v2671_v22  ;;  %v2695_v52 = vadd.f32 0.00028619796, %v2694_v56  ;;  %v2706_v1 = vadd.f32 0.001143296, %v2705_v63  ;;  %vm2642_vm10 = vmor %vm2640_vm8, %vm2641_vm9 }
 0x1f2   : > { %v2638_v40 = vmul.f32 %v4182_v4, %v2637_v27  ;;  %v1520_v49 = vadd.f32 %v9062_v23, %v1455_v24  ;;  %v1593_v5 = vmul.f32 %v4249_v37, %v9041_v62  ;;  %v2662_v44 = vmul.f32 %v2661_v55, %v6896_v46  ;;  %v6971_v2 = vld [vmem:[#allocation2 + $0xc9] sm:$0xff] }
 0x1f3   : > { %v3725_v51 = vmul.f32 %v6609_v59, %v3689_v7  ;;  %v2673_v32 = vmul.f32 %v2672_v25, %v6896_v46  ;;  %v2696_v53 = vmul.f32 %v2695_v52, %v6953_v31  ;;  %v2707_v47 = vmul.f32 %v2706_v1, %v6953_v31  ;;  %v6988_v37 = vld [vmem:[#allocation2 + $0x129] sm:$0xff] }
 0x1f4   : > { %v2639_v36 = vadd.f32 %v4182_v4, %v2638_v40  ;;  %v1625_v60 = vadd.f32 %v1593_v5, %v1520_v49  ;;  %v1658_v22 = vmul.f32 %v6971_v2, %v9003_v12  ;;  %vm2645_vm11 = vcmp.eq.f32.partialorder %v2644_v45, 8.507059e+37  ;;  %v6986_v49 = vld [vmem:[#allocation2 + $0x112] sm:$0xff] }
 0x1f5   : > { %v3761_v56 = vadd.f32 %v6623_v11, %v3725_v51  ;;  %v6979_v63 = vadd.f32 1.0, %v2673_v32  ;;  %v2697_v27 = vadd.f32 0.0036580483, %v2696_v53  ;;  %v2708_v21 = vadd.f32 0.014752088, %v2707_v47 }
 0x1f6   : > { %v2643_v24 = vsel %vm2642_vm10, %v4182_v4, %v2639_v36  ;;  %v2119_v46 = vadd.f32 %v2087_v8, %v2054_v16  ;;  %v1690_v55 = vadd.f32 %v1658_v22, %v1625_v60  ;;  %v1723_v52 = vmul.f32 %v6210_v41, %v9044_v26 }
 0x1f7   : > { %v3825_v7 = vadd.f32 %v3793_v14, %v3761_v56  ;;  %v2648_v25 = vsel %vm2645_vm11, %v2647_v54, %v2643_v24  ;;  %4183 = vrcp.f32 %v6979_v63  ;;  %v2314_v1 = vmul.f32 0.5, %v6797_v28 }
 0x1f8   : > { %v2649_v42 = vmul.f32 %v2648_v25, %v2624_v61  ;;  %v2663_v40 = vadd.f32 1.1283791, %v2662_v44  ;;  %v2698_v23 = vmul.f32 %v2697_v27, %v6953_v31  ;;  %v6992_v8 = vmul.f32 0.5, %v6851_v18 }
 0x1f9   : > { %3857 = vst [vmem:[%s6654_s13 + $0x28] sm:$0xff] %v3825_v7  ;;  %v2709_v4 = vmul.f32 %v2708_v21, %v6953_v31  ;;  %v2152_v45 = vmul.f32 %v6287_v10, %v6811_v30  ;;  %v1755_v54 = vadd.f32 %v1723_v52, %v1690_v55  ;;  %v2684_v28 = vand.u32 2147483647, %v6979_v63 }
 0x1fa   : > { %v4055_v16 = vclamps-f32 %v2649_v42, 1.0  ;;  %v2686_v61 = vand.u32 2147483648, %v6979_v63  ;;  %v2699_v5 = vadd.f32 0.05243302, %v2698_v23  ;;  %v2217_v53 = vmul.f32 %v6307_v35, %v6986_v49  ;;  %v9065_v42 = vld [vmem:[#allocation86_spill] sm:$0xff] }
 0x1fb   : > { %v2710_v51 = vadd.f32 0.112945676, %v2709_v4  ;;  %v2184_v32 = vadd.f32 %v2152_v45, %v2119_v46  ;;  %v1788_v18 = vmul.f32 %v6224_v39, %v6826_v38  ;;  %v2664_v14 = vmul.f32 %v2663_v40, %v6876_v17  ;;  %v9066_v40 = vld [vmem:[#allocation73_spill] sm:$0xff] }
 0x1fc   : > { %v3658_v47 = vadd.f32 1.0, %v4055_v16  ;;  %vm2680_vm12 = vweird.f32 %v6979_v63  ;;  %v2700_v36 = vmul.f32 %v2699_v5, %v6953_v31  ;;  %v1853_v27 = vmul.f32 %v6246_v19, %v6988_v37 }
 0x1fd   : > { %v4184_v44 = vpop.eup %4183  ;;  %v2711_v60 = vmul.f32 %v2710_v51, %v6953_v31  ;;  %v2249_v22 = vadd.f32 %v2217_v53, %v2184_v32  ;;  %v1820_v56 = vadd.f32 %v1788_v18, %v1755_v54  ;;  %vm7010_vm13 = vcmp.eq.f32.partialorder %v2684_v28, 8.507059e+37  ;;  %v4251_v54 = vld [vmem:[#allocation2 + $0xaa] sm:$0xff]  ;;  %v9067_v53 = vld [vmem:[#allocation105_spill] sm:$0xff] }
 0x1fe   : > { %v3690_v21 = vmul.f32 %v3658_v47, %v2314_v1  ;;  %v2676_v24 = vmul.f32 %v4184_v44, %v6979_v63  ;;  %v2687_v17 = vor.u32 1.1754944e-38, %v2686_v61  ;;  %v2701_v55 = vadd.f32 0.18741608, %v2700_v36  ;;  %v3794_v28 = vld [vmem:[%s4603_s15 + $0x30] sm:$0xff] }
 0x1ff   : > { %v2712_v7 = vadd.f32 0.4994258, %v2711_v60  ;;  %v7015_v25 = vadd.f32 %v6923_v57, %v2249_v22  ;;  %v1885_v52 = vadd.f32 %v1853_v27, %v1820_v56  ;;  %v1326_v23 = vadd.f32 %v9066_v40, %v9065_v42  ;;  %v7027_v51 = vld [vmem:[#allocation2 + $0xca] sm:$0xff] }
 0x200   : > { %v3726_v4 = vmul.f32 %v6609_v59, %v3690_v21  ;;  %v2677_v45 = vsub.f32 1.0, %v2676_v24  ;;  %v2702_v1 = vmul.f32 %v2701_v55, %v6953_v31  ;;  %v1958_v16 = vmul.f32 %v4251_v54, %v6262_v6  ;;  %v7033_v22 = vld [vmem:[#allocation2 + $0x12a] sm:$0xff] }
 0x201   : > { %v2713_v61 = vmul.f32 %v2712_v7, %v6953_v31  ;;  %v7025_v5 = vmul.f32 0.70710677, %v7015_v25  ;;  %v2023_v32 = vmul.f32 %v7027_v51, %v6267_v0  ;;  %v1391_v18 = vadd.f32 %v9067_v53, %v1326_v23  ;;  %v9068_v21 = vld [vmem:[#allocation115_spill] sm:$0xff] }
 0x202   : > { %v3762_v47 = vadd.f32 %v6623_v11, %v3726_v4  ;;  %v2678_v36 = vmul.f32 %v4184_v44, %v2677_v45  ;;  %vm2681_vm14 = vweird.f32 %v4184_v44  ;;  %v2703_v60 = vadd.f32 1.1283791, %v2702_v1  ;;  %v4253_v4 = vld [vmem:[#allocation2 + $0xb1] sm:$0xff] }
 0x203   : > { %v7035_v56 = vadd.f32 1.0, %v2713_v61  ;;  %v2732_v31 = vmul.f32 %v7025_v5, %v7025_v5  ;;  %v1990_v27 = vadd.f32 %v1958_v16, %v1885_v52  ;;  %v1456_v24 = vadd.f32 %v9068_v21, %v1391_v18  ;;  %vm2682_vm15 = vmor %vm2680_vm12, %vm2681_vm14  ;;  %v7065_v21 = vld [vmem:[#allocation2 + $0x131] sm:$0xff] }
 0x204   : > { %v3826_v55 = vadd.f32 %v3794_v28, %v3762_v47  ;;  %v2679_v7 = vadd.f32 %v4184_v44, %v2678_v36  ;;  %v2088_v42 = vmul.f32 %v6285_v34, %v6730_v15  ;;  %v2153_v40 = vmul.f32 %v6287_v10, %v6868_v33  ;;  %v9069_v28 = vld [vmem:[#allocation127_spill] sm:$0xff] }
 0x205   : > { %4185 = vrcp.f32 %v7035_v56  ;;  %v2726_v23 = vand.u32 2147483648, %v7035_v56  ;;  %v2218_v52 = vmul.f32 %v6307_v35, %v7033_v22  ;;  %v1594_v45 = vmul.f32 %v4253_v4, %v9041_v62  ;;  %v7061_v47 = vld [vmem:[#allocation2 + $0xd1] sm:$0xff] }
 0x206   : > { %3858 = vst [vmem:[%s6654_s13 + $0x30] sm:$0xff] %v3826_v55  ;;  %v2683_v1 = vsel %vm2682_vm15, %v4184_v44, %v2679_v7  ;;  %v7052_v54 = vmin.f32 %v2732_v31, 16.0  ;;  %v2055_v16 = vadd.f32 %v2023_v32, %v1990_v27  ;;  %v1521_v61 = vadd.f32 %v9069_v28, %v1456_v24 }
 0x207   : > { %v2688_v63 = vsel %vm7010_vm13, %v2687_v17, %v2683_v1  ;;  %v7058_v53 = vmul.f32 %v2703_v60, %v6937_v29  ;;  %v2724_v18 = vand.u32 2147483647, %v7035_v56  ;;  %v1659_v36 = vmul.f32 %v7061_v47, %v9003_v12 }
 0x208   : > { %v2689_v44 = vmul.f32 %v2688_v63, %v2664_v14  ;;  %v2734_v32 = vmul.f32 2.1237322e-06, %v7052_v54  ;;  %v2745_v31 = vmul.f32 3.8918573e-05, %v7052_v54  ;;  %v2120_v27 = vadd.f32 %v2088_v42, %v2055_v16  ;;  %v4255_v42 = vld [vmem:[#allocation2 + $0xb2] sm:$0xff] }
 0x209   : > { %v2727_v46 = vor.u32 1.1754944e-38, %v2726_v23  ;;  %v1626_v17 = vadd.f32 %v1594_v45, %v1521_v61  ;;  %v1724_v29 = vmul.f32 %v6210_v41, %v6764_v13  ;;  %v1789_v60 = vmul.f32 %v6224_v39, %v6910_v3 }
 0x20a   : > { %v4056_v24 = vclamps-f32 %v2689_v44, 1.0  ;;  %vm2720_vm0 = vweird.f32 %v7035_v56  ;;  %v2735_v55 = vadd.f32 0.00028619796, %v2734_v32  ;;  %v2746_v7 = vadd.f32 0.001143296, %v2745_v31 }
 0x20b   : > { %v2185_v4 = vadd.f32 %v2153_v40, %v2120_v27  ;;  %v4186_v14 = vpop.eup %4185  ;;  %v1691_v1 = vadd.f32 %v1659_v36, %v1626_v17  ;;  %v1854_v28 = vmul.f32 %v6246_v19, %v7065_v21  ;;  %v1959_v23 = vmul.f32 %v4255_v42, %v6262_v6  ;;  %v9072_v27 = vld [vmem:[#allocation93_spill] sm:$0xff]  ;;  %v9073_v17 = vld [vmem:[#allocation31_spill] sm:$0xff] }
 0x20c   : > { %v2024_v45 = vmul.f32 %v6267_v0, %v6669_v20  ;;  %v3659_v16 = vadd.f32 1.0, %v4056_v24  ;;  %v2716_v61 = vmul.f32 %v4186_v14, %v7035_v56  ;;  %vm7080_vm1 = vcmp.eq.f32.partialorder %v2724_v18, 8.507059e+37 }
 0x20d   : > { %v2736_v40 = vmul.f32 %v2735_v55, %v7052_v54  ;;  %v2089_v36 = vmul.f32 %v6285_v34, %v6811_v30  ;;  %v2747_v44 = vmul.f32 %v2746_v7, %v7052_v54  ;;  %v2250_v32 = vadd.f32 %v2218_v52, %v2185_v4  ;;  %v9074_v52 = vld [vmem:[#allocation110_spill] sm:$0xff] }
 0x20e   : > { %v1756_v31 = vadd.f32 %v1724_v29, %v1691_v1  ;;  %v1327_v20 = vadd.f32 %v9073_v17, %v9072_v27  ;;  %v3691_v24 = vmul.f32 %v3659_v16, %v6992_v8  ;;  %v2717_v42 = vsub.f32 1.0, %v2716_v61  ;;  %v3795_v16 = vld [vmem:[%s4603_s15 + $0x38] sm:$0xff] }
 0x20f   : > { %v2737_v18 = vadd.f32 0.0036580483, %v2736_v40  ;;  %v2154_v55 = vmul.f32 %v6287_v10, %v6986_v49  ;;  %v2748_v50 = vadd.f32 0.014752088, %v2747_v44  ;;  %v7096_v30 = vadd.f32 %v6923_v57, %v2250_v32 }
 0x210   : > { %v1821_v7 = vadd.f32 %v1789_v60, %v1756_v31  ;;  %v1392_v4 = vadd.f32 %v9074_v52, %v1327_v20  ;;  %v3727_v29 = vmul.f32 %v6609_v59, %v3691_v24  ;;  %v2718_v1 = vmul.f32 %v4186_v14, %v2717_v42  ;;  %v9075_v59 = vld [vmem:[#allocation120_spill] sm:$0xff] }
 0x211   : > { %vm2721_vm2 = vweird.f32 %v4186_v14  ;;  %v2738_v8 = vmul.f32 %v2737_v18, %v7052_v54  ;;  %v2749_v61 = vmul.f32 %v2748_v50, %v7052_v54  ;;  %v7104_v40 = vmul.f32 0.70710677, %v7096_v30 }
 0x212   : > { %v1886_v27 = vadd.f32 %v1854_v28, %v1821_v7  ;;  %v2219_v44 = vmul.f32 %v6307_v35, %v7091_v48  ;;  %v3763_v60 = vadd.f32 %v6623_v11, %v3727_v29  ;;  %v2719_v32 = vadd.f32 %v4186_v14, %v2718_v1  ;;  %vm2722_vm3 = vmor %vm2720_vm0, %vm2721_vm2  ;;  %v9076_v7 = vld [vmem:[#allocation131_spill] sm:$0xff] }
 0x213   : > { %v2739_v31 = vadd.f32 0.05243302, %v2738_v8  ;;  %v1457_v17 = vadd.f32 %v9075_v59, %v1392_v4  ;;  %v2750_v20 = vadd.f32 0.112945676, %v2749_v61  ;;  %v2772_v50 = vmul.f32 %v7104_v40, %v7104_v40 }
 0x214   : > { %v1991_v24 = vadd.f32 %v1959_v23, %v1886_v27  ;;  %v1595_v28 = vmul.f32 %v6971_v2, %v9041_v62  ;;  %v3827_v42 = vadd.f32 %v3795_v16, %v3763_v60  ;;  %v2723_v18 = vsel %vm2722_vm3, %v4186_v14, %v2719_v32 }
 0x215   : > { %v2740_v11 = vmul.f32 %v2739_v31, %v7052_v54  ;;  %v1522_v52 = vadd.f32 %v9076_v7, %v1457_v17  ;;  %v2728_v4 = vsel %vm7080_vm1, %v2727_v46, %v2723_v18  ;;  %v2751_v56 = vmul.f32 %v2750_v20, %v7052_v54  ;;  %v7133_v20 = vld [vmem:[#allocation2 + $0x149] sm:$0xff]  ;;  %v9077_v7 = vld [vmem:[#allocation20_spill] sm:$0xff] }
 0x216   : > { %v7121_v29 = vmin.f32 %v2772_v50, 16.0  ;;  %v2056_v1 = vadd.f32 %v2024_v45, %v1991_v24  ;;  %3859 = vst [vmem:[%s6654_s13 + $0x38] sm:$0xff] %v3827_v42  ;;  %v2729_v23 = vmul.f32 %v2728_v4, %v7058_v53  ;;  %v1660_v2 = vmul.f32 %v9003_v12, %v9044_v26 }
 0x217   : > { %v2741_v8 = vadd.f32 0.18741608, %v2740_v11  ;;  %v1627_v61 = vadd.f32 %v1595_v28, %v1522_v52  ;;  %v2752_v14 = vadd.f32 0.4994258, %v2751_v56  ;;  %v1725_v45 = vmul.f32 %v6210_v41, %v6826_v38  ;;  %v4256_v11 = vld [vmem:[#allocation2 + $0x1c8] sm:$0xff] }
 0x218   : > { %v2774_v16 = vmul.f32 2.1237322e-06, %v7121_v29  ;;  %v2785_v27 = vmul.f32 3.8918573e-05, %v7121_v29  ;;  %v2121_v63 = vadd.f32 %v2089_v36, %v2056_v1  ;;  %v4057_v46 = vclamps-f32 %v2729_v23, 1.0 }
 0x219   : > { %v2742_v60 = vmul.f32 %v2741_v8, %v7052_v54  ;;  %v1692_v32 = vadd.f32 %v1660_v2, %v1627_v61  ;;  %v2753_v53 = vmul.f32 %v2752_v14, %v7052_v54  ;;  %v2316_v26 = vmul.f32 0.5, %v6926_v9 }
 0x21a   : > { %v2775_v31 = vadd.f32 0.00028619796, %v2774_v16  ;;  %v2786_v59 = vadd.f32 0.001143296, %v2785_v27  ;;  %v2186_v17 = vadd.f32 %v2154_v55, %v2121_v63  ;;  %v3660_v50 = vadd.f32 1.0, %v4057_v46  ;;  %v3796_v16 = vld [vmem:[%s4603_s15 + $0x40] sm:$0xff] }
 0x21b   : > { %v1757_v24 = vadd.f32 %v1725_v45, %v1692_v32  ;;  %v1790_v36 = vmul.f32 %v6224_v39, %v6988_v37  ;;  %v7138_v28 = vadd.f32 1.0, %v2753_v53  ;;  %v7143_v55 = vmul.f32 %v4256_v11, %v9077_v7  ;;  %v7175_v32 = vld [vmem:[%s8621_s4] ss:$0 sm:$0xff] }
 0x21c   : > { %v2776_v42 = vmul.f32 %v2775_v31, %v7121_v29  ;;  %v2787_v18 = vmul.f32 %v2786_v59, %v7121_v29  ;;  %v2251_v54 = vadd.f32 %v2219_v44, %v2186_v17  ;;  %v7146_v52 = vmul.f32 %v4256_v11, %v9048_v58  ;;  %v7157_v44 = vld [vmem:[%s8620_s3] ss:$0 sm:$0xff]  ;;  %v9080_v17 = vld [vmem:[#allocation132_spill] sm:$0xff] }
 0x21d   : > { %9078 = vst [vmem:[#allocation58_spill] sm:$0xff] %v7143_v55  ;;  %v3692_v9 = vmul.f32 %v3660_v50, %v2316_v26  ;;  %v1822_v4 = vadd.f32 %v1790_v36, %v1757_v24  ;;  %v7149_v56 = vmul.f32 %v4256_v11, %v9052_v43  ;;  %v2743_v1 = vadd.f32 1.1283791, %v2742_v60  ;;  %v9081_v26 = vld [vmem:[#allocation41_spill] sm:$0xff] }
 0x21e   : > { %9079 = vst [vmem:[#allocation37_spill] sm:$0xff] %v7146_v52  ;;  %4187 = vrcp.f32 %v7138_v28  ;;  %v1855_v23 = vmul.f32 %v6246_v19, %v7133_v20  ;;  %v2777_v61 = vadd.f32 0.0036580483, %v2776_v42  ;;  %v2788_v2 = vadd.f32 0.014752088, %v2787_v18 }
 0x21f   : > { %v3728_v8 = vmul.f32 %v7157_v44, %v3692_v9  ;;  %v7161_v14 = vadd.f32 %v6923_v57, %v2251_v54  ;;  %v7165_v27 = vmul.f32 0.5, %v7015_v25  ;;  %v7168_v63 = vmul.f32 0.5, %v7096_v30  ;;  %v9082_v9 = vld [vmem:[#allocation114_spill] sm:$0xff] }
 0x220   : > { %v1887_v46 = vadd.f32 %v1855_v23, %v1822_v4  ;;  %v1960_v60 = vmul.f32 %v7027_v51, %v6262_v6  ;;  %v2764_v53 = vand.u32 2147483647, %v7138_v28  ;;  %v2778_v25 = vmul.f32 %v2777_v61, %v7121_v29 }
 0x221   : > { %v3764_v45 = vadd.f32 %v7175_v32, %v3728_v8  ;;  %v2789_v31 = vmul.f32 %v2788_v2, %v7121_v29  ;;  %v2744_v30 = vmul.f32 %v2743_v1, %v7025_v5  ;;  %v2766_v59 = vand.u32 2147483648, %v7138_v28 }
 0x222   : > { %v7184_v51 = vmul.f32 0.70710677, %v7161_v14  ;;  %v1328_v50 = vadd.f32 %v9081_v26, %v9080_v17  ;;  %v2779_v36 = vadd.f32 0.05243302, %v2778_v25  ;;  %v2025_v18 = vmul.f32 %v6267_v0, %v6730_v15 }
 0x223   : > { %v3828_v24 = vadd.f32 %v3796_v16, %v3764_v45  ;;  %v2790_v42 = vadd.f32 0.112945676, %v2789_v31  ;;  %vm2760_vm4 = vweird.f32 %v7138_v28  ;;  %v1992_v11 = vadd.f32 %v1960_v60, %v1887_v46  ;;  %v9085_v46 = vld [vmem:[#allocation126_spill] sm:$0xff] }
 0x224   : > { %v4188_v54 = vpop.eup %4187  ;;  %v2812_v5 = vmul.f32 %v7184_v51, %v7184_v51  ;;  %v1393_v4 = vadd.f32 %v9082_v9, %v1328_v50  ;;  %vm7196_vm5 = vcmp.eq.f32.partialorder %v2764_v53, 8.507059e+37  ;;  %v2780_v8 = vmul.f32 %v2779_v36, %v7121_v29  ;;  %v7211_v50 = vld [vmem:[#allocation2 + $0x14a] sm:$0xff] }
 0x225   : > { %3860 = vst [vmem:[%s6654_s13 + $0x40] sm:$0xff] %v3828_v24  ;;  %v2756_v1 = vmul.f32 %v4188_v54, %v7138_v28  ;;  %v2791_v15 = vmul.f32 %v2790_v42, %v7121_v29  ;;  %v2767_v61 = vor.u32 1.1754944e-38, %v2766_v59  ;;  %v2090_v16 = vmul.f32 %v6285_v34, %v6868_v33  ;;  %v9086_v24 = vld [vmem:[#allocation135_spill] sm:$0xff] }
 0x226   : > { %v7202_v2 = vmin.f32 %v2812_v5, 16.0  ;;  %v1458_v60 = vadd.f32 %v9085_v46, %v1393_v4  ;;  %v2781_v25 = vadd.f32 0.18741608, %v2780_v8  ;;  %v1596_v53 = vmul.f32 %v7061_v47, %v9041_v62 }
 0x227   : > { %v2757_v45 = vsub.f32 1.0, %v2756_v1  ;;  %v2792_v31 = vadd.f32 0.4994258, %v2791_v15  ;;  %v2057_v59 = vadd.f32 %v2025_v18, %v1992_v11  ;;  %vm2761_vm6 = vweird.f32 %v4188_v54  ;;  %v7218_v15 = vld [vmem:[#allocation2 + $0x151] sm:$0xff] }
 0x228   : > { %v2814_v17 = vmul.f32 2.1237322e-06, %v7202_v2  ;;  %v2825_v26 = vmul.f32 3.8918573e-05, %v7202_v2  ;;  %v1523_v36 = vadd.f32 %v9086_v24, %v1458_v60  ;;  %v2782_v5 = vmul.f32 %v2781_v25, %v7121_v29  ;;  %vm2762_vm7 = vmor %vm2760_vm4, %vm2761_vm6 }
 0x229   : > { %v2758_v42 = vmul.f32 %v4188_v54, %v2757_v45  ;;  %v2793_v9 = vmul.f32 %v2792_v31, %v7121_v29  ;;  %v1661_v47 = vmul.f32 %v9003_v12, %v6764_v13  ;;  %v2155_v18 = vmul.f32 %v6287_v10, %v7033_v22 }
 0x22a   : > { %v2815_v4 = vadd.f32 0.00028619796, %v2814_v17  ;;  %v2826_v1 = vadd.f32 0.001143296, %v2825_v26  ;;  %v1628_v8 = vadd.f32 %v1596_v53, %v1523_v36  ;;  %v2220_v11 = vmul.f32 %v6307_v35, %v7211_v50 }
 0x22b   : > { %v2759_v46 = vadd.f32 %v4188_v54, %v2758_v42  ;;  %v7220_v55 = vadd.f32 1.0, %v2793_v9  ;;  %v2122_v45 = vadd.f32 %v2090_v16, %v2057_v59  ;;  %v2783_v31 = vadd.f32 1.1283791, %v2782_v5 }
 0x22c   : > { %v2816_v29 = vmul.f32 %v2815_v4, %v7202_v2  ;;  %v2827_v60 = vmul.f32 %v2826_v1, %v7202_v2  ;;  %v1693_v13 = vadd.f32 %v1661_v47, %v1628_v8  ;;  %v1726_v53 = vmul.f32 %v6210_v41, %v6910_v3  ;;  %v9087_v4 = vld [vmem:[#allocation122_spill] sm:$0xff] }
 0x22d   : > { %v2763_v25 = vsel %vm2762_vm7, %v4188_v54, %v2759_v46  ;;  %4189 = vrcp.f32 %v7220_v55  ;;  %v1791_v28 = vmul.f32 %v6224_v39, %v7065_v21  ;;  %v1856_v24 = vmul.f32 %v6246_v19, %v7218_v15  ;;  %v4259_v54 = vld [vmem:[#allocation2 + $0xd2] sm:$0xff] }
 0x22e   : > { %v2768_v17 = vsel %vm7196_vm5, %v2767_v61, %v2763_v25  ;;  %v2817_v26 = vadd.f32 0.0036580483, %v2816_v29  ;;  %v2828_v16 = vadd.f32 0.014752088, %v2827_v60  ;;  %v1758_v59 = vadd.f32 %v1726_v53, %v1693_v13  ;;  %v9088_v60 = vld [vmem:[#allocation136_spill] sm:$0xff]  ;;  %v9089_v13 = vld [vmem:[#allocation109_spill] sm:$0xff] }
 0x22f   : > { %v2769_v36 = vmul.f32 %v2768_v17, %v2744_v30  ;;  %v1961_v42 = vmul.f32 %v4259_v54, %v6262_v6  ;;  %v2187_v9 = vadd.f32 %v2155_v18, %v2122_v45  ;;  %v2026_v23 = vmul.f32 %v6267_v0, %v9087_v4  ;;  %v9090_v54 = vld [vmem:[#allocation119_spill] sm:$0xff] }
 0x230   : > { %v2818_v5 = vmul.f32 %v2817_v26, %v7202_v2  ;;  %v2091_v61 = vmul.f32 %v6285_v34, %v6986_v49  ;;  %v2784_v8 = vmul.f32 %v2783_v31, %v7104_v40  ;;  %v2829_v47 = vmul.f32 %v2828_v16, %v7202_v2 }
 0x231   : > { %v4058_v1 = vclamps-f32 %v2769_v36, 1.0  ;;  %v1823_v30 = vadd.f32 %v1791_v28, %v1758_v59  ;;  %vm2800_vm8 = vweird.f32 %v7220_v55  ;;  %v2252_v29 = vadd.f32 %v2220_v11, %v2187_v9 }
 0x232   : > { %v2819_v46 = vadd.f32 0.05243302, %v2818_v5  ;;  %v1329_v25 = vadd.f32 %v9089_v13, %v9088_v60  ;;  %v2804_v53 = vand.u32 2147483647, %v7220_v55  ;;  %v2830_v17 = vadd.f32 0.112945676, %v2829_v47 }
 0x233   : > { %v4190_v18 = vpop.eup %4189  ;;  %v3661_v45 = vadd.f32 1.0, %v4058_v1  ;;  %v1888_v26 = vadd.f32 %v1856_v24, %v1823_v30  ;;  %v2806_v40 = vand.u32 2147483648, %v7220_v55  ;;  %v7255_v28 = vadd.f32 %v6923_v57, %v2252_v29  ;;  %v9091_v29 = vld [vmem:[#allocation130_spill] sm:$0xff] }
 0x234   : > { %v2796_v36 = vmul.f32 %v4190_v18, %v7220_v55  ;;  %v2820_v31 = vmul.f32 %v2819_v46, %v7202_v2  ;;  %v2831_v16 = vmul.f32 %v2830_v17, %v7202_v2  ;;  %v1394_v5 = vadd.f32 %v9090_v54, %v1329_v25  ;;  %v4260_v25 = vld [vmem:[#allocation2 + $0xe9] sm:$0xff] }
 0x235   : > { %v3693_v11 = vmul.f32 %v3661_v45, %v7165_v27  ;;  %v1993_v59 = vadd.f32 %v1961_v42, %v1888_v26  ;;  %v7261_v24 = vmul.f32 0.70710677, %v7255_v28  ;;  %v2156_v1 = vmul.f32 %v6287_v10, %v7091_v48  ;;  %v3797_v27 = vld [vmem:[%s4603_s15 + $0x48] sm:$0xff] }
 0x236   : > { %v2797_v9 = vsub.f32 1.0, %v2796_v36  ;;  %v2821_v4 = vadd.f32 0.18741608, %v2820_v31  ;;  %v2832_v30 = vadd.f32 0.4994258, %v2831_v16  ;;  %v1459_v60 = vadd.f32 %v9091_v29, %v1394_v5  ;;  %v7274_v31 = vld [vmem:[#allocation2 + $0x152] sm:$0xff] }
 0x237   : > { %v3729_v47 = vmul.f32 %v7157_v44, %v3693_v11  ;;  %v2058_v46 = vadd.f32 %v2026_v23, %v1993_v59  ;;  %vm2801_vm9 = vweird.f32 %v4190_v18  ;;  %v2852_v42 = vmul.f32 %v7261_v24, %v7261_v24  ;;  %v9092_v23 = vld [vmem:[#allocation141_spill] sm:$0xff] }
 0x238   : > { %v2798_v13 = vmul.f32 %v4190_v18, %v2797_v9  ;;  %v1597_v45 = vmul.f32 %v4260_v25, %v9041_v62  ;;  %v2822_v26 = vmul.f32 %v2821_v4, %v7202_v2  ;;  %v2833_v36 = vmul.f32 %v2832_v30, %v7202_v2  ;;  %vm2802_vm11 = vmor %vm2800_vm8, %vm2801_vm9 }
 0x239   : > { %v3765_v17 = vadd.f32 %v7175_v32, %v3729_v47  ;;  %v1524_v11 = vadd.f32 %v9092_v23, %v1459_v60  ;;  %vm2805_vm10 = vcmp.eq.f32.partialorder %v2804_v53, 8.507059e+37  ;;  %v2807_v59 = vor.u32 1.1754944e-38, %v2806_v40 }
 0x23a   : > { %v2799_v16 = vadd.f32 %v4190_v18, %v2798_v13  ;;  %v7277_v54 = vmin.f32 %v2852_v42, 16.0  ;;  %v7281_v9 = vadd.f32 1.0, %v2833_v36  ;;  %v2123_v47 = vadd.f32 %v2091_v61, %v2058_v46 }
 0x23b   : > { %v3829_v5 = vadd.f32 %v3797_v27, %v3765_v17  ;;  %v1629_v4 = vadd.f32 %v1597_v45, %v1524_v11  ;;  %v2221_v60 = vmul.f32 %v6307_v35, %v7274_v31  ;;  %v2823_v40 = vadd.f32 1.1283791, %v2822_v26  ;;  %v7291_v27 = vld [vmem:[#allocation2 + $0x169] sm:$0xff] }
 0x23c   : > { %v2803_v29 = vsel %vm2802_vm11, %v4190_v18, %v2799_v16  ;;  %v2854_v2 = vmul.f32 2.1237322e-06, %v7277_v54  ;;  %v2865_v30 = vmul.f32 3.8918573e-05, %v7277_v54  ;;  %4191 = vrcp.f32 %v7281_v9 }
 0x23d   : > { %3861 = vst [vmem:[%s6654_s13 + $0x48] sm:$0xff] %v3829_v5  ;;  %v2808_v53 = vsel %vm2805_vm10, %v2807_v59, %v2803_v29  ;;  %v1662_v55 = vmul.f32 %v9003_v12, %v6826_v38  ;;  %v1727_v13 = vmul.f32 %v6210_v41, %v6988_v37  ;;  %v2846_v42 = vand.u32 2147483648, %v7281_v9 }
 0x23e   : > { %v2809_v61 = vmul.f32 %v2808_v53, %v2784_v8  ;;  %v2855_v46 = vadd.f32 0.00028619796, %v2854_v2  ;;  %v2866_v18 = vadd.f32 0.001143296, %v2865_v30  ;;  %v2188_v25 = vadd.f32 %v2156_v1, %v2123_v47 }
 0x23f   : > { %v1694_v45 = vadd.f32 %v1662_v55, %v1629_v4  ;;  %v1792_v17 = vmul.f32 %v6224_v39, %v7133_v20  ;;  %v2844_v36 = vand.u32 2147483647, %v7281_v9  ;;  %v2824_v8 = vmul.f32 %v2823_v40, %v7184_v51  ;;  %v4261_v4 = vld [vmem:[#allocation2 + $0xea] sm:$0xff]  ;;  %v9094_v40 = vld [vmem:[#allocation76_spill] sm:$0xff] }
 0x240   : > { %v4059_v26 = vclamps-f32 %v2809_v61, 1.0  ;;  %v2856_v38 = vmul.f32 %v2855_v46, %v7277_v54  ;;  %v2867_v23 = vmul.f32 %v2866_v18, %v7277_v54  ;;  %v2253_v11 = vadd.f32 %v2221_v60, %v2188_v25  ;;  %v9093_v60 = vld [vmem:[#allocation142_spill] sm:$0xff] }
 0x241   : > { %v1759_v16 = vadd.f32 %v1727_v13, %v1694_v45  ;;  %v1857_v59 = vmul.f32 %v6246_v19, %v7291_v27  ;;  %vm2840_vm12 = vweird.f32 %v7281_v9  ;;  %v1962_v29 = vmul.f32 %v4261_v4, %v6262_v6 }
 0x242   : > { %v3662_v5 = vadd.f32 1.0, %v4059_v26  ;;  %v2857_v1 = vadd.f32 0.0036580483, %v2856_v38  ;;  %v2868_v47 = vadd.f32 0.014752088, %v2867_v23  ;;  %v4192_v2 = vpop.eup %4191  ;;  %v2847_v30 = vor.u32 1.1754944e-38, %v2846_v42 }
 0x243   : > { %v7307_v53 = vadd.f32 %v6923_v57, %v2253_v11  ;;  %v1824_v51 = vadd.f32 %v1792_v17, %v1759_v16  ;;  %v1330_v55 = vadd.f32 %v9094_v40, %v9093_v60  ;;  %v2836_v46 = vmul.f32 %v4192_v2, %v7281_v9  ;;  %v9097_v23 = vld [vmem:[#allocation125_spill] sm:$0xff]  ;;  %v3798_v16 = vld [vmem:[%s4603_s15 + $0x50] sm:$0xff] }
 0x244   : > { %v3694_v61 = vmul.f32 %v3662_v5, %v7168_v63  ;;  %vm7313_vm13 = vcmp.eq.f32.partialorder %v2844_v36, 8.507059e+37  ;;  %v2858_v13 = vmul.f32 %v2857_v1, %v7277_v54  ;;  %v2027_v42 = vmul.f32 %v6267_v0, %v6868_v33 }
 0x245   : > { %v2869_v25 = vmul.f32 %v2868_v47, %v7277_v54  ;;  %v7322_v45 = vmul.f32 0.70710677, %v7307_v53  ;;  %v1889_v17 = vadd.f32 %v1857_v59, %v1824_v51  ;;  %v2092_v63 = vmul.f32 %v6285_v34, %v7033_v22  ;;  %v9098_v51 = vld [vmem:[#allocation134_spill] sm:$0xff] }
 0x246   : > { %v3730_v26 = vmul.f32 %v7157_v44, %v3694_v61  ;;  %v2837_v36 = vsub.f32 1.0, %v2836_v46  ;;  %v2859_v38 = vadd.f32 0.05243302, %v2858_v13  ;;  %v1395_v11 = vadd.f32 %v9097_v23, %v1330_v55  ;;  %v4262_v46 = vld [vmem:[#allocation2 + $0xf1] sm:$0xff] }
 0x247   : > { %vm2841_vm14 = vweird.f32 %v4192_v2  ;;  %v2870_v5 = vadd.f32 0.112945676, %v2869_v25  ;;  %v2892_v33 = vmul.f32 %v7322_v45, %v7322_v45  ;;  %v1994_v1 = vadd.f32 %v1962_v29, %v1889_v17 }
 0x248   : > { %v3766_v47 = vadd.f32 %v7175_v32, %v3730_v26  ;;  %v2838_v4 = vmul.f32 %v4192_v2, %v2837_v36  ;;  %v2860_v59 = vmul.f32 %v2859_v38, %v7277_v54  ;;  %v1460_v60 = vadd.f32 %v9098_v51, %v1395_v11  ;;  %v9099_v26 = vld [vmem:[#allocation147_spill] sm:$0xff]  ;;  %vm2842_vm15 = vmor %vm2840_vm12, %vm2841_vm14 }
 0x249   : > { %v2871_v40 = vmul.f32 %v2870_v5, %v7277_v54  ;;  %v7335_v61 = vmin.f32 %v2892_v33, 16.0  ;;  %v2157_v55 = vmul.f32 %v6287_v10, %v7211_v50  ;;  %v1598_v13 = vmul.f32 %v4262_v46, %v9041_v62 }
 0x24a   : > { %v3830_v25 = vadd.f32 %v3798_v16, %v3766_v47  ;;  %v2839_v29 = vadd.f32 %v4192_v2, %v2838_v4  ;;  %v2861_v17 = vadd.f32 0.18741608, %v2860_v59  ;;  %v1525_v36 = vadd.f32 %v9099_v26, %v1460_v60 }
 0x24b   : > { %v2872_v38 = vadd.f32 0.4994258, %v2871_v40  ;;  %v2894_v23 = vmul.f32 2.1237322e-06, %v7335_v61  ;;  %v2905_v11 = vmul.f32 3.8918573e-05, %v7335_v61  ;;  %v2059_v5 = vadd.f32 %v2027_v42, %v1994_v1 }
 0x24c   : > { %3862 = vst [vmem:[%s6654_s13 + $0x50] sm:$0xff] %v3830_v25  ;;  %v2843_v33 = vsel %vm2842_vm15, %v4192_v2, %v2839_v29  ;;  %v2862_v51 = vmul.f32 %v2861_v17, %v7277_v54  ;;  %v1630_v46 = vadd.f32 %v1598_v13, %v1525_v36  ;;  %v1663_v16 = vmul.f32 %v9003_v12, %v6910_v3  ;;  %v7353_v40 = vld [vmem:[#allocation2 + $0x16a] sm:$0xff] }
 0x24d   : > { %v2848_v47 = vsel %vm7313_vm13, %v2847_v30, %v2843_v33  ;;  %v2873_v9 = vmul.f32 %v2872_v38, %v7277_v54  ;;  %v2895_v4 = vadd.f32 0.00028619796, %v2894_v23  ;;  %v2906_v59 = vadd.f32 0.001143296, %v2905_v11  ;;  %v4263_v1 = vld [vmem:[#allocation2 + $0x1d0] sm:$0xff] }
 0x24e   : > { %v2849_v60 = vmul.f32 %v2848_v47, %v2824_v8  ;;  %v2124_v26 = vadd.f32 %v2092_v63, %v2059_v5  ;;  %v1695_v42 = vadd.f32 %v1663_v16, %v1630_v46  ;;  %v1728_v2 = vmul.f32 %v6210_v41, %v7065_v21  ;;  %v7367_v29 = vld [vmem:[#allocation2 + $0x171] sm:$0xff] }
 0x24f   : > { %v7358_v13 = vmul.f32 %v4263_v1, %v9077_v7  ;;  %v7360_v3 = vadd.f32 1.0, %v2873_v9  ;;  %v2896_v30 = vmul.f32 %v2895_v4, %v7335_v61  ;;  %v2907_v54 = vmul.f32 %v2906_v59, %v7335_v61 }
 0x250   : > { %v7365_v18 = vmul.f32 %v4263_v1, %v9048_v58  ;;  %v4060_v8 = vclamps-f32 %v2849_v60, 1.0  ;;  %v2189_v25 = vadd.f32 %v2157_v55, %v2124_v26  ;;  %v1760_v63 = vadd.f32 %v1728_v2, %v1695_v42 }
 0x251   : > { %9100 = vst [vmem:[#allocation49_spill] sm:$0xff] %v7358_v13  ;;  %v2863_v17 = vadd.f32 1.1283791, %v2862_v51  ;;  %4193 = vrcp.f32 %v7360_v3  ;;  %v2222_v7 = vmul.f32 %v6307_v35, %v7353_v40  ;;  %v1793_v36 = vmul.f32 %v6224_v39, %v7218_v15 }
 0x252   : > { %9101 = vst [vmem:[#allocation166_spill] sm:$0xff] %v7365_v18  ;;  %v2319_v38 = vmul.f32 0.5, %v7161_v14  ;;  %v3663_v23 = vadd.f32 1.0, %v4060_v8  ;;  %v2897_v11 = vadd.f32 0.0036580483, %v2896_v30  ;;  %v7376_v33 = vmul.f32 %v4263_v1, %v9052_v43 }
 0x253   : > { %v2908_v5 = vadd.f32 0.014752088, %v2907_v54  ;;  %v2886_v55 = vand.u32 2147483648, %v7360_v3  ;;  %v2254_v51 = vadd.f32 %v2222_v7, %v2189_v25  ;;  %v1825_v46 = vadd.f32 %v1793_v36, %v1760_v63  ;;  %v3799_v54 = vld [vmem:[%s4603_s15 + $0x58] sm:$0xff]  ;;  %v9104_v63 = vld [vmem:[#allocation118_spill] sm:$0xff] }
 0x254   : > { %9102 = vst [vmem:[#allocation117_spill] sm:$0xff] %v7376_v33  ;;  %v3695_v16 = vmul.f32 %v3663_v23, %v2319_v38  ;;  %v2884_v47 = vand.u32 2147483647, %v7360_v3  ;;  %v2898_v9 = vmul.f32 %v2897_v11, %v7335_v61  ;;  %v7383_v14 = vmul.f32 0.5, %v7255_v28  ;;  %v4264_v23 = vld [vmem:[#allocation2 + $0xf2] sm:$0xff] }
 0x255   : > { %v2909_v4 = vmul.f32 %v2908_v5, %v7335_v61  ;;  %v2864_v59 = vmul.f32 %v2863_v17, %v7261_v24  ;;  %v7387_v60 = vadd.f32 %v6923_v57, %v2254_v51  ;;  %v1858_v26 = vmul.f32 %v6246_v19, %v7367_v29  ;;  %v9103_v24 = vld [vmem:[#allocation74_spill] sm:$0xff]  ;;  %v7581_v33 = vld [vmem:[#allocation2 + $0x192] sm:$0xff] }
 0x256   : > { %v3731_v42 = vmul.f32 %v7157_v44, %v3695_v16  ;;  %vm2880_vm0 = vweird.f32 %v7360_v3  ;;  %v2899_v2 = vadd.f32 0.05243302, %v2898_v9  ;;  %v2887_v8 = vor.u32 1.1754944e-38, %v2886_v55 }
 0x257   : > { %v2910_v1 = vadd.f32 0.112945676, %v2909_v4  ;;  %v4194_v30 = vpop.eup %4193  ;;  %v7395_v28 = vmul.f32 0.70710677, %v7387_v60  ;;  %v1890_v25 = vadd.f32 %v1858_v26, %v1825_v46  ;;  %v1331_v57 = vadd.f32 %v9104_v63, %v9103_v24  ;;  %v9107_v46 = vld [vmem:[#allocation129_spill] sm:$0xff]  ;;  %v9108_v63 = vld [vmem:[#allocation140_spill] sm:$0xff] }
 0x258   : > { %v3767_v17 = vadd.f32 %v7175_v32, %v3731_v42  ;;  %v2876_v7 = vmul.f32 %v4194_v30, %v7360_v3  ;;  %vm7401_vm1 = vcmp.eq.f32.partialorder %v2884_v47, 8.507059e+37  ;;  %v2900_v38 = vmul.f32 %v2899_v2, %v7335_v61 }
 0x259   : > { %v1963_v11 = vmul.f32 %v4264_v23, %v6262_v6  ;;  %v2911_v5 = vmul.f32 %v2910_v1, %v7335_v61  ;;  %v2932_v55 = vmul.f32 %v7395_v28, %v7395_v28  ;;  %v2028_v51 = vmul.f32 %v6267_v0, %v6986_v49  ;;  %v4265_v49 = vld [vmem:[#allocation2 + $0x109] sm:$0xff] }
 0x25a   : > { %v1396_v16 = vadd.f32 %v9107_v46, %v1331_v57  ;;  %v3831_v47 = vadd.f32 %v3799_v54, %v3767_v17  ;;  %v2877_v9 = vsub.f32 1.0, %v2876_v7  ;;  %v2901_v4 = vadd.f32 0.18741608, %v2900_v38  ;;  %v7424_v38 = vld [vmem:[#allocation2 + $0x172] sm:$0xff] }
 0x25b   : > { %v2093_v26 = vmul.f32 %v6285_v34, %v7091_v48  ;;  %v2912_v42 = vadd.f32 0.4994258, %v2911_v5  ;;  %v7415_v2 = vmin.f32 %v2932_v55, 16.0  ;;  %v1995_v24 = vadd.f32 %v1963_v11, %v1890_v25  ;;  %v9109_v5 = vld [vmem:[#allocation113_spill] sm:$0xff]  ;;  %v7427_v11 = vld [vmem:[#allocation2 + $0x189] sm:$0xff] }
 0x25c   : > { %v1461_v1 = vadd.f32 %v9108_v63, %v1396_v16  ;;  %3863 = vst [vmem:[%s6654_s13 + $0x58] sm:$0xff] %v3831_v47  ;;  %v2878_v23 = vmul.f32 %v4194_v30, %v2877_v9  ;;  %vm2881_vm2 = vweird.f32 %v4194_v30  ;;  %v2902_v13 = vmul.f32 %v2901_v4, %v7335_v61 }
 0x25d   : > { %v1599_v57 = vmul.f32 %v4265_v49, %v9041_v62  ;;  %v2913_v54 = vmul.f32 %v2912_v42, %v7335_v61  ;;  %v2934_v17 = vmul.f32 2.1237322e-06, %v7415_v2  ;;  %v2945_v7 = vmul.f32 3.8918573e-05, %v7415_v2  ;;  %vm2882_vm3 = vmor %vm2880_vm0, %vm2881_vm2 }
 0x25e   : > { %v1526_v25 = vadd.f32 %v9109_v5, %v1461_v1  ;;  %v2879_v55 = vadd.f32 %v4194_v30, %v2878_v23  ;;  %v2903_v46 = vadd.f32 1.1283791, %v2902_v13  ;;  %v2060_v16 = vadd.f32 %v2028_v51, %v1995_v24 }
 0x25f   : > { %v2158_v47 = vmul.f32 %v6287_v10, %v7274_v31  ;;  %v7433_v61 = vadd.f32 1.0, %v2913_v54  ;;  %v2935_v9 = vadd.f32 0.00028619796, %v2934_v17  ;;  %v2946_v4 = vadd.f32 0.001143296, %v2945_v7 }
 0x260   : > { %v1631_v42 = vadd.f32 %v1599_v57, %v1526_v25  ;;  %v2883_v63 = vsel %vm2882_vm3, %v4194_v30, %v2879_v55  ;;  %v2223_v1 = vmul.f32 %v6307_v35, %v7424_v38  ;;  %v1664_v23 = vmul.f32 %v9003_v12, %v6988_v37  ;;  %v4266_v37 = vld [vmem:[#allocation2 + $0x10a] sm:$0xff] }
 0x261   : > { %v1729_v13 = vmul.f32 %v6210_v41, %v7133_v20  ;;  %v2888_v51 = vsel %vm7401_vm1, %v2887_v8, %v2883_v63  ;;  %4195 = vrcp.f32 %v7433_v61  ;;  %v1794_v3 = vmul.f32 %v6224_v39, %v7291_v27 }
 0x262   : > { %v1859_v30 = vmul.f32 %v6246_v19, %v7427_v11  ;;  %v2889_v24 = vmul.f32 %v2888_v51, %v2864_v59  ;;  %v2936_v49 = vmul.f32 %v2935_v9, %v7415_v2  ;;  %v2947_v57 = vmul.f32 %v2946_v4, %v7415_v2  ;;  %v9110_v51 = vld [vmem:[#allocation152_spill] sm:$0xff] }
 0x263   : > { %v1964_v54 = vmul.f32 %v4266_v37, %v6262_v6  ;;  %v7452_v17 = vmul.f32 %v2903_v46, %v7322_v45  ;;  %v2924_v8 = vand.u32 2147483647, %v7433_v61  ;;  %v2125_v36 = vadd.f32 %v2093_v26, %v2060_v16  ;;  %v9111_v37 = vld [vmem:[#allocation124_spill] sm:$0xff] }
 0x264   : > { %v1696_v7 = vadd.f32 %v1664_v23, %v1631_v42  ;;  %v4061_v5 = vclamps-f32 %v2889_v24, 1.0  ;;  %v2937_v25 = vadd.f32 0.0036580483, %v2936_v49  ;;  %v2948_v55 = vadd.f32 0.014752088, %v2947_v57 }
 0x265   : > { %v2029_v59 = vmul.f32 %v6267_v0, %v7033_v22  ;;  %v2190_v63 = vadd.f32 %v2158_v47, %v2125_v36  ;;  %v2094_v4 = vmul.f32 %v6285_v34, %v7211_v50  ;;  %v1332_v18 = vadd.f32 %v9111_v37, %v9110_v51  ;;  %v9112_v47 = vld [vmem:[#allocation133_spill] sm:$0xff] }
 0x266   : > { %v1761_v9 = vadd.f32 %v1729_v13, %v1696_v7  ;;  %v3664_v45 = vadd.f32 1.0, %v4061_v5  ;;  %vm2920_vm4 = vweird.f32 %v7433_v61  ;;  %v2938_v26 = vmul.f32 %v2937_v25, %v7415_v2  ;;  %v7475_v5 = vld [vmem:[%s8619_s2] ss:$0 sm:$0xff] }
 0x267   : > { %v2949_v46 = vmul.f32 %v2948_v55, %v7415_v2  ;;  %v4196_v16 = vpop.eup %4195  ;;  %v2926_v42 = vand.u32 2147483648, %v7433_v61  ;;  %v2255_v23 = vadd.f32 %v2223_v1, %v2190_v63  ;;  %v1397_v13 = vadd.f32 %v9112_v47, %v1332_v18  ;;  %v9115_v25 = vld [vmem:[#allocation145_spill] sm:$0xff]  ;;  %v4268_v63 = vld [vmem:[#allocation2 + $0x111] sm:$0xff] }
 0x268   : > { %v1826_v22 = vadd.f32 %v1794_v3, %v1761_v9  ;;  %v3696_v24 = vmul.f32 %v3664_v45, %v7383_v14  ;;  %v2916_v49 = vmul.f32 %v4196_v16, %v7433_v61  ;;  %vm7468_vm5 = vcmp.eq.f32.partialorder %v2924_v8, 8.507059e+37  ;;  %v3800_v51 = vld [vmem:[%s4603_s15 + $0x60] sm:$0xff] }
 0x269   : > { %v2939_v36 = vadd.f32 0.05243302, %v2938_v26  ;;  %v2950_v7 = vadd.f32 0.112945676, %v2949_v46  ;;  %v2291_v1 = vadd.f32 %v7475_v5, %v2255_v23  ;;  %v1462_v18 = vadd.f32 %v9115_v25, %v1397_v13 }
 0x26a   : > { %v1891_v3 = vadd.f32 %v1859_v30, %v1826_v22  ;;  %v3732_v14 = vmul.f32 %v7157_v44, %v3696_v24  ;;  %v2917_v55 = vsub.f32 1.0, %v2916_v49  ;;  %v1600_v9 = vmul.f32 %v4268_v63, %v9041_v62  ;;  %v9116_v22 = vld [vmem:[#allocation48_spill] sm:$0xff] }
 0x26b   : > { %v2940_v8 = vmul.f32 %v2939_v36, %v7415_v2  ;;  %vm2921_vm6 = vweird.f32 %v4196_v16  ;;  %v2951_v37 = vmul.f32 %v2950_v7, %v7415_v2  ;;  %v7484_v45 = vmul.f32 0.70710677, %v2291_v1 }
 0x26c   : > { %v1996_v26 = vadd.f32 %v1964_v54, %v1891_v3  ;;  %v3768_v46 = vadd.f32 %v7175_v32, %v3732_v14  ;;  %v2918_v30 = vmul.f32 %v4196_v16, %v2917_v55  ;;  %v1527_v47 = vadd.f32 %v9116_v22, %v1462_v18  ;;  %vm2922_vm7 = vmor %vm2920_vm4, %vm2921_vm6 }
 0x26d   : > { %v2941_v23 = vadd.f32 0.18741608, %v2940_v8  ;;  %v2952_v13 = vadd.f32 0.4994258, %v2951_v37  ;;  %v2972_v24 = vmul.f32 %v7484_v45, %v7484_v45  ;;  %v2159_v36 = vmul.f32 %v6287_v10, %v7353_v40 }
 0x26e   : > { %v2061_v49 = vadd.f32 %v2029_v59, %v1996_v26  ;;  %v3832_v25 = vadd.f32 %v3800_v51, %v3768_v46  ;;  %v2919_v7 = vadd.f32 %v4196_v16, %v2918_v30  ;;  %v1632_v63 = vadd.f32 %v1600_v9, %v1527_v47  ;;  %v7502_v51 = vld [vmem:[#allocation2 + $0x18a] sm:$0xff] }
 0x26f   : > { %v1665_v54 = vmul.f32 %v9003_v12, %v7065_v21  ;;  %v2927_v3 = vor.u32 1.1754944e-38, %v2926_v42  ;;  %v2953_v18 = vmul.f32 %v2952_v13, %v7415_v2  ;;  %v7498_v14 = vmin.f32 %v2972_v24, 16.0 }
 0x270   : > { %v2126_v55 = vadd.f32 %v2094_v4, %v2061_v49  ;;  %3864 = vst [vmem:[%s6654_s13 + $0x60] sm:$0xff] %v3832_v25  ;;  %v2923_v59 = vsel %vm2922_vm7, %v4196_v16, %v2919_v7  ;;  %v2942_v8 = vmul.f32 %v2941_v23, %v7415_v2  ;;  %v1730_v21 = vmul.f32 %v6210_v41, %v7218_v15  ;;  %v7512_v4 = vld [vmem:[#allocation2 + $0x191] sm:$0xff]  ;;  %v7517_v23 = vld [vmem:[#allocation2 + $0x1e8] sm:$0xff] }
 0x271   : > { %v1697_v9 = vadd.f32 %v1665_v54, %v1632_v63  ;;  %v2928_v61 = vsel %vm7468_vm5, %v2927_v3, %v2923_v59  ;;  %v7508_v37 = vadd.f32 1.0, %v2953_v18  ;;  %v2974_v42 = vmul.f32 2.1237322e-06, %v7498_v14 }
 0x272   : > { %v2985_v26 = vmul.f32 3.8918573e-05, %v7498_v14  ;;  %v2929_v16 = vmul.f32 %v2928_v61, %v7452_v17  ;;  %v2191_v2 = vadd.f32 %v2159_v36, %v2126_v55  ;;  %v1795_v30 = vmul.f32 %v6224_v39, %v7367_v29 }
 0x273   : > { %v1762_v46 = vadd.f32 %v1730_v21, %v1697_v9  ;;  %v7521_v57 = vmul.f32 %v7517_v23, %v9048_v58  ;;  %v2321_v22 = vmul.f32 0.5, %v7307_v53  ;;  %4197 = vrcp.f32 %v7508_v37  ;;  %v4270_v9 = vld [vmem:[#allocation2 + $0x112] sm:$0xff] }
 0x274   : > { %v2224_v47 = vmul.f32 %v6307_v35, %v7502_v51  ;;  %v4062_v13 = vclamps-f32 %v2929_v16, 1.0  ;;  %v2975_v17 = vadd.f32 0.00028619796, %v2974_v42  ;;  %v2986_v24 = vadd.f32 0.001143296, %v2985_v26 }
 0x275   : > { %9117 = vst [vmem:[#allocation38_spill] sm:$0xff] %v7521_v57  ;;  %v1827_v49 = vadd.f32 %v1795_v30, %v1762_v46  ;;  %v2943_v36 = vadd.f32 1.1283791, %v2942_v8  ;;  %v2964_v25 = vand.u32 2147483647, %v7508_v37  ;;  %v1860_v63 = vmul.f32 %v6246_v19, %v7512_v4  ;;  %v9119_v30 = vld [vmem:[#allocation87_spill] sm:$0xff] }
 0x276   : > { %v2256_v7 = vadd.f32 %v2224_v47, %v2191_v2  ;;  %v3665_v54 = vadd.f32 1.0, %v4062_v13  ;;  %v2966_v3 = vand.u32 2147483648, %v7508_v37  ;;  %v2976_v53 = vmul.f32 %v2975_v17, %v7498_v14 }
 0x277   : > { %v2987_v18 = vmul.f32 %v2986_v24, %v7498_v14  ;;  %v7534_v55 = vmul.f32 0.5, %v7387_v60  ;;  %v7536_v59 = vmul.f32 0.5, %v2291_v1  ;;  %v1965_v21 = vmul.f32 %v4270_v9, %v6262_v6  ;;  %v9118_v1 = vld [vmem:[#allocation78_spill] sm:$0xff] }
 0x278   : > { %v7539_v8 = vadd.f32 %v7475_v5, %v2256_v7  ;;  %v3697_v61 = vmul.f32 %v3665_v54, %v2321_v22  ;;  %v2977_v42 = vadd.f32 0.0036580483, %v2976_v53  ;;  %v1892_v16 = vadd.f32 %v1860_v63, %v1827_v49  ;;  %v9122_v54 = vld [vmem:[#allocation138_spill] sm:$0xff] }
 0x279   : > { %v2988_v26 = vadd.f32 0.014752088, %v2987_v18  ;;  %v4198_v2 = vpop.eup %4197  ;;  %v2944_v46 = vmul.f32 %v2943_v36, %v7395_v28  ;;  %vm2960_vm8 = vweird.f32 %v7508_v37  ;;  %v1333_v47 = vadd.f32 %v9119_v30, %v9118_v1  ;;  %v3801_v28 = vld [vmem:[%s4603_s15 + $0x68] sm:$0xff] }
 0x27a   : > { %v7545_v60 = vmul.f32 0.70710677, %v7539_v8  ;;  %v3733_v13 = vmul.f32 %v7157_v44, %v3697_v61  ;;  %v2956_v17 = vmul.f32 %v4198_v2, %v7508_v37  ;;  %vm7551_vm9 = vcmp.eq.f32.partialorder %v2964_v25, 8.507059e+37 }
 0x27b   : > { %v2967_v24 = vor.u32 1.1754944e-38, %v2966_v3  ;;  %v2978_v49 = vmul.f32 %v2977_v42, %v7498_v14  ;;  %v2989_v36 = vmul.f32 %v2988_v26, %v7498_v14  ;;  %v2030_v63 = vmul.f32 %v6267_v0, %v7091_v48  ;;  %v9123_v26 = vld [vmem:[#allocation150_spill] sm:$0xff] }
 0x27c   : > { %v3012_v7 = vmul.f32 %v7545_v60, %v7545_v60  ;;  %v1398_v53 = vadd.f32 %v9122_v54, %v1333_v47  ;;  %v3769_v18 = vadd.f32 %v7175_v32, %v3733_v13  ;;  %v2957_v25 = vsub.f32 1.0, %v2956_v17  ;;  %v9124_v54 = vld [vmem:[#allocation83_spill] sm:$0xff] }
 0x27d   : > { %v2979_v9 = vadd.f32 0.05243302, %v2978_v49  ;;  %v1997_v61 = vadd.f32 %v1965_v21, %v1892_v16  ;;  %v2990_v3 = vadd.f32 0.112945676, %v2989_v36  ;;  %v2095_v42 = vmul.f32 %v6285_v34, %v7274_v31  ;;  %v4271_v21 = vld [vmem:[#allocation2 + $0x129] sm:$0xff] }
 0x27e   : > { %v7564_v1 = vmin.f32 %v3012_v7, 16.0  ;;  %v1463_v30 = vadd.f32 %v9123_v26, %v1398_v53  ;;  %v3833_v57 = vadd.f32 %v3801_v28, %v3769_v18  ;;  %v2958_v52 = vmul.f32 %v4198_v2, %v2957_v25 }
 0x27f   : > { %vm2961_vm10 = vweird.f32 %v4198_v2  ;;  %v2980_v48 = vmul.f32 %v2979_v9, %v7498_v14  ;;  %v2991_v47 = vmul.f32 %v2990_v3, %v7498_v14  ;;  %v1601_v16 = vmul.f32 %v4271_v21, %v9041_v62 }
 0x280   : > { %v3014_v13 = vmul.f32 2.1237322e-06, %v7564_v1  ;;  %v3025_v17 = vmul.f32 3.8918573e-05, %v7564_v1  ;;  %3865 = vst [vmem:[%s6654_s13 + $0x68] sm:$0xff] %v3833_v57  ;;  %v2959_v49 = vadd.f32 %v4198_v2, %v2958_v52  ;;  %v2062_v7 = vadd.f32 %v2030_v63, %v1997_v61  ;;  %vm2962_vm11 = vmor %vm2960_vm8, %vm2961_vm10 }
 0x281   : > { %v2981_v36 = vadd.f32 0.18741608, %v2980_v48  ;;  %v1528_v53 = vadd.f32 %v9124_v54, %v1463_v30  ;;  %v2992_v28 = vadd.f32 0.4994258, %v2991_v47  ;;  %v2160_v9 = vmul.f32 %v6287_v10, %v7424_v38  ;;  %v7590_v48 = vld [vmem:[#allocation2 + $0x1a9] sm:$0xff] }
 0x282   : > { %v3015_v18 = vadd.f32 0.00028619796, %v3014_v13  ;;  %v3026_v25 = vadd.f32 0.001143296, %v3025_v17  ;;  %v2963_v3 = vsel %vm2962_vm11, %v4198_v2, %v2959_v49  ;;  %v1666_v52 = vmul.f32 %v9003_v12, %v7133_v20 }
 0x283   : > { %v2982_v26 = vmul.f32 %v2981_v36, %v7498_v14  ;;  %v1633_v57 = vadd.f32 %v1601_v16, %v1528_v53  ;;  %v2968_v63 = vsel %vm7551_vm9, %v2967_v24, %v2963_v3  ;;  %v2993_v37 = vmul.f32 %v2992_v28, %v7498_v14 }
 0x284   : > { %v3016_v61 = vmul.f32 %v3015_v18, %v7564_v1  ;;  %v3027_v30 = vmul.f32 %v3026_v25, %v7564_v1  ;;  %v2969_v2 = vmul.f32 %v2968_v63, %v2944_v46  ;;  %v2127_v47 = vadd.f32 %v2095_v42, %v2062_v7  ;;  %v4272_v42 = vld [vmem:[#allocation2 + $0x12a] sm:$0xff] }
 0x285   : > { %v1698_v13 = vadd.f32 %v1666_v52, %v1633_v57  ;;  %v1731_v17 = vmul.f32 %v6210_v41, %v7291_v27  ;;  %v7594_v21 = vadd.f32 1.0, %v2993_v37  ;;  %v2225_v22 = vmul.f32 %v6307_v35, %v7581_v33 }
 0x286   : > { %v3017_v20 = vadd.f32 0.0036580483, %v3016_v61  ;;  %v3028_v16 = vadd.f32 0.014752088, %v3027_v30  ;;  %v4063_v14 = vclamps-f32 %v2969_v2, 1.0  ;;  %v2192_v24 = vadd.f32 %v2160_v9, %v2127_v47 }
 0x287   : > { %v1763_v49 = vadd.f32 %v1731_v17, %v1698_v13  ;;  %v1796_v36 = vmul.f32 %v6224_v39, %v7427_v11  ;;  %v2983_v54 = vadd.f32 1.1283791, %v2982_v26  ;;  %4199 = vrcp.f32 %v7594_v21  ;;  %v9125_v13 = vld [vmem:[#allocation80_spill] sm:$0xff]  ;;  %v9126_v17 = vld [vmem:[#allocation66_spill] sm:$0xff] }
 0x288   : > { %v1861_v46 = vmul.f32 %v6246_v19, %v7590_v48  ;;  %v1966_v7 = vmul.f32 %v4272_v42, %v6262_v6  ;;  %v3666_v53 = vadd.f32 1.0, %v4063_v14  ;;  %v3018_v28 = vmul.f32 %v3017_v20, %v7564_v1  ;;  %v9127_v42 = vld [vmem:[#allocation144_spill] sm:$0xff] }
 0x289   : > { %v3029_v18 = vmul.f32 %v3028_v16, %v7564_v1  ;;  %v2257_v25 = vadd.f32 %v2225_v22, %v2192_v24  ;;  %v3004_v9 = vand.u32 2147483647, %v7594_v21  ;;  %v3006_v3 = vand.u32 2147483648, %v7594_v21  ;;  %v3802_v24 = vld [vmem:[%s4603_s15 + $0x70] sm:$0xff] }
 0x28a   : > { %v1828_v26 = vadd.f32 %v1796_v36, %v1763_v49  ;;  %v2031_v57 = vmul.f32 %v6267_v0, %v7211_v50  ;;  %v3698_v52 = vmul.f32 %v3666_v53, %v7534_v55  ;;  %v3019_v63 = vadd.f32 0.05243302, %v3018_v28  ;;  %v7629_v36 = vld [vmem:[#allocation2 + $0x1aa] sm:$0xff] }
 0x28b   : > { %v3030_v37 = vadd.f32 0.112945676, %v3029_v18  ;;  %v7612_v61 = vadd.f32 %v7475_v5, %v2257_v25  ;;  %v2096_v2 = vmul.f32 %v6285_v34, %v7353_v40  ;;  %v2161_v47 = vmul.f32 %v6287_v10, %v7502_v51 }
 0x28c   : > { %v1893_v30 = vadd.f32 %v1861_v46, %v1828_v26  ;;  %v1334_v20 = vadd.f32 %v9126_v17, %v9125_v13  ;;  %v3734_v16 = vmul.f32 %v7157_v44, %v3698_v52  ;;  %v2984_v50 = vmul.f32 %v2983_v54, %v7484_v45 }
 0x28d   : > { %v3020_v55 = vmul.f32 %v3019_v63, %v7564_v1  ;;  %v3031_v22 = vmul.f32 %v3030_v37, %v7564_v1  ;;  %v4200_v14 = vpop.eup %4199  ;;  %vm3000_vm12 = vweird.f32 %v7594_v21  ;;  %v7627_v49 = vmul.f32 0.70710677, %v7612_v61  ;;  %v9130_v63 = vld [vmem:[#allocation47_spill] sm:$0xff] }
 0x28e   : > { %v1998_v46 = vadd.f32 %v1966_v7, %v1893_v30  ;;  %v1399_v53 = vadd.f32 %v9127_v42, %v1334_v20  ;;  %v3770_v44 = vadd.f32 %v7175_v32, %v3734_v16  ;;  %v2996_v45 = vmul.f32 %v4200_v14, %v7594_v21  ;;  %v9131_v20 = vld [vmem:[#allocation158_spill] sm:$0xff] }
 0x28f   : > { %vm7634_vm13 = vcmp.eq.f32.partialorder %v3004_v9, 8.507059e+37  ;;  %v3007_v28 = vor.u32 1.1754944e-38, %v3006_v3  ;;  %v3021_v18 = vadd.f32 0.18741608, %v3020_v55  ;;  %v3032_v25 = vadd.f32 0.4994258, %v3031_v22 }
 0x290   : > { %v3052_v26 = vmul.f32 %v7627_v49, %v7627_v49  ;;  %v2063_v52 = vadd.f32 %v2031_v57, %v1998_v46  ;;  %v1464_v7 = vadd.f32 %v9130_v63, %v1399_v53  ;;  %v3834_v37 = vadd.f32 %v3802_v24, %v3770_v44  ;;  %v7648_v55 = vld [vmem:[#allocation2 + $0x1b1] sm:$0xff] }
 0x291   : > { %v2997_v30 = vsub.f32 1.0, %v2996_v45  ;;  %v3022_v32 = vmul.f32 %v3021_v18, %v7564_v1  ;;  %v2226_v9 = vmul.f32 %v6307_v35, %v7629_v36  ;;  %v3033_v13 = vmul.f32 %v3032_v25, %v7564_v1  ;;  %v4273_v24 = vld [vmem:[#allocation2 + $0x131] sm:$0xff] }
 0x292   : > { %v7645_v17 = vmin.f32 %v3052_v26, 16.0  ;;  %v2128_v3 = vadd.f32 %v2096_v2, %v2063_v52  ;;  %v1529_v16 = vadd.f32 %v9131_v20, %v1464_v7  ;;  %3866 = vst [vmem:[%s6654_s13 + $0x70] sm:$0xff] %v3834_v37  ;;  %vm3001_vm14 = vweird.f32 %v4200_v14  ;;  %v4274_v20 = vld [vmem:[#allocation2 + $0x132] sm:$0xff] }
 0x293   : > { %v2998_v57 = vmul.f32 %v4200_v14, %v2997_v30  ;;  %v3023_v22 = vadd.f32 1.1283791, %v3022_v32  ;;  %v1602_v46 = vmul.f32 %v4273_v24, %v9041_v62  ;;  %v7652_v42 = vadd.f32 1.0, %v3033_v13  ;;  %vm3002_vm15 = vmor %vm3000_vm12, %vm3001_vm14 }
 0x294   : > { %v3054_v53 = vmul.f32 2.1237322e-06, %v7645_v17  ;;  %v3065_v1 = vmul.f32 3.8918573e-05, %v7645_v17  ;;  %v1667_v2 = vmul.f32 %v9003_v12, %v7218_v15  ;;  %v1732_v18 = vmul.f32 %v6210_v41, %v7367_v29 }
 0x295   : > { %v2999_v44 = vadd.f32 %v4200_v14, %v2998_v57  ;;  %v1634_v45 = vadd.f32 %v1602_v46, %v1529_v16  ;;  %v1797_v25 = vmul.f32 %v6224_v39, %v7512_v4  ;;  %4201 = vrcp.f32 %v7652_v42 }
 0x296   : > { %v3046_v26 = vand.u32 2147483648, %v7652_v42  ;;  %v2193_v52 = vadd.f32 %v2161_v47, %v2128_v3  ;;  %v1862_v63 = vmul.f32 %v6246_v19, %v7648_v55  ;;  %v3055_v7 = vadd.f32 0.00028619796, %v3054_v53  ;;  %v9133_v53 = vld [vmem:[#allocation137_spill] sm:$0xff] }
 0x297   : > { %v3003_v15 = vsel %vm3002_vm15, %v4200_v14, %v2999_v44  ;;  %v3066_v37 = vadd.f32 0.001143296, %v3065_v1  ;;  %v1699_v30 = vadd.f32 %v1667_v2, %v1634_v45  ;;  %v7671_v13 = vmul.f32 %v3023_v22, %v7545_v60 }
 0x298   : > { %v3008_v32 = vsel %vm7634_vm13, %v3007_v28, %v3003_v15  ;;  %v3044_v21 = vand.u32 2147483647, %v7652_v42  ;;  %v1967_v16 = vmul.f32 %v4274_v20, %v6262_v6  ;;  %v3056_v47 = vmul.f32 %v3055_v7, %v7645_v17  ;;  %v9132_v28 = vld [vmem:[#allocation161_spill] sm:$0xff] }
 0x299   : > { %v3009_v57 = vmul.f32 %v3008_v32, %v2984_v50  ;;  %v3067_v3 = vmul.f32 %v3066_v37, %v7645_v17  ;;  %v1764_v14 = vadd.f32 %v1732_v18, %v1699_v30  ;;  %v3047_v24 = vor.u32 1.1754944e-38, %v3046_v26  ;;  %v4275_v37 = vld [vmem:[#allocation2 + $0x149] sm:$0xff] }
 0x29a   : > { %v2258_v46 = vadd.f32 %v2226_v9, %v2193_v52  ;;  %v2032_v54 = vmul.f32 %v6267_v0, %v7274_v31  ;;  %v1335_v60 = vadd.f32 %v9133_v53, %v9132_v28  ;;  %vm3040_vm0 = vweird.f32 %v7652_v42  ;;  %v9134_v31 = vld [vmem:[#allocation149_spill] sm:$0xff] }
 0x29b   : > { %v4064_v22 = vclamps-f32 %v3009_v57, 1.0  ;;  %v3057_v1 = vadd.f32 0.0036580483, %v3056_v47  ;;  %v3068_v2 = vadd.f32 0.014752088, %v3067_v3  ;;  %v1829_v44 = vadd.f32 %v1797_v25, %v1764_v14  ;;  %v4202_v50 = vpop.eup %4201 }
 0x29c   : > { %v7683_v45 = vadd.f32 %v7475_v5, %v2258_v46  ;;  %v2097_v18 = vmul.f32 %v6285_v34, %v7424_v38  ;;  %v2162_v9 = vmul.f32 %v6287_v10, %v7581_v33  ;;  %v1400_v26 = vadd.f32 %v9134_v31, %v1335_v60  ;;  %v9137_v46 = vld [vmem:[#allocation51_spill] sm:$0xff] }
 0x29d   : > { %v3667_v52 = vadd.f32 1.0, %v4064_v22  ;;  %v3036_v15 = vmul.f32 %v4202_v50, %v7652_v42  ;;  %vm7691_vm1 = vcmp.eq.f32.partialorder %v3044_v21, 8.507059e+37  ;;  %v3058_v25 = vmul.f32 %v3057_v1, %v7645_v17  ;;  %v7710_v1 = vld [vmem:[%s8620_s3] ss:$0 sm:$0xff] }
 0x29e   : > { %v1603_v30 = vmul.f32 %v4275_v37, %v9041_v62  ;;  %v3069_v32 = vmul.f32 %v3068_v2, %v7645_v17  ;;  %v7699_v20 = vmul.f32 0.70710677, %v7683_v45  ;;  %v1894_v57 = vadd.f32 %v1862_v63, %v1829_v44  ;;  %v3803_v44 = vld [vmem:[%s4603_s15 + $0x78] sm:$0xff] }
 0x29f   : > { %v1668_v47 = vmul.f32 %v9003_v12, %v7291_v27  ;;  %v3699_v21 = vmul.f32 %v3667_v52, %v7536_v59  ;;  %v3037_v3 = vsub.f32 1.0, %v3036_v15  ;;  %v3059_v14 = vadd.f32 0.05243302, %v3058_v25  ;;  %v7724_v15 = vld [vmem:[%s8621_s4] ss:$0 sm:$0xff] }
 0x2a0   : > { %v1465_v28 = vadd.f32 %v9137_v46, %v1400_v26  ;;  %vm3041_vm2 = vweird.f32 %v4202_v50  ;;  %v3070_v53 = vadd.f32 0.112945676, %v3069_v32  ;;  %v3092_v60 = vmul.f32 %v7699_v20, %v7699_v20 }
 0x2a1   : > { %v1999_v22 = vadd.f32 %v1967_v16, %v1894_v57  ;;  %v3735_v63 = vmul.f32 %v7710_v1, %v3699_v21  ;;  %v3038_v27 = vmul.f32 %v4202_v50, %v3037_v3  ;;  %v3060_v59 = vmul.f32 %v3059_v14, %v7645_v17  ;;  %vm3042_vm3 = vmor %vm3040_vm0, %vm3041_vm2 }
 0x2a2   : > { %v1530_v2 = vadd.f32 %v7149_v56, %v1465_v28  ;;  %v3071_v31 = vmul.f32 %v3070_v53, %v7645_v17  ;;  %v7717_v26 = vmin.f32 %v3092_v60, 16.0  ;;  %v1733_v16 = vmul.f32 %v6210_v41, %v7427_v11 }
 0x2a3   : > { %v2064_v52 = vadd.f32 %v2032_v54, %v1999_v22  ;;  %v3771_v25 = vadd.f32 %v7724_v15, %v3735_v63  ;;  %v3039_v37 = vadd.f32 %v4202_v50, %v3038_v27  ;;  %v3061_v32 = vadd.f32 0.18741608, %v3060_v59  ;;  %v7736_v63 = vld [vmem:[#allocation2 + $0x1b2] sm:$0xff] }
 0x2a4   : > { %v1635_v57 = vadd.f32 %v1603_v30, %v1530_v2  ;;  %v3072_v56 = vadd.f32 0.4994258, %v3071_v31  ;;  %v3094_v54 = vmul.f32 2.1237322e-06, %v7717_v26  ;;  %v3105_v21 = vmul.f32 3.8918573e-05, %v7717_v26 }
 0x2a5   : > { %v2129_v3 = vadd.f32 %v2097_v18, %v2064_v52  ;;  %v3835_v14 = vadd.f32 %v3803_v44, %v3771_v25  ;;  %v3043_v46 = vsel %vm3042_vm3, %v4202_v50, %v3039_v37  ;;  %v3062_v28 = vmul.f32 %v3061_v32, %v7645_v17  ;;  %v7750_v2 = vld [vmem:[#allocation2 + $0x1c9] sm:$0xff] }
 0x2a6   : > { %v1700_v53 = vadd.f32 %v1668_v47, %v1635_v57  ;;  %v3048_v60 = vsel %vm7691_vm1, %v3047_v24, %v3043_v46  ;;  %v3073_v30 = vmul.f32 %v3072_v56, %v7645_v17  ;;  %v3095_v22 = vadd.f32 0.00028619796, %v3094_v54  ;;  %v4278_v44 = vld [vmem:[#allocation2 + $0x1f0] sm:$0xff]  ;;  %v4279_v54 = vld [vmem:[#allocation2 + $0x208] sm:$0xff] }
 0x2a7   : > { %v3106_v42 = vadd.f32 0.001143296, %v3105_v21  ;;  %v7740_v27 = vmul.f32 %v7517_v23, %v9052_v43  ;;  %3867 = vst [vmem:[%s6654_s13 + $0x78] sm:$0xff] %v3835_v14  ;;  %v3049_v18 = vmul.f32 %v3048_v60, %v7671_v13  ;;  %v1798_v47 = vmul.f32 %v6224_v39, %v7590_v48 }
 0x2a8   : > { %v1765_v50 = vadd.f32 %v1733_v16, %v1700_v53  ;;  %v7746_v59 = vadd.f32 1.0, %v3073_v30  ;;  %v3096_v24 = vmul.f32 %v3095_v22, %v7717_v26  ;;  %v2194_v7 = vadd.f32 %v2162_v9, %v2129_v3 }
 0x2a9   : > { %v3107_v17 = vmul.f32 %v3106_v42, %v7717_v26  ;;  %v7753_v23 = vmul.f32 %v4278_v44, %v9048_v58  ;;  %v7756_v31 = vmul.f32 %v4278_v44, %v9052_v43  ;;  %v4065_v13 = vclamps-f32 %v3049_v18, 1.0  ;;  %v9138_v42 = vld [vmem:[#allocation167_spill] sm:$0xff] }
 0x2aa   : > { %v2227_v52 = vmul.f32 %v6307_v35, %v7736_v63  ;;  %v2324_v16 = vmul.f32 0.5, %v7539_v8  ;;  %v3063_v25 = vadd.f32 1.1283791, %v3062_v28  ;;  %4203 = vrcp.f32 %v7746_v59  ;;  %v9139_v18 = vld [vmem:[#allocation143_spill] sm:$0xff] }
 0x2ab   : > { %v1830_v37 = vadd.f32 %v1798_v47, %v1765_v50  ;;  %v3668_v9 = vadd.f32 1.0, %v4065_v13  ;;  %v3097_v32 = vadd.f32 0.0036580483, %v3096_v24  ;;  %v3108_v57 = vadd.f32 0.014752088, %v3107_v17 }
 0x2ac   : > { %v2259_v56 = vadd.f32 %v2227_v52, %v2194_v7  ;;  %v7763_v58 = vmul.f32 %v4279_v54, %v9052_v43  ;;  %v3084_v21 = vand.u32 2147483647, %v7746_v59  ;;  %v3086_v3 = vand.u32 2147483648, %v7746_v59  ;;  %v4280_v7 = vld [vmem:[#allocation2 + $0x14a] sm:$0xff]  ;;  %v3804_v52 = vld [vmem:[%s4603_s15 + $0x80] sm:$0xff] }
 0x2ad   : > { %v1863_v8 = vmul.f32 %v6246_v19, %v7750_v2  ;;  %v3700_v14 = vmul.f32 %v3668_v9, %v2324_v16  ;;  %v3098_v46 = vmul.f32 %v3097_v32, %v7717_v26  ;;  %v3109_v28 = vmul.f32 %v3108_v57, %v7717_v26 }
 0x2ae   : > { %v7772_v53 = vadd.f32 %v7475_v5, %v2259_v56  ;;  %v7775_v60 = vmul.f32 0.5, %v7612_v61  ;;  %v3064_v30 = vmul.f32 %v3063_v25, %v7627_v49  ;;  %v1336_v50 = vadd.f32 %v9139_v18, %v9138_v42  ;;  %v9140_v49 = vld [vmem:[#allocation108_spill] sm:$0xff] }
 0x2af   : > { %v1895_v22 = vadd.f32 %v1863_v8, %v1830_v37  ;;  %v3736_v47 = vmul.f32 %v7710_v1, %v3700_v14  ;;  %v3099_v24 = vadd.f32 0.05243302, %v3098_v46  ;;  %v3110_v17 = vadd.f32 0.112945676, %v3109_v28  ;;  %v9143_v14 = vld [vmem:[#allocation36_spill] sm:$0xff] }
 0x2b0   : > { %v1968_v44 = vmul.f32 %v4280_v7, %v6262_v6  ;;  %v4204_v13 = vpop.eup %4203  ;;  %vm3080_vm4 = vweird.f32 %v7746_v59  ;;  %v3087_v16 = vor.u32 1.1754944e-38, %v3086_v3  ;;  %v7785_v61 = vmul.f32 0.70710677, %v7772_v53 }
 0x2b1   : > { %v1401_v25 = vadd.f32 %v9140_v49, %v1336_v50  ;;  %v3772_v37 = vadd.f32 %v7724_v15, %v3736_v47  ;;  %v3076_v9 = vmul.f32 %v4204_v13, %v7746_v59  ;;  %vm7790_vm5 = vcmp.eq.f32.partialorder %v3084_v21, 8.507059e+37 }
 0x2b2   : > { %v3100_v57 = vmul.f32 %v3099_v24, %v7717_v26  ;;  %v2033_v56 = vmul.f32 %v6267_v0, %v7353_v40  ;;  %v3111_v54 = vmul.f32 %v3110_v17, %v7717_v26  ;;  %v3132_v3 = vmul.f32 %v7785_v61, %v7785_v61  ;;  %v7805_v24 = vld [vmem:[#allocation2 + $0x1ca] sm:$0xff]  ;;  %v9144_v17 = vld [vmem:[#allocation117_spill] sm:$0xff] }
 0x2b3   : > { %v2000_v8 = vadd.f32 %v1968_v44, %v1895_v22  ;;  %v1466_v46 = vadd.f32 %v9143_v14, %v1401_v25  ;;  %v3836_v28 = vadd.f32 %v3804_v52, %v3772_v37  ;;  %v3077_v42 = vsub.f32 1.0, %v3076_v9  ;;  %v4281_v52 = vld [vmem:[#allocation2 + $0x151] sm:$0xff] }
 0x2b4   : > { %v3101_v21 = vadd.f32 0.18741608, %v3100_v57  ;;  %v2098_v18 = vmul.f32 %v6285_v34, %v7502_v51  ;;  %v3112_v50 = vadd.f32 0.4994258, %v3111_v54  ;;  %v7803_v47 = vmin.f32 %v3132_v3, 16.0  ;;  %v7816_v54 = vld [vmem:[#allocation2 + $0x1d1] sm:$0xff] }
 0x2b5   : > { %v2163_v40 = vmul.f32 %v6287_v10, %v7629_v36  ;;  %v1531_v7 = vadd.f32 %v9144_v17, %v1466_v46  ;;  %3868 = vst [vmem:[%s6654_s13 + $0x80] sm:$0xff] %v3836_v28  ;;  %v3078_v22 = vmul.f32 %v4204_v13, %v3077_v42  ;;  %vm3081_vm6 = vweird.f32 %v4204_v13 }
 0x2b6   : > { %v3102_v44 = vmul.f32 %v3101_v21, %v7717_v26  ;;  %v1604_v49 = vmul.f32 %v4281_v52, %v9041_v62  ;;  %v3113_v25 = vmul.f32 %v3112_v50, %v7717_v26  ;;  %v3134_v37 = vmul.f32 2.1237322e-06, %v7803_v47  ;;  %vm3082_vm7 = vmor %vm3080_vm4, %vm3081_vm6 }
 0x2b7   : > { %v3145_v9 = vmul.f32 3.8918573e-05, %v7803_v47  ;;  %v2065_v57 = vadd.f32 %v2033_v56, %v2000_v8  ;;  %v3079_v3 = vadd.f32 %v4204_v13, %v3078_v22  ;;  %v2228_v14 = vmul.f32 %v6307_v35, %v7805_v24 }
 0x2b8   : > { %v1636_v46 = vadd.f32 %v1604_v49, %v1531_v7  ;;  %v1669_v28 = vmul.f32 %v9003_v12, %v7367_v29  ;;  %v7824_v42 = vadd.f32 1.0, %v3113_v25  ;;  %v3135_v26 = vadd.f32 0.00028619796, %v3134_v37 }
 0x2b9   : > { %v3146_v21 = vadd.f32 0.001143296, %v3145_v9  ;;  %v2130_v50 = vadd.f32 %v2098_v18, %v2065_v57  ;;  %v3083_v17 = vsel %vm3082_vm7, %v4204_v13, %v3079_v3  ;;  %v3103_v56 = vadd.f32 1.1283791, %v3102_v44  ;;  %v4282_v44 = vld [vmem:[#allocation2 + $0x152] sm:$0xff] }
 0x2ba   : > { %v1701_v8 = vadd.f32 %v1669_v28, %v1636_v46  ;;  %v1734_v22 = vmul.f32 %v6210_v41, %v7512_v4  ;;  %v3088_v7 = vsel %vm7790_vm5, %v3087_v16, %v3083_v17  ;;  %4205 = vrcp.f32 %v7824_v42  ;;  %v9146_v17 = vld [vmem:[#allocation148_spill] sm:$0xff] }
 0x2bb   : > { %v1799_v29 = vmul.f32 %v6224_v39, %v7648_v55  ;;  %v1864_v59 = vmul.f32 %v6246_v19, %v7816_v54  ;;  %v3089_v52 = vmul.f32 %v3088_v7, %v3064_v30  ;;  %v3136_v18 = vmul.f32 %v3135_v26, %v7803_v47 }
 0x2bc   : > { %v3147_v13 = vmul.f32 %v3146_v21, %v7803_v47  ;;  %v1969_v49 = vmul.f32 %v4282_v44, %v6262_v6  ;;  %v3124_v25 = vand.u32 2147483647, %v7824_v42  ;;  %v2195_v32 = vadd.f32 %v2163_v40, %v2130_v50  ;;  %v9145_v21 = vld [vmem:[#allocation168_spill] sm:$0xff] }
 0x2bd   : > { %v1766_v16 = vadd.f32 %v1734_v22, %v1701_v8  ;;  %v2034_v37 = vmul.f32 %v6267_v0, %v7424_v38  ;;  %v4066_v9 = vclamps-f32 %v3089_v52, 1.0  ;;  %v3104_v57 = vmul.f32 %v3103_v56, %v7699_v20  ;;  %v9147_v8 = vld [vmem:[#allocation156_spill] sm:$0xff] }
 0x2be   : > { %v3137_v3 = vadd.f32 0.0036580483, %v3136_v18  ;;  %v3148_v46 = vadd.f32 0.014752088, %v3147_v13  ;;  %v2260_v30 = vadd.f32 %v2228_v14, %v2195_v32  ;;  %v2099_v26 = vmul.f32 %v6285_v34, %v7581_v33 }
 0x2bf   : > { %v1831_v28 = vadd.f32 %v1799_v29, %v1766_v16  ;;  %v1337_v7 = vadd.f32 %v9146_v17, %v9145_v21  ;;  %v3669_v44 = vadd.f32 1.0, %v4066_v9  ;;  %vm3120_vm8 = vweird.f32 %v7824_v42 }
 0x2c0   : > { %v3138_v40 = vmul.f32 %v3137_v3, %v7803_v47  ;;  %v3149_v38 = vmul.f32 %v3148_v46, %v7803_v47  ;;  %v4206_v50 = vpop.eup %4205  ;;  %v3126_v20 = vand.u32 2147483648, %v7824_v42  ;;  %v7851_v56 = vadd.f32 %v7475_v5, %v2260_v30  ;;  %v4283_v3 = vld [vmem:[#allocation2 + $0x169] sm:$0xff] }
 0x2c1   : > { %v1896_v14 = vadd.f32 %v1864_v59, %v1831_v28  ;;  %v1402_v22 = vadd.f32 %v9147_v8, %v1337_v7  ;;  %v3701_v29 = vmul.f32 %v3669_v44, %v7775_v60  ;;  %v3116_v52 = vmul.f32 %v4206_v50, %v7824_v42  ;;  %v9150_v28 = vld [vmem:[#allocation37_spill] sm:$0xff] }
 0x2c2   : > { %vm7856_vm9 = vcmp.eq.f32.partialorder %v3124_v25, 8.507059e+37  ;;  %v3139_v13 = vadd.f32 0.05243302, %v3138_v40  ;;  %v3150_v32 = vadd.f32 0.112945676, %v3149_v38  ;;  %v1605_v46 = vmul.f32 %v4283_v3, %v9041_v62  ;;  %v3805_v25 = vld [vmem:[%s4603_s15 + $0x88] sm:$0xff] }
 0x2c3   : > { %v7861_v16 = vmul.f32 0.70710677, %v7851_v56  ;;  %v2001_v9 = vadd.f32 %v1969_v49, %v1896_v14  ;;  %v3737_v59 = vmul.f32 %v7710_v1, %v3701_v29  ;;  %v3117_v30 = vsub.f32 1.0, %v3116_v52 }
 0x2c4   : > { %v3140_v60 = vmul.f32 %v3139_v13, %v7803_v47  ;;  %v1467_v21 = vadd.f32 %v9150_v28, %v1402_v22  ;;  %vm3121_vm10 = vweird.f32 %v4206_v50  ;;  %v3151_v17 = vmul.f32 %v3150_v32, %v7803_v47 }
 0x2c5   : > { %v3172_v7 = vmul.f32 %v7861_v16, %v7861_v16  ;;  %v2066_v44 = vadd.f32 %v2034_v37, %v2001_v9  ;;  %v3773_v49 = vadd.f32 %v7724_v15, %v3737_v59  ;;  %v3118_v40 = vmul.f32 %v4206_v50, %v3117_v30  ;;  %vm3122_vm11 = vmor %vm3120_vm8, %vm3121_vm10 }
 0x2c6   : > { %v3141_v38 = vadd.f32 0.18741608, %v3140_v60  ;;  %v1532_v14 = vadd.f32 %v7740_v27, %v1467_v21  ;;  %v3152_v8 = vadd.f32 0.4994258, %v3151_v17  ;;  %v2164_v22 = vmul.f32 %v6287_v10, %v7736_v63  ;;  %v7895_v17 = vld [vmem:[#allocation2 + $0x1e9] sm:$0xff] }
 0x2c7   : > { %v7873_v29 = vmin.f32 %v3172_v7, 16.0  ;;  %v1670_v52 = vmul.f32 %v9003_v12, %v7427_v11  ;;  %v3837_v13 = vadd.f32 %v3805_v25, %v3773_v49  ;;  %v3119_v32 = vadd.f32 %v4206_v50, %v3118_v40  ;;  %v7887_v11 = vld [vmem:[#allocation2 + $0x1d2] sm:$0xff] }
 0x2c8   : > { %v2131_v3 = vadd.f32 %v2099_v26, %v2066_v44  ;;  %v1637_v37 = vadd.f32 %v1605_v46, %v1532_v14  ;;  %v3127_v9 = vor.u32 1.1754944e-38, %v3126_v20  ;;  %v3153_v27 = vmul.f32 %v3152_v8, %v7803_v47  ;;  %v4284_v49 = vld [vmem:[#allocation2 + $0x210] sm:$0xff] }
 0x2c9   : > { %v3174_v59 = vmul.f32 2.1237322e-06, %v7873_v29  ;;  %v3185_v30 = vmul.f32 3.8918573e-05, %v7873_v29  ;;  %3869 = vst [vmem:[%s6654_s13 + $0x88] sm:$0xff] %v3837_v13  ;;  %v3123_v60 = vsel %vm3122_vm11, %v4206_v50, %v3119_v32  ;;  %v3142_v28 = vmul.f32 %v3141_v38, %v7803_v47 }
 0x2ca   : > { %v1702_v21 = vadd.f32 %v1670_v52, %v1637_v37  ;;  %v1735_v26 = vmul.f32 %v6210_v41, %v7590_v48  ;;  %v3128_v42 = vsel %vm7856_vm9, %v3127_v9, %v3123_v60  ;;  %v7893_v20 = vadd.f32 1.0, %v3153_v27  ;;  %v4285_v60 = vld [vmem:[#allocation2 + $0x16a] sm:$0xff] }
 0x2cb   : > { %v3175_v46 = vadd.f32 0.00028619796, %v3174_v59  ;;  %v3186_v25 = vadd.f32 0.001143296, %v3185_v30  ;;  %v3129_v7 = vmul.f32 %v3128_v42, %v3104_v57  ;;  %v2196_v44 = vadd.f32 %v2164_v22, %v2131_v3 }
 0x2cc   : > { %v1767_v50 = vadd.f32 %v1735_v26, %v1702_v21  ;;  %v1800_v47 = vmul.f32 %v6224_v39, %v7750_v2  ;;  %v7900_v40 = vmul.f32 %v4284_v49, %v9052_v43  ;;  %v2326_v38 = vmul.f32 0.5, %v7683_v45 }
 0x2cd   : > { %4207 = vrcp.f32 %v7893_v20  ;;  %v2229_v18 = vmul.f32 %v6307_v35, %v7887_v11  ;;  %v4067_v14 = vclamps-f32 %v3129_v7, 1.0  ;;  %v3176_v8 = vmul.f32 %v3175_v46, %v7873_v29 }
 0x2ce   : > { %v3187_v57 = vmul.f32 %v3186_v25, %v7873_v29  ;;  %v1832_v22 = vadd.f32 %v1800_v47, %v1767_v50  ;;  %v3143_v52 = vadd.f32 1.1283791, %v3142_v28  ;;  %v3164_v13 = vand.u32 2147483647, %v7893_v20 }
 0x2cf   : > { %v2261_v32 = vadd.f32 %v2229_v18, %v2196_v44  ;;  %v1865_v43 = vmul.f32 %v6246_v19, %v7895_v17  ;;  %v3670_v3 = vadd.f32 1.0, %v4067_v14  ;;  %v3166_v45 = vand.u32 2147483648, %v7893_v20  ;;  %v9152_v44 = vld [vmem:[#allocation35_spill] sm:$0xff] }
 0x2d0   : > { %v3177_v37 = vadd.f32 0.0036580483, %v3176_v8  ;;  %v3188_v9 = vadd.f32 0.014752088, %v3187_v57  ;;  %v7913_v27 = vmul.f32 0.5, %v7772_v53  ;;  %v7916_v59 = vmul.f32 0.5, %v7851_v56 }
 0x2d1   : > { %v2297_v30 = vadd.f32 %v7475_v5, %v2261_v32  ;;  %v1970_v28 = vmul.f32 %v4285_v60, %v6262_v6  ;;  %v3702_v21 = vmul.f32 %v3670_v3, %v2326_v38  ;;  %v1897_v46 = vadd.f32 %v1865_v43, %v1832_v22  ;;  %v9151_v56 = vld [vmem:[#allocation139_spill] sm:$0xff]  ;;  %v9156_v60 = vld [vmem:[#allocation166_spill] sm:$0xff] }
 0x2d2   : > { %v3178_v26 = vmul.f32 %v3177_v37, %v7873_v29  ;;  %v3189_v42 = vmul.f32 %v3188_v9, %v7873_v29  ;;  %v3144_v7 = vmul.f32 %v3143_v52, %v7785_v61  ;;  %vm3160_vm12 = vweird.f32 %v7893_v20  ;;  %v3806_v14 = vld [vmem:[%s4603_s15 + $0x90] sm:$0xff] }
 0x2d3   : > { %v4208_v25 = vpop.eup %4207  ;;  %v7924_v53 = vmul.f32 0.70710677, %v2297_v30  ;;  %v1338_v5 = vadd.f32 %v9152_v44, %v9151_v56  ;;  %v3738_v50 = vmul.f32 %v7710_v1, %v3702_v21  ;;  %vm7930_vm13 = vcmp.eq.f32.partialorder %v3164_v13, 8.507059e+37  ;;  %v9155_v22 = vld [vmem:[#allocation155_spill] sm:$0xff] }
 0x2d4   : > { %v3156_v47 = vmul.f32 %v4208_v25, %v7893_v20  ;;  %v3167_v38 = vor.u32 1.1754944e-38, %v3166_v45  ;;  %v3179_v18 = vadd.f32 0.05243302, %v3178_v26  ;;  %v3190_v8 = vadd.f32 0.112945676, %v3189_v42  ;;  %v7948_v56 = vld [vmem:[#allocation2 + $0x1ea] sm:$0xff] }
 0x2d5   : > { %v3212_v61 = vmul.f32 %v7924_v53, %v7924_v53  ;;  %v2035_v57 = vmul.f32 %v6267_v0, %v7502_v51  ;;  %v1403_v52 = vadd.f32 %v9155_v22, %v1338_v5  ;;  %v3774_v32 = vadd.f32 %v7724_v15, %v3738_v50 }
 0x2d6   : > { %v3157_v43 = vsub.f32 1.0, %v3156_v47  ;;  %v3180_v13 = vmul.f32 %v3179_v18, %v7873_v29  ;;  %v2002_v3 = vadd.f32 %v1970_v28, %v1897_v46  ;;  %v3191_v45 = vmul.f32 %v3190_v8, %v7873_v29  ;;  %v4286_v8 = vld [vmem:[#allocation2 + $0x171] sm:$0xff] }
 0x2d7   : > { %v7943_v37 = vmin.f32 %v3212_v61, 16.0  ;;  %v2100_v9 = vmul.f32 %v6285_v34, %v7629_v36  ;;  %v1468_v21 = vadd.f32 %v9156_v60, %v1403_v52  ;;  %v3838_v26 = vadd.f32 %v3806_v14, %v3774_v32 }
 0x2d8   : > { %v3158_v51 = vmul.f32 %v4208_v25, %v3157_v43  ;;  %vm3161_vm14 = vweird.f32 %v4208_v25  ;;  %v3181_v42 = vadd.f32 0.18741608, %v3180_v13  ;;  %v3192_v44 = vadd.f32 0.4994258, %v3191_v45 }
 0x2d9   : > { %v3214_v5 = vmul.f32 2.1237322e-06, %v7943_v37  ;;  %v3225_v28 = vmul.f32 3.8918573e-05, %v7943_v37  ;;  %v2165_v46 = vmul.f32 %v6287_v10, %v7805_v24  ;;  %3870 = vst [vmem:[%s6654_s13 + $0x90] sm:$0xff] %v3838_v26  ;;  %v2067_v47 = vadd.f32 %v2035_v57, %v2002_v3  ;;  %vm3162_vm15 = vmor %vm3160_vm12, %vm3161_vm14 }
 0x2da   : > { %v3159_v50 = vadd.f32 %v4208_v25, %v3158_v51  ;;  %v1533_v18 = vadd.f32 %v7756_v31, %v1468_v21  ;;  %v1606_v14 = vmul.f32 %v4286_v8, %v9041_v62  ;;  %v3182_v61 = vmul.f32 %v3181_v42, %v7873_v29 }
 0x2db   : > { %v3193_v22 = vmul.f32 %v3192_v44, %v7873_v29  ;;  %v3215_v52 = vadd.f32 0.00028619796, %v3214_v5  ;;  %v3226_v32 = vadd.f32 0.001143296, %v3225_v28  ;;  %v2230_v13 = vmul.f32 %v6307_v35, %v7948_v56  ;;  %v7971_v29 = vld [vmem:[#allocation2 + $0x1f1] sm:$0xff] }
 0x2dc   : > { %v3163_v43 = vsel %vm3162_vm15, %v4208_v25, %v3159_v50  ;;  %v1638_v45 = vadd.f32 %v1606_v14, %v1533_v18  ;;  %v1671_v31 = vmul.f32 %v9003_v12, %v7512_v4  ;;  %v7973_v25 = vmul.f32 0.5, %v2297_v30 }
 0x2dd   : > { %v3168_v57 = vsel %vm7930_vm13, %v3167_v38, %v3163_v43  ;;  %v7967_v3 = vadd.f32 1.0, %v3193_v22  ;;  %v3216_v20 = vmul.f32 %v3215_v52, %v7943_v37  ;;  %v3227_v60 = vmul.f32 %v3226_v32, %v7943_v37  ;;  %v9157_v32 = vld [vmem:[#allocation146_spill] sm:$0xff] }
 0x2de   : > { %v3169_v21 = vmul.f32 %v3168_v57, %v3144_v7  ;;  %v2132_v26 = vadd.f32 %v2100_v9, %v2067_v47  ;;  %v1703_v51 = vadd.f32 %v1671_v31, %v1638_v45  ;;  %v3183_v42 = vadd.f32 1.1283791, %v3182_v61  ;;  %v4287_v7 = vld [vmem:[#allocation2 + $0x172] sm:$0xff]  ;;  %v9158_v43 = vld [vmem:[#allocation58_spill] sm:$0xff] }
 0x2df   : > { %4209 = vrcp.f32 %v7967_v3  ;;  %v1736_v4 = vmul.f32 %v6210_v41, %v7648_v55  ;;  %v1801_v49 = vmul.f32 %v6224_v39, %v7816_v54  ;;  %v3217_v44 = vadd.f32 0.0036580483, %v3216_v20  ;;  %v7996_v20 = vld [vmem:[%s8619_s2] ss:$0 sm:$0xff] }
 0x2e0   : > { %v4068_v38 = vclamps-f32 %v3169_v21, 1.0  ;;  %v3228_v5 = vadd.f32 0.014752088, %v3227_v60  ;;  %v2197_v28 = vadd.f32 %v2165_v46, %v2132_v26  ;;  %v1866_v30 = vmul.f32 %v6246_v19, %v7971_v29 }
 0x2e1   : > { %v1768_v50 = vadd.f32 %v1736_v4, %v1703_v51  ;;  %v1971_v9 = vmul.f32 %v4287_v7, %v6262_v6  ;;  %v2036_v47 = vmul.f32 %v6267_v0, %v7581_v33  ;;  %v3218_v8 = vmul.f32 %v3217_v44, %v7943_v37  ;;  %v9159_v51 = vld [vmem:[#allocation38_spill] sm:$0xff] }
 0x2e2   : > { %v3671_v18 = vadd.f32 1.0, %v4068_v38  ;;  %v3229_v14 = vmul.f32 %v3228_v5, %v7943_v37  ;;  %v2262_v61 = vadd.f32 %v2230_v13, %v2197_v28  ;;  %v3184_v22 = vmul.f32 %v3183_v42, %v7861_v16  ;;  %v4289_v38 = vld [vmem:[#allocation2 + $0x189] sm:$0xff]  ;;  %v3807_v5 = vld [vmem:[%s4603_s15 + $0x98] sm:$0xff] }
 0x2e3   : > { %v1833_v52 = vadd.f32 %v1801_v49, %v1768_v50  ;;  %v2101_v46 = vmul.f32 %v6285_v34, %v7736_v63  ;;  %v1404_v45 = vadd.f32 %v9158_v43, %v9157_v32  ;;  %v3219_v57 = vadd.f32 0.05243302, %v3218_v8 }
 0x2e4   : > { %v3703_v31 = vmul.f32 %v3671_v18, %v7913_v27  ;;  %v3230_v33 = vadd.f32 0.112945676, %v3229_v14  ;;  %v7999_v13 = vadd.f32 %v7996_v20, %v2262_v61  ;;  %v3204_v60 = vand.u32 2147483647, %v7967_v3 }
 0x2e5   : > { %v4210_v16 = vpop.eup %4209  ;;  %v3206_v21 = vand.u32 2147483648, %v7967_v3  ;;  %v1898_v26 = vadd.f32 %v1866_v30, %v1833_v52  ;;  %v1469_v42 = vadd.f32 %v9159_v51, %v1404_v45  ;;  %v3220_v49 = vmul.f32 %v3219_v57, %v7943_v37 }
 0x2e6   : > { %v3739_v27 = vmul.f32 %v7710_v1, %v3703_v31  ;;  %v3196_v4 = vmul.f32 %v4210_v16, %v7967_v3  ;;  %v1607_v44 = vmul.f32 %v4289_v38, %v9041_v62  ;;  %v3231_v28 = vmul.f32 %v3230_v33, %v7943_v37 }
 0x2e7   : > { %v8011_v50 = vmul.f32 0.70710677, %v7999_v13  ;;  %v2003_v7 = vadd.f32 %v1971_v9, %v1898_v26  ;;  %v1672_v30 = vmul.f32 %v9003_v12, %v7590_v48  ;;  %v3221_v14 = vadd.f32 0.18741608, %v3220_v49 }
 0x2e8   : > { %v3775_v18 = vadd.f32 %v7724_v15, %v3739_v27  ;;  %v3197_v8 = vsub.f32 1.0, %v3196_v4  ;;  %v1534_v61 = vadd.f32 %v7763_v58, %v1469_v42  ;;  %vm3201_vm0 = vweird.f32 %v4210_v16  ;;  %v8029_v42 = vld [vmem:[#allocation2 + $0x1f2] sm:$0xff]  ;;  %v8033_v4 = vld [vmem:[#allocation2 + $0x209] sm:$0xff] }
 0x2e9   : > { %v3232_v52 = vadd.f32 0.4994258, %v3231_v28  ;;  %v3252_v32 = vmul.f32 %v8011_v50, %v8011_v50  ;;  %v2068_v43 = vadd.f32 %v2036_v47, %v2003_v7  ;;  %v3222_v9 = vmul.f32 %v3221_v14, %v7943_v37 }
 0x2ea   : > { %v3839_v45 = vadd.f32 %v3807_v5, %v3775_v18  ;;  %v3198_v31 = vmul.f32 %v4210_v16, %v3197_v8  ;;  %v1639_v57 = vadd.f32 %v1607_v44, %v1534_v61  ;;  %vm3200_vm1 = vweird.f32 %v7967_v3 }
 0x2eb   : > { %vm8021_vm2 = vcmp.eq.f32.partialorder %v3204_v60, 8.507059e+37  ;;  %v3233_v33 = vmul.f32 %v3232_v52, %v7943_v37  ;;  %v8026_v58 = vmin.f32 %v3252_v32, 16.0  ;;  %v3207_v51 = vor.u32 1.1754944e-38, %v3206_v21  ;;  %vm3202_vm3 = vmor %vm3200_vm1, %vm3201_vm0  ;;  %v4290_v52 = vld [vmem:[#allocation2 + $0x18a] sm:$0xff] }
 0x2ec   : > { %3871 = vst [vmem:[%s6654_s13 + $0x98] sm:$0xff] %v3839_v45  ;;  %v3199_v26 = vadd.f32 %v4210_v16, %v3198_v31  ;;  %v1704_v47 = vadd.f32 %v1672_v30, %v1639_v57  ;;  %v1737_v27 = vmul.f32 %v6210_v41, %v7750_v2  ;;  %v2133_v49 = vadd.f32 %v2101_v46, %v2068_v43 }
 0x2ed   : > { %v8036_v3 = vadd.f32 1.0, %v3233_v33  ;;  %v3254_v60 = vmul.f32 2.1237322e-06, %v8026_v58  ;;  %v3265_v37 = vmul.f32 3.8918573e-05, %v8026_v58  ;;  %v2166_v21 = vmul.f32 %v6287_v10, %v7887_v11 }
 0x2ee   : > { %v3203_v38 = vsel %vm3202_vm3, %v4210_v16, %v3199_v26  ;;  %v3223_v44 = vadd.f32 1.1283791, %v3222_v9  ;;  %v1769_v5 = vadd.f32 %v1737_v27, %v1704_v47  ;;  %v2231_v7 = vmul.f32 %v6307_v35, %v8029_v42  ;;  %v9162_v26 = vld [vmem:[#allocation104_spill] sm:$0xff] }
 0x2ef   : > { %v3208_v28 = vsel %vm8021_vm2, %v3207_v51, %v3203_v38  ;;  %4211 = vrcp.f32 %v8036_v3  ;;  %v1802_v30 = vmul.f32 %v6224_v39, %v7895_v17  ;;  %v3255_v8 = vadd.f32 0.00028619796, %v3254_v60  ;;  %v9163_v51 = vld [vmem:[#allocation49_spill] sm:$0xff] }
 0x2f0   : > { %v3209_v18 = vmul.f32 %v3208_v28, %v3184_v22  ;;  %v3266_v46 = vadd.f32 0.001143296, %v3265_v37  ;;  %v1867_v16 = vmul.f32 %v6246_v19, %v8033_v4  ;;  %v2198_v14 = vadd.f32 %v2166_v21, %v2133_v49 }
 0x2f1   : > { %v1834_v61 = vadd.f32 %v1802_v30, %v1769_v5  ;;  %v1972_v32 = vmul.f32 %v4290_v52, %v6262_v6  ;;  %v2037_v43 = vmul.f32 %v6267_v0, %v7629_v36  ;;  %v3224_v31 = vmul.f32 %v3223_v44, %v7924_v53 }
 0x2f2   : > { %v4069_v45 = vclamps-f32 %v3209_v18, 1.0  ;;  %v3256_v9 = vmul.f32 %v3255_v8, %v8026_v58  ;;  %v3267_v22 = vmul.f32 %v3266_v46, %v8026_v58  ;;  %v3244_v57 = vand.u32 2147483647, %v8036_v3 }
 0x2f3   : > { %v2263_v48 = vadd.f32 %v2231_v7, %v2198_v14  ;;  %v1899_v33 = vadd.f32 %v1867_v16, %v1834_v61  ;;  %v1405_v47 = vadd.f32 %v9163_v51, %v9162_v26  ;;  %v2102_v36 = vmul.f32 %v6285_v34, %v7805_v24  ;;  %v3808_v61 = vld [vmem:[%s4603_s15 + $0xa0] sm:$0xff] }
 0x2f4   : > { %v3672_v27 = vadd.f32 1.0, %v4069_v45  ;;  %v3257_v60 = vadd.f32 0.0036580483, %v3256_v9  ;;  %v3268_v37 = vadd.f32 0.014752088, %v3267_v22  ;;  %v3246_v53 = vand.u32 2147483648, %v8036_v3 }
 0x2f5   : > { %v4212_v49 = vpop.eup %4211  ;;  %v8064_v38 = vadd.f32 %v7996_v20, %v2263_v48  ;;  %v2004_v44 = vadd.f32 %v1972_v32, %v1899_v33  ;;  %v1470_v21 = vadd.f32 %v7753_v23, %v1405_v47  ;;  %vm3240_vm4 = vweird.f32 %v8036_v3  ;;  %v4291_v9 = vld [vmem:[#allocation2 + $0x191] sm:$0xff] }
 0x2f6   : > { %v3704_v5 = vmul.f32 %v3672_v27, %v7916_v59  ;;  %v3236_v28 = vmul.f32 %v4212_v49, %v8036_v3  ;;  %v3258_v7 = vmul.f32 %v3257_v60, %v8026_v58  ;;  %vm8071_vm5 = vcmp.eq.f32.partialorder %v3244_v57, 8.507059e+37 }
 0x2f7   : > { %v3269_v18 = vmul.f32 %v3268_v37, %v8026_v58  ;;  %v8077_v8 = vmul.f32 0.70710677, %v8064_v38  ;;  %v2069_v46 = vadd.f32 %v2037_v43, %v2004_v44  ;;  %v1535_v14 = vadd.f32 %v7900_v40, %v1470_v21 }
 0x2f8   : > { %v3740_v23 = vmul.f32 %v7710_v1, %v3704_v5  ;;  %v3237_v16 = vsub.f32 1.0, %v3236_v28  ;;  %v3259_v59 = vadd.f32 0.05243302, %v3258_v7  ;;  %v3247_v52 = vor.u32 1.1754944e-38, %v3246_v53 }
 0x2f9   : > { %v3270_v32 = vadd.f32 0.112945676, %v3269_v18  ;;  %v3292_v45 = vmul.f32 %v8077_v8, %v8077_v8  ;;  %v1608_v22 = vmul.f32 %v4291_v9, %v9041_v62  ;;  %vm3241_vm6 = vweird.f32 %v4212_v49 }
 0x2fa   : > { %v3776_v57 = vadd.f32 %v7724_v15, %v3740_v23  ;;  %v3238_v48 = vmul.f32 %v4212_v49, %v3237_v16  ;;  %v3260_v43 = vmul.f32 %v3259_v59, %v8026_v58  ;;  %v1673_v51 = vmul.f32 %v9003_v12, %v7648_v55  ;;  %vm3242_vm7 = vmor %vm3240_vm4, %vm3241_vm6  ;;  %v8107_v59 = vld [vmem:[#allocation2 + $0x20a] sm:$0xff] }
 0x2fb   : > { %v3271_v33 = vmul.f32 %v3270_v32, %v8026_v58  ;;  %v8088_v26 = vmin.f32 %v3292_v45, 16.0  ;;  %v1640_v40 = vadd.f32 %v1608_v22, %v1535_v14  ;;  %v2134_v37 = vadd.f32 %v2102_v36, %v2069_v46  ;;  %v8102_v36 = vld [vmem:[#allocation2 + $0x211] sm:$0xff] }
 0x2fc   : > { %v3840_v47 = vadd.f32 %v3808_v61, %v3776_v57  ;;  %v3239_v27 = vadd.f32 %v4212_v49, %v3238_v48  ;;  %v3261_v60 = vadd.f32 0.18741608, %v3260_v43  ;;  %v2167_v55 = vmul.f32 %v6287_v10, %v7948_v56  ;;  %v4292_v43 = vld [vmem:[#allocation2 + $0x192] sm:$0xff] }
 0x2fd   : > { %v3272_v53 = vadd.f32 0.4994258, %v3271_v33  ;;  %v3294_v44 = vmul.f32 2.1237322e-06, %v8088_v26  ;;  %v3305_v21 = vmul.f32 3.8918573e-05, %v8088_v26  ;;  %v1705_v5 = vadd.f32 %v1673_v51, %v1640_v40 }
 0x2fe   : > { %3872 = vst [vmem:[%s6654_s13 + $0xa0] sm:$0xff] %v3840_v47  ;;  %v3243_v28 = vsel %vm3242_vm7, %v4212_v49, %v3239_v27  ;;  %v3262_v7 = vmul.f32 %v3261_v60, %v8026_v58  ;;  %v1738_v18 = vmul.f32 %v6210_v41, %v7816_v54  ;;  %v2199_v14 = vadd.f32 %v2167_v55, %v2134_v37 }
 0x2ff   : > { %v3248_v3 = vsel %vm8071_vm5, %v3247_v52, %v3243_v28  ;;  %v3273_v46 = vmul.f32 %v3272_v53, %v8026_v58  ;;  %v3295_v23 = vadd.f32 0.00028619796, %v3294_v44  ;;  %v3306_v16 = vadd.f32 0.001143296, %v3305_v21  ;;  %v4293_v44 = vld [vmem:[#allocation2 + $0x1a9] sm:$0xff] }
 0x300   : > { %v3249_v49 = vmul.f32 %v3248_v3, %v3224_v31  ;;  %v1770_v61 = vadd.f32 %v1738_v18, %v1705_v5  ;;  %v1803_v32 = vmul.f32 %v6224_v39, %v7971_v29  ;;  %v8112_v45 = vmul.f32 0.5, %v7999_v13  ;;  %v9166_v3 = vld [vmem:[#allocation34_spill] sm:$0xff] }
 0x301   : > { %v8114_v9 = vadd.f32 1.0, %v3273_v46  ;;  %v3296_v30 = vmul.f32 %v3295_v23, %v8088_v26  ;;  %v3307_v52 = vmul.f32 %v3306_v16, %v8088_v26  ;;  %v2232_v22 = vmul.f32 %v6307_v35, %v8107_v59 }
 0x302   : > { %v4070_v58 = vclamps-f32 %v3249_v49, 1.0  ;;  %v1835_v57 = vadd.f32 %v1803_v32, %v1770_v61  ;;  %v1868_v31 = vmul.f32 %v6246_v19, %v8102_v36  ;;  %v3263_v48 = vadd.f32 1.1283791, %v3262_v7  ;;  %v3809_v32 = vld [vmem:[%s4603_s15 + $0xa8] sm:$0xff] }
 0x303   : > { %4213 = vrcp.f32 %v8114_v9  ;;  %v1973_v13 = vmul.f32 %v4292_v43, %v6262_v6  ;;  %v2038_v33 = vmul.f32 %v6267_v0, %v7736_v63  ;;  %v3297_v51 = vadd.f32 0.0036580483, %v3296_v30 }
 0x304   : > { %v3673_v40 = vadd.f32 1.0, %v4070_v58  ;;  %v3308_v47 = vadd.f32 0.014752088, %v3307_v52  ;;  %v2264_v27 = vadd.f32 %v2232_v22, %v2199_v14  ;;  %v1900_v60 = vadd.f32 %v1868_v31, %v1835_v57  ;;  %v8152_v57 = vld [vmem:[#allocation2 + $0x212] sm:$0xff] }
 0x305   : > { %v2103_v37 = vmul.f32 %v6285_v34, %v7887_v11  ;;  %v2168_v53 = vmul.f32 %v6287_v10, %v8029_v42  ;;  %v1609_v21 = vmul.f32 %v4293_v44, %v9041_v62  ;;  %v3298_v28 = vmul.f32 %v3297_v51, %v8088_v26 }
 0x306   : > { %v3705_v5 = vmul.f32 %v3673_v40, %v7973_v25  ;;  %v3309_v63 = vmul.f32 %v3308_v47, %v8088_v26  ;;  %v8135_v7 = vadd.f32 %v7996_v20, %v2264_v27  ;;  %v3264_v55 = vmul.f32 %v3263_v48, %v8011_v50 }
 0x307   : > { %v2005_v18 = vadd.f32 %v1973_v13, %v1900_v60  ;;  %v1641_v46 = vadd.f32 %v1609_v21, %v9166_v3  ;;  %v1674_v23 = vmul.f32 %v9003_v12, %v7750_v2  ;;  %v3284_v49 = vand.u32 2147483647, %v8114_v9 }
 0x308   : > { %v3741_v16 = vmul.f32 %v7710_v1, %v3705_v5  ;;  %v3299_v25 = vadd.f32 0.05243302, %v3298_v28  ;;  %v3310_v14 = vadd.f32 0.112945676, %v3309_v63  ;;  %v8145_v30 = vmul.f32 0.70710677, %v8135_v7 }
 0x309   : > { %v4214_v61 = vpop.eup %4213  ;;  %v2070_v52 = vadd.f32 %v2038_v33, %v2005_v18  ;;  %v1706_v58 = vadd.f32 %v1674_v23, %v1641_v46  ;;  %v1739_v50 = vmul.f32 %v6210_v41, %v7895_v17  ;;  %v1804_v31 = vmul.f32 %v6224_v39, %v8033_v4  ;;  %v8159_v33 = vld [vmem:[#allocation2 + $0x229] sm:$0xff] }
 0x30a   : > { %v3777_v22 = vadd.f32 %v7724_v15, %v3741_v16  ;;  %v3276_v2 = vmul.f32 %v4214_v61, %v8114_v9  ;;  %v3300_v1 = vmul.f32 %v3299_v25, %v8088_v26  ;;  %v3311_v48 = vmul.f32 %v3310_v14, %v8088_v26 }
 0x30b   : > { %v3332_v43 = vmul.f32 %v8145_v30, %v8145_v30  ;;  %v2135_v13 = vadd.f32 %v2103_v37, %v2070_v52  ;;  %v1771_v40 = vadd.f32 %v1739_v50, %v1706_v58  ;;  %v3286_v47 = vand.u32 2147483648, %v8114_v9 }
 0x30c   : > { %v3841_v15 = vadd.f32 %v3809_v32, %v3777_v22  ;;  %v3277_v51 = vsub.f32 1.0, %v3276_v2  ;;  %v3301_v27 = vadd.f32 0.18741608, %v3300_v1  ;;  %v3312_v60 = vadd.f32 0.4994258, %v3311_v48  ;;  %v4294_v2 = vld [vmem:[#allocation2 + $0x1aa] sm:$0xff] }
 0x30d   : > { %v8162_v44 = vmin.f32 %v3332_v43, 16.0  ;;  %v2233_v21 = vmul.f32 %v6307_v35, %v8152_v57  ;;  %v1836_v5 = vadd.f32 %v1804_v31, %v1771_v40  ;;  %vm3281_vm8 = vweird.f32 %v4214_v61 }
 0x30e   : > { %3873 = vst [vmem:[%s6654_s13 + $0xa8] sm:$0xff] %v3841_v15  ;;  %v3278_v28 = vmul.f32 %v4214_v61, %v3277_v51  ;;  %v3302_v37 = vmul.f32 %v3301_v27, %v8088_v26  ;;  %v1869_v63 = vmul.f32 %v6246_v19, %v8159_v33  ;;  %v3313_v18 = vmul.f32 %v3312_v60, %v8088_v26 }
 0x30f   : > { %v3334_v3 = vmul.f32 2.1237322e-06, %v8162_v44  ;;  %v3345_v46 = vmul.f32 3.8918573e-05, %v8162_v44  ;;  %v2200_v23 = vadd.f32 %v2168_v53, %v2135_v13  ;;  %vm3280_vm9 = vweird.f32 %v8114_v9  ;;  %v4295_v9 = vld [vmem:[#allocation2 + $0x1b1] sm:$0xff] }
 0x310   : > { %v3279_v16 = vadd.f32 %v4214_v61, %v3278_v28  ;;  %vm3285_vm10 = vcmp.eq.f32.partialorder %v3284_v49, 8.507059e+37  ;;  %v3287_v25 = vor.u32 1.1754944e-38, %v3286_v47  ;;  %vm3282_vm11 = vmor %vm3280_vm9, %vm3281_vm8  ;;  %v8174_v14 = vadd.f32 1.0, %v3313_v18  ;;  %v9167_v47 = vld [vmem:[#allocation46_spill] sm:$0xff] }
 0x311   : > { %v3335_v32 = vadd.f32 0.00028619796, %v3334_v3  ;;  %v3346_v52 = vadd.f32 0.001143296, %v3345_v46  ;;  %v1901_v58 = vadd.f32 %v1869_v63, %v1836_v5  ;;  %v2265_v22 = vadd.f32 %v2233_v21, %v2200_v23 }
 0x312   : > { %v3283_v50 = vsel %vm3282_vm11, %v4214_v61, %v3279_v16  ;;  %v1974_v26 = vmul.f32 %v4294_v2, %v6262_v6  ;;  %v2039_v1 = vmul.f32 %v6267_v0, %v7805_v24  ;;  %v3303_v31 = vadd.f32 1.1283791, %v3302_v37  ;;  %v8183_v61 = vld [vmem:[#allocation2 + $0x22a] sm:$0xff] }
 0x313   : > { %v3288_v53 = vsel %vm3285_vm10, %v3287_v25, %v3283_v50  ;;  %4215 = vrcp.f32 %v8174_v14  ;;  %v1610_v49 = vmul.f32 %v4295_v9, %v9041_v62  ;;  %v3336_v43 = vmul.f32 %v3335_v32, %v8162_v44  ;;  %v8216_v9 = vld [vmem:[%s8620_s3] ss:$0 sm:$0xff] }
 0x314   : > { %v3289_v48 = vmul.f32 %v3288_v53, %v3264_v55  ;;  %v3347_v13 = vmul.f32 %v3346_v52, %v8162_v44  ;;  %v2104_v40 = vmul.f32 %v6285_v34, %v7948_v56  ;;  %v8188_v15 = vadd.f32 %v7996_v20, %v2265_v22 }
 0x315   : > { %v2006_v24 = vadd.f32 %v1974_v26, %v1901_v58  ;;  %v2169_v51 = vmul.f32 %v6287_v10, %v8107_v59  ;;  %v1642_v27 = vadd.f32 %v1610_v49, %v9167_v47  ;;  %v3326_v55 = vand.u32 2147483648, %v8174_v14 }
 0x316   : > { %v4071_v60 = vclamps-f32 %v3289_v48, 1.0  ;;  %v3337_v21 = vadd.f32 0.0036580483, %v3336_v43  ;;  %v3348_v5 = vadd.f32 0.014752088, %v3347_v13  ;;  %v3304_v28 = vmul.f32 %v3303_v31, %v8077_v8  ;;  %v3810_v43 = vld [vmem:[%s4603_s15 + $0xb0] sm:$0xff] }
 0x317   : > { %v8196_v37 = vmul.f32 0.70710677, %v8188_v15  ;;  %v2234_v63 = vmul.f32 %v6307_v35, %v8183_v61  ;;  %v1675_v18 = vmul.f32 %v9003_v12, %v7816_v54  ;;  %v2071_v16 = vadd.f32 %v2039_v1, %v2006_v24 }
 0x318   : > { %v3674_v3 = vadd.f32 1.0, %v4071_v60  ;;  %v3338_v46 = vmul.f32 %v3337_v21, %v8162_v44  ;;  %v3349_v23 = vmul.f32 %v3348_v5, %v8162_v44  ;;  %v3324_v32 = vand.u32 2147483647, %v8174_v14  ;;  %v8231_v60 = vld [vmem:[%s8621_s4] ss:$0 sm:$0xff] }
 0x319   : > { %v4216_v25 = vpop.eup %4215  ;;  %v3372_v8 = vmul.f32 %v8196_v37, %v8196_v37  ;;  %v1707_v52 = vadd.f32 %v1675_v18, %v1642_v27  ;;  %v1740_v58 = vmul.f32 %v6210_v41, %v7971_v29  ;;  %v3327_v22 = vor.u32 1.1754944e-38, %v3326_v55  ;;  %v8226_v27 = vld [vmem:[#allocation2 + $0x231] sm:$0xff] }
 0x31a   : > { %v3706_v50 = vmul.f32 %v3674_v3, %v8112_v45  ;;  %v3316_v54 = vmul.f32 %v4216_v25, %v8174_v14  ;;  %v3339_v2 = vadd.f32 0.05243302, %v3338_v46  ;;  %v3350_v26 = vadd.f32 0.112945676, %v3349_v23 }
 0x31b   : > { %v8211_v53 = vmin.f32 %v3372_v8, 16.0  ;;  %v2136_v1 = vadd.f32 %v2104_v40, %v2071_v16  ;;  %v1772_v31 = vadd.f32 %v1740_v58, %v1707_v52  ;;  %vm3321_vm12 = vweird.f32 %v4216_v25 }
 0x31c   : > { %v3742_v49 = vmul.f32 %v8216_v9, %v3706_v50  ;;  %v3317_v48 = vsub.f32 1.0, %v3316_v54  ;;  %v1805_v45 = vmul.f32 %v6224_v39, %v8102_v36  ;;  %v3340_v13 = vmul.f32 %v3339_v2, %v8162_v44 }
 0x31d   : > { %v3351_v24 = vmul.f32 %v3350_v26, %v8162_v44  ;;  %v3374_v40 = vmul.f32 2.1237322e-06, %v8211_v53  ;;  %v3385_v47 = vmul.f32 3.8918573e-05, %v8211_v53  ;;  %v2201_v5 = vadd.f32 %v2169_v51, %v2136_v1 }
 0x31e   : > { %v3778_v55 = vadd.f32 %v8231_v60, %v3742_v49  ;;  %v3318_v21 = vmul.f32 %v4216_v25, %v3317_v48  ;;  %v1837_v18 = vadd.f32 %v1805_v45, %v1772_v31  ;;  %vm3320_vm13 = vweird.f32 %v8174_v14 }
 0x31f   : > { %v3352_v3 = vadd.f32 0.4994258, %v3351_v24  ;;  %v3375_v46 = vadd.f32 0.00028619796, %v3374_v40  ;;  %v3386_v23 = vadd.f32 0.001143296, %v3385_v47  ;;  %v2266_v52 = vadd.f32 %v2234_v63, %v2201_v5  ;;  %vm3322_vm14 = vmor %vm3320_vm13, %vm3321_vm12 }
 0x320   : > { %v3842_v16 = vadd.f32 %v3810_v43, %v3778_v55  ;;  %v3319_v8 = vadd.f32 %v4216_v25, %v3318_v21  ;;  %v1870_v58 = vmul.f32 %v6246_v19, %v8226_v27  ;;  %v3341_v50 = vadd.f32 0.18741608, %v3340_v13 }
 0x321   : > { %v3353_v54 = vmul.f32 %v3352_v3, %v8162_v44  ;;  %v3376_v2 = vmul.f32 %v3375_v46, %v8211_v53  ;;  %v3387_v51 = vmul.f32 %v3386_v23, %v8211_v53  ;;  %vm3325_vm15 = vcmp.eq.f32.partialorder %v3324_v32, 8.507059e+37 }
 0x322   : > { %3874 = vst [vmem:[%s6654_s13 + $0xb0] sm:$0xff] %v3842_v16  ;;  %v3323_v14 = vsel %vm3322_vm14, %v4216_v25, %v3319_v8  ;;  %v8243_v26 = vadd.f32 %v7996_v20, %v2266_v52  ;;  %v1902_v1 = vadd.f32 %v1870_v58, %v1837_v18  ;;  %v2331_v13 = vmul.f32 0.5, %v8064_v38  ;;  %v4298_v25 = vld [vmem:[#allocation2 + $0x1b2] sm:$0xff]  ;;  %v4299_v8 = vld [vmem:[#allocation2 + $0x1c9] sm:$0xff] }
 0x323   : > { %v3328_v63 = vsel %vm3325_vm15, %v3327_v22, %v3323_v14  ;;  %v8245_v31 = vadd.f32 1.0, %v3353_v54  ;;  %v3377_v49 = vadd.f32 0.0036580483, %v3376_v2  ;;  %v3388_v48 = vadd.f32 0.014752088, %v3387_v51  ;;  %v9168_v51 = vld [vmem:[#allocation153_spill] sm:$0xff] }
 0x324   : > { %v3329_v45 = vmul.f32 %v3328_v63, %v3304_v28  ;;  %v8248_v43 = vmul.f32 0.70710677, %v8243_v26  ;;  %v3342_v24 = vmul.f32 %v3341_v50, %v8162_v44  ;;  %v1975_v32 = vmul.f32 %v4298_v25, %v6262_v6 }
 0x325   : > { %4217 = vrcp.f32 %v8245_v31  ;;  %v3378_v22 = vmul.f32 %v3377_v49, %v8211_v53  ;;  %v3389_v47 = vmul.f32 %v3388_v48, %v8211_v53  ;;  %v8259_v55 = vmul.f32 0.5, %v8135_v7  ;;  %v3811_v48 = vld [vmem:[%s4603_s15 + $0xb8] sm:$0xff] }
 0x326   : > { %v4072_v40 = vclamps-f32 %v3329_v45, 1.0  ;;  %v3412_v28 = vmul.f32 %v8248_v43, %v8248_v43  ;;  %v8262_v38 = vmul.f32 0.5, %v8188_v15  ;;  %v2007_v44 = vadd.f32 %v1975_v32, %v1902_v1 }
 0x327   : > { %v2040_v21 = vmul.f32 %v6267_v0, %v7887_v11  ;;  %v3379_v18 = vadd.f32 0.05243302, %v3378_v22  ;;  %v3390_v3 = vadd.f32 0.112945676, %v3389_v47  ;;  %v3343_v23 = vadd.f32 1.1283791, %v3342_v24 }
 0x328   : > { %v3675_v5 = vadd.f32 1.0, %v4072_v40  ;;  %v8266_v46 = vmin.f32 %v3412_v28, 16.0  ;;  %v3364_v16 = vand.u32 2147483647, %v8245_v31  ;;  %v2105_v7 = vmul.f32 %v6285_v34, %v8029_v42 }
 0x329   : > { %v1611_v15 = vmul.f32 %v4299_v8, %v9041_v62  ;;  %v3380_v58 = vmul.f32 %v3379_v18, %v8211_v53  ;;  %v3391_v11 = vmul.f32 %v3390_v3, %v8211_v53  ;;  %v1676_v1 = vmul.f32 %v9003_v12, %v7895_v17 }
 0x32a   : > { %v3707_v52 = vmul.f32 %v3675_v5, %v2331_v13  ;;  %v3414_v50 = vmul.f32 2.1237322e-06, %v8266_v46  ;;  %v3425_v2 = vmul.f32 3.8918573e-05, %v8266_v46  ;;  %v1741_v63 = vmul.f32 %v6210_v41, %v8033_v4 }
 0x32b   : > { %v4218_v54 = vpop.eup %4217  ;;  %v1643_v14 = vadd.f32 %v1611_v15, %v9168_v51  ;;  %v3381_v13 = vadd.f32 0.18741608, %v3380_v58  ;;  %v2072_v24 = vadd.f32 %v2040_v21, %v2007_v44  ;;  %v3392_v25 = vadd.f32 0.4994258, %v3391_v11 }
 0x32c   : > { %v3743_v49 = vmul.f32 %v8216_v9, %v3707_v52  ;;  %v3356_v45 = vmul.f32 %v4218_v54, %v8245_v31  ;;  %v3415_v32 = vadd.f32 0.00028619796, %v3414_v50  ;;  %v3426_v40 = vadd.f32 0.001143296, %v3425_v2 }
 0x32d   : > { %v1708_v22 = vadd.f32 %v1676_v1, %v1643_v14  ;;  %v3366_v17 = vand.u32 2147483648, %v8245_v31  ;;  %v3382_v5 = vmul.f32 %v3381_v13, %v8211_v53  ;;  %v3393_v18 = vmul.f32 %v3392_v25, %v8211_v53  ;;  %v8297_v1 = vld [vmem:[#allocation2 + $0x232] sm:$0xff] }
 0x32e   : > { %v3779_v47 = vadd.f32 %v8231_v60, %v3743_v49  ;;  %v3357_v28 = vsub.f32 1.0, %v3356_v45  ;;  %v3416_v3 = vmul.f32 %v3415_v32, %v8266_v46  ;;  %v3427_v8 = vmul.f32 %v3426_v40, %v8266_v46 }
 0x32f   : > { %v1773_v15 = vadd.f32 %v1741_v63, %v1708_v22  ;;  %vm3361_vm0 = vweird.f32 %v4218_v54  ;;  %v1806_v52 = vmul.f32 %v6224_v39, %v8159_v33  ;;  %v8292_v58 = vadd.f32 1.0, %v3393_v18  ;;  %v8299_v63 = vld [vmem:[#allocation2 + $0x249] sm:$0xff] }
 0x330   : > { %v3843_v44 = vadd.f32 %v3811_v48, %v3779_v47  ;;  %v3358_v21 = vmul.f32 %v4218_v54, %v3357_v28  ;;  %v3417_v11 = vadd.f32 0.0036580483, %v3416_v3  ;;  %v3428_v50 = vadd.f32 0.014752088, %v3427_v8  ;;  %v4300_v28 = vld [vmem:[#allocation2 + $0x1ca] sm:$0xff] }
 0x331   : > { %v2137_v2 = vadd.f32 %v2105_v7, %v2072_v24  ;;  %v3344_v51 = vmul.f32 %v3343_v23, %v8145_v30  ;;  %vm3360_vm1 = vweird.f32 %v8245_v31  ;;  %v3383_v14 = vadd.f32 1.1283791, %v3382_v5  ;;  %v4301_v5 = vld [vmem:[#allocation2 + $0x1d1] sm:$0xff] }
 0x332   : > { %3875 = vst [vmem:[%s6654_s13 + $0xb8] sm:$0xff] %v3843_v44  ;;  %v3359_v53 = vadd.f32 %v4218_v54, %v3358_v21  ;;  %vm3362_vm2 = vmor %vm3360_vm1, %vm3361_vm0  ;;  %v3367_v49 = vor.u32 1.1754944e-38, %v3366_v17  ;;  %4219 = vrcp.f32 %v8292_v58  ;;  %v2170_v48 = vmul.f32 %v6287_v10, %v8152_v57 }
 0x333   : > { %v1838_v45 = vadd.f32 %v1806_v52, %v1773_v15  ;;  %vm3365_vm3 = vcmp.eq.f32.partialorder %v3364_v16, 8.507059e+37  ;;  %v3418_v30 = vmul.f32 %v3417_v11, %v8266_v46  ;;  %v3429_v23 = vmul.f32 %v3428_v50, %v8266_v46  ;;  %v9169_v11 = vld [vmem:[#allocation157_spill] sm:$0xff] }
 0x334   : > { %v3363_v7 = vsel %vm3362_vm2, %v4218_v54, %v3359_v53  ;;  %v2202_v13 = vadd.f32 %v2170_v48, %v2137_v2  ;;  %v2235_v24 = vmul.f32 %v6307_v35, %v8297_v1  ;;  %v1871_v25 = vmul.f32 %v6246_v19, %v8299_v63 }
 0x335   : > { %v3368_v31 = vsel %vm3365_vm3, %v3367_v49, %v3363_v7  ;;  %v8311_v40 = vmul.f32 %v3383_v14, %v8196_v37  ;;  %v3419_v22 = vadd.f32 0.05243302, %v3418_v30  ;;  %v3430_v47 = vadd.f32 0.112945676, %v3429_v23 }
 0x336   : > { %v3369_v32 = vmul.f32 %v3368_v31, %v3344_v51  ;;  %v2267_v54 = vadd.f32 %v2235_v24, %v2202_v13  ;;  %v1903_v16 = vadd.f32 %v1871_v25, %v1838_v45  ;;  %v1976_v17 = vmul.f32 %v4300_v28, %v6262_v6 }
 0x337   : > { %v1612_v18 = vmul.f32 %v4301_v5, %v9041_v62  ;;  %v3420_v8 = vmul.f32 %v3419_v22, %v8266_v46  ;;  %v3431_v15 = vmul.f32 %v3430_v47, %v8266_v46  ;;  %v2041_v44 = vmul.f32 %v6267_v0, %v7948_v56  ;;  %v3812_v47 = vld [vmem:[%s4603_s15 + $0xc0] sm:$0xff] }
 0x338   : > { %v4073_v3 = vclamps-f32 %v3369_v32, 1.0  ;;  %v4220_v37 = vpop.eup %4219  ;;  %vm3400_vm4 = vweird.f32 %v8292_v58  ;;  %v3404_v21 = vand.u32 2147483647, %v8292_v58  ;;  %v8322_v52 = vadd.f32 %v7996_v20, %v2267_v54 }
 0x339   : > { %v1644_v50 = vadd.f32 %v1612_v18, %v9169_v11  ;;  %v3396_v51 = vmul.f32 %v4220_v37, %v8292_v58  ;;  %v3421_v53 = vadd.f32 0.18741608, %v3420_v8  ;;  %v1677_v14 = vmul.f32 %v9003_v12, %v7971_v29 }
 0x33a   : > { %v3676_v2 = vadd.f32 1.0, %v4073_v3  ;;  %v3406_v49 = vand.u32 2147483648, %v8292_v58  ;;  %v3432_v56 = vadd.f32 0.4994258, %v3431_v15  ;;  %v8330_v48 = vmul.f32 0.70710677, %v8322_v52 }
 0x33b   : > { %v2008_v45 = vadd.f32 %v1976_v17, %v1903_v16  ;;  %v3397_v30 = vsub.f32 1.0, %v3396_v51  ;;  %v1709_v23 = vadd.f32 %v1677_v14, %v1644_v50  ;;  %v1742_v31 = vmul.f32 %v6210_v41, %v8102_v36  ;;  %v8352_v3 = vld [vmem:[#allocation2 + $0x24a] sm:$0xff] }
 0x33c   : > { %v3708_v7 = vmul.f32 %v3676_v2, %v8259_v55  ;;  %vm8335_vm5 = vcmp.eq.f32.partialorder %v3404_v21, 8.507059e+37  ;;  %v3422_v29 = vmul.f32 %v3421_v53, %v8266_v46  ;;  %v3433_v24 = vmul.f32 %v3432_v56, %v8266_v46  ;;  %v8361_v21 = vld [vmem:[#allocation2 + $0x251] sm:$0xff] }
 0x33d   : > { %v3452_v25 = vmul.f32 %v8330_v48, %v8330_v48  ;;  %v3398_v22 = vmul.f32 %v4220_v37, %v3397_v30  ;;  %vm3401_vm6 = vweird.f32 %v4220_v37  ;;  %v1774_v55 = vadd.f32 %v1742_v31, %v1709_v23 }
 0x33e   : > { %v3744_v32 = vmul.f32 %v8216_v9, %v3708_v7  ;;  %v8345_v54 = vadd.f32 1.0, %v3433_v24  ;;  %v2073_v28 = vadd.f32 %v2041_v44, %v2008_v45  ;;  %v1807_v17 = vmul.f32 %v6224_v39, %v8226_v27  ;;  %vm3402_vm7 = vmor %vm3400_vm4, %vm3401_vm6 }
 0x33f   : > { %v8347_v16 = vmin.f32 %v3452_v25, 16.0  ;;  %v3399_v46 = vadd.f32 %v4220_v37, %v3398_v22  ;;  %v3407_v18 = vor.u32 1.1754944e-38, %v3406_v49  ;;  %v2106_v8 = vmul.f32 %v6285_v34, %v8107_v59 }
 0x340   : > { %v3780_v5 = vadd.f32 %v8231_v60, %v3744_v32  ;;  %v3423_v15 = vadd.f32 1.1283791, %v3422_v29  ;;  %4221 = vrcp.f32 %v8345_v54  ;;  %v2171_v44 = vmul.f32 %v6287_v10, %v8183_v61  ;;  %v4302_v29 = vld [vmem:[#allocation2 + $0x1d2] sm:$0xff] }
 0x341   : > { %v1839_v11 = vadd.f32 %v1807_v17, %v1774_v55  ;;  %v3403_v2 = vsel %vm3402_vm7, %v4220_v37, %v3399_v46  ;;  %v3454_v51 = vmul.f32 2.1237322e-06, %v8347_v16  ;;  %v3465_v53 = vmul.f32 3.8918573e-05, %v8347_v16 }
 0x342   : > { %v3844_v50 = vadd.f32 %v3812_v47, %v3780_v5  ;;  %v3408_v14 = vsel %vm8335_vm5, %v3407_v18, %v3403_v2  ;;  %v3444_v58 = vand.u32 2147483647, %v8345_v54  ;;  %v2138_v49 = vadd.f32 %v2106_v8, %v2073_v28 }
 0x343   : > { %v2236_v56 = vmul.f32 %v6307_v35, %v8352_v3  ;;  %v3409_v45 = vmul.f32 %v3408_v14, %v8311_v40  ;;  %v3455_v7 = vadd.f32 0.00028619796, %v3454_v51  ;;  %v3466_v30 = vadd.f32 0.001143296, %v3465_v53 }
 0x344   : > { %3876 = vst [vmem:[%s6654_s13 + $0xc0] sm:$0xff] %v3844_v50  ;;  %v1872_v37 = vmul.f32 %v6246_v19, %v8361_v21  ;;  %v3424_v23 = vmul.f32 %v3423_v15, %v8248_v43  ;;  %v2203_v31 = vadd.f32 %v2171_v44, %v2138_v49  ;;  %v1977_v13 = vmul.f32 %v4302_v29, %v6262_v6  ;;  %v4303_v43 = vld [vmem:[#allocation2 + $0x1e9] sm:$0xff] }
 0x345   : > { %v2042_v24 = vmul.f32 %v6267_v0, %v8029_v42  ;;  %v4074_v25 = vclamps-f32 %v3409_v45, 1.0  ;;  %v3456_v32 = vmul.f32 %v3455_v7, %v8347_v16  ;;  %v3467_v22 = vmul.f32 %v3466_v30, %v8347_v16  ;;  %v9174_v44 = vld [vmem:[#allocation151_spill] sm:$0xff] }
 0x346   : > { %v1904_v40 = vadd.f32 %v1872_v37, %v1839_v11  ;;  %v4222_v55 = vpop.eup %4221  ;;  %vm3440_vm8 = vweird.f32 %v8345_v54  ;;  %v3446_v47 = vand.u32 2147483648, %v8345_v54  ;;  %v2268_v28 = vadd.f32 %v2236_v56, %v2203_v31  ;;  %v3813_v37 = vld [vmem:[%s4603_s15 + $0xc8] sm:$0xff] }
 0x347   : > { %v1613_v17 = vmul.f32 %v4303_v43, %v9041_v62  ;;  %v3677_v5 = vadd.f32 1.0, %v4074_v25  ;;  %v3436_v46 = vmul.f32 %v4222_v55, %v8345_v54  ;;  %vm8384_vm9 = vcmp.eq.f32.partialorder %v3444_v58, 8.507059e+37  ;;  %v1580_v29 = vld [vmem:[#allocation2 + $0x269] sm:$0xff] }
 0x348   : > { %v3457_v18 = vadd.f32 0.0036580483, %v3456_v32  ;;  %v3468_v8 = vadd.f32 0.014752088, %v3467_v22  ;;  %v8389_v15 = vadd.f32 %v7996_v20, %v2268_v28  ;;  %v1678_v50 = vmul.f32 %v9003_v12, %v8033_v4 }
 0x349   : > { %v1645_v11 = vadd.f32 %v1613_v17, %v9174_v44  ;;  %v3709_v2 = vmul.f32 %v3677_v5, %v8262_v38  ;;  %v3437_v51 = vsub.f32 1.0, %v3436_v46  ;;  %v2009_v14 = vadd.f32 %v1977_v13, %v1904_v40 }
 0x34a   : > { %v3458_v53 = vmul.f32 %v3457_v18, %v8347_v16  ;;  %v3469_v58 = vmul.f32 %v3468_v8, %v8347_v16  ;;  %v8398_v49 = vmul.f32 0.70710677, %v8389_v15  ;;  %v1743_v45 = vmul.f32 %v6210_v41, %v8159_v33 }
 0x34b   : > { %v1710_v56 = vadd.f32 %v1678_v50, %v1645_v11  ;;  %v3745_v7 = vmul.f32 %v8216_v9, %v3709_v2  ;;  %v3438_v30 = vmul.f32 %v4222_v55, %v3437_v51  ;;  %vm3441_vm10 = vweird.f32 %v4222_v55 }
 0x34c   : > { %v3447_v4 = vor.u32 1.1754944e-38, %v3446_v47  ;;  %v3470_v38 = vadd.f32 0.112945676, %v3469_v58  ;;  %v3492_v31 = vmul.f32 %v8398_v49, %v8398_v49  ;;  %v1808_v25 = vmul.f32 %v6224_v39, %v8299_v63  ;;  %vm3442_vm11 = vmor %vm3440_vm8, %vm3441_vm10  ;;  %v8416_v63 = vld [vmem:[#allocation2 + $0x252] sm:$0xff] }
 0x34d   : > { %v1775_v13 = vadd.f32 %v1743_v45, %v1710_v56  ;;  %v3781_v32 = vadd.f32 %v8231_v60, %v3745_v7  ;;  %v3439_v22 = vadd.f32 %v4222_v55, %v3438_v30  ;;  %v3459_v40 = vadd.f32 0.05243302, %v3458_v53  ;;  %v4304_v56 = vld [vmem:[#allocation2 + $0x1ea] sm:$0xff] }
 0x34e   : > { %v2074_v33 = vadd.f32 %v2042_v24, %v2009_v14  ;;  %v3471_v47 = vmul.f32 %v3470_v38, %v8347_v16  ;;  %v8412_v28 = vmin.f32 %v3492_v31, 16.0  ;;  %v2107_v43 = vmul.f32 %v6285_v34, %v8152_v57 }
 0x34f   : > { %v1840_v17 = vadd.f32 %v1808_v25, %v1775_v13  ;;  %v3845_v5 = vadd.f32 %v3813_v37, %v3781_v32  ;;  %v3443_v46 = vsel %vm3442_vm11, %v4222_v55, %v3439_v22  ;;  %v2172_v18 = vmul.f32 %v6287_v10, %v8297_v1 }
 0x350   : > { %v1873_v24 = vmul.f32 %v6246_v19, %v1580_v29  ;;  %v3448_v54 = vsel %vm8384_vm9, %v3447_v4, %v3443_v46  ;;  %v3472_v8 = vadd.f32 0.4994258, %v3471_v47  ;;  %v3494_v44 = vmul.f32 2.1237322e-06, %v8412_v28  ;;  %v4305_v4 = vld [vmem:[#allocation2 + $0x1f1] sm:$0xff] }
 0x351   : > { %v3505_v11 = vmul.f32 3.8918573e-05, %v8412_v28  ;;  %3877 = vst [vmem:[%s6654_s13 + $0xc8] sm:$0xff] %v3845_v5  ;;  %v3449_v50 = vmul.f32 %v3448_v54, %v3424_v23  ;;  %v3460_v2 = vmul.f32 %v3459_v40, %v8347_v16  ;;  %v2139_v55 = vadd.f32 %v2107_v43, %v2074_v33  ;;  %v9175_v33 = vld [vmem:[#allocation154_spill] sm:$0xff] }
 0x352   : > { %v1905_v51 = vadd.f32 %v1873_v24, %v1840_v17  ;;  %v3473_v53 = vmul.f32 %v3472_v8, %v8347_v16  ;;  %v3495_v14 = vadd.f32 0.00028619796, %v3494_v44  ;;  %v1978_v45 = vmul.f32 %v4304_v56, %v6262_v6  ;;  %v1945_v8 = vld [vmem:[#allocation2 + $0x26a] sm:$0xff] }
 0x353   : > { %v3506_v58 = vadd.f32 0.001143296, %v3505_v11  ;;  %v4075_v42 = vclamps-f32 %v3449_v50, 1.0  ;;  %v2204_v7 = vadd.f32 %v2172_v18, %v2139_v55  ;;  %v2237_v30 = vmul.f32 %v6307_v35, %v8416_v63  ;;  %v3814_v11 = vld [vmem:[%s4603_s15 + $0xd0] sm:$0xff] }
 0x354   : > { %v1614_v37 = vmul.f32 %v4305_v4, %v9041_v62  ;;  %v8432_v23 = vadd.f32 1.0, %v3473_v53  ;;  %v3496_v38 = vmul.f32 %v3495_v14, %v8412_v28  ;;  %v2010_v29 = vadd.f32 %v1978_v45, %v1905_v51 }
 0x355   : > { %v3507_v31 = vmul.f32 %v3506_v58, %v8412_v28  ;;  %v2334_v13 = vmul.f32 0.5, %v8243_v26  ;;  %v3678_v25 = vadd.f32 1.0, %v4075_v42  ;;  %v3461_v32 = vadd.f32 0.18741608, %v3460_v2 }
 0x356   : > { %v2269_v22 = vadd.f32 %v2237_v30, %v2204_v7  ;;  %4223 = vrcp.f32 %v8432_v23  ;;  %v2043_v40 = vmul.f32 %v6267_v0, %v8107_v59  ;;  %v1646_v62 = vadd.f32 %v1614_v37, %v9175_v33 }
 0x357   : > { %v3710_v47 = vmul.f32 %v3678_v25, %v2334_v13  ;;  %v3497_v43 = vadd.f32 0.0036580483, %v3496_v38  ;;  %v3508_v17 = vadd.f32 0.014752088, %v3507_v31  ;;  %v2108_v26 = vmul.f32 %v6285_v34, %v8183_v61  ;;  %v1581_v38 = vld [vmem:[#allocation2 + $0x271] sm:$0xff] }
 0x358   : > { %v8442_v5 = vadd.f32 %v7996_v20, %v2269_v22  ;;  %v2075_v46 = vadd.f32 %v2043_v40, %v2010_v29  ;;  %v1679_v18 = vmul.f32 %v9003_v12, %v8102_v36  ;;  %v3462_v54 = vmul.f32 %v3461_v32, %v8347_v16 }
 0x359   : > { %v3746_v24 = vmul.f32 %v8216_v9, %v3710_v47  ;;  %v3509_v59 = vmul.f32 %v3508_v17, %v8412_v28  ;;  %v2173_v44 = vmul.f32 %v6287_v10, %v8352_v3  ;;  %v1744_v61 = vmul.f32 %v6210_v41, %v8226_v27 }
 0x35a   : > { %v8455_v20 = vmul.f32 0.70710677, %v8442_v5  ;;  %v2140_v50 = vadd.f32 %v2108_v26, %v2075_v46  ;;  %v1711_v2 = vadd.f32 %v1679_v18, %v1646_v62  ;;  %v3498_v36 = vmul.f32 %v3497_v43, %v8412_v28 }
 0x35b   : > { %v3782_v12 = vadd.f32 %v8231_v60, %v3746_v24  ;;  %v3510_v16 = vadd.f32 0.112945676, %v3509_v59  ;;  %v2238_v53 = vmul.f32 %v6307_v35, %v1945_v8  ;;  %v1809_v41 = vmul.f32 %v6224_v39, %v8361_v21  ;;  %v8477_v39 = vld [vmem:[%s8619_s2] ss:$0 sm:$0xff] }
 0x35c   : > { %v4224_v55 = vpop.eup %4223  ;;  %v3532_v51 = vmul.f32 %v8455_v20, %v8455_v20  ;;  %v2205_v3 = vadd.f32 %v2173_v44, %v2140_v50  ;;  %v1776_v14 = vadd.f32 %v1744_v61, %v1711_v2  ;;  %v3463_v27 = vadd.f32 1.1283791, %v3462_v54 }
 0x35d   : > { %v3846_v58 = vadd.f32 %v3814_v11, %v3782_v12  ;;  %v3476_v56 = vmul.f32 %v4224_v55, %v8432_v23  ;;  %v3511_v45 = vmul.f32 %v3510_v16, %v8412_v28  ;;  %v3486_v4 = vand.u32 2147483648, %v8432_v23  ;;  %v4307_v11 = vld [vmem:[#allocation2 + $0x1f2] sm:$0xff] }
 0x35e   : > { %v8468_v42 = vmin.f32 %v3532_v51, 16.0  ;;  %v2270_v7 = vadd.f32 %v2238_v53, %v2205_v3  ;;  %v3499_v37 = vadd.f32 0.05243302, %v3498_v36  ;;  %v1841_v31 = vadd.f32 %v1809_v41, %v1776_v14 }
 0x35f   : > { %3878 = vst [vmem:[%s6654_s13 + $0xd0] sm:$0xff] %v3846_v58  ;;  %v3477_v30 = vsub.f32 1.0, %v3476_v56  ;;  %v3512_v29 = vadd.f32 0.4994258, %v3511_v45  ;;  %vm3480_vm12 = vweird.f32 %v8432_v23  ;;  %vm3481_vm13 = vweird.f32 %v4224_v55 }
 0x360   : > { %v3534_v13 = vmul.f32 2.1237322e-06, %v8468_v42  ;;  %v3545_v25 = vmul.f32 3.8918573e-05, %v8468_v42  ;;  %v8480_v21 = vadd.f32 %v8477_v39, %v2270_v7  ;;  %v3484_v22 = vand.u32 2147483647, %v8432_v23  ;;  %vm3482_vm14 = vmor %vm3480_vm12, %vm3481_vm13 }
 0x361   : > { %v3478_v32 = vmul.f32 %v4224_v55, %v3477_v30  ;;  %v3513_v40 = vmul.f32 %v3512_v29, %v8412_v28  ;;  %v1874_v47 = vmul.f32 %v6246_v19, %v1581_v38  ;;  %v3487_v17 = vor.u32 1.1754944e-38, %v3486_v4 }
 0x362   : > { %v3535_v33 = vadd.f32 0.00028619796, %v3534_v13  ;;  %v3546_v62 = vadd.f32 0.001143296, %v3545_v25  ;;  %v3500_v46 = vmul.f32 %v3499_v37, %v8412_v28  ;;  %v8488_v26 = vmul.f32 0.70710677, %v8480_v21 }
 0x363   : > { %v3479_v43 = vadd.f32 %v4224_v55, %v3478_v32  ;;  %v8490_v18 = vadd.f32 1.0, %v3513_v40  ;;  %v1906_v54 = vadd.f32 %v1874_v47, %v1841_v31  ;;  %v3464_v59 = vmul.f32 %v3463_v27, %v8330_v48 }
 0x364   : > { %v3536_v24 = vmul.f32 %v3535_v33, %v8468_v42  ;;  %v3547_v23 = vmul.f32 %v3546_v62, %v8468_v42  ;;  %vm3485_vm15 = vcmp.eq.f32.partialorder %v3484_v22, 8.507059e+37  ;;  %v3572_v19 = vmul.f32 %v8488_v26, %v8488_v26  ;;  %v3815_v33 = vld [vmem:[%s4603_s15 + $0xd8] sm:$0xff] }
 0x365   : > { %v3483_v8 = vsel %vm3482_vm14, %v4224_v55, %v3479_v43  ;;  %4225 = vrcp.f32 %v8490_v18  ;;  %v1979_v50 = vmul.f32 %v4307_v11, %v6262_v6  ;;  %v3501_v61 = vadd.f32 0.18741608, %v3500_v46  ;;  %v1946_v6 = vld [vmem:[#allocation2 + $0x272] sm:$0xff] }
 0x366   : > { %v3488_v44 = vsel %vm3485_vm15, %v3487_v17, %v3483_v8  ;;  %v3537_v12 = vadd.f32 0.0036580483, %v3536_v24  ;;  %v3548_v36 = vadd.f32 0.014752088, %v3547_v23  ;;  %v8499_v16 = vmin.f32 %v3572_v19, 16.0 }
 0x367   : > { %v3489_v2 = vmul.f32 %v3488_v44, %v3464_v59  ;;  %v2011_v51 = vadd.f32 %v1979_v50, %v1906_v54  ;;  %v2044_v48 = vmul.f32 %v6267_v0, %v8152_v57  ;;  %v2335_v55 = vmul.f32 0.5, %v8322_v52 }
 0x368   : > { %v3549_v53 = vmul.f32 %v3548_v36, %v8468_v42  ;;  %v3574_v14 = vmul.f32 2.1237322e-06, %v8499_v16  ;;  %v3585_v58 = vmul.f32 3.8918573e-05, %v8499_v16  ;;  %v2109_v41 = vmul.f32 %v6285_v34, %v8297_v1 }
 0x369   : > { %v4076_v3 = vclamps-f32 %v3489_v2, 1.0  ;;  %v2076_v56 = vadd.f32 %v2044_v48, %v2011_v51  ;;  %v3502_v45 = vmul.f32 %v3501_v61, %v8412_v28  ;;  %v3538_v7 = vmul.f32 %v3537_v12, %v8468_v42 }
 0x36a   : > { %v3550_v0 = vadd.f32 0.112945676, %v3549_v53  ;;  %v3575_v52 = vadd.f32 0.00028619796, %v3574_v14  ;;  %v3586_v30 = vadd.f32 0.001143296, %v3585_v58  ;;  %v2174_v37 = vmul.f32 %v6287_v10, %v8416_v63 }
 0x36b   : > { %v3679_v27 = vadd.f32 1.0, %v4076_v3  ;;  %v4226_v57 = vpop.eup %4225  ;;  %v2141_v4 = vadd.f32 %v2109_v41, %v2076_v56  ;;  %v2239_v29 = vmul.f32 %v6307_v35, %v1946_v6  ;;  %v3503_v32 = vadd.f32 1.1283791, %v3502_v45 }
 0x36c   : > { %v3516_v31 = vmul.f32 %v4226_v57, %v8490_v18  ;;  %v3551_v34 = vmul.f32 %v3550_v0, %v8468_v42  ;;  %v3576_v1 = vmul.f32 %v3575_v52, %v8499_v16  ;;  %v3587_v28 = vmul.f32 %v3586_v30, %v8499_v16 }
 0x36d   : > { %v3711_v38 = vmul.f32 %v3679_v27, %v2335_v55  ;;  %v2206_v13 = vadd.f32 %v2174_v37, %v2141_v4  ;;  %v3539_v40 = vadd.f32 0.05243302, %v3538_v7  ;;  %v3526_v10 = vand.u32 2147483648, %v8490_v18 }
 0x36e   : > { %v3517_v22 = vsub.f32 1.0, %v3516_v31  ;;  %v3552_v63 = vadd.f32 0.4994258, %v3551_v34  ;;  %v3588_v62 = vadd.f32 0.014752088, %v3587_v28  ;;  %vm3521_vm0 = vweird.f32 %v4226_v57 }
 0x36f   : > { %v3747_v25 = vmul.f32 %v8216_v9, %v3711_v38  ;;  %v2271_v47 = vadd.f32 %v2239_v29, %v2206_v13  ;;  %v3524_v17 = vand.u32 2147483647, %v8490_v18  ;;  %v3577_v24 = vadd.f32 0.0036580483, %v3576_v1  ;;  %v3816_v29 = vld [vmem:[%s4603_s15 + $0xe0] sm:$0xff] }
 0x370   : > { %v3518_v43 = vmul.f32 %v4226_v57, %v3517_v22  ;;  %v3553_v46 = vmul.f32 %v3552_v63, %v8468_v42  ;;  %v3589_v23 = vmul.f32 %v3588_v62, %v8499_v16  ;;  %vm3520_vm1 = vweird.f32 %v8490_v18 }
 0x371   : > { %v3783_v35 = vadd.f32 %v8231_v60, %v3747_v25  ;;  %v8526_v54 = vadd.f32 %v8477_v39, %v2271_v47  ;;  %v3540_v19 = vmul.f32 %v3539_v40, %v8468_v42  ;;  %vm3522_vm2 = vmor %vm3520_vm1, %vm3521_vm0  ;;  %v3527_v44 = vor.u32 1.1754944e-38, %v3526_v10 }
 0x372   : > { %v3519_v8 = vadd.f32 %v4226_v57, %v3518_v43  ;;  %v3554_v11 = vadd.f32 1.0, %v3553_v46  ;;  %v3590_v50 = vadd.f32 0.112945676, %v3589_v23  ;;  %v3504_v2 = vmul.f32 %v3503_v32, %v8398_v49 }
 0x373   : > { %v3847_v59 = vadd.f32 %v3815_v33, %v3783_v35  ;;  %vm3525_vm3 = vcmp.eq.f32.partialorder %v3524_v17, 8.507059e+37  ;;  %v8533_v12 = vmul.f32 0.70710677, %v8526_v54  ;;  %v3578_v36 = vmul.f32 %v3577_v24, %v8499_v16 }
 0x374   : > { %v3523_v61 = vsel %vm3522_vm2, %v4226_v57, %v3519_v8  ;;  %4227 = vrcp.f32 %v3554_v11  ;;  %v3541_v18 = vadd.f32 0.18741608, %v3540_v19  ;;  %v3591_v48 = vmul.f32 %v3590_v50, %v8499_v16 }
 0x375   : > { %3879 = vst [vmem:[%s6654_s13 + $0xd8] sm:$0xff] %v3847_v59  ;;  %v3528_v39 = vsel %vm3525_vm3, %v3527_v44, %v3523_v61  ;;  %v3612_v55 = vmul.f32 %v8533_v12, %v8533_v12  ;;  %v3579_v14 = vadd.f32 0.05243302, %v3578_v36  ;;  %v2336_v58 = vmul.f32 0.5, %v8389_v15 }
 0x376   : > { %v3529_v51 = vmul.f32 %v3528_v39, %v3504_v2  ;;  %v3592_v53 = vadd.f32 0.4994258, %v3591_v48  ;;  %v3542_v56 = vmul.f32 %v3541_v18, %v8468_v42  ;;  %v3564_v42 = vand.u32 2147483647, %v3554_v11 }
 0x377   : > { %v8539_v49 = vmin.f32 %v3612_v55, 16.0  ;;  %v3580_v52 = vmul.f32 %v3579_v14, %v8499_v16  ;;  %v3566_v34 = vand.u32 2147483648, %v3554_v11  ;;  %vm3560_vm5 = vweird.f32 %v3554_v11 }
 0x378   : > { %v4077_v3 = vclamps-f32 %v3529_v51, 1.0  ;;  %v3593_v41 = vmul.f32 %v3592_v53, %v8499_v16  ;;  %v3543_v38 = vadd.f32 1.1283791, %v3542_v56  ;;  %vm3565_vm7 = vcmp.eq.f32.partialorder %v3564_v42, 8.507059e+37 }
 0x379   : > { %v3614_v45 = vmul.f32 2.1237322e-06, %v8539_v49  ;;  %v3625_v7 = vmul.f32 3.8918573e-05, %v8539_v49  ;;  %v3581_v32 = vadd.f32 0.18741608, %v3580_v52 }
 0x37a   : > { %v3680_v6 = vadd.f32 1.0, %v4077_v3  ;;  %v4228_v27 = vpop.eup %4227  ;;  %v3594_v30 = vadd.f32 1.0, %v3593_v41  ;;  %v3567_v10 = vor.u32 1.1754944e-38, %v3566_v34  ;;  %v3544_v62 = vmul.f32 %v3543_v38, %v8455_v20 }
 0x37b   : > { %v3556_v57 = vmul.f32 %v4228_v27, %v3554_v11  ;;  %v3615_v4 = vadd.f32 0.00028619796, %v3614_v45  ;;  %v3626_v37 = vadd.f32 0.001143296, %v3625_v7  ;;  %vm3561_vm4 = vweird.f32 %v4228_v27 }
 0x37c   : > { %v3712_v0 = vmul.f32 %v3680_v6, %v2336_v58  ;;  %4229 = vrcp.f32 %v3594_v30  ;;  %vm3562_vm6 = vmor %vm3560_vm5, %vm3561_vm4  ;;  %v3582_v46 = vmul.f32 %v3581_v32, %v8499_v16  ;;  %v2337_v11 = vmul.f32 0.5, %v8442_v5  ;;  %v3817_v58 = vld [vmem:[%s4603_s15 + $0xe8] sm:$0xff] }
 0x37d   : > { %v3557_v31 = vsub.f32 1.0, %v3556_v57  ;;  %v3616_v13 = vmul.f32 %v3615_v4, %v8539_v49  ;;  %v3627_v25 = vmul.f32 %v3626_v37, %v8539_v49  ;;  %v3606_v2 = vand.u32 2147483648, %v3594_v30 }
 0x37e   : > { %v3748_v15 = vmul.f32 %v8216_v9, %v3712_v0  ;;  %v3583_v50 = vadd.f32 1.1283791, %v3582_v46  ;;  %v3604_v36 = vand.u32 2147483647, %v3594_v30  ;;  %vm3600_vm9 = vweird.f32 %v3594_v30 }
 0x37f   : > { %v3558_v28 = vmul.f32 %v4228_v27, %v3557_v31  ;;  %v3628_v33 = vadd.f32 0.014752088, %v3627_v25  ;;  %v3617_v63 = vadd.f32 0.0036580483, %v3616_v13  ;;  %v3607_v55 = vor.u32 1.1754944e-38, %v3606_v2  ;;  %v3818_v31 = vld [vmem:[%s4603_s15 + $0xf0] sm:$0xff] }
 0x380   : > { %v3784_v1 = vadd.f32 %v8231_v60, %v3748_v15  ;;  %v3584_v53 = vmul.f32 %v3583_v50, %v8488_v26  ;;  %vm3605_vm11 = vcmp.eq.f32.partialorder %v3604_v36, 8.507059e+37  ;;  %v2338_v52 = vmul.f32 0.5, %v8480_v21 }
 0x381   : > { %v3559_v40 = vadd.f32 %v4228_v27, %v3558_v28  ;;  %v3629_v35 = vmul.f32 %v3628_v33, %v8539_v49  ;;  %v3618_v59 = vmul.f32 %v3617_v63, %v8539_v49  ;;  %v2339_v63 = vmul.f32 0.5, %v8526_v54 }
 0x382   : > { %v3848_v22 = vadd.f32 %v3816_v29, %v3784_v1  ;;  %v4230_v43 = vpop.eup %4229 }
 0x383   : > { %v3563_v47 = vsel %vm3562_vm6, %v4228_v27, %v3559_v40  ;;  %v3596_v23 = vmul.f32 %v4230_v43, %v3594_v30  ;;  %v3630_v8 = vadd.f32 0.112945676, %v3629_v35  ;;  %vm3601_vm8 = vweird.f32 %v4230_v43 }
 0x384   : > { %3880 = vst [vmem:[%s6654_s13 + $0xe0] sm:$0xff] %v3848_v22  ;;  %v3568_v17 = vsel %vm3565_vm7, %v3567_v10, %v3563_v47  ;;  %v3619_v51 = vadd.f32 0.05243302, %v3618_v59  ;;  %vm3602_vm10 = vmor %vm3600_vm9, %vm3601_vm8 }
 0x385   : > { %v3569_v24 = vmul.f32 %v3568_v17, %v3544_v62  ;;  %v3597_v44 = vsub.f32 1.0, %v3596_v23  ;;  %v3631_v20 = vmul.f32 %v3630_v8, %v8539_v49 }
 0x386   : > { %v3620_v56 = vmul.f32 %v3619_v51, %v8539_v49 }
 0x387   : > { %v4078_v19 = vclamps-f32 %v3569_v24, 1.0  ;;  %v3598_v39 = vmul.f32 %v4230_v43, %v3597_v44  ;;  %v3632_v16 = vadd.f32 0.4994258, %v3631_v20 }
 0x388   : > { %v3621_v57 = vadd.f32 0.18741608, %v3620_v56 }
 0x389   : > { %v3681_v61 = vadd.f32 1.0, %v4078_v19  ;;  %v3599_v48 = vadd.f32 %v4230_v43, %v3598_v39  ;;  %v3633_v3 = vmul.f32 %v3632_v16, %v8539_v49 }
 0x38a   : > { %v3622_v37 = vmul.f32 %v3621_v57, %v8539_v49 }
 0x38b   : > { %v3713_v18 = vmul.f32 %v3681_v61, %v2337_v11  ;;  %v3603_v14 = vsel %vm3602_vm10, %v4230_v43, %v3599_v48  ;;  %v3634_v41 = vadd.f32 1.0, %v3633_v3 }
 0x38c   : > { %v3608_v6 = vsel %vm3605_vm11, %v3607_v55, %v3603_v14  ;;  %v3623_v34 = vadd.f32 1.1283791, %v3622_v37 }
 0x38d   : > { %v3749_v5 = vmul.f32 %v8216_v9, %v3713_v18  ;;  %v3609_v45 = vmul.f32 %v3608_v6, %v3584_v53  ;;  %4231 = vrcp.f32 %v3634_v41  ;;  %v3646_v1 = vand.u32 2147483648, %v3634_v41 }
 0x38e   : > { %v3644_v21 = vand.u32 2147483647, %v3634_v41  ;;  %vm3640_vm13 = vweird.f32 %v3634_v41  ;;  %v3624_v32 = vmul.f32 %v3623_v34, %v8533_v12  ;;  %v3819_v12 = vld [vmem:[%s4603_s15 + $0xf8] sm:$0xff] }
 0x38f   : > { %v3785_v27 = vadd.f32 %v8231_v60, %v3749_v5  ;;  %v4079_v0 = vclamps-f32 %v3609_v45, 1.0  ;;  %v3647_v49 = vor.u32 1.1754944e-38, %v3646_v1 }
 0x390   : > { %vm3645_vm15 = vcmp.eq.f32.partialorder %v3644_v21, 8.507059e+37 }
 0x391   : > { %v3849_v7 = vadd.f32 %v3817_v58, %v3785_v27  ;;  %v3682_v26 = vadd.f32 1.0, %v4079_v0 }
 0x393   : > { %3881 = vst [vmem:[%s6654_s13 + $0xe8] sm:$0xff] %v3849_v7  ;;  %v3714_v30 = vmul.f32 %v3682_v26, %v2338_v52  ;;  %v4232_v4 = vpop.eup %4231 }
 0x394   : > { %v3636_v38 = vmul.f32 %v4232_v4, %v3634_v41  ;;  %vm3641_vm12 = vweird.f32 %v4232_v4 }
 0x395   : > { %v3750_v15 = vmul.f32 %v8216_v9, %v3714_v30  ;;  %vm3642_vm14 = vmor %vm3640_vm13, %vm3641_vm12 }
 0x396   : > { %v3637_v42 = vsub.f32 1.0, %v3636_v38 }
 0x397   : > { %v3786_v29 = vadd.f32 %v8231_v60, %v3750_v15 }
 0x398   : > { %v3638_v13 = vmul.f32 %v4232_v4, %v3637_v42 }
 0x399   : > { %v3850_v28 = vadd.f32 %v3818_v31, %v3786_v29 }
 0x39a   : > { %v3639_v25 = vadd.f32 %v4232_v4, %v3638_v13 }
 0x39b   : > { %3882 = vst [vmem:[%s6654_s13 + $0xf0] sm:$0xff] %v3850_v28 }
 0x39c   : > { %v3643_v22 = vsel %vm3642_vm14, %v4232_v4, %v3639_v25 }
 0x39d   : > { %v3648_v40 = vsel %vm3645_vm15, %v3647_v49, %v3643_v22 }
 0x39e   : > { %v3649_v33 = vmul.f32 %v3648_v40, %v3624_v32 }
 0x3a0   : > { %v4080_v10 = vclamps-f32 %v3649_v33, 1.0 }
 0x3a2   : > { %v3683_v62 = vadd.f32 1.0, %v4080_v10 }
 0x3a4   : > { %v3715_v47 = vmul.f32 %v3683_v62, %v2339_v63 }
 0x3a6   : > { %v3751_v35 = vmul.f32 %v8216_v9, %v3715_v47 }
 0x3a8   : > { %v3787_v43 = vadd.f32 %v8231_v60, %v3751_v35 }
 0x3aa   : > { %v3851_v17 = vadd.f32 %v3819_v12, %v3787_v43 }
 0x3ac   : > { %3883 = vst [vmem:[%s6654_s13 + $0xf8] sm:$0xff] %v3851_v17 }
 0x3ad   : > { %4395 = shalt.err (!%p4392_p0)
}
 0x3ae   : > { %s4460_s14 = smov 128   ;;  %s4461_s13 = smov 8  }
 0x3af   : > { %4094 = dma.vmem_to_hbm [thread:$0]  (%p4574_p5), %s3899_s1, 4096, %s3901_s23, %s3885_s21, %s4460_s14, %s4460_s14, %s4461_s13  }
 0x3b0 PF: > { %s9176_s6 = sld [smem:[#allocation12_spill]]  ;;  %s3915_s7 = sand.u32 1, %s4434_s18  }
 0x3b1   : > { %p4105_p3 = pnand %p4041_p11, %p4541_p6  ;;  %s3916_s9 = scalar_lea.sflag [#allocation5], %s3915_s7 }
 0x3b3   : > { %p4106_p7 = pneg %p4105_p3 }
 0x3b5   : > { %4429 = dma.done.wait (%p4106_p7), %s3916_s9, 4096  }
 0x3b6   : > { %4431 = vsyncadd (%p4106_p7), %s3916_s9, 4294963200  ;;  %s22_s23 = sadd.s32 1, %s9176_s6   ;;  %s9177_s16 = sld [smem:[#allocation13_spill]] }
 0x3b7   : > { %p19_p9 = scmp.ge.s32.totalorder %s22_s23, 4   ;;  %s9178_s18 = smov %s4438_s19 }
 0x3b8   : > { %s9179_s19 = smov %s4442_s20  ;;  %s9180_s20 = smov %s4583_s30 }
 0x3b9   : > { %s9181_s21 = smov %s4450_s22  ;;  %21 = sbr.rel (!%p19_p9) target bundleno = 9 (0x9), region = 101 }
 0x3bc   : > { %s9182_s22 = smov %s9177_s16 }
 0x3be   :  { %3922 = vsyncpa [#allocation4], 1 }
 0x3bf   :  { %3924 = vsyncpa [#allocation4 + $0x1], 1 }
 0x3c0   :  { %3925 = vsyncpa [#allocation7], 1 }
 0x3c1   :  { %3926 = vsyncpa [#allocation5], 1 }
 0x3c2   :  { %3928 = vsyncpa [#allocation5 + $0x1], 1 }

</bundles_post_ra>
